<compile_context>
chip_gen: v7x
topology: tpu7x:2x2x1
jax: 0.10.0
libtpu: 0.0.40
codegen_flags: <defaults>
</compile_context>

<pallas_src>
import numpy as np
import jax
import jax.numpy as jnp
from jax.experimental import pallas as pl
from jax.experimental.pallas import tpu as pltpu

EPS = 1e-5


# ---------------------------------------------------------------------------
# Fused kernel: one batch element per grid step.
# ---------------------------------------------------------------------------
def _upblock_kernel(down_ref, skip_ref,
                    wt00_ref, wt01_ref, wt10_ref, wt11_ref, bt_ref,
                    w1_ref, s1_ref, c1_ref, w2_ref, s2_ref, c2_ref,
                    out_ref,
                    up_scr, cat_scr, col1_scr, mid_scr, col2_scr):
    _, H, W, Cin = down_ref.shape
    _, Hp, Wp, Cskip = skip_ref.shape
    Cout = out_ref.shape[3]
    Ccat = Cout + Cskip
    N = Hp * Wp
    f32 = jnp.float32

    # ------------- stage 1: ConvTranspose2d(k=2, s=2) as 4 matmuls ----------
    x2 = down_ref[...].reshape(H * W, Cin)
    bt = bt_ref[...]

    def tconv(w_ref):
        return jnp.dot(x2, w_ref[...], preferred_element_type=f32) + bt

    # cat_scr layout: (row_pair q, row_parity s, padded_col, channel) with
    # padded row r = 2*q + s.  Zero ONLY the 1-pixel halo.
    cat_scr[0:1, 0:1, :, :] = jnp.zeros((1, 1, Wp + 2, Ccat), f32)          # r = 0
    cat_scr[H:H + 1, 1:2, :, :] = jnp.zeros((1, 1, Wp + 2, Ccat), f32)      # r = Hp+1
    cat_scr[:, :, 0:1, :] = jnp.zeros((H + 1, 2, 1, Ccat), f32)             # col 0
    cat_scr[:, :, Wp + 1:Wp + 2, :] = jnp.zeros((H + 1, 2, 1, Ccat), f32)   # col Wp+1

    # Sub-pixel interleave: for each output-row parity `a`, interleave the two
    # column phases through the small up_scr scratch, then drop the rows into
    # the padded concat scratch (all static slices, minor dim preserved).
    for a, (wb0, wb1) in enumerate(((wt00_ref, wt01_ref),
                                    (wt10_ref, wt11_ref))):
        up_scr[:, :, 0:1, :] = tconv(wb0).reshape(H, W, 1, Cout)
        up_scr[:, :, 1:2, :] = tconv(wb1).reshape(H, W, 1, Cout)
        rows = up_scr[...].reshape(H, Wp, Cout)          # upsample rows 2i + a
        if a == 0:
            cat_scr[0:H, 1:2, 1:Wp + 1, 0:Cout] = rows.reshape(H, 1, Wp, Cout)
        else:
            cat_scr[1:H + 1, 0:1, 1:Wp + 1, 0:Cout] = rows.reshape(H, 1, Wp, Cout)

    # Channel-concat the skip connection straight into the padded scratch.
    skip4 = skip_ref[...].reshape(H, 2, Wp, Cskip)       # (i, parity, x, c)
    cat_scr[0:H, 1:2, 1:Wp + 1, Cout:Ccat] = skip4[:, 0:1, :, :]
    cat_scr[1:H + 1, 0:1, 1:Wp + 1, Cout:Ccat] = skip4[:, 1:2, :, :]

    # ------------- stage 2: conv1 (3x3, pad=1) + folded BN + ReLU -----------
    xpad = cat_scr[...].reshape(Hp + 2, Wp + 2, Ccat)
    for dy in range(3):
        for dx in range(3):
            t = dy * 3 + dx
            col1_scr[:, t * Ccat:(t + 1) * Ccat] = (
                xpad[dy:dy + Hp, dx:dx + Wp, :].reshape(N, Ccat))
    h = jnp.dot(col1_scr[...], w1_ref[...], preferred_element_type=f32)
    h = jnp.maximum(h * s1_ref[...] + c1_ref[...], 0.0)

    # ------------- stage 3: conv2 (3x3, pad=1) + folded BN + ReLU -----------
    mid_scr[0:1, :, :] = jnp.zeros((1, Wp + 2, Cout), f32)
    mid_scr[Hp + 1:Hp + 2, :, :] = jnp.zeros((1, Wp + 2, Cout), f32)
    mid_scr[:, 0:1, :] = jnp.zeros((Hp + 2, 1, Cout), f32)
    mid_scr[:, Wp + 1:Wp + 2, :] = jnp.zeros((Hp + 2, 1, Cout), f32)
    mid_scr[1:Hp + 1, 1:Wp + 1, :] = h.reshape(Hp, Wp, Cout)

    for dy in range(3):
        for dx in range(3):
            t = dy * 3 + dx
            col2_scr[:, t * Cout:(t + 1) * Cout] = (
                mid_scr[dy:dy + Hp, dx:dx + Wp, :].reshape(N, Cout))
    o = jnp.dot(col2_scr[...], w2_ref[...], preferred_element_type=f32)
    o = jnp.maximum(o * s2_ref[...] + c2_ref[...], 0.0)

    out_ref[...] = o.reshape(1, Hp, Wp, Cout).astype(out_ref.dtype)


# ---------------------------------------------------------------------------
# Wrapper: NCHW in / NCHW out (PyTorch convention).
# ---------------------------------------------------------------------------
def upblock_forward(down_nchw, skip_nchw, p):
    B, Cin, H, W = down_nchw.shape
    Cout = p["wt00"].shape[1]
    Cskip = skip_nchw.shape[1]
    Ccat = Cout + Cskip
    Hp, Wp = 2 * H, 2 * W

    # TODO(synk): keep the surrounding model NHWC to avoid these transposes.
    down = jnp.transpose(down_nchw, (0, 2, 3, 1))      # NHWC
    skip = jnp.transpose(skip_nchw, (0, 2, 3, 1))      # NHWC

    def full2(r, c):
        return pl.BlockSpec((r, c), lambda b: (0, 0))

    out_nhwc = pl.pallas_call(
        _upblock_kernel,
        out_shape=jax.ShapeDtypeStruct((B, Hp, Wp, Cout), jnp.float32),
        grid=(B,),
        in_specs=[
            pl.BlockSpec((1, H, W, Cin), lambda b: (b, 0, 0, 0)),
            pl.BlockSpec((1, Hp, Wp, Cskip), lambda b: (b, 0, 0, 0)),
            full2(Cin, Cout), full2(Cin, Cout),
            full2(Cin, Cout), full2(Cin, Cout),
            full2(1, Cout),
            full2(9 * Ccat, Cout), full2(1, Cout), full2(1, Cout),
            full2(9 * Cout, Cout), full2(1, Cout), full2(1, Cout),
        ],
        out_specs=pl.BlockSpec((1, Hp, Wp, Cout), lambda b: (b, 0, 0, 0)),
        scratch_shapes=[
            pltpu.VMEM((H, W, 2, Cout), jnp.float32),          # column interleave
            pltpu.VMEM((H + 1, 2, Wp + 2, Ccat), jnp.float32),  # padded concat
            pltpu.VMEM((Hp * Wp, 9 * Ccat), jnp.float32),       # im2col conv1
            pltpu.VMEM((Hp + 2, Wp + 2, Cout), jnp.float32),    # padded mid act
            pltpu.VMEM((Hp * Wp, 9 * Cout), jnp.float32),       # im2col conv2
        ],
        compiler_params=pltpu.CompilerParams(
            dimension_semantics=("parallel",),
            vmem_limit_bytes=48 * 1024 * 1024,
        ),
    )(down, skip, p["wt00"], p["wt01"], p["wt10"], p["wt11"], p["bt"],
      p["w1"], p["s1"], p["c1"], p["w2"], p["s2"], p["c2"])

    return jnp.transpose(out_nhwc, (0, 3, 1, 2))       # back to NCHW


# ---------------------------------------------------------------------------
# Pure-JAX reference (PyTorch-faithful, NCHW) for correctness checking.
# ---------------------------------------------------------------------------
def _reference(down, skip, raw):
    B, Cin, H, W = down.shape
    Wt, bt = raw["Wt"], raw["bt"]
    Cout = Wt.shape[1]
    # ConvTranspose2d(k=2, s=2): y[n,o,2i+a,2j+b] = sum_c x[n,c,i,j] * W[c,o,a,b]
    t = jnp.einsum("ncij,coab->noiajb", down, Wt,
                   precision=jax.lax.Precision.HIGHEST)
    up = t.reshape(B, Cout, 2 * H, 2 * W) + bt[None, :, None, None]

    x = jnp.concatenate([up, skip], axis=1)

    def conv3x3(x, w, b):
        y = jax.lax.conv_general_dilated(
            x, w, (1, 1), ((1, 1), (1, 1)),
            dimension_numbers=("NCHW", "OIHW", "NCHW"),
            precision=jax.lax.Precision.HIGHEST)
        return y + b[None, :, None, None]

    def bn(x, g, be, m, v):
        s = g / jnp.sqrt(v + EPS)
        return s[None, :, None, None] * (x - m[None, :, None, None]) \
            + be[None, :, None, None]

    x = jnp.maximum(bn(conv3x3(x, raw["W1"], raw["b1"]),
                       raw["g1"], raw["be1"], raw["m1"], raw["v1"]), 0.0)
    x = jnp.maximum(bn(conv3x3(x, raw["W2"], raw["b2"]),
                       raw["g2"], raw["be2"], raw["m2"], raw["v2"]), 0.0)
    return x


def _make_params(key, Cin, Cout, Cskip):
    Ccat = Cout + Cskip
    ks = jax.random.split(key, 14)
    raw = dict(
        Wt=0.1 * jax.random.normal(ks[0], (Cin, Cout, 2, 2), jnp.float32),
        bt=0.1 * jax.random.normal(ks[1], (Cout,), jnp.float32),
        W1=0.1 * jax.random.normal(ks[2], (Cout, Ccat, 3, 3), jnp.float32),
        b1=0.1 * jax.random.normal(ks[3], (Cout,), jnp.float32),
        g1=1.0 + 0.1 * jax.random.normal(ks[4], (Cout,), jnp.float32),
        be1=0.1 * jax.random.normal(ks[5], (Cout,), jnp.float32),
        m1=0.1 * jax.random.normal(ks[6], (Cout,), jnp.float32),
        v1=1.0 + 0.5 * jax.random.uniform(ks[7], (Cout,), jnp.float32),
        W2=0.1 * jax.random.normal(ks[8], (Cout, Cout, 3, 3), jnp.float32),
        b2=0.1 * jax.random.normal(ks[9], (Cout,), jnp.float32),
        g2=1.0 + 0.1 * jax.random.normal(ks[10], (Cout,), jnp.float32),
        be2=0.1 * jax.random.normal(ks[11], (Cout,), jnp.float32),
        m2=0.1 * jax.random.normal(ks[12], (Cout,), jnp.float32),
        v2=1.0 + 0.5 * jax.random.uniform(ks[13], (Cout,), jnp.float32),
    )
    # Kernel-side packing: per-subpixel tconv weights, im2col conv weights
    # (tap-major rows), folded BN scale/shift (conv bias folded in).
    s1 = raw["g1"] / jnp.sqrt(raw["v1"] + EPS)
    c1 = raw["be1"] + s1 * (raw["b1"] - raw["m1"])
    s2 = raw["g2"] / jnp.sqrt(raw["v2"] + EPS)
    c2 = raw["be2"] + s2 * (raw["b2"] - raw["m2"])
    p = dict(
        wt00=raw["Wt"][:, :, 0, 0], wt01=raw["Wt"][:, :, 0, 1],
        wt10=raw["Wt"][:, :, 1, 0], wt11=raw["Wt"][:, :, 1, 1],
        bt=raw["bt"].reshape(1, Cout),
        w1=raw["W1"].transpose(2, 3, 1, 0).reshape(9 * Ccat, Cout),
        w2=raw["W2"].transpose(2, 3, 1, 0).reshape(9 * Cout, Cout),
        s1=s1.reshape(1, Cout), c1=c1.reshape(1, Cout),
        s2=s2.reshape(1, Cout), c2=c2.reshape(1, Cout),
    )
    return raw, p


if __name__ == "__main__":
    key = jax.random.PRNGKey(0)
    k_down, k_skip, k_par = jax.random.split(key, 3)

    # UpBlock(in_channels=8, out_channels=4, 'conv_transpose')
    B, Cin, Cout, H, W = 2, 8, 4, 8, 8
    Cskip = Cin - Cout
    down = jax.random.normal(k_down, (B, Cin, H, W), jnp.float32)        # NCHW
    skip = jax.random.normal(k_skip, (B, Cskip, 2 * H, 2 * W), jnp.float32)

    raw, params = _make_params(k_par, Cin, Cout, Cskip)

    out = upblock_forward(down, skip, params)
    out = jax.block_until_ready(out)

    ref = jax.block_until_ready(_reference(down, skip, raw))
    np.testing.assert_allclose(np.asarray(out), np.asarray(ref),
                               rtol=1e-3, atol=1e-3)
    assert out.shape == (B, Cout, 2 * H, 2 * W)
    print("KERNEL_OK")
</pallas_src>

<mosaic_0001>
module attributes {stable_mosaic.version = 11 : i64} {
  func.func @_upblock_kernel(%arg0: i32, %arg1: memref<1x8x8x8xf32, #tpu.memory_space<vmem>>, %arg2: memref<1x16x16x4xf32, #tpu.memory_space<vmem>>, %arg3: memref<8x4xf32, #tpu.memory_space<vmem>>, %arg4: memref<8x4xf32, #tpu.memory_space<vmem>>, %arg5: memref<8x4xf32, #tpu.memory_space<vmem>>, %arg6: memref<8x4xf32, #tpu.memory_space<vmem>>, %arg7: memref<1x4xf32, #tpu.memory_space<vmem>>, %arg8: memref<72x4xf32, #tpu.memory_space<vmem>>, %arg9: memref<1x4xf32, #tpu.memory_space<vmem>>, %arg10: memref<1x4xf32, #tpu.memory_space<vmem>>, %arg11: memref<36x4xf32, #tpu.memory_space<vmem>>, %arg12: memref<1x4xf32, #tpu.memory_space<vmem>>, %arg13: memref<1x4xf32, #tpu.memory_space<vmem>>, %arg14: memref<1x16x16x4xf32, #tpu.memory_space<vmem>>, %arg15: memref<8x8x2x4xf32, #tpu.memory_space<vmem>>, %arg16: memref<9x2x18x8xf32, #tpu.memory_space<vmem>>, %arg17: memref<256x72xf32, #tpu.memory_space<vmem>>, %arg18: memref<18x18x4xf32, #tpu.memory_space<vmem>>, %arg19: memref<256x36xf32, #tpu.memory_space<vmem>>) attributes {dimension_semantics = [#tpu.dimension_semantics<parallel>], iteration_bounds = array<i64: 2>, scalar_prefetch = 0 : i64, scratch_operands = 5 : i64, tpu.core_type = #tpu.core_type<tc>, window_params = [{transform_indices = @transform_0, window_bounds = array<i64: 1, 8, 8, 8>}, {transform_indices = @transform_1, window_bounds = array<i64: 1, 16, 16, 4>}, {pipeline_mode = #tpu.pipeline_mode<synchronous>, transform_indices = @transform_2, window_bounds = array<i64: 8, 4>}, {pipeline_mode = #tpu.pipeline_mode<synchronous>, transform_indices = @transform_3, window_bounds = array<i64: 8, 4>}, {pipeline_mode = #tpu.pipeline_mode<synchronous>, transform_indices = @transform_4, window_bounds = array<i64: 8, 4>}, {pipeline_mode = #tpu.pipeline_mode<synchronous>, transform_indices = @transform_5, window_bounds = array<i64: 8, 4>}, {pipeline_mode = #tpu.pipeline_mode<synchronous>, transform_indices = @transform_6, window_bounds = array<i64: 1, 4>}, {pipeline_mode = #tpu.pipeline_mode<synchronous>, transform_indices = @transform_7, window_bounds = array<i64: 72, 4>}, {pipeline_mode = #tpu.pipeline_mode<synchronous>, transform_indices = @transform_8, window_bounds = array<i64: 1, 4>}, {pipeline_mode = #tpu.pipeline_mode<synchronous>, transform_indices = @transform_9, window_bounds = array<i64: 1, 4>}, {pipeline_mode = #tpu.pipeline_mode<synchronous>, transform_indices = @transform_10, window_bounds = array<i64: 36, 4>}, {pipeline_mode = #tpu.pipeline_mode<synchronous>, transform_indices = @transform_11, window_bounds = array<i64: 1, 4>}, {pipeline_mode = #tpu.pipeline_mode<synchronous>, transform_indices = @transform_12, window_bounds = array<i64: 1, 4>}, {transform_indices = @transform_13, window_bounds = array<i64: 1, 16, 16, 4>}]} {
    %c0 = arith.constant 0 : index
    %c0_0 = arith.constant 0 : index
    %c0_1 = arith.constant 0 : index
    %c0_2 = arith.constant 0 : index
    %0 = vector.load %arg1[%c0, %c0_0, %c0_1, %c0_2] : memref<1x8x8x8xf32, #tpu.memory_space<vmem>>, vector<1x8x8x8xf32>
    %1 = vector.shape_cast %0 : vector<1x8x8x8xf32> to vector<64x8xf32>
    %c0_3 = arith.constant 0 : index
    %c0_4 = arith.constant 0 : index
    %2 = vector.load %arg7[%c0_3, %c0_4] : memref<1x4xf32, #tpu.memory_space<vmem>>, vector<1x4xf32>
    %cst = arith.constant 0.000000e+00 : f32
    %3 = vector.broadcast %cst : f32 to vector<1x1x18x8xf32>
    %c0_5 = arith.constant 0 : index
    %c0_6 = arith.constant 0 : index
    %c0_7 = arith.constant 0 : index
    %c0_8 = arith.constant 0 : index
    %4 = vector.load %arg16[%c0_5, %c0_6, %c0_7, %c0_8] : memref<9x2x18x8xf32, #tpu.memory_space<vmem>>, vector<1x1x18x8xf32>
    tpu.vector_store %arg16[%c0_5, %c0_6, %c0_7, %c0_8], %3 {strides = array<i32>} : memref<9x2x18x8xf32, #tpu.memory_space<vmem>>, vector<1x1x18x8xf32>,
    %cst_9 = arith.constant 0.000000e+00 : f32
    %5 = vector.broadcast %cst_9 : f32 to vector<1x1x18x8xf32>
    %c8 = arith.constant 8 : index
    %c1 = arith.constant 1 : index
    %c0_10 = arith.constant 0 : index
    %c0_11 = arith.constant 0 : index
    %6 = vector.load %arg16[%c8, %c1, %c0_10, %c0_11] : memref<9x2x18x8xf32, #tpu.memory_space<vmem>>, vector<1x1x18x8xf32>
    tpu.vector_store %arg16[%c8, %c1, %c0_10, %c0_11], %5 {strides = array<i32>} : memref<9x2x18x8xf32, #tpu.memory_space<vmem>>, vector<1x1x18x8xf32>,
    %cst_12 = arith.constant 0.000000e+00 : f32
    %7 = vector.broadcast %cst_12 : f32 to vector<9x2x1x8xf32>
    %c0_13 = arith.constant 0 : index
    %c0_14 = arith.constant 0 : index
    %c0_15 = arith.constant 0 : index
    %c0_16 = arith.constant 0 : index
    %8 = vector.load %arg16[%c0_13, %c0_14, %c0_15, %c0_16] : memref<9x2x18x8xf32, #tpu.memory_space<vmem>>, vector<9x2x1x8xf32>
    tpu.vector_store %arg16[%c0_13, %c0_14, %c0_15, %c0_16], %7 {strides = array<i32>} : memref<9x2x18x8xf32, #tpu.memory_space<vmem>>, vector<9x2x1x8xf32>,
    %cst_17 = arith.constant 0.000000e+00 : f32
    %9 = vector.broadcast %cst_17 : f32 to vector<9x2x1x8xf32>
    %c0_18 = arith.constant 0 : index
    %c0_19 = arith.constant 0 : index
    %c17 = arith.constant 17 : index
    %c0_20 = arith.constant 0 : index
    %10 = vector.load %arg16[%c0_18, %c0_19, %c17, %c0_20] : memref<9x2x18x8xf32, #tpu.memory_space<vmem>>, vector<9x2x1x8xf32>
    tpu.vector_store %arg16[%c0_18, %c0_19, %c17, %c0_20], %9 {strides = array<i32>} : memref<9x2x18x8xf32, #tpu.memory_space<vmem>>, vector<9x2x1x8xf32>,
    %c0_21 = arith.constant 0 : index
    %c0_22 = arith.constant 0 : index
    %11 = vector.load %arg3[%c0_21, %c0_22] : memref<8x4xf32, #tpu.memory_space<vmem>>, vector<8x4xf32>
    %cst_23 = arith.constant dense<0.000000e+00> : vector<64x4xf32>
    %12 = tpu.matmul %1, %11, %cst_23 {dimension_numbers = #tpu.dot_dimension_numbers<[1], [0], [0], [1], [0, 0, 1, 1], [], []>} : vector<64x8xf32>, vector<8x4xf32>, vector<64x4xf32> -> vector<64x4xf32>
    %13 = vector.broadcast %2 : vector<1x4xf32> to vector<64x4xf32>
    %14 = arith.addf %12, %13 : vector<64x4xf32>
    %15 = vector.shape_cast %14 : vector<64x4xf32> to vector<8x8x1x4xf32>
    %c0_24 = arith.constant 0 : index
    %c0_25 = arith.constant 0 : index
    %c0_26 = arith.constant 0 : index
    %c0_27 = arith.constant 0 : index
    %16 = vector.load %arg15[%c0_24, %c0_25, %c0_26, %c0_27] : memref<8x8x2x4xf32, #tpu.memory_space<vmem>>, vector<8x8x1x4xf32>
    tpu.vector_store %arg15[%c0_24, %c0_25, %c0_26, %c0_27], %15 {strides = array<i32>} : memref<8x8x2x4xf32, #tpu.memory_space<vmem>>, vector<8x8x1x4xf32>,
    %c0_28 = arith.constant 0 : index
    %c0_29 = arith.constant 0 : index
    %17 = vector.load %arg4[%c0_28, %c0_29] : memref<8x4xf32, #tpu.memory_space<vmem>>, vector<8x4xf32>
    %cst_30 = arith.constant dense<0.000000e+00> : vector<64x4xf32>
    %18 = tpu.matmul %1, %17, %cst_30 {dimension_numbers = #tpu.dot_dimension_numbers<[1], [0], [0], [1], [0, 0, 1, 1], [], []>} : vector<64x8xf32>, vector<8x4xf32>, vector<64x4xf32> -> vector<64x4xf32>
    %19 = vector.broadcast %2 : vector<1x4xf32> to vector<64x4xf32>
    %20 = arith.addf %18, %19 : vector<64x4xf32>
    %21 = vector.shape_cast %20 : vector<64x4xf32> to vector<8x8x1x4xf32>
    %c0_31 = arith.constant 0 : index
    %c0_32 = arith.constant 0 : index
    %c1_33 = arith.constant 1 : index
    %c0_34 = arith.constant 0 : index
    %22 = vector.load %arg15[%c0_31, %c0_32, %c1_33, %c0_34] : memref<8x8x2x4xf32, #tpu.memory_space<vmem>>, vector<8x8x1x4xf32>
    tpu.vector_store %arg15[%c0_31, %c0_32, %c1_33, %c0_34], %21 {strides = array<i32>} : memref<8x8x2x4xf32, #tpu.memory_space<vmem>>, vector<8x8x1x4xf32>,
    %c0_35 = arith.constant 0 : index
    %c0_36 = arith.constant 0 : index
    %c0_37 = arith.constant 0 : index
    %c0_38 = arith.constant 0 : index
    %23 = vector.load %arg15[%c0_35, %c0_36, %c0_37, %c0_38] : memref<8x8x2x4xf32, #tpu.memory_space<vmem>>, vector<8x8x2x4xf32>
    %24 = vector.shape_cast %23 : vector<8x8x2x4xf32> to vector<8x16x4xf32>
    %25 = vector.shape_cast %24 : vector<8x16x4xf32> to vector<8x1x16x4xf32>
    %c0_39 = arith.constant 0 : index
    %c1_40 = arith.constant 1 : index
    %c1_41 = arith.constant 1 : index
    %c0_42 = arith.constant 0 : index
    %26 = vector.load %arg16[%c0_39, %c1_40, %c1_41, %c0_42] : memref<9x2x18x8xf32, #tpu.memory_space<vmem>>, vector<8x1x16x4xf32>
    tpu.vector_store %arg16[%c0_39, %c1_40, %c1_41, %c0_42], %25 {strides = array<i32>} : memref<9x2x18x8xf32, #tpu.memory_space<vmem>>, vector<8x1x16x4xf32>,
    %c0_43 = arith.constant 0 : index
    %c0_44 = arith.constant 0 : index
    %27 = vector.load %arg5[%c0_43, %c0_44] : memref<8x4xf32, #tpu.memory_space<vmem>>, vector<8x4xf32>
    %cst_45 = arith.constant dense<0.000000e+00> : vector<64x4xf32>
    %28 = tpu.matmul %1, %27, %cst_45 {dimension_numbers = #tpu.dot_dimension_numbers<[1], [0], [0], [1], [0, 0, 1, 1], [], []>} : vector<64x8xf32>, vector<8x4xf32>, vector<64x4xf32> -> vector<64x4xf32>
    %29 = vector.broadcast %2 : vector<1x4xf32> to vector<64x4xf32>
    %30 = arith.addf %28, %29 : vector<64x4xf32>
    %31 = vector.shape_cast %30 : vector<64x4xf32> to vector<8x8x1x4xf32>
    %c0_46 = arith.constant 0 : index
    %c0_47 = arith.constant 0 : index
    %c0_48 = arith.constant 0 : index
    %c0_49 = arith.constant 0 : index
    %32 = vector.load %arg15[%c0_46, %c0_47, %c0_48, %c0_49] : memref<8x8x2x4xf32, #tpu.memory_space<vmem>>, vector<8x8x1x4xf32>
    tpu.vector_store %arg15[%c0_46, %c0_47, %c0_48, %c0_49], %31 {strides = array<i32>} : memref<8x8x2x4xf32, #tpu.memory_space<vmem>>, vector<8x8x1x4xf32>,
    %c0_50 = arith.constant 0 : index
    %c0_51 = arith.constant 0 : index
    %33 = vector.load %arg6[%c0_50, %c0_51] : memref<8x4xf32, #tpu.memory_space<vmem>>, vector<8x4xf32>
    %cst_52 = arith.constant dense<0.000000e+00> : vector<64x4xf32>
    %34 = tpu.matmul %1, %33, %cst_52 {dimension_numbers = #tpu.dot_dimension_numbers<[1], [0], [0], [1], [0, 0, 1, 1], [], []>} : vector<64x8xf32>, vector<8x4xf32>, vector<64x4xf32> -> vector<64x4xf32>
    %35 = vector.broadcast %2 : vector<1x4xf32> to vector<64x4xf32>
    %36 = arith.addf %34, %35 : vector<64x4xf32>
    %37 = vector.shape_cast %36 : vector<64x4xf32> to vector<8x8x1x4xf32>
    %c0_53 = arith.constant 0 : index
    %c0_54 = arith.constant 0 : index
    %c1_55 = arith.constant 1 : index
    %c0_56 = arith.constant 0 : index
    %38 = vector.load %arg15[%c0_53, %c0_54, %c1_55, %c0_56] : memref<8x8x2x4xf32, #tpu.memory_space<vmem>>, vector<8x8x1x4xf32>
    tpu.vector_store %arg15[%c0_53, %c0_54, %c1_55, %c0_56], %37 {strides = array<i32>} : memref<8x8x2x4xf32, #tpu.memory_space<vmem>>, vector<8x8x1x4xf32>,
    %c0_57 = arith.constant 0 : index
    %c0_58 = arith.constant 0 : index
    %c0_59 = arith.constant 0 : index
    %c0_60 = arith.constant 0 : index
    %39 = vector.load %arg15[%c0_57, %c0_58, %c0_59, %c0_60] : memref<8x8x2x4xf32, #tpu.memory_space<vmem>>, vector<8x8x2x4xf32>
    %40 = vector.shape_cast %39 : vector<8x8x2x4xf32> to vector<8x16x4xf32>
    %41 = vector.shape_cast %40 : vector<8x16x4xf32> to vector<8x1x16x4xf32>
    %c1_61 = arith.constant 1 : index
    %c0_62 = arith.constant 0 : index
    %c1_63 = arith.constant 1 : index
    %c0_64 = arith.constant 0 : index
    %42 = vector.load %arg16[%c1_61, %c0_62, %c1_63, %c0_64] : memref<9x2x18x8xf32, #tpu.memory_space<vmem>>, vector<8x1x16x4xf32>
    tpu.vector_store %arg16[%c1_61, %c0_62, %c1_63, %c0_64], %41 {strides = array<i32>} : memref<9x2x18x8xf32, #tpu.memory_space<vmem>>, vector<8x1x16x4xf32>,
    %c0_65 = arith.constant 0 : index
    %c0_66 = arith.constant 0 : index
    %c0_67 = arith.constant 0 : index
    %c0_68 = arith.constant 0 : index
    %43 = vector.load %arg2[%c0_65, %c0_66, %c0_67, %c0_68] : memref<1x16x16x4xf32, #tpu.memory_space<vmem>>, vector<1x16x16x4xf32>
    %44 = vector.shape_cast %43 : vector<1x16x16x4xf32> to vector<8x2x16x4xf32>
    %45 = vector.extract_strided_slice %44 {offsets = [0, 0, 0, 0], sizes = [8, 1, 16, 4], strides = [1, 1, 1, 1]} : vector<8x2x16x4xf32> to vector<8x1x16x4xf32>
    %c0_69 = arith.constant 0 : index
    %c1_70 = arith.constant 1 : index
    %c1_71 = arith.constant 1 : index
    %c4 = arith.constant 4 : index
    %46 = vector.load %arg16[%c0_69, %c1_70, %c1_71, %c4] : memref<9x2x18x8xf32, #tpu.memory_space<vmem>>, vector<8x1x16x4xf32>
    tpu.vector_store %arg16[%c0_69, %c1_70, %c1_71, %c4], %45 {strides = array<i32>} : memref<9x2x18x8xf32, #tpu.memory_space<vmem>>, vector<8x1x16x4xf32>,
    %47 = vector.extract_strided_slice %44 {offsets = [0, 1, 0, 0], sizes = [8, 1, 16, 4], strides = [1, 1, 1, 1]} : vector<8x2x16x4xf32> to vector<8x1x16x4xf32>
    %c1_72 = arith.constant 1 : index
    %c0_73 = arith.constant 0 : index
    %c1_74 = arith.constant 1 : index
    %c4_75 = arith.constant 4 : index
    %48 = vector.load %arg16[%c1_72, %c0_73, %c1_74, %c4_75] : memref<9x2x18x8xf32, #tpu.memory_space<vmem>>, vector<8x1x16x4xf32>
    tpu.vector_store %arg16[%c1_72, %c0_73, %c1_74, %c4_75], %47 {strides = array<i32>} : memref<9x2x18x8xf32, #tpu.memory_space<vmem>>, vector<8x1x16x4xf32>,
    %c0_76 = arith.constant 0 : index
    %c0_77 = arith.constant 0 : index
    %c0_78 = arith.constant 0 : index
    %c0_79 = arith.constant 0 : index
    %49 = vector.load %arg16[%c0_76, %c0_77, %c0_78, %c0_79] : memref<9x2x18x8xf32, #tpu.memory_space<vmem>>, vector<9x2x18x8xf32>
    %50 = vector.shape_cast %49 : vector<9x2x18x8xf32> to vector<18x18x8xf32>
    %51 = vector.extract_strided_slice %50 {offsets = [0, 0, 0], sizes = [16, 16, 8], strides = [1, 1, 1]} : vector<18x18x8xf32> to vector<16x16x8xf32>
    %52 = vector.shape_cast %51 : vector<16x16x8xf32> to vector<256x8xf32>
    %c0_80 = arith.constant 0 : index
    %c0_81 = arith.constant 0 : index
    %53 = vector.load %arg17[%c0_80, %c0_81] : memref<256x72xf32, #tpu.memory_space<vmem>>, vector<256x8xf32>
    tpu.vector_store %arg17[%c0_80, %c0_81], %52 {strides = array<i32>} : memref<256x72xf32, #tpu.memory_space<vmem>>, vector<256x8xf32>,
    %54 = vector.extract_strided_slice %50 {offsets = [0, 1, 0], sizes = [16, 16, 8], strides = [1, 1, 1]} : vector<18x18x8xf32> to vector<16x16x8xf32>
    %55 = vector.shape_cast %54 : vector<16x16x8xf32> to vector<256x8xf32>
    %c0_82 = arith.constant 0 : index
    %c8_83 = arith.constant 8 : index
    %56 = vector.load %arg17[%c0_82, %c8_83] : memref<256x72xf32, #tpu.memory_space<vmem>>, vector<256x8xf32>
    tpu.vector_store %arg17[%c0_82, %c8_83], %55 {strides = array<i32>} : memref<256x72xf32, #tpu.memory_space<vmem>>, vector<256x8xf32>,
    %57 = vector.extract_strided_slice %50 {offsets = [0, 2, 0], sizes = [16, 16, 8], strides = [1, 1, 1]} : vector<18x18x8xf32> to vector<16x16x8xf32>
    %58 = vector.shape_cast %57 : vector<16x16x8xf32> to vector<256x8xf32>
    %c0_84 = arith.constant 0 : index
    %c16 = arith.constant 16 : index
    %59 = vector.load %arg17[%c0_84, %c16] : memref<256x72xf32, #tpu.memory_space<vmem>>, vector<256x8xf32>
    tpu.vector_store %arg17[%c0_84, %c16], %58 {strides = array<i32>} : memref<256x72xf32, #tpu.memory_space<vmem>>, vector<256x8xf32>,
    %60 = vector.extract_strided_slice %50 {offsets = [1, 0, 0], sizes = [16, 16, 8], strides = [1, 1, 1]} : vector<18x18x8xf32> to vector<16x16x8xf32>
    %61 = vector.shape_cast %60 : vector<16x16x8xf32> to vector<256x8xf32>
    %c0_85 = arith.constant 0 : index
    %c24 = arith.constant 24 : index
    %62 = vector.load %arg17[%c0_85, %c24] : memref<256x72xf32, #tpu.memory_space<vmem>>, vector<256x8xf32>
    tpu.vector_store %arg17[%c0_85, %c24], %61 {strides = array<i32>} : memref<256x72xf32, #tpu.memory_space<vmem>>, vector<256x8xf32>,
    %63 = vector.extract_strided_slice %50 {offsets = [1, 1, 0], sizes = [16, 16, 8], strides = [1, 1, 1]} : vector<18x18x8xf32> to vector<16x16x8xf32>
    %64 = vector.shape_cast %63 : vector<16x16x8xf32> to vector<256x8xf32>
    %c0_86 = arith.constant 0 : index
    %c32 = arith.constant 32 : index
    %65 = vector.load %arg17[%c0_86, %c32] : memref<256x72xf32, #tpu.memory_space<vmem>>, vector<256x8xf32>
    tpu.vector_store %arg17[%c0_86, %c32], %64 {strides = array<i32>} : memref<256x72xf32, #tpu.memory_space<vmem>>, vector<256x8xf32>,
    %66 = vector.extract_strided_slice %50 {offsets = [1, 2, 0], sizes = [16, 16, 8], strides = [1, 1, 1]} : vector<18x18x8xf32> to vector<16x16x8xf32>
    %67 = vector.shape_cast %66 : vector<16x16x8xf32> to vector<256x8xf32>
    %c0_87 = arith.constant 0 : index
    %c40 = arith.constant 40 : index
    %68 = vector.load %arg17[%c0_87, %c40] : memref<256x72xf32, #tpu.memory_space<vmem>>, vector<256x8xf32>
    tpu.vector_store %arg17[%c0_87, %c40], %67 {strides = array<i32>} : memref<256x72xf32, #tpu.memory_space<vmem>>, vector<256x8xf32>,
    %69 = vector.extract_strided_slice %50 {offsets = [2, 0, 0], sizes = [16, 16, 8], strides = [1, 1, 1]} : vector<18x18x8xf32> to vector<16x16x8xf32>
    %70 = vector.shape_cast %69 : vector<16x16x8xf32> to vector<256x8xf32>
    %c0_88 = arith.constant 0 : index
    %c48 = arith.constant 48 : index
    %71 = vector.load %arg17[%c0_88, %c48] : memref<256x72xf32, #tpu.memory_space<vmem>>, vector<256x8xf32>
    tpu.vector_store %arg17[%c0_88, %c48], %70 {strides = array<i32>} : memref<256x72xf32, #tpu.memory_space<vmem>>, vector<256x8xf32>,
    %72 = vector.extract_strided_slice %50 {offsets = [2, 1, 0], sizes = [16, 16, 8], strides = [1, 1, 1]} : vector<18x18x8xf32> to vector<16x16x8xf32>
    %73 = vector.shape_cast %72 : vector<16x16x8xf32> to vector<256x8xf32>
    %c0_89 = arith.constant 0 : index
    %c56 = arith.constant 56 : index
    %74 = vector.load %arg17[%c0_89, %c56] : memref<256x72xf32, #tpu.memory_space<vmem>>, vector<256x8xf32>
    tpu.vector_store %arg17[%c0_89, %c56], %73 {strides = array<i32>} : memref<256x72xf32, #tpu.memory_space<vmem>>, vector<256x8xf32>,
    %75 = vector.extract_strided_slice %50 {offsets = [2, 2, 0], sizes = [16, 16, 8], strides = [1, 1, 1]} : vector<18x18x8xf32> to vector<16x16x8xf32>
    %76 = vector.shape_cast %75 : vector<16x16x8xf32> to vector<256x8xf32>
    %c0_90 = arith.constant 0 : index
    %c64 = arith.constant 64 : index
    %77 = vector.load %arg17[%c0_90, %c64] : memref<256x72xf32, #tpu.memory_space<vmem>>, vector<256x8xf32>
    tpu.vector_store %arg17[%c0_90, %c64], %76 {strides = array<i32>} : memref<256x72xf32, #tpu.memory_space<vmem>>, vector<256x8xf32>,
    %c0_91 = arith.constant 0 : index
    %c0_92 = arith.constant 0 : index
    %78 = vector.load %arg17[%c0_91, %c0_92] : memref<256x72xf32, #tpu.memory_space<vmem>>, vector<256x72xf32>
    %c0_93 = arith.constant 0 : index
    %c0_94 = arith.constant 0 : index
    %79 = vector.load %arg8[%c0_93, %c0_94] : memref<72x4xf32, #tpu.memory_space<vmem>>, vector<72x4xf32>
    %cst_95 = arith.constant dense<0.000000e+00> : vector<256x4xf32>
    %80 = tpu.matmul %78, %79, %cst_95 {dimension_numbers = #tpu.dot_dimension_numbers<[1], [0], [0], [1], [0, 0, 1, 1], [], []>} : vector<256x72xf32>, vector<72x4xf32>, vector<256x4xf32> -> vector<256x4xf32>
    %c0_96 = arith.constant 0 : index
    %c0_97 = arith.constant 0 : index
    %81 = vector.load %arg9[%c0_96, %c0_97] : memref<1x4xf32, #tpu.memory_space<vmem>>, vector<1x4xf32>
    %82 = vector.broadcast %81 : vector<1x4xf32> to vector<256x4xf32>
    %83 = arith.mulf %80, %82 : vector<256x4xf32>
    %c0_98 = arith.constant 0 : index
    %c0_99 = arith.constant 0 : index
    %84 = vector.load %arg10[%c0_98, %c0_99] : memref<1x4xf32, #tpu.memory_space<vmem>>, vector<1x4xf32>
    %85 = vector.broadcast %84 : vector<1x4xf32> to vector<256x4xf32>
    %86 = arith.addf %83, %85 : vector<256x4xf32>
    %cst_100 = arith.constant 0.000000e+00 : f32
    %87 = vector.broadcast %cst_100 : f32 to vector<256x4xf32>
    %88 = arith.maximumf %86, %87 : vector<256x4xf32>
    %cst_101 = arith.constant 0.000000e+00 : f32
    %89 = vector.broadcast %cst_101 : f32 to vector<1x18x4xf32>
    %c0_102 = arith.constant 0 : index
    %c0_103 = arith.constant 0 : index
    %c0_104 = arith.constant 0 : index
    %90 = vector.load %arg18[%c0_102, %c0_103, %c0_104] : memref<18x18x4xf32, #tpu.memory_space<vmem>>, vector<1x18x4xf32>
    tpu.vector_store %arg18[%c0_102, %c0_103, %c0_104], %89 {strides = array<i32>} : memref<18x18x4xf32, #tpu.memory_space<vmem>>, vector<1x18x4xf32>,
    %cst_105 = arith.constant 0.000000e+00 : f32
    %91 = vector.broadcast %cst_105 : f32 to vector<1x18x4xf32>
    %c17_106 = arith.constant 17 : index
    %c0_107 = arith.constant 0 : index
    %c0_108 = arith.constant 0 : index
    %92 = vector.load %arg18[%c17_106, %c0_107, %c0_108] : memref<18x18x4xf32, #tpu.memory_space<vmem>>, vector<1x18x4xf32>
    tpu.vector_store %arg18[%c17_106, %c0_107, %c0_108], %91 {strides = array<i32>} : memref<18x18x4xf32, #tpu.memory_space<vmem>>, vector<1x18x4xf32>,
    %cst_109 = arith.constant 0.000000e+00 : f32
    %93 = vector.broadcast %cst_109 : f32 to vector<18x1x4xf32>
    %c0_110 = arith.constant 0 : index
    %c0_111 = arith.constant 0 : index
    %c0_112 = arith.constant 0 : index
    %94 = vector.load %arg18[%c0_110, %c0_111, %c0_112] : memref<18x18x4xf32, #tpu.memory_space<vmem>>, vector<18x1x4xf32>
    tpu.vector_store %arg18[%c0_110, %c0_111, %c0_112], %93 {strides = array<i32>} : memref<18x18x4xf32, #tpu.memory_space<vmem>>, vector<18x1x4xf32>,
    %cst_113 = arith.constant 0.000000e+00 : f32
    %95 = vector.broadcast %cst_113 : f32 to vector<18x1x4xf32>
    %c0_114 = arith.constant 0 : index
    %c17_115 = arith.constant 17 : index
    %c0_116 = arith.constant 0 : index
    %96 = vector.load %arg18[%c0_114, %c17_115, %c0_116] : memref<18x18x4xf32, #tpu.memory_space<vmem>>, vector<18x1x4xf32>
    tpu.vector_store %arg18[%c0_114, %c17_115, %c0_116], %95 {strides = array<i32>} : memref<18x18x4xf32, #tpu.memory_space<vmem>>, vector<18x1x4xf32>,
    %97 = vector.shape_cast %88 : vector<256x4xf32> to vector<16x16x4xf32>
    %c1_117 = arith.constant 1 : index
    %c1_118 = arith.constant 1 : index
    %c0_119 = arith.constant 0 : index
    %98 = vector.load %arg18[%c1_117, %c1_118, %c0_119] : memref<18x18x4xf32, #tpu.memory_space<vmem>>, vector<16x16x4xf32>
    tpu.vector_store %arg18[%c1_117, %c1_118, %c0_119], %97 {strides = array<i32>} : memref<18x18x4xf32, #tpu.memory_space<vmem>>, vector<16x16x4xf32>,
    %c0_120 = arith.constant 0 : index
    %c0_121 = arith.constant 0 : index
    %c0_122 = arith.constant 0 : index
    %99 = vector.load %arg18[%c0_120, %c0_121, %c0_122] : memref<18x18x4xf32, #tpu.memory_space<vmem>>, vector<16x16x4xf32>
    %100 = vector.shape_cast %99 : vector<16x16x4xf32> to vector<256x4xf32>
    %c0_123 = arith.constant 0 : index
    %c0_124 = arith.constant 0 : index
    %101 = vector.load %arg19[%c0_123, %c0_124] : memref<256x36xf32, #tpu.memory_space<vmem>>, vector<256x4xf32>
    tpu.vector_store %arg19[%c0_123, %c0_124], %100 {strides = array<i32>} : memref<256x36xf32, #tpu.memory_space<vmem>>, vector<256x4xf32>,
    %c0_125 = arith.constant 0 : index
    %c1_126 = arith.constant 1 : index
    %c0_127 = arith.constant 0 : index
    %102 = vector.load %arg18[%c0_125, %c1_126, %c0_127] : memref<18x18x4xf32, #tpu.memory_space<vmem>>, vector<16x16x4xf32>
    %103 = vector.shape_cast %102 : vector<16x16x4xf32> to vector<256x4xf32>
    %c0_128 = arith.constant 0 : index
    %c4_129 = arith.constant 4 : index
    %104 = vector.load %arg19[%c0_128, %c4_129] : memref<256x36xf32, #tpu.memory_space<vmem>>, vector<256x4xf32>
    tpu.vector_store %arg19[%c0_128, %c4_129], %103 {strides = array<i32>} : memref<256x36xf32, #tpu.memory_space<vmem>>, vector<256x4xf32>,
    %c0_130 = arith.constant 0 : index
    %c2 = arith.constant 2 : index
    %c0_131 = arith.constant 0 : index
    %105 = vector.load %arg18[%c0_130, %c2, %c0_131] : memref<18x18x4xf32, #tpu.memory_space<vmem>>, vector<16x16x4xf32>
    %106 = vector.shape_cast %105 : vector<16x16x4xf32> to vector<256x4xf32>
    %c0_132 = arith.constant 0 : index
    %c8_133 = arith.constant 8 : index
    %107 = vector.load %arg19[%c0_132, %c8_133] : memref<256x36xf32, #tpu.memory_space<vmem>>, vector<256x4xf32>
    tpu.vector_store %arg19[%c0_132, %c8_133], %106 {strides = array<i32>} : memref<256x36xf32, #tpu.memory_space<vmem>>, vector<256x4xf32>,
    %c1_134 = arith.constant 1 : index
    %c0_135 = arith.constant 0 : index
    %c0_136 = arith.constant 0 : index
    %108 = vector.load %arg18[%c1_134, %c0_135, %c0_136] : memref<18x18x4xf32, #tpu.memory_space<vmem>>, vector<16x16x4xf32>
    %109 = vector.shape_cast %108 : vector<16x16x4xf32> to vector<256x4xf32>
    %c0_137 = arith.constant 0 : index
    %c12 = arith.constant 12 : index
    %110 = vector.load %arg19[%c0_137, %c12] : memref<256x36xf32, #tpu.memory_space<vmem>>, vector<256x4xf32>
    tpu.vector_store %arg19[%c0_137, %c12], %109 {strides = array<i32>} : memref<256x36xf32, #tpu.memory_space<vmem>>, vector<256x4xf32>,
    %c1_138 = arith.constant 1 : index
    %c1_139 = arith.constant 1 : index
    %c0_140 = arith.constant 0 : index
    %111 = vector.load %arg18[%c1_138, %c1_139, %c0_140] : memref<18x18x4xf32, #tpu.memory_space<vmem>>, vector<16x16x4xf32>
    %112 = vector.shape_cast %111 : vector<16x16x4xf32> to vector<256x4xf32>
    %c0_141 = arith.constant 0 : index
    %c16_142 = arith.constant 16 : index
    %113 = vector.load %arg19[%c0_141, %c16_142] : memref<256x36xf32, #tpu.memory_space<vmem>>, vector<256x4xf32>
    tpu.vector_store %arg19[%c0_141, %c16_142], %112 {strides = array<i32>} : memref<256x36xf32, #tpu.memory_space<vmem>>, vector<256x4xf32>,
    %c1_143 = arith.constant 1 : index
    %c2_144 = arith.constant 2 : index
    %c0_145 = arith.constant 0 : index
    %114 = vector.load %arg18[%c1_143, %c2_144, %c0_145] : memref<18x18x4xf32, #tpu.memory_space<vmem>>, vector<16x16x4xf32>
    %115 = vector.shape_cast %114 : vector<16x16x4xf32> to vector<256x4xf32>
    %c0_146 = arith.constant 0 : index
    %c20 = arith.constant 20 : index
    %116 = vector.load %arg19[%c0_146, %c20] : memref<256x36xf32, #tpu.memory_space<vmem>>, vector<256x4xf32>
    tpu.vector_store %arg19[%c0_146, %c20], %115 {strides = array<i32>} : memref<256x36xf32, #tpu.memory_space<vmem>>, vector<256x4xf32>,
    %c2_147 = arith.constant 2 : index
    %c0_148 = arith.constant 0 : index
    %c0_149 = arith.constant 0 : index
    %117 = vector.load %arg18[%c2_147, %c0_148, %c0_149] : memref<18x18x4xf32, #tpu.memory_space<vmem>>, vector<16x16x4xf32>
    %118 = vector.shape_cast %117 : vector<16x16x4xf32> to vector<256x4xf32>
    %c0_150 = arith.constant 0 : index
    %c24_151 = arith.constant 24 : index
    %119 = vector.load %arg19[%c0_150, %c24_151] : memref<256x36xf32, #tpu.memory_space<vmem>>, vector<256x4xf32>
    tpu.vector_store %arg19[%c0_150, %c24_151], %118 {strides = array<i32>} : memref<256x36xf32, #tpu.memory_space<vmem>>, vector<256x4xf32>,
    %c2_152 = arith.constant 2 : index
    %c1_153 = arith.constant 1 : index
    %c0_154 = arith.constant 0 : index
    %120 = vector.load %arg18[%c2_152, %c1_153, %c0_154] : memref<18x18x4xf32, #tpu.memory_space<vmem>>, vector<16x16x4xf32>
    %121 = vector.shape_cast %120 : vector<16x16x4xf32> to vector<256x4xf32>
    %c0_155 = arith.constant 0 : index
    %c28 = arith.constant 28 : index
    %122 = vector.load %arg19[%c0_155, %c28] : memref<256x36xf32, #tpu.memory_space<vmem>>, vector<256x4xf32>
    tpu.vector_store %arg19[%c0_155, %c28], %121 {strides = array<i32>} : memref<256x36xf32, #tpu.memory_space<vmem>>, vector<256x4xf32>,
    %c2_156 = arith.constant 2 : index
    %c2_157 = arith.constant 2 : index
    %c0_158 = arith.constant 0 : index
    %123 = vector.load %arg18[%c2_156, %c2_157, %c0_158] : memref<18x18x4xf32, #tpu.memory_space<vmem>>, vector<16x16x4xf32>
    %124 = vector.shape_cast %123 : vector<16x16x4xf32> to vector<256x4xf32>
    %c0_159 = arith.constant 0 : index
    %c32_160 = arith.constant 32 : index
    %125 = vector.load %arg19[%c0_159, %c32_160] : memref<256x36xf32, #tpu.memory_space<vmem>>, vector<256x4xf32>
    tpu.vector_store %arg19[%c0_159, %c32_160], %124 {strides = array<i32>} : memref<256x36xf32, #tpu.memory_space<vmem>>, vector<256x4xf32>,
    %c0_161 = arith.constant 0 : index
    %c0_162 = arith.constant 0 : index
    %126 = vector.load %arg19[%c0_161, %c0_162] : memref<256x36xf32, #tpu.memory_space<vmem>>, vector<256x36xf32>
    %c0_163 = arith.constant 0 : index
    %c0_164 = arith.constant 0 : index
    %127 = vector.load %arg11[%c0_163, %c0_164] : memref<36x4xf32, #tpu.memory_space<vmem>>, vector<36x4xf32>
    %cst_165 = arith.constant dense<0.000000e+00> : vector<256x4xf32>
    %128 = tpu.matmul %126, %127, %cst_165 {dimension_numbers = #tpu.dot_dimension_numbers<[1], [0], [0], [1], [0, 0, 1, 1], [], []>} : vector<256x36xf32>, vector<36x4xf32>, vector<256x4xf32> -> vector<256x4xf32>
    %c0_166 = arith.constant 0 : index
    %c0_167 = arith.constant 0 : index
    %129 = vector.load %arg12[%c0_166, %c0_167] : memref<1x4xf32, #tpu.memory_space<vmem>>, vector<1x4xf32>
    %130 = vector.broadcast %129 : vector<1x4xf32> to vector<256x4xf32>
    %131 = arith.mulf %128, %130 : vector<256x4xf32>
    %c0_168 = arith.constant 0 : index
    %c0_169 = arith.constant 0 : index
    %132 = vector.load %arg13[%c0_168, %c0_169] : memref<1x4xf32, #tpu.memory_space<vmem>>, vector<1x4xf32>
    %133 = vector.broadcast %132 : vector<1x4xf32> to vector<256x4xf32>
    %134 = arith.addf %131, %133 : vector<256x4xf32>
    %cst_170 = arith.constant 0.000000e+00 : f32
    %135 = vector.broadcast %cst_170 : f32 to vector<256x4xf32>
    %136 = arith.maximumf %134, %135 : vector<256x4xf32>
    %137 = vector.shape_cast %136 : vector<256x4xf32> to vector<1x16x16x4xf32>
    %c0_171 = arith.constant 0 : index
    %c0_172 = arith.constant 0 : index
    %c0_173 = arith.constant 0 : index
    %c0_174 = arith.constant 0 : index
    %138 = vector.load %arg14[%c0_171, %c0_172, %c0_173, %c0_174] : memref<1x16x16x4xf32, #tpu.memory_space<vmem>>, vector<1x16x16x4xf32>
    tpu.vector_store %arg14[%c0_171, %c0_172, %c0_173, %c0_174], %137 {strides = array<i32>} : memref<1x16x16x4xf32, #tpu.memory_space<vmem>>, vector<1x16x16x4xf32>,
    return
  }
  func.func @transform_0(%arg0: i32) -> (i32, i32, i32, i32) {
    %c0_i32 = arith.constant 0 : i32
    %c0_i32_0 = arith.constant 0 : i32
    %c0_i32_1 = arith.constant 0 : i32
    %c0_i32_2 = arith.constant 0 : i32
    return %arg0, %c0_i32, %c0_i32_0, %c0_i32_1 : i32, i32, i32, i32
  }
  func.func @transform_1(%arg0: i32) -> (i32, i32, i32, i32) {
    %c0_i32 = arith.constant 0 : i32
    %c0_i32_0 = arith.constant 0 : i32
    %c0_i32_1 = arith.constant 0 : i32
    %c0_i32_2 = arith.constant 0 : i32
    return %arg0, %c0_i32, %c0_i32_0, %c0_i32_1 : i32, i32, i32, i32
  }
  func.func @transform_2(%arg0: i32) -> (i32, i32) {
    %c0_i32 = arith.constant 0 : i32
    %c0_i32_0 = arith.constant 0 : i32
    %c0_i32_1 = arith.constant 0 : i32
    return %c0_i32, %c0_i32_0 : i32, i32
  }
  func.func @transform_3(%arg0: i32) -> (i32, i32) {
    %c0_i32 = arith.constant 0 : i32
    %c0_i32_0 = arith.constant 0 : i32
    %c0_i32_1 = arith.constant 0 : i32
    return %c0_i32, %c0_i32_0 : i32, i32
  }
  func.func @transform_4(%arg0: i32) -> (i32, i32) {
    %c0_i32 = arith.constant 0 : i32
    %c0_i32_0 = arith.constant 0 : i32
    %c0_i32_1 = arith.constant 0 : i32
    return %c0_i32, %c0_i32_0 : i32, i32
  }
  func.func @transform_5(%arg0: i32) -> (i32, i32) {
    %c0_i32 = arith.constant 0 : i32
    %c0_i32_0 = arith.constant 0 : i32
    %c0_i32_1 = arith.constant 0 : i32
    return %c0_i32, %c0_i32_0 : i32, i32
  }
  func.func @transform_6(%arg0: i32) -> (i32, i32) {
    %c0_i32 = arith.constant 0 : i32
    %c0_i32_0 = arith.constant 0 : i32
    %c0_i32_1 = arith.constant 0 : i32
    return %c0_i32, %c0_i32_0 : i32, i32
  }
  func.func @transform_7(%arg0: i32) -> (i32, i32) {
    %c0_i32 = arith.constant 0 : i32
    %c0_i32_0 = arith.constant 0 : i32
    %c0_i32_1 = arith.constant 0 : i32
    return %c0_i32, %c0_i32_0 : i32, i32
  }
  func.func @transform_8(%arg0: i32) -> (i32, i32) {
    %c0_i32 = arith.constant 0 : i32
    %c0_i32_0 = arith.constant 0 : i32
    %c0_i32_1 = arith.constant 0 : i32
    return %c0_i32, %c0_i32_0 : i32, i32
  }
  func.func @transform_9(%arg0: i32) -> (i32, i32) {
    %c0_i32 = arith.constant 0 : i32
    %c0_i32_0 = arith.constant 0 : i32
    %c0_i32_1 = arith.constant 0 : i32
    return %c0_i32, %c0_i32_0 : i32, i32
  }
  func.func @transform_10(%arg0: i32) -> (i32, i32) {
    %c0_i32 = arith.constant 0 : i32
    %c0_i32_0 = arith.constant 0 : i32
    %c0_i32_1 = arith.constant 0 : i32
    return %c0_i32, %c0_i32_0 : i32, i32
  }
  func.func @transform_11(%arg0: i32) -> (i32, i32) {
    %c0_i32 = arith.constant 0 : i32
    %c0_i32_0 = arith.constant 0 : i32
    %c0_i32_1 = arith.constant 0 : i32
    return %c0_i32, %c0_i32_0 : i32, i32
  }
  func.func @transform_12(%arg0: i32) -> (i32, i32) {
    %c0_i32 = arith.constant 0 : i32
    %c0_i32_0 = arith.constant 0 : i32
    %c0_i32_1 = arith.constant 0 : i32
    return %c0_i32, %c0_i32_0 : i32, i32
  }
  func.func @transform_13(%arg0: i32) -> (i32, i32, i32, i32) {
    %c0_i32 = arith.constant 0 : i32
    %c0_i32_0 = arith.constant 0 : i32
    %c0_i32_1 = arith.constant 0 : i32
    %c0_i32_2 = arith.constant 0 : i32
    return %arg0, %c0_i32, %c0_i32_0, %c0_i32_1 : i32, i32, i32, i32
  }
}

</mosaic_0001>

<bundles_post_ra>
// kernel: tpu_custom_call.1
= control target key start
LH: loop header
LB: loop body
LE: loop exit
PB: predicated region body
PF: predicated region fallthrough
CT: control target
= control target key end

     0   :  { %s8780_s25 = smov 0   ;;  %s12353_s0 = inlined_call_operand.vmem [shape: f32[2,8,8,8], index: 0, kind: input, shape index: {}]   ;;  %s12354_s1 = inlined_call_operand.vmem [shape: f32[2,16,16,4], index: 1, kind: input, shape index: {}]   ;;  %s12355_s2 = inlined_call_operand.vmem [shape: f32[8,4], index: 2, kind: input, shape index: {}]   ;;  %s12356_s3 = inlined_call_operand.vmem [shape: f32[8,4], index: 3, kind: input, shape index: {}]   ;;  %s12357_s4 = inlined_call_operand.vmem [shape: f32[8,4], index: 4, kind: input, shape index: {}]   ;;  %s12358_s5 = inlined_call_operand.vmem [shape: f32[8,4], index: 5, kind: input, shape index: {}]   ;;  %s12359_s6 = inlined_call_operand.vmem [shape: f32[1,4], index: 6, kind: input, shape index: {}]   ;;  %s12360_s7 = inlined_call_operand.vmem [shape: f32[72,4], index: 7, kind: input, shape index: {}]   ;;  %s12361_s8 = inlined_call_operand.vmem [shape: f32[1,4], index: 8, kind: input, shape index: {}]   ;;  %s12362_s9 = inlined_call_operand.vmem [shape: f32[1,4], index: 9, kind: input, shape index: {}]   ;;  %s12363_s10 = inlined_call_operand.vmem [shape: f32[36,4], index: 10, kind: input, shape index: {}]   ;;  %s12364_s11 = inlined_call_operand.vmem [shape: f32[1,4], index: 11, kind: input, shape index: {}]   ;;  %s12365_s12 = inlined_call_operand.vmem [shape: f32[1,4], index: 12, kind: input, shape index: {}]   ;;  %s12366_s13 = inlined_call_operand.vmem [shape: f32[2,16,16,4], index: 13, kind: output, shape index: {}]  }
   0x1 LB: > { %s8227_s26 = sadd.s32 4294967295, %s8693_s25   ;;  %p8231_p0 = scmp.ge.s32.totalorder %s8693_s25, 1  ;;  %s8693_s25 = sphi %s8780_s25, %s23_s25  }
   0x2   : > { %p397_p1 = scmp.lt.s32.totalorder %s8693_s25, 3 }
   0x4   : > { %p398_p2 = pnand %p8231_p0, %p397_p1 }
   0x6   : > { %401 = sbr.rel (%p398_p2) target bundleno = 1943 (0x797), region = 72 }
   0xd   : > { %v516_v0 = vld [vmem:[%s12355_s2] sm:$0xff]  ;;  %p446_p3 = scmp.lt.s32.totalorder %s8227_s26, 1  ;;  %vm470_vm0 = vcmask 64512   ;;  %s8695_s28 = smov 4   ;;  %vm1116_vm1 = vcmask 24576   ;;  %v12367_v40 = vmov 0.0   ;;  %v664_v60 = vlaneseq }
   0xe   : > { %v1181_v1 = vld [vmem:[%s12356_s3] sm:$0xff]  ;;  %8459 = vmatprep.subr.mxu0 %v516_v0  ;;  %471 = vst.msk [vmem:[#allocation3] sm:$0xff] %vm470_vm0, %v12367_v40  ;;  %472 = vst.msk [vmem:[#allocation3 + $0x8] sm:$0xff] %vm470_vm0, %v12367_v40  ;;  %vm479_vm2 = vcmask 57344   ;;  %vm473_vm3 = vcmask 58368   ;;  %vm2232_vm4 = vcmask 31744  }
   0xf   : > { %v2249_v2 = vld [vmem:[%s12357_s4] sm:$0xff]  ;;  %8473 = vmatprep.subr.mxu1 %v1181_v1  ;;  %8460 = vmatpush3.msra.mxu0 %v516_v0  ;;  %s12534_s26 = smov (!%p446_p3, %s8227_s26), 1  ;;  %476 = vst.msk [vmem:[#allocation3 + $0x198] sm:$0xff] %vm470_vm0, %v12367_v40  ;;  %477 = vst.msk [vmem:[#allocation3 + $0x1a0] sm:$0xff] %vm470_vm0, %v12367_v40  ;;  %vm4277_vm5 = vcmask 1046528   ;;  %s8697_s29 = smov 8  }
  0x10   : > { %v2883_v3 = vld [vmem:[%s12358_s5] sm:$0xff]  ;;  %8474 = vmatpush3.msra.mxu1 %v1181_v1  ;;  %8487 = vmatprep.subr.mxu0 %v2249_v2  ;;  %s8342_s18 = sshll.u32 %s12534_s26, 6  ;;  %s8343_s19 = sshll.u32 %s12534_s26, 8  ;;  %5979 = vst.msk [vmem:[#allocation5 + $0x18] sm:$0x1] %vm1116_vm1, %v12367_v40  ;;  %vm4487_vm6 = vcmask 1045504  }
  0x11   : > { %8501 = vmatprep.subr.mxu1 %v2883_v3  ;;  %s8807_s22 = scalar_lea.vmem %s12353_s0, %s8342_s18  ;;  %s8814_s27 = scalar_lea.vmem %s12354_s1, %s8343_s19  ;;  %5980 = vst.msk [vmem:[#allocation5 + $0x30] sm:$0x1] %vm1116_vm1, %v12367_v40  ;;  %5981 = vst.msk [vmem:[#allocation5 + $0x48] sm:$0x1] %vm1116_vm1, %v12367_v40  ;;  %v8699_v58 = vmov 1966171168  }
  0x12   : > { %v461_v4 = vld [vmem:[%s8807_s22] sm:$0xff]  ;;  %v462_v5 = vld [vmem:[%s8807_s22 + $0x8] sm:$0xff]  ;;  %v463_v6 = vld [vmem:[%s8807_s22 + $0x10] sm:$0xff]  ;;  %5982 = vst.msk [vmem:[#allocation5 + $0x60] sm:$0x1] %vm1116_vm1, %v12367_v40  ;;  %s8698_s30 = smov 16   ;;  %v662_v59 = vunpack.c.l.s4 %v8699_v58 }
  0x13   : > { %8461 = vmatprep.mubr.msk.f32.mxu0 %vm470_vm0, %v461_v4  ;;  %8475 = vmatprep.mubr.msk.f32.mxu1 %vm470_vm0, %v461_v4  ;;  %v3950_v7 = vld [vmem:[%s8814_s27] sm:$0xff]  ;;  %v464_v8 = vld [vmem:[%s8807_s22 + $0x18] sm:$0xff]  ;;  %v3951_v11 = vld [vmem:[%s8814_s27 + $0x8] sm:$0xff]  ;;  %5983 = vst.msk [vmem:[#allocation5 + $0x78] sm:$0x1] %vm1116_vm1, %v12367_v40  ;;  %v665_v0 = vshrl.u32 %v664_v60, 7 }
  0x14   : > { %8462 = vmatmul.mubr.msk.f32.vlgmr.msra.gmra.mrb[0].mxu0 %vm470_vm0, %v462_v5  ;;  %8476 = vmatmul.mubr.msk.f32.vlgmr.msra.gmra.mrb[0].mxu1 %vm470_vm0, %v462_v5  ;;  %v3954_v9 = vld [vmem:[%s8814_s27 + $0x20] sm:$0xff]  ;;  %v3955_v12 = vld [vmem:[%s8814_s27 + $0x28] sm:$0xff]  ;;  %v467_v14 = vld [vmem:[%s8807_s22 + $0x30] sm:$0xff]  ;;  %5984 = vst.msk [vmem:[#allocation5 + $0x90] sm:$0x1] %vm1116_vm1, %v12367_v40  ;;  %v663_v63 = vunpack.c.0.s8 %v662_v59  ;;  %vm4046_vm7 = vcmask 64544  }
  0x15   : > { %8464 = vmatprep.mubr.msk.f32.mxu0 %vm470_vm0, %v463_v6  ;;  %8478 = vmatprep.mubr.msk.f32.mxu1 %vm470_vm0, %v463_v6  ;;  %v465_v10 = vld [vmem:[%s8807_s22 + $0x20] sm:$0xff]  ;;  %v466_v13 = vld [vmem:[%s8807_s22 + $0x28] sm:$0xff]  ;;  %v468_v17 = vld [vmem:[%s8807_s22 + $0x38] sm:$0xff]  ;;  %5985 = vst.msk [vmem:[#allocation5 + $0xa8] sm:$0x1] %vm1116_vm1, %v12367_v40  ;;  %s8701_s16 = smov 24  }
  0x16   : > { %8488 = vmatpush3.msra.mxu0 %v2249_v2  ;;  %8502 = vmatpush3.msra.mxu1 %v2883_v3  ;;  %v3958_v15 = vld [vmem:[%s8814_s27 + $0x40] sm:$0xff]  ;;  %v3959_v16 = vld [vmem:[%s8814_s27 + $0x48] sm:$0xff]  ;;  %v3952_v28 = vld [vmem:[%s8814_s27 + $0x10] sm:$0xff]  ;;  %5986 = vst.msk [vmem:[#allocation5 + $0xc0] sm:$0x1] %vm1116_vm1, %v12367_v40  ;;  %v9093_v3 = vsub.s32 %v663_v63, %v665_v0  ;;  %s8702_s17 = smov 32  }
  0x17   : > { %3998 = vrot.lane.b32.xlu0 %v3950_v7, %s8695_s28  ;;  %4002 = vrot.lane.b32.xlu1 %v3954_v9, %s8695_s28  ;;  %v3962_v18 = vld [vmem:[%s8814_s27 + $0x60] sm:$0xff]  ;;  %v3963_v19 = vld [vmem:[%s8814_s27 + $0x68] sm:$0xff]  ;;  %5987 = vst.msk [vmem:[#allocation5 + $0xd8] sm:$0x1] %vm1116_vm1, %v12367_v40  ;;  %5988 = vst.msk [vmem:[#allocation5 + $0xf0] sm:$0x1] %vm1116_vm1, %v12367_v40 }
  0x18   : > { %8465 = vmatmul.mubr.msk.f32.gmra.mrb[2].mxu0 %vm470_vm0, %v464_v8  ;;  %8479 = vmatmul.mubr.msk.f32.gmra.mrb[2].mxu1 %vm470_vm0, %v464_v8  ;;  %v3966_v20 = vld [vmem:[%s8814_s27 + $0x80] sm:$0xff]  ;;  %v3967_v21 = vld [vmem:[%s8814_s27 + $0x88] sm:$0xff]  ;;  %v3953_v29 = vld [vmem:[%s8814_s27 + $0x18] sm:$0xff]  ;;  %5989 = vst.msk [vmem:[#allocation5 + $0x108] sm:$0x1] %vm1116_vm1, %v12367_v40  ;;  %vm4454_vm8 = vcmask 130112  }
  0x19   : > { %8467 = vmatprep.mubr.msk.f32.mxu0 %vm470_vm0, %v465_v10  ;;  %8481 = vmatprep.mubr.msk.f32.mxu1 %vm470_vm0, %v465_v10  ;;  %v3970_v22 = vld [vmem:[%s8814_s27 + $0xa0] sm:$0xff]  ;;  %v3971_v23 = vld [vmem:[%s8814_s27 + $0xa8] sm:$0xff]  ;;  %v3956_v30 = vld [vmem:[%s8814_s27 + $0x30] sm:$0xff]  ;;  %5990 = vst.msk [vmem:[#allocation5 + $0x120] sm:$0x1] %vm1116_vm1, %v12367_v40  ;;  %vm4664_vm9 = vcmask 195712  }
  0x1a   : > { %v3974_v24 = vld [vmem:[%s8814_s27 + $0xc0] sm:$0xff]  ;;  %v3975_v25 = vld [vmem:[%s8814_s27 + $0xc8] sm:$0xff]  ;;  %v3957_v31 = vld [vmem:[%s8814_s27 + $0x38] sm:$0xff]  ;;  %5991 = vst.msk [vmem:[#allocation5 + $0x138] sm:$0x1] %vm1116_vm1, %v12367_v40  ;;  %vm4795_vm10 = vcmask 261312  }
  0x1b   : > { %4000 = vrot.lane.b32.xlu0 %v3951_v11, %s8695_s28  ;;  %4004 = vrot.lane.b32.xlu1 %v3955_v12, %s8695_s28  ;;  %v3978_v26 = vld [vmem:[%s8814_s27 + $0xe0] sm:$0xff]  ;;  %v3979_v27 = vld [vmem:[%s8814_s27 + $0xe8] sm:$0xff]  ;;  %5992 = vst.msk [vmem:[#allocation5 + $0x150] sm:$0x1] %vm1116_vm1, %v12367_v40  ;;  %5993 = vst.msk [vmem:[#allocation5 + $0x168] sm:$0x1] %vm1116_vm1, %v12367_v40 }
  0x1c   : > { %8468 = vmatmul.mubr.msk.f32.gmra.mrb[4].mxu0 %vm470_vm0, %v466_v13  ;;  %8482 = vmatmul.mubr.msk.f32.gmra.mrb[4].mxu1 %vm470_vm0, %v466_v13  ;;  %v3960_v32 = vld [vmem:[%s8814_s27 + $0x50] sm:$0xff]  ;;  %v3961_v33 = vld [vmem:[%s8814_s27 + $0x58] sm:$0xff]  ;;  %5994 = vst.msk [vmem:[#allocation5 + $0x180] sm:$0x1] %vm1116_vm1, %v12367_v40  ;;  %5997 = vst.msk [vmem:[#allocation5 + $0x29] sm:$0x1] %vm1116_vm1, %v12367_v40 }
  0x1d   : > { %8470 = vmatprep.mubr.msk.f32.mxu0 %vm470_vm0, %v467_v14  ;;  %8484 = vmatprep.mubr.msk.f32.mxu1 %vm470_vm0, %v467_v14  ;;  %v3964_v34 = vld [vmem:[%s8814_s27 + $0x70] sm:$0xff]  ;;  %v3965_v35 = vld [vmem:[%s8814_s27 + $0x78] sm:$0xff]  ;;  %5998 = vst.msk [vmem:[#allocation5 + $0x41] sm:$0x1] %vm1116_vm1, %v12367_v40  ;;  %5999 = vst.msk [vmem:[#allocation5 + $0x59] sm:$0x1] %vm1116_vm1, %v12367_v40 }
  0x1e   : > { %v3968_v36 = vld [vmem:[%s8814_s27 + $0x90] sm:$0xff]  ;;  %v3969_v37 = vld [vmem:[%s8814_s27 + $0x98] sm:$0xff]  ;;  %6000 = vst.msk [vmem:[#allocation5 + $0x71] sm:$0x1] %vm1116_vm1, %v12367_v40  ;;  %6001 = vst.msk [vmem:[#allocation5 + $0x89] sm:$0x1] %vm1116_vm1, %v12367_v40 }
  0x1f   : > { %4006 = vrot.lane.b32.xlu0 %v3958_v15, %s8695_s28  ;;  %4008 = vrot.lane.b32.xlu1 %v3959_v16, %s8695_s28  ;;  %v3972_v38 = vld [vmem:[%s8814_s27 + $0xb0] sm:$0xff]  ;;  %v3973_v39 = vld [vmem:[%s8814_s27 + $0xb8] sm:$0xff]  ;;  %6002 = vst.msk [vmem:[#allocation5 + $0xa1] sm:$0x1] %vm1116_vm1, %v12367_v40  ;;  %6003 = vst.msk [vmem:[#allocation5 + $0xb9] sm:$0x1] %vm1116_vm1, %v12367_v40 }
  0x20   : > { %8471 = vmatmul.mubr.msk.f32.gmra.mrb[6].mxu0 %vm470_vm0, %v468_v17  ;;  %8485 = vmatmul.mubr.msk.f32.gmra.mrb[6].mxu1 %vm470_vm0, %v468_v17  ;;  %6004 = vst.msk [vmem:[#allocation5 + $0xd1] sm:$0x1] %vm1116_vm1, %v12367_v40  ;;  %6005 = vst.msk [vmem:[#allocation5 + $0xe9] sm:$0x1] %vm1116_vm1, %v12367_v40  ;;  %v3976_v41 = vld [vmem:[%s8814_s27 + $0xd0] sm:$0xff]  ;;  %v3977_v42 = vld [vmem:[%s8814_s27 + $0xd8] sm:$0xff] }
  0x21   : > { %8489 = vmatprep.mubr.msk.f32.mxu0 %vm470_vm0, %v461_v4  ;;  %8503 = vmatprep.mubr.msk.f32.mxu1 %vm470_vm0, %v461_v4  ;;  %6006 = vst.msk [vmem:[#allocation5 + $0x101] sm:$0x1] %vm1116_vm1, %v12367_v40  ;;  %6007 = vst.msk [vmem:[#allocation5 + $0x119] sm:$0x1] %vm1116_vm1, %v12367_v40  ;;  %v3980_v43 = vld [vmem:[%s8814_s27 + $0xf0] sm:$0xff]  ;;  %v3981_v44 = vld [vmem:[%s8814_s27 + $0xf8] sm:$0xff] }
  0x22   : > { %6008 = vst.msk [vmem:[#allocation5 + $0x131] sm:$0x1] %vm1116_vm1, %v12367_v40  ;;  %6009 = vst.msk [vmem:[#allocation5 + $0x149] sm:$0x1] %vm1116_vm1, %v12367_v40  ;;  %v4144_v46 = vld [vmem:[#allocation3 + $0x8] sm:$0xff]  ;;  %vm4930_vm11 = vcmask 326912  }
  0x23   : > { %4010 = vrot.lane.b32.xlu0 %v3962_v18, %s8695_s28  ;;  %4012 = vrot.lane.b32.xlu1 %v3963_v19, %s8695_s28  ;;  %6010 = vst.msk [vmem:[#allocation5 + $0x161] sm:$0x1] %vm1116_vm1, %v12367_v40  ;;  %6011 = vst.msk [vmem:[#allocation5 + $0x179] sm:$0x1] %vm1116_vm1, %v12367_v40  ;;  %v4279_v48 = vrot.slane %v4144_v46, 1  ;;  %v4489_v54 = vrot.slane %v4144_v46, 2 }
  0x24   : > { %8490 = vmatmul.mubr.msk.f32.vlgmr.msra.gmra.mrb[8].mxu0 %vm470_vm0, %v462_v5  ;;  %8504 = vmatmul.mubr.msk.f32.vlgmr.msra.gmra.mrb[8].mxu1 %vm470_vm0, %v462_v5  ;;  %6012 = vst.msk [vmem:[#allocation5 + $0x191] sm:$0x1] %vm1116_vm1, %v12367_v40  ;;  %v8700_v61 = vmov 1983009808   ;;  %v9091_v1 = vld [vmem:[%s12359_s6] ss:$0 sm:$0xff] }
  0x25   : > { %8492 = vmatprep.mubr.msk.f32.mxu0 %vm470_vm0, %v463_v6  ;;  %8506 = vmatprep.mubr.msk.f32.mxu1 %vm470_vm0, %v463_v6  ;;  %480 = vst.msk [vmem:[#allocation3] sm:$0x1] %vm479_vm2, %v12367_v40  ;;  %481 = vst.msk [vmem:[#allocation3 + $0x18] sm:$0x1] %vm479_vm2, %v12367_v40  ;;  %v1946_v62 = vunpack.c.l.s4 %v8700_v61  ;;  %s8703_s21 = smov 40   ;;  %s8704_s22 = smov 48  }
  0x26   : > { %482 = vst.msk [vmem:[#allocation3 + $0x30] sm:$0x1] %vm479_vm2, %v12367_v40  ;;  %483 = vst.msk [vmem:[#allocation3 + $0x48] sm:$0x1] %vm479_vm2, %v12367_v40  ;;  %vm5064_vm12 = vcmask 392512   ;;  %s8705_s27 = smov 56  }
  0x27   : > { %4014 = vrot.lane.b32.xlu0 %v3966_v20, %s8695_s28  ;;  %4016 = vrot.lane.b32.xlu1 %v3967_v21, %s8695_s28  ;;  %484 = vst.msk [vmem:[#allocation3 + $0x60] sm:$0x1] %vm479_vm2, %v12367_v40  ;;  %485 = vst.msk [vmem:[#allocation3 + $0x78] sm:$0x1] %vm479_vm2, %v12367_v40  ;;  %v1947_v2 = vunpack.c.0.s8 %v1946_v62  ;;  %s8706_s14 = smov 64   ;;  %vm5195_vm13 = vcmask 458112  }
  0x28   : > { %8493 = vmatmul.mubr.msk.f32.gmra.mrb[10].mxu0 %vm470_vm0, %v464_v8  ;;  %8507 = vmatmul.mubr.msk.f32.gmra.mrb[10].mxu1 %vm470_vm0, %v464_v8  ;;  %486 = vst.msk [vmem:[#allocation3 + $0x90] sm:$0x1] %vm479_vm2, %v12367_v40  ;;  %487 = vst.msk [vmem:[#allocation3 + $0xa8] sm:$0x1] %vm479_vm2, %v12367_v40  ;;  %vm5330_vm14 = vcmask 523712   ;;  %vm5464_vm15 = vcmask 589312  }
  0x29   : > { %8495 = vmatprep.mubr.msk.f32.mxu0 %vm470_vm0, %v465_v10  ;;  %8509 = vmatprep.mubr.msk.f32.mxu1 %vm470_vm0, %v465_v10  ;;  %488 = vst.msk [vmem:[#allocation3 + $0xc0] sm:$0x1] %vm479_vm2, %v12367_v40  ;;  %489 = vst.msk [vmem:[#allocation3 + $0xd8] sm:$0x1] %vm479_vm2, %v12367_v40  ;;  %v9101_v12 = vsub.s32 %v1947_v2, %v665_v0 }
  0x2a   : > { %490 = vst.msk [vmem:[#allocation3 + $0xf0] sm:$0x1] %vm479_vm2, %v12367_v40  ;;  %491 = vst.msk [vmem:[#allocation3 + $0x108] sm:$0x1] %vm479_vm2, %v12367_v40 }
  0x2b   : > { %4018 = vrot.lane.b32.xlu0 %v3970_v22, %s8695_s28  ;;  %4020 = vrot.lane.b32.xlu1 %v3971_v23, %s8695_s28  ;;  %492 = vst.msk [vmem:[#allocation3 + $0x120] sm:$0x1] %vm479_vm2, %v12367_v40  ;;  %493 = vst.msk [vmem:[#allocation3 + $0x138] sm:$0x1] %vm479_vm2, %v12367_v40 }
  0x2c   : > { %8496 = vmatmul.mubr.msk.f32.gmra.mrb[12].mxu0 %vm470_vm0, %v466_v13  ;;  %8510 = vmatmul.mubr.msk.f32.gmra.mrb[12].mxu1 %vm470_vm0, %v466_v13  ;;  %494 = vst.msk [vmem:[#allocation3 + $0x150] sm:$0x1] %vm479_vm2, %v12367_v40  ;;  %495 = vst.msk [vmem:[#allocation3 + $0x168] sm:$0x1] %vm479_vm2, %v12367_v40  ;;  %v4143_v45 = vld [vmem:[#allocation3] sm:$0xff] }
  0x2d   : > { %8498 = vmatprep.mubr.msk.f32.mxu0 %vm470_vm0, %v467_v14  ;;  %8512 = vmatprep.mubr.msk.f32.mxu1 %vm470_vm0, %v467_v14  ;;  %496 = vst.msk [vmem:[#allocation3 + $0x180] sm:$0x1] %vm479_vm2, %v12367_v40  ;;  %499 = vst.msk [vmem:[#allocation3 + $0x29] sm:$0x1] %vm479_vm2, %v12367_v40  ;;  %v4278_v47 = vrot.slane %v4143_v45, 1  ;;  %v4488_v53 = vrot.slane %v4143_v45, 2 }
  0x2e   : > { %500 = vst.msk [vmem:[#allocation3 + $0x41] sm:$0x1] %vm479_vm2, %v12367_v40  ;;  %501 = vst.msk [vmem:[#allocation3 + $0x59] sm:$0x1] %vm479_vm2, %v12367_v40 }
  0x2f   : > { %4022 = vrot.lane.b32.xlu0 %v3974_v24, %s8695_s28  ;;  %4024 = vrot.lane.b32.xlu1 %v3975_v25, %s8695_s28  ;;  %502 = vst.msk [vmem:[#allocation3 + $0x71] sm:$0x1] %vm479_vm2, %v12367_v40  ;;  %503 = vst.msk [vmem:[#allocation3 + $0x89] sm:$0x1] %vm479_vm2, %v12367_v40  ;;  %v4280_v50 = vsel %vm4277_vm5, %v4278_v47, %v4279_v48  ;;  %v4490_v55 = vsel %vm4487_vm6, %v4488_v53, %v4489_v54 }
  0x30   : > { %8499 = vmatmul.mubr.msk.f32.gmra.mrb[14].mxu0 %vm470_vm0, %v468_v17  ;;  %8513 = vmatmul.mubr.msk.f32.gmra.mrb[14].mxu1 %vm470_vm0, %v468_v17  ;;  %504 = vst.msk [vmem:[#allocation3 + $0xa1] sm:$0x1] %vm479_vm2, %v12367_v40  ;;  %505 = vst.msk [vmem:[#allocation3 + $0xb9] sm:$0x1] %vm479_vm2, %v12367_v40 }
  0x31   : > { %506 = vst.msk [vmem:[#allocation3 + $0xd1] sm:$0x1] %vm479_vm2, %v12367_v40  ;;  %507 = vst.msk [vmem:[#allocation3 + $0xe9] sm:$0x1] %vm479_vm2, %v12367_v40 }
  0x32   : > { %508 = vst.msk [vmem:[#allocation3 + $0x101] sm:$0x1] %vm479_vm2, %v12367_v40  ;;  %509 = vst.msk [vmem:[#allocation3 + $0x119] sm:$0x1] %vm479_vm2, %v12367_v40 }
  0x33   : > { %4026 = vrot.lane.b32.xlu0 %v3978_v26, %s8695_s28  ;;  %4028 = vrot.lane.b32.xlu1 %v3979_v27, %s8695_s28  ;;  %510 = vst.msk [vmem:[#allocation3 + $0x131] sm:$0x1] %vm479_vm2, %v12367_v40  ;;  %511 = vst.msk [vmem:[#allocation3 + $0x149] sm:$0x1] %vm479_vm2, %v12367_v40 }
  0x34   : > { %512 = vst.msk [vmem:[#allocation3 + $0x161] sm:$0x1] %vm479_vm2, %v12367_v40  ;;  %513 = vst.msk [vmem:[#allocation3 + $0x179] sm:$0x1] %vm479_vm2, %v12367_v40 }
  0x35   : > { %514 = vst.msk [vmem:[#allocation3 + $0x191] sm:$0x1] %vm479_vm2, %v12367_v40  ;;  %497 = vst.msk [vmem:[#allocation3 + $0x198] sm:$0x1] %vm479_vm2, %v12367_v40 }
  0x36   : > { %474 = vst.msk [vmem:[#allocation3 + $0x10] sm:$0x3] %vm473_vm3, %v12367_v40  ;;  %478 = vst.msk [vmem:[#allocation3 + $0x1a8] sm:$0x3] %vm473_vm3, %v12367_v40  ;;  %vm7789_vm3 = vcmask 1043456  }
  0x37   : > { %4079 = vrot.lane.b32.xlu0 %v3952_v28, %s8695_s28  ;;  %4081 = vrot.lane.b32.xlu1 %v3953_v29, %s8695_s28  ;;  %498 = vst.msk [vmem:[#allocation3 + $0x11] sm:$0x1] %vm479_vm2, %v12367_v40  ;;  %515 = vst.msk [vmem:[#allocation3 + $0x1a9] sm:$0x1] %vm479_vm2, %v12367_v40  ;;  %vm5972_vm2 = vcmask 25600  }
  0x38   : > { %5970 = vst.msk [vmem:[#allocation5] sm:$0xff] %vm2232_vm4, %v12367_v40  ;;  %5971 = vst.msk [vmem:[#allocation5 + $0x8] sm:$0xff] %vm2232_vm4, %v12367_v40 }
  0x39   : > { %5975 = vst.msk [vmem:[#allocation5 + $0x198] sm:$0xff] %vm2232_vm4, %v12367_v40  ;;  %5976 = vst.msk [vmem:[#allocation5 + $0x1a0] sm:$0xff] %vm2232_vm4, %v12367_v40 }
  0x3a   : > { %5978 = vst.msk [vmem:[#allocation5] sm:$0x1] %vm1116_vm1, %v12367_v40  ;;  %5995 = vst.msk [vmem:[#allocation5 + $0x198] sm:$0x1] %vm1116_vm1, %v12367_v40 }
  0x3b   : > { %4083 = vrot.lane.b32.xlu0 %v3956_v30, %s8695_s28  ;;  %4085 = vrot.lane.b32.xlu1 %v3957_v31, %s8695_s28  ;;  %4197 = vst.msk [vmem:[#allocation4] sm:$0xff] %vm470_vm0, %v4143_v45  ;;  %4198 = vst.msk [vmem:[#allocation4 + $0x8] sm:$0xff] %vm470_vm0, %v4144_v46 }
  0x3e   : > { %v4145_v49 = vld [vmem:[#allocation3 + $0x10] sm:$0x3] }
  0x3f   : > { %4087 = vrot.lane.b32.xlu0 %v3960_v32, %s8695_s28  ;;  %4089 = vrot.lane.b32.xlu1 %v3961_v33, %s8695_s28  ;;  %v4281_v51 = vrot.slane %v4145_v49, 1  ;;  %v4491_v56 = vrot.slane %v4145_v49, 2 }
  0x41   : > { %v4282_v52 = vsel %vm4277_vm5, %v4279_v48, %v4281_v51  ;;  %v4492_v57 = vsel %vm4487_vm6, %v4489_v54, %v4491_v56 }
  0x43   : > { %4091 = vrot.lane.b32.xlu0 %v3964_v34, %s8695_s28  ;;  %4093 = vrot.lane.b32.xlu1 %v3965_v35, %s8695_s28 }
  0x47   : > { %4095 = vrot.lane.b32.xlu0 %v3968_v36, %s8695_s28  ;;  %4097 = vrot.lane.b32.xlu1 %v3969_v37, %s8695_s28 }
  0x4b   : > { %4099 = vrot.lane.b32.xlu0 %v3972_v38, %s8695_s28  ;;  %4101 = vrot.lane.b32.xlu1 %v3973_v39, %s8695_s28 }
  0x4f   : > { %4103 = vrot.lane.b32.xlu0 %v3976_v41, %s8695_s28  ;;  %4105 = vrot.lane.b32.xlu1 %v3977_v42, %s8695_s28 }
  0x53   : > { %4107 = vrot.lane.b32.xlu0 %v3980_v43, %s8695_s28  ;;  %4109 = vrot.lane.b32.xlu1 %v3981_v44, %s8695_s28 }
  0x57   : > { %4358 = vrot.lane.b32.xlu0 %v4280_v50, %s8697_s29  ;;  %4360 = vrot.lane.b32.xlu1 %v4282_v52, %s8697_s29 }
  0x5b   : > { %4568 = vrot.lane.b32.xlu0 %v4490_v55, %s8698_s30  ;;  %4570 = vrot.lane.b32.xlu1 %v4492_v57, %s8698_s30 }
  0xe7   : > { %v8463_v4 = vpop.f32.mrb[0].mxu0  ;;  %v8477_v5 = vpop.f32.mrb[0].mxu1 }
  0xe8   : > { %v619_v6 = vadd.f32 %v8463_v4, %v9091_v1  ;;  %v1254_v7 = vadd.f32 %v8477_v5, %v9091_v1  ;;  %v613_v8 = vpop.f32.mrb[1].mxu0  ;;  %v1248_v9 = vpop.f32.mrb[1].mxu1 }
  0xe9   : > { %v614_v10 = vadd.f32 %v9091_v1, %v613_v8  ;;  %v9099_v11 = vadd.f32 %v9091_v1, %v1248_v9 }
  0xea   : > { %v709_v13 = vcombine.high %v619_v6, %v619_v6  ;;  %v716_v14 = vrot.slane %v619_v6, %v9093_v3  ;;  %v1344_v15 = vcombine.high %v1254_v7, %v1254_v7  ;;  %v1351_v16 = vrot.slane %v1254_v7, %v9093_v3 }
  0xeb   : > { %v660_v17 = vcombine.high %v614_v10, %v614_v10  ;;  %v667_v18 = vrot.slane %v614_v10, %v9093_v3  ;;  %v1295_v19 = vcombine.high %v9099_v11, %v9099_v11  ;;  %v9110_v20 = vrot.slane %v9099_v11, %v9093_v3  ;;  %v9112_v21 = vpop.f32.mrb[2].mxu0  ;;  %v9114_v22 = vpop.f32.mrb[2].mxu1 }
  0xec   : > { %v723_v23 = vrot.slane %v709_v13, %v9093_v3  ;;  %v724_v24 = vcombine.high %v716_v14, %v716_v14  ;;  %v732_v25 = vrot.slane %v716_v14, %v9093_v3  ;;  %v1358_v26 = vrot.slane %v1344_v15, %v9093_v3  ;;  %v9119_v27 = vpop.f32.mrb[3].mxu0  ;;  %v9121_v28 = vpop.f32.mrb[3].mxu1 }
  0xed   : > { %v1359_v29 = vcombine.high %v1351_v16, %v1351_v16  ;;  %v1367_v30 = vrot.slane %v1351_v16, %v9093_v3  ;;  %v674_v31 = vrot.slane %v660_v17, %v9093_v3  ;;  %v675_v32 = vcombine.high %v667_v18, %v667_v18 }
  0xee   : > { %v725_v33 = vcombine.high %v723_v23, %v723_v23  ;;  %v739_v34 = vrot.slane %v723_v23, %v9093_v3  ;;  %v746_v35 = vrot.slane %v724_v24, %v9093_v3  ;;  %v754_v36 = vcombine.high %v732_v25, %v732_v25  ;;  %1125 = vst.msk [vmem:[#allocation2 + $0x10] sm:$0x1] %vm1116_vm1, %v732_v25 }
  0xef   : > { %v1360_v37 = vcombine.high %v1358_v26, %v1358_v26  ;;  %v1374_v38 = vrot.slane %v1358_v26, %v9093_v3  ;;  %v1381_v39 = vrot.slane %v1359_v29, %v9093_v3  ;;  %v1389_v41 = vcombine.high %v1367_v30, %v1367_v30  ;;  %1759 = vst.msk [vmem:[#allocation2 + $0x11] sm:$0x1] %vm1116_vm1, %v1367_v30  ;;  %v9131_v42 = vpop.f32.mrb[4].mxu1  ;;  %v9133_v43 = vpop.f32.mrb[4].mxu0 }
  0xf0   : > { %v753_v44 = vrot.slane %v725_v33, %v9093_v3  ;;  %v755_v45 = vcombine.high %v739_v34, %v739_v34  ;;  %v756_v46 = vcombine.high %v746_v35, %v746_v35  ;;  %1126 = vst.msk [vmem:[#allocation2 + $0x12] sm:$0x1] %vm1116_vm1, %v746_v35  ;;  %1127 = vst.msk [vmem:[#allocation2 + $0x14] sm:$0x1] %vm1116_vm1, %v754_v36  ;;  %v9139_v48 = vpop.f32.mrb[5].mxu0  ;;  %v9141_v49 = vpop.f32.mrb[5].mxu1 }
  0xf1   : > { %1129 = vst.msk [vmem:[#allocation2 + $0x18] sm:$0x1] %vm1116_vm1, %v739_v34  ;;  %v676_v47 = vcombine.high %v674_v31, %v674_v31  ;;  %v1388_v50 = vrot.slane %v1360_v37, %v9093_v3  ;;  %v1390_v51 = vcombine.high %v1374_v38, %v1374_v38  ;;  %v1391_v52 = vcombine.high %v1381_v39, %v1381_v39  ;;  %v9216_v37 = vpop.permute.xlu0 %3998 }
  0xf2   : > { %1760 = vst.msk [vmem:[#allocation2 + $0x13] sm:$0x1] %vm1116_vm1, %v1381_v39  ;;  %1761 = vst.msk [vmem:[#allocation2 + $0x15] sm:$0x1] %vm1116_vm1, %v1389_v41  ;;  %v683_v53 = vrot.slane %v667_v18, %v9093_v3  ;;  %v757_v54 = vcombine.high %v753_v44, %v753_v44  ;;  %v690_v55 = vrot.slane %v674_v31, %v9093_v3 }
  0xf3   : > { %1763 = vst.msk [vmem:[#allocation2 + $0x19] sm:$0x1] %vm1116_vm1, %v1374_v38  ;;  %1128 = vst.msk [vmem:[#allocation2 + $0x16] sm:$0x1] %vm1116_vm1, %v756_v46  ;;  %v697_v56 = vrot.slane %v675_v32, %v9093_v3  ;;  %v704_v57 = vrot.slane %v676_v47, %v9093_v3  ;;  %v1392_v58 = vcombine.high %v1388_v50, %v1388_v50  ;;  %v9161_v62 = vpop.f32.mrb[6].mxu0  ;;  %v9163_v63 = vpop.f32.mrb[6].mxu1 }
  0xf4   : > { %1130 = vst.msk [vmem:[#allocation2 + $0x1a] sm:$0x1] %vm1116_vm1, %v753_v44  ;;  %1131 = vst.msk [vmem:[#allocation2 + $0x1c] sm:$0x1] %vm1116_vm1, %v755_v45  ;;  %v705_v59 = vcombine.high %v683_v53, %v683_v53  ;;  %v1309_v60 = vrot.slane %v1295_v19, %v9093_v3  ;;  %v1310_v61 = vcombine.high %v9110_v20, %v9110_v20  ;;  %v9171_v6 = vpop.f32.mrb[7].mxu0  ;;  %v9173_v7 = vpop.f32.mrb[7].mxu1 }
  0xf5   : > { %1762 = vst.msk [vmem:[#allocation2 + $0x17] sm:$0x1] %vm1116_vm1, %v1391_v52  ;;  %1764 = vst.msk [vmem:[#allocation2 + $0x1b] sm:$0x1] %vm1116_vm1, %v1388_v50  ;;  %v706_v0 = vcombine.high %v690_v55, %v690_v55  ;;  %v707_v2 = vcombine.high %v697_v56, %v697_v56  ;;  %v708_v4 = vcombine.high %v704_v57, %v704_v57  ;;  %v9218_v38 = vpop.permute.xlu1 %4002 }
  0xf6   : > { %1765 = vst.msk [vmem:[#allocation2 + $0x1d] sm:$0x1] %vm1116_vm1, %v1390_v51  ;;  %1117 = vst.msk [vmem:[#allocation2] sm:$0x1] %vm1116_vm1, %v683_v53  ;;  %v1318_v5 = vrot.slane %v9110_v20, %v9093_v3  ;;  %v1311_v8 = vcombine.high %v1309_v60, %v1309_v60  ;;  %v1325_v9 = vrot.slane %v1309_v60, %v9093_v3 }
  0xf7   : > { %1132 = vst.msk [vmem:[#allocation2 + $0x1e] sm:$0x1] %vm1116_vm1, %v757_v54  ;;  %1118 = vst.msk [vmem:[#allocation2 + $0x2] sm:$0x1] %vm1116_vm1, %v697_v56  ;;  %v1332_v10 = vrot.slane %v1310_v61, %v9093_v3  ;;  %v629_v11 = vadd.f32 %v9112_v21, %v9091_v1  ;;  %v1264_v14 = vadd.f32 %v9114_v22, %v9091_v1  ;;  %v9196_v21 = vpop.f32.mrb[8].mxu0  ;;  %v9198_v23 = vpop.f32.mrb[8].mxu1 }
  0xf8   : > { %1121 = vst.msk [vmem:[#allocation2 + $0x8] sm:$0x1] %vm1116_vm1, %v690_v55  ;;  %1122 = vst.msk [vmem:[#allocation2 + $0xa] sm:$0x1] %vm1116_vm1, %v704_v57  ;;  %v1340_v13 = vcombine.high %v1318_v5, %v1318_v5  ;;  %v624_v15 = vadd.f32 %v9091_v1, %v9119_v27  ;;  %v9191_v16 = vadd.f32 %v9091_v1, %v9121_v28  ;;  %v9210_v31 = vpop.f32.mrb[9].mxu0  ;;  %v9212_v32 = vpop.f32.mrb[9].mxu1 }
  0xf9   : > { %1766 = vst.msk [vmem:[#allocation2 + $0x1f] sm:$0x1] %vm1116_vm1, %v1392_v58  ;;  %1119 = vst.msk [vmem:[#allocation2 + $0x4] sm:$0x1] %vm1116_vm1, %v705_v59  ;;  %v1339_v17 = vrot.slane %v1311_v8, %v9093_v3  ;;  %v1341_v18 = vcombine.high %v1325_v9, %v1325_v9  ;;  %v1342_v19 = vcombine.high %v1332_v10, %v1332_v10 }
  0xfa   : > { %1120 = vst.msk [vmem:[#allocation2 + $0x6] sm:$0x1] %vm1116_vm1, %v707_v2  ;;  %1123 = vst.msk [vmem:[#allocation2 + $0xc] sm:$0x1] %vm1116_vm1, %v706_v0  ;;  %v807_v20 = vcombine.high %v629_v11, %v629_v11  ;;  %v814_v22 = vrot.slane %v629_v11, %v9093_v3  ;;  %v1442_v24 = vcombine.high %v1264_v14, %v1264_v14 }
  0xfb   : > { %1124 = vst.msk [vmem:[#allocation2 + $0xe] sm:$0x1] %vm1116_vm1, %v708_v4  ;;  %1751 = vst.msk [vmem:[#allocation2 + $0x1] sm:$0x1] %vm1116_vm1, %v1318_v5  ;;  %v1449_v25 = vrot.slane %v1264_v14, %v9093_v3  ;;  %v758_v26 = vcombine.high %v624_v15, %v624_v15  ;;  %v1343_v27 = vcombine.high %v1339_v17, %v1339_v17  ;;  %v9224_v46 = vpop.f32.mrb[10].mxu0  ;;  %v9226_v47 = vpop.f32.mrb[10].mxu1 }
  0xfc   : > { %1752 = vst.msk [vmem:[#allocation2 + $0x3] sm:$0x1] %vm1116_vm1, %v1332_v10  ;;  %1755 = vst.msk [vmem:[#allocation2 + $0x9] sm:$0x1] %vm1116_vm1, %v1325_v9  ;;  %v821_v28 = vrot.slane %v807_v20, %v9093_v3  ;;  %v765_v29 = vrot.slane %v624_v15, %v9093_v3  ;;  %v1393_v30 = vcombine.high %v9191_v16, %v9191_v16  ;;  %v9231_v54 = vpop.f32.mrb[11].mxu0  ;;  %v9233_v55 = vpop.f32.mrb[11].mxu1 }
  0xfd   : > { %1753 = vst.msk [vmem:[#allocation2 + $0x5] sm:$0x1] %vm1116_vm1, %v1340_v13  ;;  %1754 = vst.msk [vmem:[#allocation2 + $0x7] sm:$0x1] %vm1116_vm1, %v1342_v19  ;;  %v822_v33 = vcombine.high %v814_v22, %v814_v22  ;;  %v830_v34 = vrot.slane %v814_v22, %v9093_v3  ;;  %v1456_v35 = vrot.slane %v1442_v24, %v9093_v3  ;;  %v9259_v22 = vpop.permute.xlu0 %4000 }
  0xfe   : > { %1756 = vst.msk [vmem:[#allocation2 + $0xb] sm:$0x1] %vm1116_vm1, %v1339_v17  ;;  %1757 = vst.msk [vmem:[#allocation2 + $0xd] sm:$0x1] %vm1116_vm1, %v1341_v18  ;;  %v1457_v36 = vcombine.high %v1449_v25, %v1449_v25  ;;  %v823_v39 = vcombine.high %v821_v28, %v821_v28  ;;  %v837_v41 = vrot.slane %v821_v28, %v9093_v3  ;;  %v1823_v28 = vld [vmem:[#allocation2 + $0x10] sm:$0x3] }
  0xff   : > { %1758 = vst.msk [vmem:[#allocation2 + $0xf] sm:$0x1] %vm1116_vm1, %v1343_v27  ;;  %v1465_v44 = vrot.slane %v1449_v25, %v9093_v3  ;;  %v772_v45 = vrot.slane %v758_v26, %v9093_v3  ;;  %v844_v50 = vrot.slane %v822_v33, %v9093_v3  ;;  %v852_v51 = vcombine.high %v830_v34, %v830_v34  ;;  %v9248_v11 = vpop.f32.mrb[12].mxu0  ;;  %v9250_v13 = vpop.f32.mrb[12].mxu1 }
 0x100   : > { %1141 = vst.msk [vmem:[#allocation2 + $0x30] sm:$0x1] %vm1116_vm1, %v830_v34  ;;  %v1458_v52 = vcombine.high %v1456_v35, %v1456_v35  ;;  %v1472_v53 = vrot.slane %v1456_v35, %v9093_v3  ;;  %v851_v56 = vrot.slane %v823_v39, %v9093_v3  ;;  %v853_v57 = vcombine.high %v837_v41, %v837_v41  ;;  %v9269_v33 = vpop.f32.mrb[13].mxu0  ;;  %v9271_v34 = vpop.f32.mrb[13].mxu1 }
 0x101   : > { %1145 = vst.msk [vmem:[#allocation2 + $0x38] sm:$0x1] %vm1116_vm1, %v837_v41  ;;  %v1479_v58 = vrot.slane %v1457_v36, %v9093_v3  ;;  %v1487_v59 = vcombine.high %v1465_v44, %v1465_v44  ;;  %1775 = vst.msk [vmem:[#allocation2 + $0x31] sm:$0x1] %vm1116_vm1, %v1465_v44  ;;  %v854_v60 = vcombine.high %v844_v50, %v844_v50  ;;  %v1826_v44 = vld [vmem:[#allocation2 + $0x16] sm:$0x3] }
 0x102   : > { %1142 = vst.msk [vmem:[#allocation2 + $0x32] sm:$0x1] %vm1116_vm1, %v844_v50  ;;  %1143 = vst.msk [vmem:[#allocation2 + $0x34] sm:$0x1] %vm1116_vm1, %v852_v51  ;;  %v1486_v61 = vrot.slane %v1458_v52, %v9093_v3  ;;  %v1488_v0 = vcombine.high %v1472_v53, %v1472_v53  ;;  %v773_v2 = vcombine.high %v765_v29, %v765_v29  ;;  %v1815_v19 = vld [vmem:[#allocation2] sm:$0x3] }
 0x103   : > { %1779 = vst.msk [vmem:[#allocation2 + $0x39] sm:$0x1] %vm1116_vm1, %v1472_v53  ;;  %v1816_v4 = vld [vmem:[#allocation2 + $0x2] sm:$0x3]  ;;  %v855_v5 = vcombine.high %v851_v56, %v851_v56  ;;  %1146 = vst.msk [vmem:[#allocation2 + $0x3a] sm:$0x1] %vm1116_vm1, %v851_v56  ;;  %v1489_v8 = vcombine.high %v1479_v58, %v1479_v58  ;;  %v774_v9 = vcombine.high %v772_v45, %v772_v45 }
 0x104   : > { %1147 = vst.msk [vmem:[#allocation2 + $0x3c] sm:$0x1] %vm1116_vm1, %v853_v57  ;;  %1776 = vst.msk [vmem:[#allocation2 + $0x33] sm:$0x1] %vm1116_vm1, %v1479_v58  ;;  %v781_v10 = vrot.slane %v765_v29, %v9093_v3  ;;  %v1490_v14 = vcombine.high %v1486_v61, %v1486_v61  ;;  %v788_v15 = vrot.slane %v772_v45, %v9093_v3  ;;  %v1818_v20 = vld [vmem:[#allocation2 + $0x6] sm:$0x3]  ;;  %v9277_v45 = vpop.permute.xlu1 %4004 }
 0x105   : > { %1777 = vst.msk [vmem:[#allocation2 + $0x35] sm:$0x1] %vm1116_vm1, %v1487_v59  ;;  %1144 = vst.msk [vmem:[#allocation2 + $0x36] sm:$0x1] %vm1116_vm1, %v854_v60  ;;  %v795_v17 = vrot.slane %v773_v2, %v9093_v3  ;;  %v1400_v18 = vrot.slane %v9191_v16, %v9093_v3  ;;  %v802_v24 = vrot.slane %v774_v9, %v9093_v3  ;;  %v1824_v29 = vld [vmem:[#allocation2 + $0x12] sm:$0x3] }
 0x106   : > { %1780 = vst.msk [vmem:[#allocation2 + $0x3b] sm:$0x1] %vm1116_vm1, %v1486_v61  ;;  %1781 = vst.msk [vmem:[#allocation2 + $0x3d] sm:$0x1] %vm1116_vm1, %v1488_v0  ;;  %v803_v25 = vcombine.high %v781_v10, %v781_v10  ;;  %v1407_v26 = vrot.slane %v1393_v30, %v9093_v3  ;;  %v1943_v27 = vcombine.low %v1815_v19, %v1816_v4  ;;  %v1817_v16 = vld [vmem:[#allocation2 + $0x4] sm:$0x3] }
 0x107   : > { %1148 = vst.msk [vmem:[#allocation2 + $0x3e] sm:$0x1] %vm1116_vm1, %v855_v5  ;;  %1778 = vst.msk [vmem:[#allocation2 + $0x37] sm:$0x1] %vm1116_vm1, %v1489_v8  ;;  %v804_v35 = vcombine.high %v788_v15, %v788_v15  ;;  %v805_v36 = vcombine.high %v795_v17, %v795_v17  ;;  %v1408_v39 = vcombine.high %v1400_v18, %v1400_v18  ;;  %v1825_v30 = vld [vmem:[#allocation2 + $0x14] sm:$0x3] }
 0x108   : > { %1133 = vst.msk [vmem:[#allocation2 + $0x20] sm:$0x1] %vm1116_vm1, %v781_v10  ;;  %1782 = vst.msk [vmem:[#allocation2 + $0x3f] sm:$0x1] %vm1116_vm1, %v1490_v14  ;;  %v1416_v41 = vrot.slane %v1400_v18, %v9093_v3  ;;  %v806_v50 = vcombine.high %v802_v24, %v802_v24  ;;  %v1409_v51 = vcombine.high %v1407_v26, %v1407_v26  ;;  %v1820_v56 = vld [vmem:[#allocation2 + $0xa] sm:$0x3] }
 0x109   : > { %1134 = vst.msk [vmem:[#allocation2 + $0x22] sm:$0x1] %vm1116_vm1, %v795_v17  ;;  %1137 = vst.msk [vmem:[#allocation2 + $0x28] sm:$0x1] %vm1116_vm1, %v788_v15  ;;  %v1423_v52 = vrot.slane %v1407_v26, %v9093_v3  ;;  %v1944_v53 = vcombine.low %v1817_v16, %v1818_v20  ;;  %v1822_v57 = vld [vmem:[#allocation2 + $0xe] sm:$0x3]  ;;  %v1430_v60 = vrot.slane %v1408_v39, %v9093_v3 }
 0x10a   : > { %1135 = vst.msk [vmem:[#allocation2 + $0x24] sm:$0x1] %vm1116_vm1, %v803_v25  ;;  %1138 = vst.msk [vmem:[#allocation2 + $0x2a] sm:$0x1] %vm1116_vm1, %v802_v24  ;;  %v9282_v58 = vpop.f32.mrb[14].mxu0  ;;  %v9284_v59 = vpop.f32.mrb[14].mxu1  ;;  %v1438_v61 = vcombine.high %v1416_v41, %v1416_v41  ;;  %v1951_v0 = vrot.slane %v1943_v27, %v9101_v12  ;;  %v1977_v2 = vcombine.low %v1823_v28, %v1824_v29 }
 0x10b   : > { %1136 = vst.msk [vmem:[#allocation2 + $0x26] sm:$0x1] %vm1116_vm1, %v805_v36  ;;  %1139 = vst.msk [vmem:[#allocation2 + $0x2c] sm:$0x1] %vm1116_vm1, %v804_v35  ;;  %v1827_v4 = vld [vmem:[#allocation2 + $0x18] sm:$0x3]  ;;  %v1437_v14 = vrot.slane %v1409_v51, %v9093_v3  ;;  %v1439_v15 = vcombine.high %v1423_v52, %v1423_v52  ;;  %v1958_v17 = vrot.slane %v1944_v53, %v9101_v12 }
 0x10c   : > { %1767 = vst.msk [vmem:[#allocation2 + $0x21] sm:$0x1] %vm1116_vm1, %v1416_v41  ;;  %v1828_v5 = vld [vmem:[#allocation2 + $0x1a] sm:$0x3]  ;;  %v1830_v8 = vld [vmem:[#allocation2 + $0x1e] sm:$0x3]  ;;  %v1978_v18 = vcombine.low %v1825_v30, %v1826_v44  ;;  %v1440_v25 = vcombine.high %v1430_v60, %v1430_v60  ;;  %v1985_v26 = vrot.slane %v1977_v2, %v9101_v12 }
 0x10d   : > { %v9291_v9 = vpop.f32.mrb[15].mxu0  ;;  %v9293_v10 = vpop.f32.mrb[15].mxu1  ;;  %1140 = vst.msk [vmem:[#allocation2 + $0x2e] sm:$0x1] %vm1116_vm1, %v806_v50  ;;  %1771 = vst.msk [vmem:[#allocation2 + $0x29] sm:$0x1] %vm1116_vm1, %v1423_v52  ;;  %v1441_v39 = vcombine.high %v1437_v14, %v1437_v14  ;;  %v1959_v41 = vcombine.low %v1951_v0, %v1958_v17  ;;  %v1994_v44 = vcombine.low %v1827_v4, %v1828_v5 }
 0x10e   : > { %v1819_v19 = vld [vmem:[#allocation2 + $0x8] sm:$0x3]  ;;  %v1821_v20 = vld [vmem:[#allocation2 + $0xc] sm:$0x3]  ;;  %v1839_v24 = vld [vmem:[#allocation2 + $0x30] sm:$0x3]  ;;  %v1992_v16 = vrot.slane %v1978_v18, %v9101_v12  ;;  %v9305_v50 = vpop.permute.xlu0 %4006 }
 0x10f   : > { %1768 = vst.msk [vmem:[#allocation2 + $0x23] sm:$0x1] %vm1116_vm1, %v1430_v60  ;;  %1769 = vst.msk [vmem:[#allocation2 + $0x25] sm:$0x1] %vm1116_vm1, %v1438_v61  ;;  %v1960_v27 = vcombine.low %v1819_v19, %v1820_v56  ;;  %v1961_v28 = vcombine.low %v1821_v20, %v1822_v57  ;;  %v1840_v29 = vld [vmem:[#allocation2 + $0x32] sm:$0x3]  ;;  %v9310_v60 = vpop.permute.xlu1 %4008  ;;  %v2002_v4 = vrot.slane %v1994_v44, %v9101_v12 }
 0x110   : > { %v1841_v35 = vld [vmem:[#allocation2 + $0x34] sm:$0x3]  ;;  %v1843_v36 = vld [vmem:[#allocation2 + $0x38] sm:$0x3]  ;;  %1772 = vst.msk [vmem:[#allocation2 + $0x2b] sm:$0x1] %vm1116_vm1, %v1437_v14  ;;  %v2045_v2 = vcombine.low %v1839_v24, %v1840_v29  ;;  %v1993_v0 = vcombine.low %v1985_v26, %v1992_v16  ;;  %v1274_v26 = vadd.f32 %v9131_v42, %v9091_v1 }
 0x111   : > { %1773 = vst.msk [vmem:[#allocation2 + $0x2d] sm:$0x1] %vm1116_vm1, %v1439_v15  ;;  %v1829_v30 = vld [vmem:[#allocation2 + $0x1c] sm:$0x3]  ;;  %v1844_v51 = vld [vmem:[#allocation2 + $0x3a] sm:$0x3]  ;;  %v1968_v53 = vrot.slane %v1960_v27, %v9101_v12  ;;  %v1975_v56 = vrot.slane %v1961_v28, %v9101_v12  ;;  %v639_v27 = vadd.f32 %v9133_v43, %v9091_v1 }
 0x112   : > { %v1845_v52 = vld [vmem:[#allocation2 + $0x3c] sm:$0x3]  ;;  %1770 = vst.msk [vmem:[#allocation2 + $0x27] sm:$0x1] %vm1116_vm1, %v1440_v25  ;;  %v1995_v57 = vcombine.low %v1829_v30, %v1830_v8  ;;  %v1842_v61 = vld [vmem:[#allocation2 + $0x36] sm:$0x3]  ;;  %v2062_v15 = vcombine.low %v1843_v36, %v1844_v51  ;;  %v2053_v18 = vrot.slane %v2045_v2, %v9101_v12  ;;  %v9336_v36 = vadd.f32 %v9091_v1, %v9141_v49 }
 0x113   : > { %1774 = vst.msk [vmem:[#allocation2 + $0x2f] sm:$0x1] %vm1116_vm1, %v1441_v39  ;;  %v2046_v5 = vcombine.low %v1841_v35, %v1842_v61  ;;  %v1846_v14 = vld [vmem:[#allocation2 + $0x3e] sm:$0x3]  ;;  %v1976_v17 = vcombine.low %v1968_v53, %v1975_v56  ;;  %v1831_v20 = vld [vmem:[#allocation2 + $0x20] sm:$0x3]  ;;  %v9332_v35 = vadd.f32 %v9091_v1, %v9139_v48  ;;  %v1547_v16 = vrot.slane %v1274_v26, %v9093_v3 }
 0x114   : > { %2233 = vst.msk [vmem:[#allocation3 + $0x19] sm:$0xff] %vm2232_vm4, %v1959_v41  ;;  %v2009_v8 = vrot.slane %v1995_v57, %v9101_v12  ;;  %v2063_v19 = vcombine.low %v1845_v52, %v1846_v14  ;;  %2235 = vst.msk [vmem:[#allocation3 + $0x49] sm:$0xff] %vm2232_vm4, %v1993_v0  ;;  %v2070_v25 = vrot.slane %v2062_v15, %v9101_v12  ;;  %v1835_v28 = vld [vmem:[#allocation2 + $0x28] sm:$0x3]  ;;  %v4013_v52 = vpop.permute.xlu1 %4012 }
 0x115   : > { %4047 = vst.msk [vmem:[#allocation3 + $0x19] sm:$0xff] %vm4046_vm7, %v9216_v37  ;;  %v2060_v24 = vrot.slane %v2046_v5, %v9101_v12  ;;  %4049 = vst.msk [vmem:[#allocation3 + $0x49] sm:$0xff] %vm4046_vm7, %v9218_v38  ;;  %v4011_v38 = vpop.permute.xlu0 %4010  ;;  %v1540_v41 = vcombine.high %v1274_v26, %v1274_v26  ;;  %v905_v30 = vcombine.high %v639_v27, %v639_v27 }
 0x116   : > { %2234 = vst.msk [vmem:[#allocation3 + $0x21] sm:$0xff] %vm2232_vm4, %v1976_v17  ;;  %v2010_v37 = vcombine.low %v2002_v4, %v2009_v8  ;;  %v2077_v29 = vrot.slane %v2063_v19, %v9101_v12  ;;  %v1832_v42 = vld [vmem:[#allocation2 + $0x22] sm:$0x3]  ;;  %v1833_v43 = vld [vmem:[#allocation2 + $0x24] sm:$0x3]  ;;  %v912_v49 = vrot.slane %v639_v27, %v9093_v3  ;;  %v1555_v2 = vcombine.high %v1547_v16, %v1547_v16 }
 0x117   : > { %4048 = vst.msk [vmem:[#allocation3 + $0x21] sm:$0xff] %vm4046_vm7, %v9259_v22  ;;  %v2061_v39 = vcombine.low %v2053_v18, %v2060_v24  ;;  %v2011_v44 = vcombine.low %v1831_v20, %v1832_v42  ;;  %v1836_v48 = vld [vmem:[#allocation2 + $0x2a] sm:$0x3]  ;;  %v856_v22 = vcombine.high %v9332_v35, %v9332_v35  ;;  %v1554_v61 = vrot.slane %v1540_v41, %v9093_v3 }
 0x118   : > { %2236 = vst.msk [vmem:[#allocation3 + $0x51] sm:$0xff] %vm2232_vm4, %v2010_v37  ;;  %v1837_v51 = vld [vmem:[#allocation2 + $0x2c] sm:$0x3]  ;;  %v2078_v53 = vcombine.low %v2070_v25, %v2077_v29  ;;  %v2028_v57 = vcombine.low %v1835_v28, %v1836_v48  ;;  %v1563_v0 = vrot.slane %v1547_v16, %v9093_v3  ;;  %v919_v15 = vrot.slane %v905_v30, %v9093_v3 }
 0x119   : > { %4050 = vst.msk [vmem:[#allocation3 + $0x51] sm:$0xff] %vm4046_vm7, %v9277_v45  ;;  %v1834_v56 = vld [vmem:[#allocation2 + $0x26] sm:$0x3]  ;;  %v2019_v5 = vrot.slane %v2011_v44, %v9101_v12  ;;  %v920_v45 = vcombine.high %v912_v49, %v912_v49  ;;  %v1556_v18 = vcombine.high %v1554_v61, %v1554_v61  ;;  %v1570_v19 = vrot.slane %v1554_v61, %v9093_v3 }
 0x11a   : > { %2239 = vst.msk [vmem:[#allocation3 + $0xa9] sm:$0xff] %vm2232_vm4, %v2061_v39  ;;  %v2012_v4 = vcombine.low %v1833_v43, %v1834_v56  ;;  %v1838_v14 = vld [vmem:[#allocation2 + $0x2e] sm:$0x3]  ;;  %2240 = vst.msk [vmem:[#allocation3 + $0xb1] sm:$0xff] %vm2232_vm4, %v2078_v53  ;;  %v2036_v8 = vrot.slane %v2028_v57, %v9101_v12  ;;  %v1577_v25 = vrot.slane %v1555_v2, %v9093_v3 }
 0x11b   : > { %4053 = vst.msk [vmem:[#allocation3 + $0xa9] sm:$0xff] %vm4046_vm7, %v4011_v38  ;;  %v2029_v17 = vcombine.low %v1837_v51, %v1838_v14  ;;  %4054 = vst.msk [vmem:[#allocation3 + $0xb1] sm:$0xff] %vm4046_vm7, %v4013_v52  ;;  %v1585_v26 = vcombine.high %v1563_v0, %v1563_v0  ;;  %v921_v27 = vcombine.high %v919_v15, %v919_v15 }
 0x11c   : > { %1791 = vst.msk [vmem:[#allocation2 + $0x51] sm:$0x1] %vm1116_vm1, %v1563_v0  ;;  %v9358_v20 = vld [vmem:[#allocation3 + $0x18] sm:$0xff]  ;;  %v2026_v24 = vrot.slane %v2012_v4, %v9101_v12  ;;  %v1584_v28 = vrot.slane %v1556_v18, %v9093_v3  ;;  %v1586_v29 = vcombine.high %v1570_v19, %v1570_v19  ;;  %1795 = vst.msk [vmem:[#allocation2 + $0x59] sm:$0x1] %vm1116_vm1, %v1570_v19  ;;  %v9367_v42 = vld [vmem:[#allocation3 + $0x48] sm:$0xff] }
 0x11d   : > { %4199 = vst.msk [vmem:[#allocation4 + $0x10] sm:$0xff] %vm470_vm0, %v9358_v20  ;;  %v2043_v37 = vrot.slane %v2029_v17, %v9101_v12  ;;  %12422 = vst [vmem:[#allocation7_spill] sm:$0xff] %v9367_v42  ;;  %v928_v43 = vrot.slane %v912_v49, %v9093_v3  ;;  %v1587_v39 = vcombine.high %v1577_v25, %v1577_v25  ;;  %4707 = vrot.lane.b32.xlu0 %v9367_v42, %s8701_s16 }
 0x11e   : > { %v2027_v38 = vcombine.low %v2019_v5, %v2026_v24  ;;  %1792 = vst.msk [vmem:[#allocation2 + $0x53] sm:$0x1] %vm1116_vm1, %v1577_v25  ;;  %1793 = vst.msk [vmem:[#allocation2 + $0x55] sm:$0x1] %vm1116_vm1, %v1585_v26  ;;  %v935_v41 = vrot.slane %v919_v15, %v9093_v3  ;;  %v942_v16 = vrot.slane %v920_v45, %v9093_v3  ;;  %v9378_v30 = vld [vmem:[#allocation3 + $0x20] sm:$0xff] }
 0x11f   : > { %4203 = vst.msk [vmem:[#allocation4 + $0x30] sm:$0xff] %vm470_vm0, %v9367_v42  ;;  %v2044_v44 = vcombine.low %v2036_v8, %v2043_v37  ;;  %v1588_v48 = vcombine.high %v1584_v28, %v1584_v28  ;;  %v949_v51 = vrot.slane %v921_v27, %v9093_v3  ;;  %v950_v52 = vcombine.high %v928_v43, %v928_v43 }
 0x120   : > { %1796 = vst.msk [vmem:[#allocation2 + $0x5b] sm:$0x1] %vm1116_vm1, %v1584_v28  ;;  %1797 = vst.msk [vmem:[#allocation2 + $0x5d] sm:$0x1] %vm1116_vm1, %v1586_v29  ;;  %v951_v53 = vcombine.high %v935_v41, %v935_v41  ;;  %v952_v49 = vcombine.high %v942_v16, %v942_v16  ;;  %v863_v56 = vrot.slane %v9332_v35, %v9093_v3  ;;  %v9393_v61 = vld [vmem:[#allocation3 + $0x50] sm:$0xff] }
 0x121   : > { %1157 = vst.msk [vmem:[#allocation2 + $0x50] sm:$0x1] %vm1116_vm1, %v928_v43  ;;  %1794 = vst.msk [vmem:[#allocation2 + $0x57] sm:$0x1] %vm1116_vm1, %v1587_v39  ;;  %v870_v57 = vrot.slane %v856_v22, %v9093_v3  ;;  %v9395_v2 = vld [vmem:[#allocation3 + $0x58] sm:$0x3]  ;;  %v953_v0 = vcombine.high %v949_v51, %v949_v51  ;;  %v1491_v35 = vcombine.high %v9336_v36, %v9336_v36  ;;  %4709 = vrot.lane.b32.xlu1 %v9393_v61, %s8701_s16 }
 0x122   : > { %4200 = vst.msk [vmem:[#allocation4 + $0x18] sm:$0xff] %vm470_vm0, %v9378_v30  ;;  %12423 = vst [vmem:[#allocation8_spill] sm:$0xff] %v9393_v61  ;;  %v1498_v22 = vrot.slane %v9336_v36, %v9093_v3  ;;  %v4294_v4 = vrot.slane %v9393_v61, 1  ;;  %v871_v5 = vcombine.high %v863_v56, %v863_v56  ;;  %v879_v36 = vrot.slane %v863_v56, %v9093_v3  ;;  %v9424_v45 = vld [vmem:[#allocation3 + $0xb0] sm:$0xff] }
 0x123   : > { %2237 = vst.msk [vmem:[#allocation3 + $0x79] sm:$0xff] %vm2232_vm4, %v2027_v38  ;;  %2238 = vst.msk [vmem:[#allocation3 + $0x81] sm:$0xff] %vm2232_vm4, %v2044_v44  ;;  %v872_v14 = vcombine.high %v870_v57, %v870_v57  ;;  %v886_v15 = vrot.slane %v870_v57, %v9093_v3  ;;  %4699 = vrot.lane.b32.xlu0 %v9358_v20, %s8701_s16  ;;  %v4296_v18 = vrot.slane %v9395_v2, 1 }
 0x124   : > { %1158 = vst.msk [vmem:[#allocation2 + $0x52] sm:$0x1] %vm1116_vm1, %v942_v16  ;;  %1161 = vst.msk [vmem:[#allocation2 + $0x58] sm:$0x1] %vm1116_vm1, %v935_v41  ;;  %v1506_v17 = vcombine.high %v1498_v22, %v1498_v22  ;;  %v1514_v8 = vrot.slane %v1498_v22, %v9093_v3  ;;  %v893_v19 = vrot.slane %v871_v5, %v9093_v3  ;;  %v4293_v41 = vrot.slane %v9367_v42, 1 }
 0x125   : > { %4051 = vst.msk [vmem:[#allocation3 + $0x79] sm:$0xff] %vm4046_vm7, %v9305_v50  ;;  %v9411_v50 = vld [vmem:[#allocation3 + $0xa8] sm:$0xff]  ;;  %4052 = vst.msk [vmem:[#allocation3 + $0x81] sm:$0xff] %vm4046_vm7, %v9310_v60  ;;  %v1505_v60 = vrot.slane %v1491_v35, %v9093_v3  ;;  %v900_v24 = vrot.slane %v872_v14, %v9093_v3  ;;  %v901_v25 = vcombine.high %v879_v36, %v879_v36  ;;  %4701 = vrot.lane.b32.xlu1 %v9378_v30, %s8701_s16 }
 0x126   : > { %1798 = vst.msk [vmem:[#allocation2 + $0x5f] sm:$0x1] %vm1116_vm1, %v1588_v48  ;;  %1159 = vst.msk [vmem:[#allocation2 + $0x54] sm:$0x1] %vm1116_vm1, %v950_v52  ;;  %v902_v26 = vcombine.high %v886_v15, %v886_v15  ;;  %v1528_v28 = vrot.slane %v1506_v17, %v9093_v3  ;;  %v1536_v29 = vcombine.high %v1514_v8, %v1514_v8  ;;  %v4148_v16 = vld [vmem:[#allocation3 + $0x28] sm:$0x3] }
 0x127   : > { %1162 = vst.msk [vmem:[#allocation2 + $0x5a] sm:$0x1] %vm1116_vm1, %v949_v51  ;;  %12424 = vst [vmem:[#allocation9_spill] sm:$0xff] %v9411_v50  ;;  %v1507_v27 = vcombine.high %v1505_v60, %v1505_v60  ;;  %v1521_v37 = vrot.slane %v1505_v60, %v9093_v3  ;;  %v903_v43 = vcombine.high %v893_v19, %v893_v19  ;;  %4723 = vrot.lane.b32.xlu0 %v9411_v50, %s8701_s16  ;;  %v9474_v60 = vpop.permute.xlu0 %4014 }
 0x128   : > { %4204 = vst.msk [vmem:[#allocation4 + $0x38] sm:$0xff] %vm470_vm0, %v9393_v61  ;;  %4211 = vst.msk [vmem:[#allocation4 + $0x70] sm:$0xff] %vm470_vm0, %v9411_v50  ;;  %v904_v38 = vcombine.high %v900_v24, %v900_v24  ;;  %v9448_v39 = vsel %vm4277_vm5, %v4294_v4, %v4296_v18  ;;  %v1855_v44 = vld [vmem:[#allocation2 + $0x50] sm:$0x3]  ;;  %v1538_v52 = vcombine.high %v1528_v28, %v1528_v28  ;;  %v4503_v35 = vrot.slane %v9367_v42, 2 }
 0x129   : > { %1160 = vst.msk [vmem:[#allocation2 + $0x56] sm:$0x1] %vm1116_vm1, %v952_v49  ;;  %1163 = vst.msk [vmem:[#allocation2 + $0x5c] sm:$0x1] %vm1116_vm1, %v951_v53  ;;  %v1535_v48 = vrot.slane %v1507_v27, %v9093_v3  ;;  %v1537_v51 = vcombine.high %v1521_v37, %v1521_v37  ;;  %v4504_v53 = vrot.slane %v9393_v61, 2  ;;  %v9459_v57 = vsel %vm4277_vm5, %v4293_v41, %v4294_v4 }
 0x12a   : > { %12425 = vst [vmem:[#allocation10_spill] sm:$0xff] %v9424_v45  ;;  %1164 = vst.msk [vmem:[#allocation2 + $0x5e] sm:$0x1] %vm1116_vm1, %v953_v0  ;;  %v4506_v0 = vrot.slane %v9395_v2, 2  ;;  %v4284_v5 = vrot.slane %v9378_v30, 1  ;;  %4372 = vrot.lane.b32.xlu1 %v9448_v39, %s8697_s29  ;;  %v4286_v2 = vrot.slane %v4148_v16, 1 }
 0x12b   : > { %4212 = vst.msk [vmem:[#allocation4 + $0x78] sm:$0xff] %vm470_vm0, %v9424_v45  ;;  %12426 = vst [vmem:[#allocation11_spill] sm:$0xff] %v9448_v39  ;;  %v1856_v49 = vld [vmem:[#allocation2 + $0x52] sm:$0x3]  ;;  %v1859_v56 = vld [vmem:[#allocation2 + $0x58] sm:$0x3]  ;;  %4370 = vrot.lane.b32.xlu0 %v9459_v57, %s8697_s29 }
 0x12c   : > { %1149 = vst.msk [vmem:[#allocation2 + $0x40] sm:$0x1] %vm1116_vm1, %v879_v36  ;;  %1153 = vst.msk [vmem:[#allocation2 + $0x48] sm:$0x1] %vm1116_vm1, %v886_v15  ;;  %v9463_v22 = vld [vmem:[#allocation3 + $0x78] sm:$0xff]  ;;  %v1539_v36 = vcombine.high %v1535_v48, %v1535_v48  ;;  %v4494_v4 = vrot.slane %v9378_v30, 2  ;;  %v9481_v18 = vsel %vm4487_vm6, %v4504_v53, %v4506_v0 }
 0x12d   : > { %1783 = vst.msk [vmem:[#allocation2 + $0x41] sm:$0x1] %vm1116_vm1, %v1514_v8  ;;  %1150 = vst.msk [vmem:[#allocation2 + $0x42] sm:$0x1] %vm1116_vm1, %v893_v19  ;;  %v1857_v14 = vld [vmem:[#allocation2 + $0x54] sm:$0x3]  ;;  %v9484_v19 = vsel %vm4487_vm6, %v4503_v35, %v4504_v53 }
 0x12e   : > { %1151 = vst.msk [vmem:[#allocation2 + $0x44] sm:$0x1] %vm1116_vm1, %v901_v25  ;;  %1154 = vst.msk [vmem:[#allocation2 + $0x4a] sm:$0x1] %vm1116_vm1, %v900_v24  ;;  %v4496_v15 = vrot.slane %v4148_v16, 2  ;;  %v9476_v8 = vld [vmem:[#allocation3 + $0x80] sm:$0xff]  ;;  %v9486_v24 = vpop.permute.xlu1 %4016  ;;  %4582 = vrot.lane.b32.xlu1 %v9481_v18, %s8698_s30 }
 0x12f   : > { %1155 = vst.msk [vmem:[#allocation2 + $0x4c] sm:$0x1] %vm1116_vm1, %v902_v26  ;;  %1784 = vst.msk [vmem:[#allocation2 + $0x43] sm:$0x1] %vm1116_vm1, %v1528_v28  ;;  %v4283_v25 = vrot.slane %v9358_v20, 1  ;;  %v2113_v26 = vcombine.low %v1855_v44, %v1856_v49  ;;  %v9493_v28 = vsel %vm4277_vm5, %v4284_v5, %v4286_v2  ;;  %4580 = vrot.lane.b32.xlu0 %v9484_v19, %s8698_s30 }
 0x130   : > { %1785 = vst.msk [vmem:[#allocation2 + $0x45] sm:$0x1] %vm1116_vm1, %v1536_v29  ;;  %1787 = vst.msk [vmem:[#allocation2 + $0x49] sm:$0x1] %vm1116_vm1, %v1521_v37  ;;  %v1858_v17 = vld [vmem:[#allocation2 + $0x56] sm:$0x3]  ;;  %v9498_v29 = vsel %vm4487_vm6, %v4494_v4, %v4496_v15  ;;  %v9519_v15 = vadd.f32 %v9091_v1, %v9171_v6 }
 0x131   : > { %1152 = vst.msk [vmem:[#allocation2 + $0x46] sm:$0x1] %vm1116_vm1, %v903_v43  ;;  %1156 = vst.msk [vmem:[#allocation2 + $0x4e] sm:$0x1] %vm1116_vm1, %v904_v38  ;;  %v1860_v27 = vld [vmem:[#allocation2 + $0x5a] sm:$0x3]  ;;  %v2114_v43 = vcombine.low %v1857_v14, %v1858_v17  ;;  %v9501_v44 = vsel %vm4277_vm5, %v4283_v25, %v4284_v5  ;;  %v4019_v25 = vpop.permute.xlu0 %4018 }
 0x132   : > { %12427 = vst [vmem:[#allocation12_spill] sm:$0xff] %v9459_v57  ;;  %12428 = vst [vmem:[#allocation13_spill] sm:$0xff] %v9463_v22  ;;  %v1861_v37 = vld [vmem:[#allocation2 + $0x5c] sm:$0x3]  ;;  %v1862_v38 = vld [vmem:[#allocation2 + $0x5e] sm:$0x3]  ;;  %v2130_v41 = vcombine.low %v1859_v56, %v1860_v27  ;;  %v1284_v56 = vadd.f32 %v9163_v63, %v9091_v1  ;;  %4844 = vrot.lane.b32.xlu1 %v9448_v39, %s8702_s17 }
 0x133   : > { %1786 = vst.msk [vmem:[#allocation2 + $0x47] sm:$0x1] %vm1116_vm1, %v1538_v52  ;;  %1788 = vst.msk [vmem:[#allocation2 + $0x4b] sm:$0x1] %vm1116_vm1, %v1535_v48  ;;  %v2121_v48 = vrot.slane %v2113_v26, %v9101_v12  ;;  %v649_v52 = vadd.f32 %v9161_v62, %v9091_v1  ;;  %v2128_v53 = vrot.slane %v2114_v43, %v9101_v12  ;;  %4715 = vrot.lane.b32.xlu0 %v9463_v22, %s8701_s16 }
 0x134   : > { %1789 = vst.msk [vmem:[#allocation2 + $0x4d] sm:$0x1] %vm1116_vm1, %v1537_v51  ;;  %12429 = vst [vmem:[#allocation14_spill] sm:$0xff] %v9476_v8  ;;  %v1847_v16 = vld [vmem:[#allocation2 + $0x40] sm:$0x3]  ;;  %v2131_v51 = vcombine.low %v1861_v37, %v1862_v38  ;;  %v2138_v49 = vrot.slane %v2130_v41, %v9101_v12  ;;  %v1638_v26 = vcombine.high %v1284_v56, %v1284_v56  ;;  %v4021_v41 = vpop.permute.xlu1 %4020 }
 0x135   : > { %4207 = vst.msk [vmem:[#allocation4 + $0x50] sm:$0xff] %vm470_vm0, %v9463_v22  ;;  %4208 = vst.msk [vmem:[#allocation4 + $0x58] sm:$0xff] %vm470_vm0, %v9476_v8  ;;  %v1010_v2 = vrot.slane %v649_v52, %v9093_v3  ;;  %v2129_v63 = vcombine.low %v2121_v48, %v2128_v53  ;;  %v1645_v27 = vrot.slane %v1284_v56, %v9093_v3 }
 0x136   : > { %1790 = vst.msk [vmem:[#allocation2 + $0x4f] sm:$0x1] %vm1116_vm1, %v1539_v36  ;;  %v1848_v35 = vld [vmem:[#allocation2 + $0x42] sm:$0x3]  ;;  %v2145_v62 = vrot.slane %v2131_v51, %v9101_v12  ;;  %v1003_v36 = vcombine.high %v649_v52, %v649_v52  ;;  %v1652_v48 = vrot.slane %v1638_v26, %v9093_v3  ;;  %4364 = vrot.lane.b32.xlu1 %v9493_v28, %s8697_s29 }
 0x137   : > { %v1849_v5 = vld [vmem:[#allocation2 + $0x44] sm:$0x3]  ;;  %v1851_v14 = vld [vmem:[#allocation2 + $0x48] sm:$0x3]  ;;  %v2079_v17 = vcombine.low %v1847_v16, %v1848_v35  ;;  %v1018_v0 = vcombine.high %v1010_v2, %v1010_v2  ;;  %v1026_v52 = vrot.slane %v1010_v2, %v9093_v3  ;;  %2243 = vst.msk [vmem:[#allocation3 + $0x109] sm:$0xff] %vm2232_vm4, %v2129_v63  ;;  %v1653_v2 = vcombine.high %v1645_v27, %v1645_v27 }
 0x138   : > { %v2146_v40 = vcombine.low %v2138_v49, %v2145_v62  ;;  %v1017_v51 = vrot.slane %v1003_v36, %v9093_v3  ;;  %4057 = vst.msk [vmem:[#allocation3 + $0x109] sm:$0xff] %vm4046_vm7, %v4019_v25  ;;  %4842 = vrot.lane.b32.xlu0 %v9459_v57, %s8702_s17 }
 0x139   : > { %v2087_v6 = vrot.slane %v2079_v17, %v9101_v12  ;;  %v1040_v35 = vrot.slane %v1018_v0, %v9093_v3  ;;  %1173 = vst.msk [vmem:[#allocation2 + $0x70] sm:$0x1] %vm1116_vm1, %v1026_v52  ;;  %v1654_v0 = vcombine.high %v1652_v48, %v1652_v48 }
 0x13a   : > { %v1850_v37 = vld [vmem:[#allocation2 + $0x46] sm:$0x3]  ;;  %v1852_v43 = vld [vmem:[#allocation2 + $0x4a] sm:$0x3]  ;;  %2244 = vst.msk [vmem:[#allocation3 + $0x111] sm:$0xff] %vm2232_vm4, %v2146_v40  ;;  %v1019_v49 = vcombine.high %v1017_v51, %v1017_v51  ;;  %v1033_v56 = vrot.slane %v1017_v51, %v9093_v3  ;;  %4574 = vrot.lane.b32.xlu1 %v9498_v29, %s8698_s30 }
 0x13b   : > { %v1853_v38 = vld [vmem:[#allocation2 + $0x4c] sm:$0x3]  ;;  %v2080_v1 = vcombine.low %v1849_v5, %v1850_v37  ;;  %v2096_v16 = vcombine.low %v1851_v14, %v1852_v43  ;;  %v1048_v5 = vcombine.high %v1026_v52, %v1026_v52  ;;  %4058 = vst.msk [vmem:[#allocation3 + $0x111] sm:$0xff] %vm4046_vm7, %v4021_v41  ;;  %v1050_v40 = vcombine.high %v1040_v35, %v1040_v35 }
 0x13c   : > { %v1047_v17 = vrot.slane %v1019_v49, %v9093_v3  ;;  %v1049_v25 = vcombine.high %v1033_v56, %v1033_v56  ;;  %1174 = vst.msk [vmem:[#allocation2 + $0x72] sm:$0x1] %vm1116_vm1, %v1040_v35  ;;  %1177 = vst.msk [vmem:[#allocation2 + $0x78] sm:$0x1] %vm1116_vm1, %v1033_v56  ;;  %v1661_v37 = vrot.slane %v1645_v27, %v9093_v3  ;;  %v12430_v27 = vrot.slane %v9358_v20, 2 }
 0x13d   : > { %v1854_v53 = vld [vmem:[#allocation2 + $0x4e] sm:$0x3]  ;;  %v2094_v14 = vrot.slane %v2080_v1, %v9101_v12  ;;  %v2104_v36 = vrot.slane %v2096_v16, %v9101_v12  ;;  %1175 = vst.msk [vmem:[#allocation2 + $0x74] sm:$0x1] %vm1116_vm1, %v1048_v5  ;;  %v1668_v43 = vrot.slane %v1652_v48, %v9093_v3  ;;  %1176 = vst.msk [vmem:[#allocation2 + $0x76] sm:$0x1] %vm1116_vm1, %v1050_v40  ;;  %4362 = vrot.lane.b32.xlu0 %v9501_v44, %s8697_s29 }
 0x13e   : > { %v2097_v62 = vcombine.low %v1853_v38, %v1854_v53  ;;  %v1051_v38 = vcombine.high %v1047_v17, %v1047_v17  ;;  %1178 = vst.msk [vmem:[#allocation2 + $0x7a] sm:$0x1] %vm1116_vm1, %v1047_v17  ;;  %1179 = vst.msk [vmem:[#allocation2 + $0x7c] sm:$0x1] %vm1116_vm1, %v1049_v25  ;;  %v1675_v41 = vrot.slane %v1653_v2, %v9093_v3  ;;  %v9562_v1 = vld [vmem:[#allocation3 + $0xb8] sm:$0x3]  ;;  %4725 = vrot.lane.b32.xlu1 %v9424_v45, %s8701_s16 }
 0x13f   : > { %v2095_v63 = vcombine.low %v2087_v6, %v2094_v14  ;;  %v1682_v51 = vrot.slane %v1654_v0, %v9093_v3  ;;  %v9560_v52 = vsel %vm4487_vm6, %v12430_v27, %v4494_v4  ;;  %v1683_v16 = vcombine.high %v1661_v37, %v1661_v37  ;;  %1807 = vst.msk [vmem:[#allocation2 + $0x71] sm:$0x1] %vm1116_vm1, %v1661_v37  ;;  %v9579_v49 = vld [vmem:[%s12359_s6] ss:$0 sm:$0xff] }
 0x140   : > { %v2111_v26 = vrot.slane %v2097_v62, %v9101_v12  ;;  %v1684_v48 = vcombine.high %v1668_v43, %v1668_v43  ;;  %1811 = vst.msk [vmem:[#allocation2 + $0x79] sm:$0x1] %vm1116_vm1, %v1668_v43  ;;  %v954_v53 = vcombine.high %v9519_v15, %v9519_v15  ;;  %1180 = vst.msk [vmem:[#allocation2 + $0x7e] sm:$0x1] %vm1116_vm1, %v1051_v38  ;;  %v4314_v35 = vrot.slane %v9424_v45, 1 }
 0x141   : > { %2241 = vst.msk [vmem:[#allocation3 + $0xd9] sm:$0xff] %vm2232_vm4, %v2095_v63  ;;  %v1685_v20 = vcombine.high %v1675_v41, %v1675_v41  ;;  %v1686_v30 = vcombine.high %v1682_v51, %v1682_v51  ;;  %v961_v4 = vrot.slane %v9519_v15, %v9093_v3  ;;  %v1279_v56 = vadd.f32 %v9579_v49, %v9173_v7  ;;  %v9589_v15 = vld [vmem:[#allocation3 + $0x108] sm:$0xff] }
 0x142   : > { %v2112_v6 = vcombine.low %v2104_v36, %v2111_v26  ;;  %4055 = vst.msk [vmem:[#allocation3 + $0xd9] sm:$0xff] %vm4046_vm7, %v9474_v60  ;;  %v968_v60 = vrot.slane %v954_v53, %v9093_v3  ;;  %12431 = vst [vmem:[#allocation15_spill] sm:$0xff] %v9589_v15  ;;  %v4316_v5 = vrot.slane %v9562_v1, 1  ;;  %v4313_v14 = vrot.slane %v9411_v50, 1  ;;  %v9604_v17 = vld [vmem:[#allocation3 + $0x110] sm:$0xff]  ;;  %4572 = vrot.lane.b32.xlu0 %v9560_v52, %s8698_s30 }
 0x143   : > { %1808 = vst.msk [vmem:[#allocation2 + $0x73] sm:$0x1] %vm1116_vm1, %v1675_v41  ;;  %1812 = vst.msk [vmem:[#allocation2 + $0x7b] sm:$0x1] %vm1116_vm1, %v1682_v51  ;;  %v969_v7 = vcombine.high %v961_v4, %v961_v4  ;;  %v977_v62 = vrot.slane %v961_v4, %v9093_v3  ;;  %v1589_v36 = vcombine.high %v1279_v56, %v1279_v56  ;;  %v4524_v27 = vrot.slane %v9424_v45, 2 }
 0x144   : > { %2242 = vst.msk [vmem:[#allocation3 + $0xe1] sm:$0xff] %vm2232_vm4, %v2112_v6  ;;  %v1596_v2 = vrot.slane %v1279_v56, %v9093_v3  ;;  %12432 = vst [vmem:[#allocation16_spill] sm:$0xff] %v9604_v17  ;;  %v970_v25 = vcombine.high %v968_v60, %v968_v60  ;;  %v9608_v40 = vsel %vm4277_vm5, %v4314_v35, %v4316_v5  ;;  %v4526_v4 = vrot.slane %v9562_v1, 2 }
 0x145   : > { %1809 = vst.msk [vmem:[#allocation2 + $0x75] sm:$0x1] %vm1116_vm1, %v1683_v16  ;;  %1813 = vst.msk [vmem:[#allocation2 + $0x7d] sm:$0x1] %vm1116_vm1, %v1684_v48  ;;  %v9611_v0 = vsel %vm4277_vm5, %v4313_v14, %v4314_v35  ;;  %v991_v63 = vrot.slane %v969_v7, %v9093_v3  ;;  %v999_v26 = vcombine.high %v977_v62, %v977_v62  ;;  %4836 = vrot.lane.b32.xlu1 %v9493_v28, %s8702_s17 }
 0x146   : > { %4056 = vst.msk [vmem:[#allocation3 + $0xe1] sm:$0xff] %vm4046_vm7, %v9486_v24  ;;  %v984_v24 = vrot.slane %v968_v60, %v9093_v3  ;;  %12433 = vst [vmem:[#allocation17_spill] sm:$0xff] %v9608_v40  ;;  %v1603_v37 = vrot.slane %v1589_v36, %v9093_v3  ;;  %v1604_v43 = vcombine.high %v1596_v2, %v1596_v2  ;;  %4834 = vrot.lane.b32.xlu0 %v9501_v44, %s8702_s17 }
 0x147   : > { %1810 = vst.msk [vmem:[#allocation2 + $0x77] sm:$0x1] %vm1116_vm1, %v1685_v20  ;;  %1814 = vst.msk [vmem:[#allocation2 + $0x7f] sm:$0x1] %vm1116_vm1, %v1686_v30  ;;  %v998_v38 = vrot.slane %v970_v25, %v9093_v3  ;;  %v1612_v51 = vrot.slane %v1596_v2, %v9093_v3  ;;  %v1001_v6 = vcombine.high %v991_v63, %v991_v63 }
 0x148   : > { %4219 = vst.msk [vmem:[#allocation4 + $0xb0] sm:$0xff] %vm470_vm0, %v9589_v15  ;;  %12434 = vst [vmem:[#allocation18_spill] sm:$0xff] %v9611_v0  ;;  %v1000_v41 = vcombine.high %v984_v24, %v984_v24  ;;  %v1605_v16 = vcombine.high %v1603_v37, %v1603_v37  ;;  %v1619_v48 = vrot.slane %v1603_v37, %v9093_v3 }
 0x149   : > { %4220 = vst.msk [vmem:[#allocation4 + $0xb8] sm:$0xff] %vm470_vm0, %v9604_v17  ;;  %v1626_v53 = vrot.slane %v1604_v43, %v9093_v3  ;;  %v1002_v20 = vcombine.high %v998_v38, %v998_v38  ;;  %v1634_v30 = vcombine.high %v1612_v51, %v1612_v51  ;;  %v2322_v56 = vadd.f32 %v9579_v49, %v9196_v21  ;;  %v9636_v60 = vld [vmem:[#allocation3 + $0xd8] sm:$0xff] }
 0x14a   : > { %1165 = vst.msk [vmem:[#allocation2 + $0x60] sm:$0x1] %vm1116_vm1, %v977_v62  ;;  %1169 = vst.msk [vmem:[#allocation2 + $0x68] sm:$0x1] %vm1116_vm1, %v984_v24  ;;  %v1633_v35 = vrot.slane %v1605_v16, %v9093_v3  ;;  %v1635_v5 = vcombine.high %v1619_v48, %v1619_v48  ;;  %v2956_v7 = vadd.f32 %v9579_v49, %v9198_v23  ;;  %4717 = vrot.lane.b32.xlu1 %v9476_v8, %s8701_s16 }
 0x14b   : > { %1166 = vst.msk [vmem:[#allocation2 + $0x62] sm:$0x1] %vm1116_vm1, %v991_v63  ;;  %1167 = vst.msk [vmem:[#allocation2 + $0x64] sm:$0x1] %vm1116_vm1, %v999_v26  ;;  %v1636_v14 = vcombine.high %v1626_v53, %v1626_v53  ;;  %v9653_v21 = vsel %vm4487_vm6, %v4524_v27, %v4526_v4  ;;  %v2412_v1 = vcombine.high %v2322_v56, %v2322_v56  ;;  %4739 = vrot.lane.b32.xlu0 %v9589_v15, %s8701_s16 }
 0x14c   : > { %1170 = vst.msk [vmem:[#allocation2 + $0x6a] sm:$0x1] %vm1116_vm1, %v998_v38  ;;  %1171 = vst.msk [vmem:[#allocation2 + $0x6c] sm:$0x1] %vm1116_vm1, %v1000_v41  ;;  %v2419_v62 = vrot.slane %v2322_v56, %v9093_v3  ;;  %v2317_v23 = vadd.f32 %v9579_v49, %v9210_v31  ;;  %v1637_v2 = vcombine.high %v1633_v35, %v1633_v35 }
 0x14d   : > { %1799 = vst.msk [vmem:[#allocation2 + $0x61] sm:$0x1] %vm1116_vm1, %v1612_v51  ;;  %12435 = vst [vmem:[#allocation19_spill] sm:$0xff] %v9636_v60  ;;  %v9658_v36 = vld [vmem:[#allocation3 + $0xe0] sm:$0xff]  ;;  %v3046_v28 = vcombine.high %v2956_v7, %v2956_v7  ;;  %v3053_v25 = vrot.slane %v2956_v7, %v9093_v3  ;;  %v9668_v24 = vadd.f32 %v9579_v49, %v9212_v32 }
 0x14e   : > { %1168 = vst.msk [vmem:[#allocation2 + $0x66] sm:$0x1] %vm1116_vm1, %v1001_v6  ;;  %1800 = vst.msk [vmem:[#allocation2 + $0x63] sm:$0x1] %vm1116_vm1, %v1626_v53  ;;  %v2426_v31 = vrot.slane %v2412_v1, %v9093_v3  ;;  %v2427_v63 = vcombine.high %v2419_v62, %v2419_v62  ;;  %v2435_v26 = vrot.slane %v2419_v62, %v9093_v3  ;;  %4388 = vrot.lane.b32.xlu1 %v9608_v40, %s8697_s29 }
 0x14f   : > { %1803 = vst.msk [vmem:[#allocation2 + $0x69] sm:$0x1] %vm1116_vm1, %v1619_v48  ;;  %1172 = vst.msk [vmem:[#allocation2 + $0x6e] sm:$0x1] %vm1116_vm1, %v1002_v20  ;;  %v2363_v37 = vcombine.high %v2317_v23, %v2317_v23  ;;  %v3060_v44 = vrot.slane %v3046_v28, %v9093_v3  ;;  %v3061_v43 = vcombine.high %v3053_v25, %v3053_v25  ;;  %4386 = vrot.lane.b32.xlu0 %v9611_v0, %s8697_s29 }
 0x150   : > { %4215 = vst.msk [vmem:[#allocation4 + $0x90] sm:$0xff] %vm470_vm0, %v9636_v60  ;;  %12436 = vst [vmem:[#allocation20_spill] sm:$0xff] %v9658_v36  ;;  %v3069_v38 = vrot.slane %v3053_v25, %v9093_v3  ;;  %v2370_v41 = vrot.slane %v2317_v23, %v9093_v3  ;;  %v2428_v32 = vcombine.high %v2426_v31, %v2426_v31 }
 0x151   : > { %1801 = vst.msk [vmem:[#allocation2 + $0x65] sm:$0x1] %vm1116_vm1, %v1634_v30  ;;  %1802 = vst.msk [vmem:[#allocation2 + $0x67] sm:$0x1] %vm1116_vm1, %v1636_v14  ;;  %v2442_v51 = vrot.slane %v2426_v31, %v9093_v3  ;;  %v2449_v6 = vrot.slane %v2427_v63, %v9093_v3  ;;  %v2457_v16 = vcombine.high %v2435_v26, %v2435_v26 }
 0x152   : > { %1804 = vst.msk [vmem:[#allocation2 + $0x6b] sm:$0x1] %vm1116_vm1, %v1633_v35  ;;  %1805 = vst.msk [vmem:[#allocation2 + $0x6d] sm:$0x1] %vm1116_vm1, %v1635_v5  ;;  %v3062_v48 = vcombine.high %v3060_v44, %v3060_v44  ;;  %v3076_v53 = vrot.slane %v3060_v44, %v9093_v3  ;;  %v3083_v20 = vrot.slane %v3061_v43, %v9093_v3  ;;  %v9714_v44 = vld [vmem:[#allocation3 + $0x88] sm:$0x3]  ;;  %v9716_v43 = vpop.permute.xlu0 %4022  ;;  %4598 = vrot.lane.b32.xlu1 %v9653_v21, %s8698_s30 }
 0x153   : > { %4216 = vst.msk [vmem:[#allocation4 + $0x98] sm:$0xff] %vm470_vm0, %v9658_v36  ;;  %v3091_v30 = vcombine.high %v3069_v38, %v3069_v38  ;;  %v2456_v4 = vrot.slane %v2428_v32, %v9093_v3  ;;  %v2458_v56 = vcombine.high %v2442_v51, %v2442_v51  ;;  %v2459_v35 = vcombine.high %v2449_v6, %v2449_v6 }
 0x154   : > { %1806 = vst.msk [vmem:[#allocation2 + $0x6f] sm:$0x1] %vm1116_vm1, %v1637_v2  ;;  %2827 = vst.msk [vmem:[#allocation2 + $0x10] sm:$0x1] %vm1116_vm1, %v2435_v26  ;;  %v2377_v5 = vrot.slane %v2363_v37, %v9093_v3  ;;  %v3090_v14 = vrot.slane %v3062_v48, %v9093_v3  ;;  %v3092_v7 = vcombine.high %v3076_v53, %v3076_v53 }
 0x155   : > { %3461 = vst.msk [vmem:[#allocation2 + $0x11] sm:$0x1] %vm1116_vm1, %v3069_v38  ;;  %2828 = vst.msk [vmem:[#allocation2 + $0x12] sm:$0x1] %vm1116_vm1, %v2449_v6  ;;  %v3093_v1 = vcombine.high %v3083_v20, %v3083_v20  ;;  %v2378_v62 = vcombine.high %v2370_v41, %v2370_v41  ;;  %v2460_v23 = vcombine.high %v2456_v4, %v2456_v4 }
 0x156   : > { %2829 = vst.msk [vmem:[#allocation2 + $0x14] sm:$0x1] %vm1116_vm1, %v2457_v16  ;;  %2831 = vst.msk [vmem:[#allocation2 + $0x18] sm:$0x1] %vm1116_vm1, %v2442_v51  ;;  %v2379_v2 = vcombine.high %v2377_v5, %v2377_v5  ;;  %v2386_v28 = vrot.slane %v2370_v41, %v9093_v3  ;;  %v2393_v25 = vrot.slane %v2377_v5, %v9093_v3  ;;  %v4523_v51 = vrot.slane %v9411_v50, 2 }
 0x157   : > { %3462 = vst.msk [vmem:[#allocation2 + $0x13] sm:$0x1] %vm1116_vm1, %v3083_v20  ;;  %3463 = vst.msk [vmem:[#allocation2 + $0x15] sm:$0x1] %vm1116_vm1, %v3091_v30  ;;  %v3094_v31 = vcombine.high %v3090_v14, %v3090_v14  ;;  %v2400_v63 = vrot.slane %v2378_v62, %v9093_v3  ;;  %v2997_v26 = vcombine.high %v9668_v24, %v9668_v24  ;;  %v12369_v30 = vrot.slane %v9476_v8, 1 }
 0x158   : > { %3465 = vst.msk [vmem:[#allocation2 + $0x19] sm:$0x1] %vm1116_vm1, %v3076_v53  ;;  %2830 = vst.msk [vmem:[#allocation2 + $0x16] sm:$0x1] %vm1116_vm1, %v2459_v35  ;;  %v3004_v37 = vrot.slane %v9668_v24, %v9093_v3  ;;  %v2407_v38 = vrot.slane %v2379_v2, %v9093_v3  ;;  %v2408_v41 = vcombine.high %v2386_v28, %v2386_v28  ;;  %4860 = vrot.lane.b32.xlu1 %v9608_v40, %s8702_s17 }
 0x159   : > { %2832 = vst.msk [vmem:[#allocation2 + $0x1a] sm:$0x1] %vm1116_vm1, %v2456_v4  ;;  %2833 = vst.msk [vmem:[#allocation2 + $0x1c] sm:$0x1] %vm1116_vm1, %v2458_v56  ;;  %v2409_v32 = vcombine.high %v2393_v25, %v2393_v25  ;;  %v2410_v6 = vcombine.high %v2400_v63, %v2400_v63  ;;  %v3011_v24 = vrot.slane %v2997_v26, %v9093_v3  ;;  %v4306_v4 = vrot.slane %v9714_v44, 1  ;;  %v9739_v56 = vpop.permute.xlu1 %4024 }
 0x15a   : > { %3464 = vst.msk [vmem:[#allocation2 + $0x17] sm:$0x1] %vm1116_vm1, %v3093_v1  ;;  %3466 = vst.msk [vmem:[#allocation2 + $0x1b] sm:$0x1] %vm1116_vm1, %v3090_v14  ;;  %v3012_v16 = vcombine.high %v3004_v37, %v3004_v37  ;;  %v3020_v48 = vrot.slane %v3004_v37, %v9093_v3  ;;  %v2411_v53 = vcombine.high %v2407_v38, %v2407_v38 }
 0x15b   : > { %3467 = vst.msk [vmem:[#allocation2 + $0x1d] sm:$0x1] %vm1116_vm1, %v3092_v7  ;;  %2834 = vst.msk [vmem:[#allocation2 + $0x1e] sm:$0x1] %vm1116_vm1, %v2460_v23  ;;  %v9735_v20 = vsel %vm4487_vm6, %v4523_v51, %v4524_v27  ;;  %v3013_v35 = vcombine.high %v3011_v24, %v3011_v24  ;;  %v3027_v5 = vrot.slane %v3011_v24, %v9093_v3 }
 0x15c   : > { %2819 = vst.msk [vmem:[#allocation2] sm:$0x1] %vm1116_vm1, %v2386_v28  ;;  %2823 = vst.msk [vmem:[#allocation2 + $0x8] sm:$0x1] %vm1116_vm1, %v2393_v25  ;;  %v3034_v14 = vrot.slane %v3012_v16, %v9093_v3  ;;  %v3042_v7 = vcombine.high %v3020_v48, %v3020_v48  ;;  %4596 = vrot.lane.b32.xlu0 %v9735_v20, %s8698_s30  ;;  %v9751_v27 = vsel %vm4277_vm5, %v12369_v30, %v4306_v4 }
 0x15d   : > { %3468 = vst.msk [vmem:[#allocation2 + $0x1f] sm:$0x1] %vm1116_vm1, %v3094_v31  ;;  %2820 = vst.msk [vmem:[#allocation2 + $0x2] sm:$0x1] %vm1116_vm1, %v2400_v63  ;;  %v2332_v1 = vadd.f32 %v9579_v49, %v9224_v46  ;;  %v2966_v62 = vadd.f32 %v9579_v49, %v9226_v47  ;;  %v2327_v23 = vadd.f32 %v9579_v49, %v9231_v54  ;;  %v9767_v46 = vpop.permute.xlu0 %4026  ;;  %v9784_v16 = vpop.permute.xlu1 %4028  ;;  %4380 = vrot.lane.b32.xlu1 %v9751_v27, %s8697_s29 }
 0x15e   : > { %2821 = vst.msk [vmem:[#allocation2 + $0x4] sm:$0x1] %vm1116_vm1, %v2408_v41  ;;  %2824 = vst.msk [vmem:[#allocation2 + $0xa] sm:$0x1] %vm1116_vm1, %v2407_v38  ;;  %v3041_v2 = vrot.slane %v3013_v35, %v9093_v3  ;;  %v3043_v28 = vcombine.high %v3027_v5, %v3027_v5  ;;  %v3044_v25 = vcombine.high %v3034_v14, %v3034_v14  ;;  %v3527_v39 = vld [vmem:[#allocation2 + $0x14] sm:$0x3] }
 0x15f   : > { %2825 = vst.msk [vmem:[#allocation2 + $0xc] sm:$0x1] %vm1116_vm1, %v2409_v32  ;;  %2822 = vst.msk [vmem:[#allocation2 + $0x6] sm:$0x1] %vm1116_vm1, %v2410_v6  ;;  %v9765_v31 = vadd.f32 %v9579_v49, %v9233_v55  ;;  %v2510_v47 = vcombine.high %v2332_v1, %v2332_v1  ;;  %v2517_v54 = vrot.slane %v2332_v1, %v9093_v3  ;;  %v3529_v45 = vld [vmem:[#allocation2 + $0x18] sm:$0x3] }
 0x160   : > { %3453 = vst.msk [vmem:[#allocation2 + $0x1] sm:$0x1] %vm1116_vm1, %v3020_v48  ;;  %2826 = vst.msk [vmem:[#allocation2 + $0xe] sm:$0x1] %vm1116_vm1, %v2411_v53  ;;  %v3144_v63 = vcombine.high %v2966_v62, %v2966_v62  ;;  %v3151_v26 = vrot.slane %v2966_v62, %v9093_v3  ;;  %v3045_v37 = vcombine.high %v3041_v2, %v3041_v2  ;;  %4731 = vrot.lane.b32.xlu0 %v9636_v60, %s8701_s16 }
 0x161   : > { %12437 = vst [vmem:[#allocation21_spill] sm:$0xff] %v9751_v27  ;;  %3454 = vst.msk [vmem:[#allocation2 + $0x3] sm:$0x1] %vm1116_vm1, %v3034_v14  ;;  %v2461_v55 = vcombine.high %v2327_v23, %v2327_v23  ;;  %v2468_v38 = vrot.slane %v2327_v23, %v9093_v3  ;;  %v3095_v41 = vcombine.high %v9765_v31, %v9765_v31 }
 0x162   : > { %3455 = vst.msk [vmem:[#allocation2 + $0x5] sm:$0x1] %vm1116_vm1, %v3042_v7  ;;  %3457 = vst.msk [vmem:[#allocation2 + $0x9] sm:$0x1] %vm1116_vm1, %v3027_v5  ;;  %v2524_v32 = vrot.slane %v2510_v47, %v9093_v3  ;;  %v2525_v51 = vcombine.high %v2517_v54, %v2517_v54  ;;  %v2533_v6 = vrot.slane %v2517_v54, %v9093_v3  ;;  %v9789_v5 = vpop.permute.xlu0 %4079 }
 0x163   : > { %3456 = vst.msk [vmem:[#allocation2 + $0x7] sm:$0x1] %vm1116_vm1, %v3044_v25  ;;  %3458 = vst.msk [vmem:[#allocation2 + $0xb] sm:$0x1] %vm1116_vm1, %v3041_v2  ;;  %v3158_v24 = vrot.slane %v3144_v63, %v9093_v3  ;;  %v3159_v48 = vcombine.high %v3151_v26, %v3151_v26  ;;  %v3167_v53 = vrot.slane %v3151_v26, %v9093_v3 }
 0x164   : > { %3459 = vst.msk [vmem:[#allocation2 + $0xd] sm:$0x1] %vm1116_vm1, %v3043_v28  ;;  %3460 = vst.msk [vmem:[#allocation2 + $0xf] sm:$0x1] %vm1116_vm1, %v3045_v37  ;;  %v2475_v4 = vrot.slane %v2461_v55, %v9093_v3  ;;  %v2476_v35 = vcombine.high %v2468_v38, %v2468_v38  ;;  %v2526_v14 = vcombine.high %v2524_v32, %v2524_v32  ;;  %4858 = vrot.lane.b32.xlu0 %v9611_v0, %s8702_s17  ;;  %v9805_v37 = vpop.permute.xlu1 %4081 }
 0x165   : > { %v2540_v7 = vrot.slane %v2524_v32, %v9093_v3  ;;  %v2547_v1 = vrot.slane %v2525_v51, %v9093_v3  ;;  %v2555_v62 = vcombine.high %v2533_v6, %v2533_v6  ;;  %2843 = vst.msk [vmem:[#allocation2 + $0x30] sm:$0x1] %vm1116_vm1, %v2533_v6  ;;  %v3160_v23 = vcombine.high %v3158_v24, %v3158_v24 }
 0x166   : > { %v3174_v2 = vrot.slane %v3158_v24, %v9093_v3  ;;  %v3181_v28 = vrot.slane %v3159_v48, %v9093_v3  ;;  %v3189_v25 = vcombine.high %v3167_v53, %v3167_v53  ;;  %3477 = vst.msk [vmem:[#allocation2 + $0x31] sm:$0x1] %vm1116_vm1, %v3167_v53  ;;  %v2554_v47 = vrot.slane %v2526_v14, %v9093_v3 }
 0x167   : > { %v2556_v54 = vcombine.high %v2540_v7, %v2540_v7  ;;  %v2557_v63 = vcombine.high %v2547_v1, %v2547_v1  ;;  %2844 = vst.msk [vmem:[#allocation2 + $0x32] sm:$0x1] %vm1116_vm1, %v2547_v1  ;;  %2845 = vst.msk [vmem:[#allocation2 + $0x34] sm:$0x1] %vm1116_vm1, %v2555_v62  ;;  %v2477_v26 = vcombine.high %v2475_v4, %v2475_v4  ;;  %v1864_v1 = vld [vmem:[#allocation2 + $0x62] sm:$0x3] }
 0x168   : > { %2847 = vst.msk [vmem:[#allocation2 + $0x38] sm:$0x1] %vm1116_vm1, %v2540_v7  ;;  %v3188_v55 = vrot.slane %v3160_v23, %v9093_v3  ;;  %v3190_v32 = vcombine.high %v3174_v2, %v3174_v2  ;;  %v3191_v51 = vcombine.high %v3181_v28, %v3181_v28  ;;  %3478 = vst.msk [vmem:[#allocation2 + $0x33] sm:$0x1] %vm1116_vm1, %v3181_v28  ;;  %v1863_v7 = vld [vmem:[#allocation2 + $0x60] sm:$0x3]  ;;  %v9840_v30 = vpop.permute.xlu1 %4085 }
 0x169   : > { %3479 = vst.msk [vmem:[#allocation2 + $0x35] sm:$0x1] %vm1116_vm1, %v3189_v25  ;;  %3481 = vst.msk [vmem:[#allocation2 + $0x39] sm:$0x1] %vm1116_vm1, %v3174_v2  ;;  %v2484_v6 = vrot.slane %v2468_v38, %v9093_v3  ;;  %v2558_v24 = vcombine.high %v2554_v47, %v2554_v47  ;;  %v2491_v48 = vrot.slane %v2475_v4, %v9093_v3  ;;  %v1867_v62 = vld [vmem:[#allocation2 + $0x68] sm:$0x3] }
 0x16a   : > { %2846 = vst.msk [vmem:[#allocation2 + $0x36] sm:$0x1] %vm1116_vm1, %v2557_v63  ;;  %2848 = vst.msk [vmem:[#allocation2 + $0x3a] sm:$0x1] %vm1116_vm1, %v2554_v47  ;;  %v2498_v53 = vrot.slane %v2476_v35, %v9093_v3  ;;  %v2505_v14 = vrot.slane %v2477_v26, %v9093_v3  ;;  %v3192_v23 = vcombine.high %v3188_v55, %v3188_v55  ;;  %v1865_v2 = vld [vmem:[#allocation2 + $0x64] sm:$0x3]  ;;  %v9825_v47 = vpop.permute.xlu0 %4083 }
 0x16b   : > { %2849 = vst.msk [vmem:[#allocation2 + $0x3c] sm:$0x1] %vm1116_vm1, %v2556_v54  ;;  %3480 = vst.msk [vmem:[#allocation2 + $0x37] sm:$0x1] %vm1116_vm1, %v3191_v51  ;;  %v2506_v38 = vcombine.high %v2484_v6, %v2484_v6  ;;  %v3102_v4 = vrot.slane %v9765_v31, %v9093_v3  ;;  %v3109_v35 = vrot.slane %v3095_v41, %v9093_v3  ;;  %v1866_v28 = vld [vmem:[#allocation2 + $0x66] sm:$0x3] }
 0x16c   : > { %3482 = vst.msk [vmem:[#allocation2 + $0x3b] sm:$0x1] %vm1116_vm1, %v3188_v55  ;;  %3483 = vst.msk [vmem:[#allocation2 + $0x3d] sm:$0x1] %vm1116_vm1, %v3190_v32  ;;  %v1868_v25 = vld [vmem:[#allocation2 + $0x6a] sm:$0x3]  ;;  %v2507_v54 = vcombine.high %v2491_v48, %v2491_v48  ;;  %v2508_v63 = vcombine.high %v2498_v53, %v2498_v53  ;;  %v2509_v26 = vcombine.high %v2505_v14, %v2505_v14 }
 0x16d   : > { %2835 = vst.msk [vmem:[#allocation2 + $0x20] sm:$0x1] %vm1116_vm1, %v2484_v6  ;;  %2850 = vst.msk [vmem:[#allocation2 + $0x3e] sm:$0x1] %vm1116_vm1, %v2558_v24  ;;  %v3110_v41 = vcombine.high %v3102_v4, %v3102_v4  ;;  %v3111_v55 = vcombine.high %v3109_v35, %v3109_v35  ;;  %v3118_v32 = vrot.slane %v3102_v4, %v9093_v3  ;;  %v1869_v6 = vld [vmem:[#allocation2 + $0x6c] sm:$0x3] }
 0x16e   : > { %2836 = vst.msk [vmem:[#allocation2 + $0x22] sm:$0x1] %vm1116_vm1, %v2498_v53  ;;  %2839 = vst.msk [vmem:[#allocation2 + $0x28] sm:$0x1] %vm1116_vm1, %v2491_v48  ;;  %v3125_v51 = vrot.slane %v3109_v35, %v9093_v3  ;;  %v1870_v24 = vld [vmem:[#allocation2 + $0x6e] sm:$0x3]  ;;  %v2147_v53 = vcombine.low %v1863_v7, %v1864_v1 }
 0x16f   : > { %2840 = vst.msk [vmem:[#allocation2 + $0x2a] sm:$0x1] %vm1116_vm1, %v2505_v14  ;;  %3484 = vst.msk [vmem:[#allocation2 + $0x3f] sm:$0x1] %vm1116_vm1, %v3192_v23  ;;  %v4516_v48 = vrot.slane %v9714_v44, 2  ;;  %v2148_v14 = vcombine.low %v1865_v2, %v1866_v28  ;;  %v2164_v23 = vcombine.low %v1867_v62, %v1868_v25  ;;  %v3132_v4 = vrot.slane %v3110_v41, %v9093_v3 }
 0x170   : > { %2837 = vst.msk [vmem:[#allocation2 + $0x24] sm:$0x1] %vm1116_vm1, %v2506_v38  ;;  %2838 = vst.msk [vmem:[#allocation2 + $0x26] sm:$0x1] %vm1116_vm1, %v2508_v63  ;;  %v1871_v38 = vld [vmem:[#allocation2 + $0x70] sm:$0x3]  ;;  %v3139_v35 = vrot.slane %v3111_v55, %v9093_v3  ;;  %v3140_v31 = vcombine.high %v3118_v32, %v3118_v32  ;;  %v3141_v40 = vcombine.high %v3125_v51, %v3125_v51 }
 0x171   : > { %2841 = vst.msk [vmem:[#allocation2 + $0x2c] sm:$0x1] %vm1116_vm1, %v2507_v54  ;;  %2842 = vst.msk [vmem:[#allocation2 + $0x2e] sm:$0x1] %vm1116_vm1, %v2509_v26  ;;  %v1872_v54 = vld [vmem:[#allocation2 + $0x72] sm:$0x3]  ;;  %v2155_v1 = vrot.slane %v2147_v53, %v9101_v12  ;;  %v2162_v62 = vrot.slane %v2148_v14, %v9101_v12  ;;  %v2165_v2 = vcombine.low %v1869_v6, %v1870_v24 }
 0x172   : > { %3469 = vst.msk [vmem:[#allocation2 + $0x21] sm:$0x1] %vm1116_vm1, %v3118_v32  ;;  %3473 = vst.msk [vmem:[#allocation2 + $0x29] sm:$0x1] %vm1116_vm1, %v3125_v51  ;;  %v1873_v63 = vld [vmem:[#allocation2 + $0x74] sm:$0x3]  ;;  %v3142_v41 = vcombine.high %v3132_v4, %v3132_v4  ;;  %v3143_v55 = vcombine.high %v3139_v35, %v3139_v35  ;;  %v2172_v32 = vrot.slane %v2164_v23, %v9101_v12 }
 0x173   : > { %v1874_v26 = vld [vmem:[#allocation2 + $0x76] sm:$0x3]  ;;  %v12438_v44 = vrot.slane %v9476_v8, 2  ;;  %v1875_v28 = vld [vmem:[#allocation2 + $0x78] sm:$0x3]  ;;  %v4303_v51 = vrot.slane %v9463_v22, 1  ;;  %v2163_v53 = vcombine.low %v2155_v1, %v2162_v62  ;;  %v2179_v14 = vrot.slane %v2165_v2, %v9101_v12  ;;  %v9880_v62 = vpop.permute.xlu1 %4089 }
 0x174   : > { %v1876_v25 = vld [vmem:[#allocation2 + $0x7a] sm:$0x3]  ;;  %3470 = vst.msk [vmem:[#allocation2 + $0x23] sm:$0x1] %vm1116_vm1, %v3132_v4  ;;  %3471 = vst.msk [vmem:[#allocation2 + $0x25] sm:$0x1] %vm1116_vm1, %v3140_v31  ;;  %v2181_v4 = vcombine.low %v1871_v38, %v1872_v54  ;;  %v2182_v31 = vcombine.low %v1873_v63, %v1874_v26  ;;  %v2342_v23 = vadd.f32 %v9579_v49, %v9248_v11 }
 0x175   : > { %v9849_v7 = vsel %vm4487_vm6, %v12438_v44, %v4516_v48  ;;  %3474 = vst.msk [vmem:[#allocation2 + $0x2b] sm:$0x1] %vm1116_vm1, %v3139_v35  ;;  %3475 = vst.msk [vmem:[#allocation2 + $0x2d] sm:$0x1] %vm1116_vm1, %v3141_v40  ;;  %v1877_v6 = vld [vmem:[#allocation2 + $0x7c] sm:$0x3]  ;;  %v9861_v48 = vpop.permute.xlu0 %4087  ;;  %v2976_v44 = vadd.f32 %v9579_v49, %v9250_v13  ;;  %v2198_v1 = vcombine.low %v1875_v28, %v1876_v25 }
 0x176   : > { %4590 = vrot.lane.b32.xlu1 %v9849_v7, %s8698_s30  ;;  %v1878_v24 = vld [vmem:[#allocation2 + $0x7e] sm:$0x3]  ;;  %3472 = vst.msk [vmem:[#allocation2 + $0x27] sm:$0x1] %vm1116_vm1, %v3142_v41  ;;  %3476 = vst.msk [vmem:[#allocation2 + $0x2f] sm:$0x1] %vm1116_vm1, %v3143_v55  ;;  %v2180_v38 = vcombine.low %v2172_v32, %v2179_v14  ;;  %v2189_v54 = vrot.slane %v2181_v4, %v9101_v12  ;;  %v2196_v63 = vrot.slane %v2182_v31, %v9101_v12 }
 0x177   : > { %v12439_v40 = vrot.slane %v9476_v8, 1  ;;  %2245 = vst.msk [vmem:[#allocation3 + $0x139] sm:$0xff] %vm2232_vm4, %v2163_v53  ;;  %v2199_v26 = vcombine.low %v1877_v6, %v1878_v24  ;;  %v2608_v11 = vcombine.high %v2342_v23, %v2342_v23  ;;  %v2615_v13 = vrot.slane %v2342_v23, %v9093_v3 }
 0x178   : > { %4059 = vst.msk [vmem:[#allocation3 + $0x139] sm:$0xff] %vm4046_vm7, %v9716_v43  ;;  %v3242_v2 = vcombine.high %v2976_v44, %v2976_v44  ;;  %v3249_v28 = vrot.slane %v2976_v44, %v9093_v3  ;;  %v2197_v25 = vcombine.low %v2189_v54, %v2196_v63  ;;  %v2206_v41 = vrot.slane %v2198_v1, %v9101_v12 }
 0x179   : > { %v9869_v35 = vsel %vm4277_vm5, %v4303_v51, %v12439_v40  ;;  %2246 = vst.msk [vmem:[#allocation3 + $0x141] sm:$0xff] %vm2232_vm4, %v2180_v38  ;;  %v2213_v55 = vrot.slane %v2199_v26, %v9101_v12  ;;  %v2337_v32 = vadd.f32 %v9579_v49, %v9269_v33  ;;  %v2622_v43 = vrot.slane %v2608_v11, %v9093_v3  ;;  %v9898_v53 = vpop.permute.xlu0 %4091 }
 0x17a   : > { %12440 = vst [vmem:[#allocation22_spill] sm:$0xff] %v9869_v35  ;;  %4378 = vrot.lane.b32.xlu0 %v9869_v35, %s8697_s29  ;;  %4741 = vrot.lane.b32.xlu1 %v9604_v17, %s8701_s16  ;;  %4060 = vst.msk [vmem:[#allocation3 + $0x141] sm:$0xff] %vm4046_vm7, %v9739_v56  ;;  %v2623_v51 = vcombine.high %v2615_v13, %v2615_v13  ;;  %v2631_v6 = vrot.slane %v2615_v13, %v9093_v3 }
 0x17b   : > { %v3256_v24 = vrot.slane %v3242_v2, %v9093_v3  ;;  %2247 = vst.msk [vmem:[#allocation3 + $0x169] sm:$0xff] %vm2232_vm4, %v2197_v25  ;;  %v3257_v14 = vcombine.high %v3249_v28, %v3249_v28  ;;  %v3265_v4 = vrot.slane %v3249_v28, %v9093_v3  ;;  %v2214_v31 = vcombine.low %v2206_v41, %v2213_v55 }
 0x17c   : > { %v2559_v40 = vcombine.high %v2337_v32, %v2337_v32  ;;  %4061 = vst.msk [vmem:[#allocation3 + $0x169] sm:$0xff] %vm4046_vm7, %v9767_v46  ;;  %v2624_v33 = vcombine.high %v2622_v43, %v2622_v43  ;;  %v2638_v56 = vrot.slane %v2622_v43, %v9093_v3  ;;  %v2645_v23 = vrot.slane %v2623_v51, %v9093_v3  ;;  %v9913_v46 = vpop.permute.xlu1 %4093  ;;  %v3539_v61 = vld [vmem:[#allocation2 + $0x2c] sm:$0x3] }
 0x17d   : > { %v2653_v44 = vcombine.high %v2631_v6, %v2631_v6  ;;  %2859 = vst.msk [vmem:[#allocation2 + $0x50] sm:$0x1] %vm1116_vm1, %v2631_v6  ;;  %v3258_v1 = vcombine.high %v3256_v24, %v3256_v24  ;;  %v3272_v38 = vrot.slane %v3256_v24, %v9093_v3  ;;  %v3279_v54 = vrot.slane %v3257_v14, %v9093_v3  ;;  %v9939_v24 = vpop.permute.xlu0 %4095 }
 0x17e   : > { %4852 = vrot.lane.b32.xlu1 %v9751_v27, %s8702_s17  ;;  %v3287_v63 = vcombine.high %v3265_v4, %v3265_v4  ;;  %3493 = vst.msk [vmem:[#allocation2 + $0x51] sm:$0x1] %vm1116_vm1, %v3265_v4  ;;  %v2652_v26 = vrot.slane %v2624_v33, %v9093_v3  ;;  %v2654_v11 = vcombine.high %v2638_v56, %v2638_v56  ;;  %2860 = vst.msk [vmem:[#allocation2 + $0x52] sm:$0x1] %vm1116_vm1, %v2645_v23 }
 0x17f   : > { %2248 = vst.msk [vmem:[#allocation3 + $0x171] sm:$0xff] %vm2232_vm4, %v2214_v31  ;;  %v2655_v13 = vcombine.high %v2645_v23, %v2645_v23  ;;  %v2566_v2 = vrot.slane %v2337_v32, %v9093_v3  ;;  %v3286_v28 = vrot.slane %v3258_v1, %v9093_v3  ;;  %v3288_v25 = vcombine.high %v3272_v38, %v3272_v38  ;;  %v9927_v43 = vld [vmem:[#allocation3 + $0x138] sm:$0xff] }
 0x180   : > { %2861 = vst.msk [vmem:[#allocation2 + $0x54] sm:$0x1] %vm1116_vm1, %v2653_v44  ;;  %2863 = vst.msk [vmem:[#allocation2 + $0x58] sm:$0x1] %vm1116_vm1, %v2638_v56  ;;  %v3289_v41 = vcombine.high %v3279_v54, %v3279_v54  ;;  %v2573_v55 = vrot.slane %v2559_v40, %v9093_v3  ;;  %v2656_v51 = vcombine.high %v2652_v26, %v2652_v26 }
 0x181   : > { %4062 = vst.msk [vmem:[#allocation3 + $0x171] sm:$0xff] %vm4046_vm7, %v9784_v16  ;;  %12441 = vst [vmem:[#allocation23_spill] sm:$0xff] %v9927_v43  ;;  %v2574_v16 = vcombine.high %v2566_v2, %v2566_v2  ;;  %v2582_v32 = vrot.slane %v2566_v2, %v9093_v3  ;;  %v2971_v6 = vadd.f32 %v9579_v49, %v9271_v34  ;;  %v4513_v34 = vrot.slane %v9463_v22, 2  ;;  %v9946_v40 = vld [vmem:[#allocation3 + $0x140] sm:$0xff]  ;;  %v3538_v22 = vld [vmem:[#allocation2 + $0x2a] sm:$0x3] }
 0x182   : > { %3494 = vst.msk [vmem:[#allocation2 + $0x53] sm:$0x1] %vm1116_vm1, %v3279_v54  ;;  %3495 = vst.msk [vmem:[#allocation2 + $0x55] sm:$0x1] %vm1116_vm1, %v3287_v63  ;;  %4733 = vrot.lane.b32.xlu1 %v9658_v36, %s8701_s16  ;;  %v3290_v14 = vcombine.high %v3286_v28, %v3286_v28  ;;  %v2575_v4 = vcombine.high %v2573_v55, %v2573_v55  ;;  %v2589_v31 = vrot.slane %v2573_v55, %v9093_v3 }
 0x183   : > { %3497 = vst.msk [vmem:[#allocation2 + $0x59] sm:$0x1] %vm1116_vm1, %v3272_v38  ;;  %2862 = vst.msk [vmem:[#allocation2 + $0x56] sm:$0x1] %vm1116_vm1, %v2655_v13  ;;  %v2596_v33 = vrot.slane %v2574_v16, %v9093_v3  ;;  %v2604_v56 = vcombine.high %v2582_v32, %v2582_v32  ;;  %v3193_v23 = vcombine.high %v2971_v6, %v2971_v6  ;;  %v12443_v54 = vrot.slane %v9476_v8, 2  ;;  %v9966_v13 = vpop.permute.xlu1 %4097 }
 0x184   : > { %2864 = vst.msk [vmem:[#allocation2 + $0x5a] sm:$0x1] %vm1116_vm1, %v2652_v26  ;;  %2865 = vst.msk [vmem:[#allocation2 + $0x5c] sm:$0x1] %vm1116_vm1, %v2654_v11  ;;  %v3200_v44 = vrot.slane %v2971_v6, %v9093_v3  ;;  %v2603_v1 = vrot.slane %v2575_v4, %v9093_v3  ;;  %v2605_v38 = vcombine.high %v2589_v31, %v2589_v31  ;;  %v9964_v11 = vld [vmem:[#allocation3 + $0x168] sm:$0xff] }
 0x185   : > { %4223 = vst.msk [vmem:[#allocation4 + $0xd0] sm:$0xff] %vm470_vm0, %v9927_v43  ;;  %12442 = vst [vmem:[#allocation24_spill] sm:$0xff] %v9946_v40  ;;  %v9960_v63 = vsel %vm4487_vm6, %v4513_v34, %v12443_v54  ;;  %v2352_v26 = vadd.f32 %v9579_v49, %v9282_v58  ;;  %v2606_v2 = vcombine.high %v2596_v33, %v2596_v33  ;;  %v9989_v34 = vpop.permute.xlu0 %4099 }
 0x186   : > { %3496 = vst.msk [vmem:[#allocation2 + $0x57] sm:$0x1] %vm1116_vm1, %v3289_v41  ;;  %3498 = vst.msk [vmem:[#allocation2 + $0x5b] sm:$0x1] %vm1116_vm1, %v3286_v28  ;;  %v3207_v28 = vrot.slane %v3193_v23, %v9093_v3  ;;  %v3216_v41 = vrot.slane %v3200_v44, %v9093_v3  ;;  %4588 = vrot.lane.b32.xlu0 %v9960_v63, %s8698_s30  ;;  %v2607_v58 = vcombine.high %v2603_v1, %v2603_v1 }
 0x187   : > { %3499 = vst.msk [vmem:[#allocation2 + $0x5d] sm:$0x1] %vm1116_vm1, %v3288_v25  ;;  %2866 = vst.msk [vmem:[#allocation2 + $0x5e] sm:$0x1] %vm1116_vm1, %v2656_v51  ;;  %v3208_v25 = vcombine.high %v3200_v44, %v3200_v44  ;;  %v2706_v55 = vcombine.high %v2352_v26, %v2352_v26  ;;  %v2713_v51 = vrot.slane %v2352_v26, %v9093_v3 }
 0x188   : > { %2851 = vst.msk [vmem:[#allocation2 + $0x40] sm:$0x1] %vm1116_vm1, %v2582_v32  ;;  %3500 = vst.msk [vmem:[#allocation2 + $0x5f] sm:$0x1] %vm1116_vm1, %v3290_v14  ;;  %v2986_v16 = vadd.f32 %v9579_v49, %v9284_v59  ;;  %v9981_v32 = vld [vmem:[#allocation3 + $0x170] sm:$0xff]  ;;  %v3209_v6 = vcombine.high %v3207_v28, %v3207_v28  ;;  %v3223_v14 = vrot.slane %v3207_v28, %v9093_v3 }
 0x189   : > { %4224 = vst.msk [vmem:[#allocation4 + $0xd8] sm:$0xff] %vm470_vm0, %v9946_v40  ;;  %12444 = vst [vmem:[#allocation25_spill] sm:$0xff] %v9964_v11  ;;  %v3230_v4 = vrot.slane %v3208_v25, %v9093_v3  ;;  %v2720_v59 = vrot.slane %v2706_v55, %v9093_v3 }
 0x18a   : > { %2855 = vst.msk [vmem:[#allocation2 + $0x48] sm:$0x1] %vm1116_vm1, %v2589_v31  ;;  %2852 = vst.msk [vmem:[#allocation2 + $0x42] sm:$0x1] %vm1116_vm1, %v2596_v33  ;;  %v3238_v31 = vcombine.high %v3216_v41, %v3216_v41  ;;  %v2721_v33 = vcombine.high %v2713_v51, %v2713_v51  ;;  %v3340_v23 = vcombine.high %v2986_v16, %v2986_v16  ;;  %4850 = vrot.lane.b32.xlu0 %v9869_v35, %s8702_s17  ;;  %v3526_v35 = vld [vmem:[#allocation2 + $0x12] sm:$0x3] }
 0x18b   : > { %2853 = vst.msk [vmem:[#allocation2 + $0x44] sm:$0x1] %vm1116_vm1, %v2604_v56  ;;  %2856 = vst.msk [vmem:[#allocation2 + $0x4a] sm:$0x1] %vm1116_vm1, %v2603_v1  ;;  %v2729_v56 = vrot.slane %v2713_v51, %v9093_v3  ;;  %v3237_v44 = vrot.slane %v3209_v6, %v9093_v3  ;;  %v3239_v1 = vcombine.high %v3223_v14, %v3223_v14 }
 0x18c   : > { %4227 = vst.msk [vmem:[#allocation4 + $0xf0] sm:$0xff] %vm470_vm0, %v9964_v11  ;;  %12445 = vst [vmem:[#allocation26_spill] sm:$0xff] %v9981_v32  ;;  %v3347_v54 = vrot.slane %v2986_v16, %v9093_v3  ;;  %v2722_v26 = vcombine.high %v2720_v59, %v2720_v59  ;;  %v2743_v28 = vrot.slane %v2721_v33, %v9093_v3  ;;  %v3518_v33 = vld [vmem:[#allocation2 + $0x2] sm:$0x3] }
 0x18d   : > { %2857 = vst.msk [vmem:[#allocation2 + $0x4c] sm:$0x1] %vm1116_vm1, %v2605_v38  ;;  %2854 = vst.msk [vmem:[#allocation2 + $0x46] sm:$0x1] %vm1116_vm1, %v2606_v2  ;;  %v3240_v38 = vcombine.high %v3230_v4, %v3230_v4  ;;  %v2736_v2 = vrot.slane %v2720_v59, %v9093_v3  ;;  %v2751_v25 = vcombine.high %v2729_v56, %v2729_v56  ;;  %v3517_v59 = vld [vmem:[#allocation2] sm:$0x3] }
 0x18e   : > { %3485 = vst.msk [vmem:[#allocation2 + $0x41] sm:$0x1] %vm1116_vm1, %v3216_v41  ;;  %2858 = vst.msk [vmem:[#allocation2 + $0x4e] sm:$0x1] %vm1116_vm1, %v2607_v58  ;;  %v10004_v41 = vpop.permute.xlu1 %4101  ;;  %v3241_v58 = vcombine.high %v3237_v44, %v3237_v44  ;;  %v3354_v55 = vrot.slane %v3340_v23, %v9093_v3  ;;  %v3355_v51 = vcombine.high %v3347_v54, %v3347_v54  ;;  %4755 = vrot.lane.b32.xlu0 %v9964_v11, %s8701_s16 }
 0x18f   : > { %4228 = vst.msk [vmem:[#allocation4 + $0xf8] sm:$0xff] %vm470_vm0, %v9981_v32  ;;  %v3363_v16 = vrot.slane %v3347_v54, %v9093_v3  ;;  %v2750_v6 = vrot.slane %v2722_v26, %v9093_v3 }
 0x190   : > { %3486 = vst.msk [vmem:[#allocation2 + $0x43] sm:$0x1] %vm1116_vm1, %v3230_v4  ;;  %3487 = vst.msk [vmem:[#allocation2 + $0x45] sm:$0x1] %vm1116_vm1, %v3238_v31  ;;  %v2753_v4 = vcombine.high %v2743_v28, %v2743_v28  ;;  %v2347_v31 = vadd.f32 %v9579_v49, %v9291_v9  ;;  %v3370_v23 = vrot.slane %v3354_v55, %v9093_v3 }
 0x191   : > { %3489 = vst.msk [vmem:[#allocation2 + $0x49] sm:$0x1] %vm1116_vm1, %v3223_v14  ;;  %2875 = vst.msk [vmem:[#allocation2 + $0x70] sm:$0x1] %vm1116_vm1, %v2729_v56  ;;  %v2752_v14 = vcombine.high %v2736_v2, %v2736_v2  ;;  %v3356_v56 = vcombine.high %v3354_v55, %v3354_v55  ;;  %v2754_v54 = vcombine.high %v2750_v6, %v2750_v6 }
 0x192   : > { %3488 = vst.msk [vmem:[#allocation2 + $0x47] sm:$0x1] %vm1116_vm1, %v3240_v38  ;;  %3490 = vst.msk [vmem:[#allocation2 + $0x4b] sm:$0x1] %vm1116_vm1, %v3237_v44  ;;  %v3377_v44 = vrot.slane %v3355_v51, %v9093_v3  ;;  %v10023_v38 = vpop.permute.xlu0 %4103  ;;  %v2657_v9 = vcombine.high %v2347_v31, %v2347_v31  ;;  %v2664_v26 = vrot.slane %v2347_v31, %v9093_v3 }
 0x193   : > { %3491 = vst.msk [vmem:[#allocation2 + $0x4d] sm:$0x1] %vm1116_vm1, %v3239_v1  ;;  %2876 = vst.msk [vmem:[#allocation2 + $0x72] sm:$0x1] %vm1116_vm1, %v2743_v28  ;;  %v3385_v1 = vcombine.high %v3363_v16, %v3363_v16  ;;  %v3519_v28 = vld [vmem:[#allocation2 + $0x4] sm:$0x3]  ;;  %v3386_v55 = vcombine.high %v3370_v23, %v3370_v23 }
 0x194   : > { %2877 = vst.msk [vmem:[#allocation2 + $0x74] sm:$0x1] %vm1116_vm1, %v2751_v25  ;;  %2879 = vst.msk [vmem:[#allocation2 + $0x78] sm:$0x1] %vm1116_vm1, %v2736_v2  ;;  %v2981_v2 = vadd.f32 %v9579_v49, %v9293_v10  ;;  %v3520_v25 = vld [vmem:[#allocation2 + $0x6] sm:$0x3]  ;;  %v3387_v51 = vcombine.high %v3377_v44, %v3377_v44  ;;  %v2680_v10 = vrot.slane %v2664_v26, %v9093_v3 }
 0x195   : > { %3492 = vst.msk [vmem:[#allocation2 + $0x4f] sm:$0x1] %vm1116_vm1, %v3241_v58  ;;  %3509 = vst.msk [vmem:[#allocation2 + $0x71] sm:$0x1] %vm1116_vm1, %v3363_v16  ;;  %v3384_v58 = vrot.slane %v3356_v56, %v9093_v3  ;;  %v3645_v16 = vcombine.low %v3517_v59, %v3518_v33  ;;  %v3646_v59 = vcombine.low %v3519_v28, %v3520_v25  ;;  %v10052_v28 = vld [vmem:[#allocation3 + $0x118] sm:$0x3] }
 0x196   : > { %2878 = vst.msk [vmem:[#allocation2 + $0x76] sm:$0x1] %vm1116_vm1, %v2753_v4  ;;  %2880 = vst.msk [vmem:[#allocation2 + $0x7a] sm:$0x1] %vm1116_vm1, %v2750_v6  ;;  %v2671_v6 = vrot.slane %v2657_v9, %v9093_v3  ;;  %v3291_v49 = vcombine.high %v2981_v2, %v2981_v2  ;;  %v10038_v4 = vpop.permute.xlu1 %4105  ;;  %v3298_v56 = vrot.slane %v2981_v2, %v9093_v3  ;;  %v3521_v25 = vld [vmem:[#allocation2 + $0x8] sm:$0x3] }
 0x197   : > { %2881 = vst.msk [vmem:[#allocation2 + $0x7c] sm:$0x1] %vm1116_vm1, %v2752_v14  ;;  %3510 = vst.msk [vmem:[#allocation2 + $0x73] sm:$0x1] %vm1116_vm1, %v3377_v44  ;;  %v2672_v14 = vcombine.high %v2664_v26, %v2664_v26  ;;  %v3388_v31 = vcombine.high %v3384_v58, %v3384_v58  ;;  %v3653_v33 = vrot.slane %v3645_v16, %v9101_v12  ;;  %v3550_v42 = vld [vmem:[#allocation2 + $0x42] sm:$0x3] }
 0x198   : > { %3511 = vst.msk [vmem:[#allocation2 + $0x75] sm:$0x1] %vm1116_vm1, %v3385_v1  ;;  %3513 = vst.msk [vmem:[#allocation2 + $0x79] sm:$0x1] %vm1116_vm1, %v3370_v23  ;;  %v2673_v23 = vcombine.high %v2671_v6, %v2671_v6  ;;  %v2687_v44 = vrot.slane %v2671_v6, %v9093_v3  ;;  %v3305_v9 = vrot.slane %v3291_v49, %v9093_v3  ;;  %v3523_v49 = vld [vmem:[#allocation2 + $0xc] sm:$0x3] }
 0x199   : > { %2882 = vst.msk [vmem:[#allocation2 + $0x7e] sm:$0x1] %vm1116_vm1, %v2754_v54  ;;  %3512 = vst.msk [vmem:[#allocation2 + $0x77] sm:$0x1] %vm1116_vm1, %v3387_v51  ;;  %v2694_v1 = vrot.slane %v2672_v14, %v9093_v3  ;;  %v2702_v54 = vcombine.high %v2680_v10, %v2680_v10  ;;  %v3306_v26 = vcombine.high %v3298_v56, %v3298_v56  ;;  %v10054_v51 = vpop.permute.xlu0 %4107 }
 0x19a   : > { %3514 = vst.msk [vmem:[#allocation2 + $0x7b] sm:$0x1] %vm1116_vm1, %v3384_v58  ;;  %3515 = vst.msk [vmem:[#allocation2 + $0x7d] sm:$0x1] %vm1116_vm1, %v3386_v55  ;;  %v3314_v58 = vrot.slane %v3298_v56, %v9093_v3  ;;  %v3660_v2 = vrot.slane %v3646_v59, %v9101_v12  ;;  %v3522_v55 = vld [vmem:[#allocation2 + $0xa] sm:$0x3]  ;;  %v2701_v16 = vrot.slane %v2673_v23, %v9093_v3 }
 0x19b   : > { %2867 = vst.msk [vmem:[#allocation2 + $0x60] sm:$0x1] %vm1116_vm1, %v2680_v10  ;;  %3516 = vst.msk [vmem:[#allocation2 + $0x7f] sm:$0x1] %vm1116_vm1, %v3388_v31  ;;  %v2703_v6 = vcombine.high %v2687_v44, %v2687_v44  ;;  %v2704_v14 = vcombine.high %v2694_v1, %v2694_v1  ;;  %v4334_v10 = vrot.slane %v9604_v17, 1  ;;  %v3307_v56 = vcombine.high %v3305_v9, %v3305_v9 }
 0x19c   : > { %2868 = vst.msk [vmem:[#allocation2 + $0x62] sm:$0x1] %vm1116_vm1, %v2694_v1  ;;  %2869 = vst.msk [vmem:[#allocation2 + $0x64] sm:$0x1] %vm1116_vm1, %v2702_v54  ;;  %v3524_v31 = vld [vmem:[#allocation2 + $0xe] sm:$0x3]  ;;  %v3321_v59 = vrot.slane %v3305_v9, %v9093_v3  ;;  %v3328_v0 = vrot.slane %v3306_v26, %v9093_v3  ;;  %v3336_v27 = vcombine.high %v3314_v58, %v3314_v58  ;;  %v10068_v26 = vpop.permute.xlu1 %4109 }
 0x19d   : > { %2871 = vst.msk [vmem:[#allocation2 + $0x68] sm:$0x1] %vm1116_vm1, %v2687_v44  ;;  %3501 = vst.msk [vmem:[#allocation2 + $0x61] sm:$0x1] %vm1116_vm1, %v3314_v58  ;;  %v3525_v23 = vld [vmem:[#allocation2 + $0x10] sm:$0x3]  ;;  %v2705_v1 = vcombine.high %v2701_v16, %v2701_v16  ;;  %v3661_v44 = vcombine.low %v3653_v33, %v3660_v2  ;;  %v3662_v57 = vcombine.low %v3521_v25, %v3522_v55 }
 0x19e   : > { %2870 = vst.msk [vmem:[#allocation2 + $0x66] sm:$0x1] %vm1116_vm1, %v2704_v14  ;;  %2872 = vst.msk [vmem:[#allocation2 + $0x6a] sm:$0x1] %vm1116_vm1, %v2701_v16  ;;  %v4336_v54 = vrot.slane %v10052_v28, 1  ;;  %v3335_v58 = vrot.slane %v3307_v56, %v9093_v3  ;;  %v3337_v50 = vcombine.high %v3321_v59, %v3321_v59  ;;  %v3338_v8 = vcombine.high %v3328_v0, %v3328_v0 }
 0x19f   : > { %2873 = vst.msk [vmem:[#allocation2 + $0x6c] sm:$0x1] %vm1116_vm1, %v2703_v6  ;;  %v3528_v9 = vld [vmem:[#allocation2 + $0x16] sm:$0x3]  ;;  %3502 = vst.msk [vmem:[#allocation2 + $0x63] sm:$0x1] %vm1116_vm1, %v3328_v0  ;;  %v3663_v16 = vcombine.low %v3523_v49, %v3524_v31  ;;  %v3670_v3 = vrot.slane %v3662_v57, %v9101_v12  ;;  %v3679_v0 = vcombine.low %v3525_v23, %v3526_v35 }
 0x1a0   : > { %3503 = vst.msk [vmem:[#allocation2 + $0x65] sm:$0x1] %vm1116_vm1, %v3336_v27  ;;  %3505 = vst.msk [vmem:[#allocation2 + $0x69] sm:$0x1] %vm1116_vm1, %v3321_v59  ;;  %v3530_v6 = vld [vmem:[#allocation2 + $0x1a] sm:$0x3]  ;;  %v10077_v25 = vsel %vm4277_vm5, %v4334_v10, %v4336_v54  ;;  %v3339_v56 = vcombine.high %v3335_v58, %v3335_v58  ;;  %v3680_v49 = vcombine.low %v3527_v39, %v3528_v9 }
 0x1a1   : > { %v3531_v33 = vld [vmem:[#allocation2 + $0x1c] sm:$0x3]  ;;  %v3532_v2 = vld [vmem:[#allocation2 + $0x1e] sm:$0x3]  ;;  %2874 = vst.msk [vmem:[#allocation2 + $0x6e] sm:$0x1] %vm1116_vm1, %v2705_v1  ;;  %4404 = vrot.lane.b32.xlu1 %v10077_v25, %s8697_s29  ;;  %v3677_v57 = vrot.slane %v3663_v16, %v9101_v12 }
 0x1a2   : > { %3934 = vst.msk [vmem:[#allocation3 + $0x31] sm:$0xff] %vm2232_vm4, %v3661_v44  ;;  %v4333_v55 = vrot.slane %v9589_v15, 1  ;;  %v3533_v14 = vld [vmem:[#allocation2 + $0x20] sm:$0x3]  ;;  %v3534_v27 = vld [vmem:[#allocation2 + $0x22] sm:$0x3]  ;;  %v3696_v44 = vcombine.low %v3529_v45, %v3530_v6  ;;  %v3694_v9 = vrot.slane %v3680_v49, %v9101_v12 }
 0x1a3   : > { %3504 = vst.msk [vmem:[#allocation2 + $0x67] sm:$0x1] %vm1116_vm1, %v3338_v8  ;;  %3506 = vst.msk [vmem:[#allocation2 + $0x6b] sm:$0x1] %vm1116_vm1, %v3335_v58  ;;  %v4544_v35 = vrot.slane %v9604_v17, 2  ;;  %v10092_v8 = vpop.permute.xlu0 %4358  ;;  %v3678_v39 = vcombine.low %v3670_v3, %v3677_v57  ;;  %v3697_v17 = vcombine.low %v3531_v33, %v3532_v2  ;;  %v10108_v57 = vpop.permute.xlu1 %4360 }
 0x1a4   : > { %3507 = vst.msk [vmem:[#allocation2 + $0x6d] sm:$0x1] %vm1116_vm1, %v3337_v50  ;;  %v3535_v31 = vld [vmem:[#allocation2 + $0x24] sm:$0x3]  ;;  %v3536_v59 = vld [vmem:[#allocation2 + $0x26] sm:$0x3]  ;;  %v10095_v1 = vsel %vm4277_vm5, %v4333_v55, %v4334_v10  ;;  %v3687_v50 = vrot.slane %v3679_v0, %v9101_v12  ;;  %v3704_v45 = vrot.slane %v3696_v44, %v9101_v12 }
 0x1a5   : > { %4127 = vst.msk [vmem:[#allocation3 + $0x31] sm:$0xff] %vm4046_vm7, %v9789_v5  ;;  %v10090_v23 = vld [vmem:[#allocation3 + $0xe8] sm:$0x3]  ;;  %v4546_v5 = vrot.slane %v10052_v28, 2  ;;  %v3541_v54 = vld [vmem:[#allocation2 + $0x30] sm:$0x3]  ;;  %4402 = vrot.lane.b32.xlu0 %v10095_v1, %s8697_s29  ;;  %v3713_v28 = vcombine.low %v3533_v14, %v3534_v27  ;;  %v3714_v6 = vcombine.low %v3535_v31, %v3536_v59  ;;  %v3711_v33 = vrot.slane %v3697_v17, %v9101_v12 }
 0x1a6   : > { %v3542_v58 = vld [vmem:[#allocation2 + $0x32] sm:$0x3]  ;;  %v3543_v16 = vld [vmem:[#allocation2 + $0x34] sm:$0x3]  ;;  %3508 = vst.msk [vmem:[#allocation2 + $0x6f] sm:$0x1] %vm1116_vm1, %v3339_v56  ;;  %v3695_v49 = vcombine.low %v3687_v50, %v3694_v9 }
 0x1a7   : > { %v4543_v10 = vrot.slane %v9589_v15, 2  ;;  %v3537_v55 = vld [vmem:[#allocation2 + $0x28] sm:$0x3]  ;;  %v10105_v0 = vsel %vm4487_vm6, %v4544_v35, %v4546_v5  ;;  %v3540_v56 = vld [vmem:[#allocation2 + $0x2e] sm:$0x3]  ;;  %3935 = vst.msk [vmem:[#allocation3 + $0x39] sm:$0xff] %vm2232_vm4, %v3678_v39  ;;  %v3721_v27 = vrot.slane %v3713_v28, %v9101_v12  ;;  %v3728_v31 = vrot.slane %v3714_v6, %v9101_v12  ;;  %v10126_v28 = vpop.permute.xlu0 %4568  ;;  %v10150_v6 = vpop.permute.xlu1 %4570 }
 0x1a8   : > { %12446 = vst [vmem:[#allocation27_spill] sm:$0xff] %v10105_v0  ;;  %v3544_v3 = vld [vmem:[#allocation2 + $0x36] sm:$0x3]  ;;  %4614 = vrot.lane.b32.xlu1 %v10105_v0, %s8698_s30  ;;  %v4324_v5 = vrot.slane %v9658_v36, 1  ;;  %v3545_v14 = vld [vmem:[#allocation2 + $0x38] sm:$0x3]  ;;  %v3730_v50 = vcombine.low %v3537_v55, %v3538_v22  ;;  %v3712_v17 = vcombine.low %v3704_v45, %v3711_v33  ;;  %v3747_v9 = vcombine.low %v3541_v54, %v3542_v58 }
 0x1a9   : > { %v10115_v2 = vsel %vm4487_vm6, %v4543_v10, %v4544_v35  ;;  %4128 = vst.msk [vmem:[#allocation3 + $0x39] sm:$0xff] %vm4046_vm7, %v9805_v37  ;;  %v4326_v59 = vrot.slane %v10090_v23, 1  ;;  %v3546_v44 = vld [vmem:[#allocation2 + $0x3a] sm:$0x3]  ;;  %v3547_v39 = vld [vmem:[#allocation2 + $0x3c] sm:$0x3]  ;;  %v3731_v35 = vcombine.low %v3539_v61, %v3540_v56  ;;  %v3748_v10 = vcombine.low %v3543_v16, %v3544_v3 }
 0x1aa   : > { %12447 = vst [vmem:[#allocation28_spill] sm:$0xff] %v10115_v2  ;;  %3936 = vst.msk [vmem:[#allocation3 + $0x61] sm:$0xff] %vm2232_vm4, %v3695_v49  ;;  %4612 = vrot.lane.b32.xlu0 %v10115_v2, %s8698_s30  ;;  %v3548_v15 = vld [vmem:[#allocation2 + $0x3e] sm:$0x3]  ;;  %v3549_v37 = vld [vmem:[#allocation2 + $0x40] sm:$0x3]  ;;  %v3729_v22 = vcombine.low %v3721_v27, %v3728_v31  ;;  %v3738_v45 = vrot.slane %v3730_v50, %v9101_v12  ;;  %v3764_v50 = vcombine.low %v3545_v14, %v3546_v44 }
 0x1ab   : > { %4129 = vst.msk [vmem:[#allocation3 + $0x61] sm:$0xff] %vm4046_vm7, %v9825_v47  ;;  %v10131_v55 = vsel %vm4277_vm5, %v4324_v5, %v4326_v59  ;;  %v3551_v49 = vld [vmem:[#allocation2 + $0x44] sm:$0x3]  ;;  %v3552_v61 = vld [vmem:[#allocation2 + $0x46] sm:$0x3]  ;;  %v3745_v58 = vrot.slane %v3731_v35, %v9101_v12  ;;  %v3755_v47 = vrot.slane %v3747_v9, %v9101_v12  ;;  %v3762_v16 = vrot.slane %v3748_v10, %v9101_v12 }
 0x1ac   : > { %v10135_v54 = vld [vmem:[#allocation3 + $0x30] sm:$0xff]  ;;  %3937 = vst.msk [vmem:[#allocation3 + $0x69] sm:$0xff] %vm2232_vm4, %v3712_v17  ;;  %4396 = vrot.lane.b32.xlu1 %v10131_v55, %s8697_s29  ;;  %v4536_v56 = vrot.slane %v10090_v23, 2  ;;  %v3553_v3 = vld [vmem:[#allocation2 + $0x48] sm:$0x3]  ;;  %3938 = vst.msk [vmem:[#allocation3 + $0x91] sm:$0xff] %vm2232_vm4, %v3729_v22  ;;  %v3765_v17 = vcombine.low %v3547_v39, %v3548_v15  ;;  %v3781_v9 = vcombine.low %v3549_v37, %v3550_v42 }
 0x1ad   : > { %12448 = vst [vmem:[#allocation29_spill] sm:$0xff] %v10135_v54  ;;  %v3554_v33 = vld [vmem:[#allocation2 + $0x4a] sm:$0x3]  ;;  %v3557_v27 = vld [vmem:[#allocation2 + $0x50] sm:$0x3]  ;;  %4201 = vst.msk [vmem:[#allocation4 + $0x20] sm:$0xff] %vm470_vm0, %v10135_v54  ;;  %v3746_v0 = vcombine.low %v3738_v45, %v3745_v58  ;;  %v3763_v2 = vcombine.low %v3755_v47, %v3762_v16  ;;  %v3782_v15 = vcombine.low %v3551_v49, %v3552_v61 }
 0x1ae   : > { %v3558_v31 = vld [vmem:[#allocation2 + $0x52] sm:$0x3]  ;;  %v3559_v59 = vld [vmem:[#allocation2 + $0x54] sm:$0x3]  ;;  %4130 = vst.msk [vmem:[#allocation3 + $0x69] sm:$0xff] %vm4046_vm7, %v9840_v30  ;;  %v4323_v35 = vrot.slane %v9636_v60, 1  ;;  %4747 = vrot.lane.b32.xlu0 %v9927_v43, %s8701_s16  ;;  %v3772_v37 = vrot.slane %v3764_v50, %v9101_v12  ;;  %v3779_v22 = vrot.slane %v3765_v17, %v9101_v12  ;;  %v3789_v45 = vrot.slane %v3781_v9, %v9101_v12 }
 0x1af   : > { %v3555_v10 = vld [vmem:[#allocation2 + $0x4c] sm:$0x3]  ;;  %v3556_v23 = vld [vmem:[#allocation2 + $0x4e] sm:$0x3]  ;;  %4131 = vst.msk [vmem:[#allocation3 + $0x91] sm:$0xff] %vm4046_vm7, %v9861_v48  ;;  %v12449_v30 = vrot.slane %v9658_v36, 2  ;;  %v3796_v49 = vrot.slane %v3782_v15, %v9101_v12  ;;  %v3798_v61 = vcombine.low %v3553_v3, %v3554_v33 }
 0x1b0   : > { %v3560_v44 = vld [vmem:[#allocation2 + $0x56] sm:$0x3]  ;;  %v3561_v42 = vld [vmem:[#allocation2 + $0x58] sm:$0x3]  ;;  %v3562_v39 = vld [vmem:[#allocation2 + $0x5a] sm:$0x3]  ;;  %v10164_v48 = vsel %vm4277_vm5, %v4323_v35, %v4324_v5  ;;  %v3799_v47 = vcombine.low %v3555_v10, %v3556_v23  ;;  %v10173_v5 = vpop.permute.xlu0 %4707 }
 0x1b1   : > { %v10159_v14 = vsel %vm4487_vm6, %v12449_v30, %v4536_v56  ;;  %v3563_v58 = vld [vmem:[#allocation2 + $0x5c] sm:$0x3]  ;;  %3939 = vst.msk [vmem:[#allocation3 + $0x99] sm:$0xff] %vm2232_vm4, %v3746_v0  ;;  %3940 = vst.msk [vmem:[#allocation3 + $0xc1] sm:$0xff] %vm2232_vm4, %v3763_v2  ;;  %v4533_v16 = vrot.slane %v9636_v60, 2  ;;  %v3780_v0 = vcombine.low %v3772_v37, %v3779_v22  ;;  %v3815_v2 = vcombine.low %v3557_v27, %v3558_v31 }
 0x1b2   : > { %4606 = vrot.lane.b32.xlu1 %v10159_v14, %s8698_s30  ;;  %v3564_v56 = vld [vmem:[#allocation2 + $0x5e] sm:$0x3]  ;;  %v3565_v50 = vld [vmem:[#allocation2 + $0x60] sm:$0x3]  ;;  %4132 = vst.msk [vmem:[#allocation3 + $0x99] sm:$0xff] %vm4046_vm7, %v9880_v62  ;;  %4133 = vst.msk [vmem:[#allocation3 + $0xc1] sm:$0xff] %vm4046_vm7, %v9898_v53  ;;  %v3816_v35 = vcombine.low %v3559_v59, %v3560_v44  ;;  %v3832_v9 = vcombine.low %v3561_v42, %v3562_v39  ;;  %4394 = vrot.lane.b32.xlu0 %v10164_v48, %s8697_s29 }
 0x1b3   : > { %v10175_v17 = vld [vmem:[#allocation3 + $0x38] sm:$0xff]  ;;  %v3566_v3 = vld [vmem:[#allocation2 + $0x62] sm:$0x3]  ;;  %v3567_v33 = vld [vmem:[#allocation2 + $0x64] sm:$0x3]  ;;  %v3797_v23 = vcombine.low %v3789_v45, %v3796_v49  ;;  %v3806_v30 = vrot.slane %v3798_v61, %v9101_v12  ;;  %v3813_v62 = vrot.slane %v3799_v47, %v9101_v12  ;;  %3941 = vst.msk [vmem:[#allocation3 + $0xc9] sm:$0xff] %vm2232_vm4, %v3780_v0  ;;  %v3823_v31 = vrot.slane %v3815_v2, %v9101_v12  ;;  %v10197_v45 = vpop.permute.xlu1 %4709 }
 0x1b4   : > { %12450 = vst [vmem:[#allocation30_spill] sm:$0xff] %v10175_v17  ;;  %v3568_v10 = vld [vmem:[#allocation2 + $0x66] sm:$0x3]  ;;  %4202 = vst.msk [vmem:[#allocation4 + $0x28] sm:$0xff] %vm470_vm0, %v10175_v17  ;;  %v3569_v53 = vld [vmem:[#allocation2 + $0x68] sm:$0x3]  ;;  %v3830_v59 = vrot.slane %v3816_v35, %v9101_v12  ;;  %v3833_v44 = vcombine.low %v3563_v58, %v3564_v56  ;;  %v3840_v42 = vrot.slane %v3832_v9, %v9101_v12  ;;  %v10211_v9 = vpop.permute.xlu0 %4699 }
 0x1b5   : > { %v10187_v15 = vld [vmem:[#allocation3 + $0x60] sm:$0xff]  ;;  %v3570_v27 = vld [vmem:[#allocation2 + $0x6a] sm:$0x3]  ;;  %v10195_v39 = vld [vmem:[#allocation3 + $0x178] sm:$0x3]  ;;  %4134 = vst.msk [vmem:[#allocation3 + $0xc9] sm:$0xff] %vm4046_vm7, %v9913_v46  ;;  %v3814_v58 = vcombine.low %v3806_v30, %v3813_v62  ;;  %v3849_v47 = vcombine.low %v3565_v50, %v3566_v3  ;;  %v3850_v56 = vcombine.low %v3567_v33, %v3568_v10 }
 0x1b6   : > { %12451 = vst [vmem:[#allocation31_spill] sm:$0xff] %v10187_v15  ;;  %4205 = vst.msk [vmem:[#allocation4 + $0x40] sm:$0xff] %vm470_vm0, %v10187_v15  ;;  %v3571_v37 = vld [vmem:[#allocation2 + $0x6c] sm:$0x3]  ;;  %v3572_v22 = vld [vmem:[#allocation2 + $0x6e] sm:$0x3]  ;;  %4757 = vrot.lane.b32.xlu1 %v9981_v32, %s8701_s16  ;;  %v3831_v46 = vcombine.low %v3823_v31, %v3830_v59  ;;  %v3866_v62 = vcombine.low %v3569_v53, %v3570_v27 }
 0x1b7   : > { %3942 = vst.msk [vmem:[#allocation3 + $0xf1] sm:$0xff] %vm2232_vm4, %v3797_v23  ;;  %v12452_v49 = vrot.slane %v9658_v36, 2  ;;  %v3573_v0 = vld [vmem:[#allocation2 + $0x70] sm:$0x3]  ;;  %v3574_v2 = vld [vmem:[#allocation2 + $0x72] sm:$0x3]  ;;  %v3847_v23 = vrot.slane %v3833_v44, %v9101_v12  ;;  %v3864_v3 = vrot.slane %v3850_v56, %v9101_v12  ;;  %v3867_v10 = vcombine.low %v3571_v37, %v3572_v22 }
 0x1b8   : > { %v10209_v35 = vld [vmem:[#allocation3 + $0x68] sm:$0xff]  ;;  %4135 = vst.msk [vmem:[#allocation3 + $0xf1] sm:$0xff] %vm4046_vm7, %v9939_v24  ;;  %v4354_v30 = vrot.slane %v9981_v32, 1  ;;  %v3575_v36 = vld [vmem:[#allocation2 + $0x74] sm:$0x3]  ;;  %v3857_v24 = vrot.slane %v3849_v47, %v9101_v12  ;;  %v4356_v33 = vrot.slane %v10195_v39, 1  ;;  %v3874_v59 = vrot.slane %v3866_v62, %v9101_v12  ;;  %v4702_v47 = vpop.permute.xlu1 %4701 }
 0x1b9   : > { %v10207_v61 = vsel %vm4487_vm6, %v4533_v16, %v12452_v49  ;;  %12453 = vst [vmem:[#allocation32_spill] sm:$0xff] %v10209_v35  ;;  %v3576_v16 = vld [vmem:[#allocation2 + $0x76] sm:$0x3]  ;;  %4206 = vst.msk [vmem:[#allocation4 + $0x48] sm:$0xff] %vm470_vm0, %v10209_v35  ;;  %v3577_v53 = vld [vmem:[#allocation2 + $0x78] sm:$0x3]  ;;  %v3848_v31 = vcombine.low %v3840_v42, %v3847_v23  ;;  %v3883_v44 = vcombine.low %v3573_v0, %v3574_v2 }
 0x1ba   : > { %v10219_v50 = vld [vmem:[#allocation3 + $0x90] sm:$0xff]  ;;  %3943 = vst.msk [vmem:[#allocation3 + $0xf9] sm:$0xff] %vm2232_vm4, %v3814_v58  ;;  %4604 = vrot.lane.b32.xlu0 %v10207_v61, %s8698_s30  ;;  %v3578_v27 = vld [vmem:[#allocation2 + $0x7a] sm:$0x3]  ;;  %3944 = vst.msk [vmem:[#allocation3 + $0x121] sm:$0xff] %vm2232_vm4, %v3831_v46  ;;  %4749 = vrot.lane.b32.xlu1 %v9946_v40, %s8701_s16  ;;  %v3865_v37 = vcombine.low %v3857_v24, %v3864_v3  ;;  %v3881_v22 = vrot.slane %v3867_v10, %v9101_v12  ;;  %v10240_v46 = vpop.permute.xlu0 %4723  ;;  %v4353_v0 = vrot.slane %v9964_v11, 1 }
 0x1bb   : > { %12454 = vst [vmem:[#allocation33_spill] sm:$0xff] %v10219_v50  ;;  %4209 = vst.msk [vmem:[#allocation4 + $0x60] sm:$0xff] %vm470_vm0, %v10219_v50  ;;  %v3579_v58 = vld [vmem:[#allocation2 + $0x7c] sm:$0x3]  ;;  %v3580_v49 = vld [vmem:[#allocation2 + $0x7e] sm:$0x3]  ;;  %v3884_v56 = vcombine.low %v3575_v36, %v3576_v16  ;;  %v3891_v2 = vrot.slane %v3883_v44, %v9101_v12  ;;  %v10259_v36 = vsel %vm4277_vm5, %v4354_v30, %v4356_v33 }
 0x1bc   : > { %4136 = vst.msk [vmem:[#allocation3 + $0xf9] sm:$0xff] %vm4046_vm7, %v9966_v13  ;;  %4137 = vst.msk [vmem:[#allocation3 + $0x121] sm:$0xff] %vm4046_vm7, %v9989_v34  ;;  %v10238_v13 = vld [vmem:[#allocation3 + $0xc0] sm:$0xff]  ;;  %v10242_v42 = vld [vmem:[#allocation3 + $0x98] sm:$0xff]  ;;  %v3900_v34 = vcombine.low %v3577_v53, %v3578_v27  ;;  %v3882_v23 = vcombine.low %v3874_v59, %v3881_v22  ;;  %v3901_v16 = vcombine.low %v3579_v58, %v3580_v49  ;;  %v4564_v24 = vrot.slane %v9981_v32, 2  ;;  %v4373_v10 = vpop.permute.xlu1 %4372 }
 0x1bd   : > { %12455 = vst [vmem:[#allocation34_spill] sm:$0xff] %v10238_v13  ;;  %12456 = vst [vmem:[#allocation35_spill] sm:$0xff] %v10242_v42  ;;  %v3898_v62 = vrot.slane %v3884_v56, %v9101_v12  ;;  %v10267_v53 = vld [vmem:[#allocation3 + $0xc8] sm:$0xff]  ;;  %v4344_v59 = vrot.slane %v9946_v40, 1 }
 0x1be   : > { %3945 = vst.msk [vmem:[#allocation3 + $0x129] sm:$0xff] %vm2232_vm4, %v3848_v31  ;;  %4711 = vrot.lane.b32.xlu0 %v10187_v15, %s8701_s16  ;;  %3946 = vst.msk [vmem:[#allocation3 + $0x151] sm:$0xff] %vm2232_vm4, %v3865_v37  ;;  %v3908_v3 = vrot.slane %v3900_v34, %v9101_v12  ;;  %4420 = vrot.lane.b32.xlu1 %v10259_v36, %s8697_s29  ;;  %v3915_v27 = vrot.slane %v3901_v16, %v9101_v12 }
 0x1bf   : > { %4213 = vst.msk [vmem:[#allocation4 + $0x80] sm:$0xff] %vm470_vm0, %v10238_v13  ;;  %4210 = vst.msk [vmem:[#allocation4 + $0x68] sm:$0xff] %vm470_vm0, %v10242_v42  ;;  %v3899_v33 = vcombine.low %v3891_v2, %v3898_v62  ;;  %v10280_v31 = vld [vmem:[#allocation3 + $0xf0] sm:$0xff]  ;;  %v10287_v12 = vsel %vm4277_vm5, %v4353_v0, %v4354_v30  ;;  %v4343_v2 = vrot.slane %v9927_v43, 1 }
 0x1c0   : > { %4138 = vst.msk [vmem:[#allocation3 + $0x129] sm:$0xff] %vm4046_vm7, %v10004_v41  ;;  %4139 = vst.msk [vmem:[#allocation3 + $0x151] sm:$0xff] %vm4046_vm7, %v10023_v38  ;;  %v4566_v41 = vrot.slane %v10195_v39, 2  ;;  %v4184_v38 = vld [vmem:[#allocation3 + $0x148] sm:$0x3]  ;;  %v4371_v39 = vpop.permute.xlu0 %4370 }
 0x1c1   : > { %12457 = vst [vmem:[#allocation36_spill] sm:$0xff] %v10267_v53  ;;  %3947 = vst.msk [vmem:[#allocation3 + $0x159] sm:$0xff] %vm2232_vm4, %v3882_v23  ;;  %v4346_v44 = vrot.slane %v4184_v38, 1  ;;  %v4556_v37 = vrot.slane %v4184_v38, 2  ;;  %v10363_v16 = vsel %vm4277_vm5, %v4343_v2, %v4344_v59  ;;  %v4508_v2 = vrot.slane %v10187_v15, 2 }
 0x1c2   : > { %4455 = vst.msk [vmem:[#allocation4] sm:$0xff] %vm4454_vm8, %v10092_v8  ;;  %4456 = vst.msk [vmem:[#allocation4 + $0x8] sm:$0xff] %vm4454_vm8, %v10108_v57  ;;  %v4563_v8 = vrot.slane %v9964_v11, 2  ;;  %4418 = vrot.lane.b32.xlu0 %v10287_v12, %s8697_s29  ;;  %v3916_v57 = vcombine.low %v3908_v3, %v3915_v27  ;;  %v10305_v30 = vsel %vm4487_vm6, %v4564_v24, %v4566_v41  ;;  %v4157_v3 = vld [vmem:[#allocation3 + $0x70] sm:$0x3]  ;;  %v4299_v27 = vrot.slane %v10209_v35, 1 }
 0x1c3   : > { %4462 = vst.msk [vmem:[#allocation4 + $0x38] sm:$0xff] %vm4454_vm8, %v4373_v10  ;;  %12458 = vst [vmem:[#allocation37_spill] sm:$0xff] %v10280_v31  ;;  %v10311_v58 = vld [vmem:[#allocation3 + $0x120] sm:$0xff]  ;;  %4630 = vrot.lane.b32.xlu1 %v10305_v30, %s8698_s30  ;;  %v4301_v38 = vrot.slane %v4157_v3, 1 }
 0x1c4   : > { %4214 = vst.msk [vmem:[#allocation4 + $0x88] sm:$0xff] %vm470_vm0, %v10267_v53  ;;  %4217 = vst.msk [vmem:[#allocation4 + $0xa0] sm:$0xff] %vm470_vm0, %v10280_v31 }
 0x1c5   : > { %4140 = vst.msk [vmem:[#allocation3 + $0x159] sm:$0xff] %vm4046_vm7, %v10038_v4  ;;  %v10300_v4 = vld [vmem:[#allocation3 + $0xf8] sm:$0xff]  ;;  %12460 = vst [vmem:[#allocation39_spill] sm:$0xff] %v10305_v30 }
 0x1c6   : > { %4461 = vst.msk [vmem:[#allocation4 + $0x30] sm:$0xff] %vm4454_vm8, %v4371_v39  ;;  %12459 = vst [vmem:[#allocation38_spill] sm:$0xff] %v10300_v4 }
 0x1c7   : > { %3948 = vst.msk [vmem:[#allocation3 + $0x181] sm:$0xff] %vm2232_vm4, %v3899_v33  ;;  %12461 = vst [vmem:[#allocation40_spill] sm:$0xff] %v10311_v58  ;;  %v10333_v49 = vld [vmem:[#allocation3 + $0x150] sm:$0xff] }
 0x1c8   : > { %4665 = vst.msk [vmem:[#allocation4] sm:$0xff] %vm4664_vm9, %v10126_v28  ;;  %4666 = vst.msk [vmem:[#allocation4 + $0x8] sm:$0xff] %vm4664_vm9, %v10150_v6  ;;  %v4583_v28 = vpop.permute.xlu1 %4582  ;;  %v10324_v6 = vsel %vm4487_vm6, %v4563_v8, %v4564_v24  ;;  %v4553_v24 = vrot.slane %v9927_v43, 2 }
 0x1c9   : > { %4141 = vst.msk [vmem:[#allocation3 + $0x181] sm:$0xff] %vm4046_vm7, %v10054_v51  ;;  %v4581_v51 = vpop.permute.xlu0 %4580  ;;  %12462 = vst [vmem:[#allocation41_spill] sm:$0xff] %v10324_v6  ;;  %4628 = vrot.lane.b32.xlu0 %v10324_v6, %s8698_s30 }
 0x1ca   : > { %4796 = vst.msk [vmem:[#allocation4] sm:$0xff] %vm4795_vm10, %v10211_v9  ;;  %4797 = vst.msk [vmem:[#allocation4 + $0x8] sm:$0xff] %vm4795_vm10, %v4702_v47  ;;  %v10327_v9 = vld [vmem:[#allocation3 + $0x128] sm:$0xff]  ;;  %v10336_v47 = vsel %vm4277_vm5, %v4344_v59, %v4346_v44  ;;  %v10387_v59 = vsel %vm4277_vm5, %v4299_v27, %v4301_v38  ;;  %v4509_v44 = vrot.slane %v10209_v35, 2 }
 0x1cb   : > { %4218 = vst.msk [vmem:[#allocation4 + $0xa8] sm:$0xff] %vm470_vm0, %v10300_v4  ;;  %4221 = vst.msk [vmem:[#allocation4 + $0xc0] sm:$0xff] %vm470_vm0, %v10311_v58  ;;  %4412 = vrot.lane.b32.xlu1 %v10336_v47, %s8697_s29 }
 0x1cc   : > { %3949 = vst.msk [vmem:[#allocation3 + $0x189] sm:$0xff] %vm2232_vm4, %v3916_v57  ;;  %12463 = vst [vmem:[#allocation42_spill] sm:$0xff] %v10327_v9  ;;  %v10339_v22 = vpop.permute.xlu1 %4844  ;;  %v10347_v0 = vld [vmem:[#allocation3 + $0x158] sm:$0xff]  ;;  %v4298_v57 = vrot.slane %v10187_v15, 1  ;;  %v4175_v15 = vld [vmem:[#allocation3 + $0x100] sm:$0x3] }
 0x1cd   : > { %4672 = vst.msk [vmem:[#allocation4 + $0x38] sm:$0xff] %vm4664_vm9, %v4583_v28  ;;  %4671 = vst.msk [vmem:[#allocation4 + $0x30] sm:$0xff] %vm4664_vm9, %v4581_v51  ;;  %v10345_v56 = vpop.permute.xlu0 %4715  ;;  %4703 = vrot.lane.b32.xlu0 %v10135_v54, %s8701_s16  ;;  %v4511_v28 = vrot.slane %v4157_v3, 2 }
 0x1ce   : > { %4142 = vst.msk [vmem:[#allocation3 + $0x189] sm:$0xff] %vm4046_vm7, %v10068_v26  ;;  %12464 = vst [vmem:[#allocation43_spill] sm:$0xff] %v10333_v49  ;;  %v4554_v26 = vrot.slane %v9946_v40, 2  ;;  %v4528_v40 = vrot.slane %v10238_v13, 2 }
 0x1cf   : > { %4222 = vst.msk [vmem:[#allocation4 + $0xc8] sm:$0xff] %vm470_vm0, %v10327_v9  ;;  %4225 = vst.msk [vmem:[#allocation4 + $0xe0] sm:$0xff] %vm470_vm0, %v10333_v49 }
 0x1d0   : > { %12465 = vst [vmem:[#allocation44_spill] sm:$0xff] %v10347_v0  ;;  %4226 = vst.msk [vmem:[#allocation4 + $0xe8] sm:$0xff] %vm470_vm0, %v10347_v0  ;;  %v10355_v34 = vsel %vm4487_vm6, %v4554_v26, %v4556_v37  ;;  %v4365_v23 = vpop.permute.xlu1 %4364  ;;  %v10372_v33 = vsel %vm4487_vm6, %v4553_v24, %v4554_v26  ;;  %v10394_v37 = vsel %vm4277_vm5, %v4298_v57, %v4299_v27  ;;  %v4289_v27 = vrot.slane %v10175_v17, 1 }
 0x1d1   : > { %12466 = vst [vmem:[#allocation45_spill] sm:$0xff] %v10355_v34  ;;  %4622 = vrot.lane.b32.xlu1 %v10355_v34, %s8698_s30  ;;  %4458 = vst.msk [vmem:[#allocation4 + $0x18] sm:$0xff] %vm4454_vm8, %v4365_v23  ;;  %v10360_v62 = vpop.permute.xlu0 %4842  ;;  %4410 = vrot.lane.b32.xlu0 %v10363_v16, %s8697_s29  ;;  %v10401_v23 = vsel %vm4487_vm6, %v4509_v44, %v4511_v28  ;;  %v4499_v28 = vrot.slane %v10175_v17, 2  ;;  %vm5538_vm0 = vcmask 588800  }
 0x1d2   : > { %12467 = vst [vmem:[#allocation46_spill] sm:$0xff] %v10387_v59  ;;  %12468 = vst [vmem:[#allocation47_spill] sm:$0xff] %v10394_v37 }
 0x1d4   : > { %v4575_v41 = vpop.permute.xlu1 %4574 }
 0x1d5   : > { %4713 = vrot.lane.b32.xlu1 %v10209_v35, %s8701_s16  ;;  %4668 = vst.msk [vmem:[#allocation4 + $0x18] sm:$0xff] %vm4664_vm9, %v4575_v41  ;;  %v4363_v10 = vpop.permute.xlu0 %4362  ;;  %4620 = vrot.lane.b32.xlu0 %v10372_v33, %s8698_s30  ;;  %v4151_v41 = vld [vmem:[#allocation3 + $0x40] sm:$0x3] }
 0x1d6   : > { %4457 = vst.msk [vmem:[#allocation4 + $0x10] sm:$0xff] %vm4454_vm8, %v4363_v10  ;;  %v10410_v10 = vsel %vm4487_vm6, %v4508_v2, %v4509_v44  ;;  %v4291_v38 = vrot.slane %v4151_v41, 1 }
 0x1d8   : > { %v10378_v39 = vpop.permute.xlu1 %4725  ;;  %v10422_v44 = vsel %vm4277_vm5, %v4289_v27, %v4291_v38 }
 0x1d9   : > { %4705 = vrot.lane.b32.xlu1 %v10175_v17, %s8701_s16  ;;  %v4573_v8 = vpop.permute.xlu0 %4572  ;;  %4727 = vrot.lane.b32.xlu0 %v10238_v13, %s8701_s16  ;;  %12470 = vst [vmem:[#allocation49_spill] sm:$0xff] %v10422_v44  ;;  %v4548_v17 = vrot.slane %v10311_v58, 2 }
 0x1da   : > { %4667 = vst.msk [vmem:[#allocation4 + $0x10] sm:$0xff] %vm4664_vm9, %v4573_v8 }
 0x1dc   : > { %v4837_v51 = vpop.permute.xlu1 %4836 }
 0x1dd   : > { %4376 = vrot.lane.b32.xlu1 %v10387_v59, %s8697_s29  ;;  %4932 = vst.msk [vmem:[#allocation4 + $0x8] sm:$0xff] %vm4930_vm11, %v4837_v51  ;;  %v4835_v26 = vpop.permute.xlu0 %4834  ;;  %4374 = vrot.lane.b32.xlu0 %v10394_v37, %s8697_s29  ;;  %v4501_v51 = vrot.slane %v4151_v41, 2 }
 0x1de   : > { %4931 = vst.msk [vmem:[#allocation4] sm:$0xff] %vm4930_vm11, %v4835_v26 }
 0x1df   : > { %v10433_v38 = vsel %vm4487_vm6, %v4499_v28, %v4501_v51 }
 0x1e0   : > { %v10403_v24 = vpop.permute.xlu1 %4717 }
 0x1e1   : > { %4586 = vrot.lane.b32.xlu1 %v10401_v23, %s8698_s30  ;;  %v10407_v3 = vpop.permute.xlu0 %4739  ;;  %4584 = vrot.lane.b32.xlu0 %v10410_v10, %s8698_s30 }
 0x1e2   : > { %12469 = vst [vmem:[#allocation48_spill] sm:$0xff] %v10407_v3 }
 0x1e4   : > { %v4389_v8 = vpop.permute.xlu1 %4388 }
 0x1e5   : > { %4848 = vrot.lane.b32.xlu1 %v10387_v59, %s8702_s17  ;;  %4470 = vst.msk [vmem:[#allocation4 + $0x78] sm:$0xff] %vm4454_vm8, %v4389_v8  ;;  %v4387_v57 = vpop.permute.xlu0 %4386  ;;  %4719 = vrot.lane.b32.xlu0 %v10219_v50, %s8701_s16  ;;  %v4288_v8 = vrot.slane %v10135_v54, 1 }
 0x1e6   : > { %4469 = vst.msk [vmem:[#allocation4 + $0x70] sm:$0xff] %vm4454_vm8, %v4387_v57 }
 0x1e7   : > { %v10440_v41 = vsel %vm4277_vm5, %v4288_v8, %v4289_v27  ;;  %v4169_v27 = vld [vmem:[#allocation3 + $0xd0] sm:$0x3]  ;;  %v4319_v8 = vrot.slane %v10267_v53, 1 }
 0x1e8   : > { %v4599_v26 = vpop.permute.xlu1 %4598  ;;  %12471 = vst [vmem:[#allocation50_spill] sm:$0xff] %v10440_v41 }
 0x1e9   : > { %4368 = vrot.lane.b32.xlu1 %v10422_v44, %s8697_s29  ;;  %4680 = vst.msk [vmem:[#allocation4 + $0x78] sm:$0xff] %vm4664_vm9, %v4599_v26  ;;  %v4597_v2 = vpop.permute.xlu0 %4596  ;;  %4846 = vrot.lane.b32.xlu0 %v10394_v37, %s8702_s17  ;;  %v4498_v26 = vrot.slane %v10135_v54, 2  ;;  %v4321_v37 = vrot.slane %v4169_v27, 1 }
 0x1ea   : > { %4679 = vst.msk [vmem:[#allocation4 + $0x70] sm:$0xff] %vm4664_vm9, %v4597_v2 }
 0x1eb   : > { %v10449_v51 = vsel %vm4487_vm6, %v4498_v26, %v4499_v28  ;;  %v4318_v28 = vrot.slane %v10238_v13, 1 }
 0x1ec   : > { %v10435_v57 = vpop.permute.xlu1 %4860 }
 0x1ed   : > { %4578 = vrot.lane.b32.xlu1 %v10433_v38, %s8698_s30  ;;  %4366 = vrot.lane.b32.xlu0 %v10440_v41, %s8697_s29  ;;  %v10451_v59 = vpop.permute.xlu0 %4731  ;;  %v10475_v11 = vsel %vm4277_vm5, %v4318_v28, %v4319_v8 }
 0x1ee   : > { %12473 = vst [vmem:[#allocation52_spill] sm:$0xff] %v10475_v11 }
 0x1f0   : > { %v4381_v2 = vpop.permute.xlu1 %4380 }
 0x1f1   : > { %4729 = vrot.lane.b32.xlu1 %v10267_v53, %s8701_s16  ;;  %4466 = vst.msk [vmem:[#allocation4 + $0x58] sm:$0xff] %vm4454_vm8, %v4381_v2  ;;  %4576 = vrot.lane.b32.xlu0 %v10449_v51, %s8698_s30  ;;  %v10460_v32 = vpop.permute.xlu0 %4858  ;;  %v10468_v2 = vsel %vm4277_vm5, %v4319_v8, %v4321_v37  ;;  %v4309_v8 = vrot.slane %v10242_v42, 1 }
 0x1f2   : > { %12472 = vst [vmem:[#allocation51_spill] sm:$0xff] %v10468_v2 }
 0x1f4   : > { %v4591_v26 = vpop.permute.xlu1 %4590 }
 0x1f5   : > { %4840 = vrot.lane.b32.xlu1 %v10422_v44, %s8702_s17  ;;  %4838 = vrot.lane.b32.xlu0 %v10440_v41, %s8702_s17  ;;  %v4529_v44 = vrot.slane %v10267_v53, 2  ;;  %v4531_v41 = vrot.slane %v4169_v27, 2  ;;  %4676 = vst.msk [vmem:[#allocation4 + $0x58] sm:$0xff] %vm4664_vm9, %v4591_v26  ;;  %v4379_v43 = vpop.permute.xlu0 %4378  ;;  %v4163_v27 = vld [vmem:[#allocation3 + $0xa0] sm:$0x3]  ;;  %v4518_v53 = vrot.slane %v10219_v50, 2 }
 0x1f6   : > { %4465 = vst.msk [vmem:[#allocation4 + $0x50] sm:$0xff] %vm4454_vm8, %v4379_v43  ;;  %v4311_v28 = vrot.slane %v4163_v27, 1  ;;  %v4521_v60 = vrot.slane %v4163_v27, 2 }
 0x1f7   : > { %v10482_v37 = vsel %vm4487_vm6, %v4529_v44, %v4531_v41  ;;  %v10487_v26 = vsel %vm4487_vm6, %v4528_v40, %v4529_v44  ;;  %v4519_v41 = vrot.slane %v10242_v42, 2  ;;  %v4308_v40 = vrot.slane %v10219_v50, 1 }
 0x1f8   : > { %v10497_v43 = vsel %vm4277_vm5, %v4309_v8, %v4311_v28  ;;  %v10511_v28 = vpop.permute.xlu1 %4741 }
 0x1f9   : > { %4721 = vrot.lane.b32.xlu1 %v10242_v42, %s8701_s16  ;;  %4743 = vrot.lane.b32.xlu0 %v10311_v58, %s8701_s16  ;;  %12474 = vst [vmem:[#allocation53_spill] sm:$0xff] %v10497_v43  ;;  %v4589_v44 = vpop.permute.xlu0 %4588  ;;  %12475 = vst [vmem:[#allocation54_spill] sm:$0xff] %v10511_v28  ;;  %v10514_v27 = vsel %vm4277_vm5, %v4308_v40, %v4309_v8  ;;  %v4181_v40 = vld [vmem:[#allocation3 + $0x130] sm:$0x3]  ;;  %v4338_v42 = vrot.slane %v10311_v58, 1  ;;  %v4541_v58 = vrot.slane %v4175_v15, 2 }
 0x1fa   : > { %4675 = vst.msk [vmem:[#allocation4 + $0x50] sm:$0xff] %vm4664_vm9, %v4589_v44  ;;  %12476 = vst [vmem:[#allocation55_spill] sm:$0xff] %v10514_v27  ;;  %v4341_v13 = vrot.slane %v4181_v40, 1  ;;  %v4551_v35 = vrot.slane %v4181_v40, 2  ;;  %v4329_v40 = vrot.slane %v10300_v4, 1 }
 0x1fc   : > { %v10526_v44 = vpop.permute.xlu1 %4852 }
 0x1fd   : > { %4392 = vrot.lane.b32.xlu1 %v10468_v2, %s8697_s29  ;;  %4390 = vrot.lane.b32.xlu0 %v10475_v11, %s8697_s29  ;;  %v10530_v8 = vpop.permute.xlu0 %4850 }
 0x201   : > { %4602 = vrot.lane.b32.xlu1 %v10482_v37, %s8698_s30  ;;  %4600 = vrot.lane.b32.xlu0 %v10487_v26, %s8698_s30 }
 0x205   : > { %4864 = vrot.lane.b32.xlu1 %v10468_v2, %s8702_s17  ;;  %4735 = vrot.lane.b32.xlu0 %v10280_v31, %s8701_s16  ;;  %v10506_v2 = vsel %vm4487_vm6, %v4519_v41, %v4521_v60  ;;  %v10522_v60 = vsel %vm4487_vm6, %v4518_v53, %v4519_v41  ;;  %v10537_v53 = vpop.permute.xlu1 %4733  ;;  %v10539_v41 = vld [vmem:[#allocation3 + $0x180] sm:$0xff] }
 0x209   : > { %4384 = vrot.lane.b32.xlu1 %v10497_v43, %s8697_s29  ;;  %4862 = vrot.lane.b32.xlu0 %v10475_v11, %s8702_s17  ;;  %v4339_v11 = vrot.slane %v10327_v9, 1 }
 0x20b   : > { %v10547_v50 = vsel %vm4277_vm5, %v4339_v11, %v4341_v13  ;;  %v10553_v3 = vsel %vm4277_vm5, %v4338_v42, %v4339_v11 }
 0x20d   : > { %4594 = vrot.lane.b32.xlu1 %v10506_v2, %s8698_s30  ;;  %4382 = vrot.lane.b32.xlu0 %v10514_v27, %s8697_s29 }
 0x211   : > { %4745 = vrot.lane.b32.xlu1 %v10327_v9, %s8701_s16  ;;  %4592 = vrot.lane.b32.xlu0 %v10522_v60, %s8698_s30 }
 0x213   : > { %v4405_v28 = vpop.permute.xlu1 %4404 }
 0x214   : > { %4478 = vst.msk [vmem:[#allocation4 + $0xb8] sm:$0xff] %vm4454_vm8, %v4405_v28  ;;  %v4539_v28 = vrot.slane %v10300_v4, 2 }
 0x215   : > { %4856 = vrot.lane.b32.xlu1 %v10497_v43, %s8702_s17  ;;  %4854 = vrot.lane.b32.xlu0 %v10514_v27, %s8702_s17  ;;  %v10544_v43 = vpop.permute.xlu0 %4755  ;;  %v4549_v27 = vrot.slane %v10327_v9, 2  ;;  %v4331_v9 = vrot.slane %v4175_v15, 1 }
 0x216   : > { %12477 = vst [vmem:[#allocation56_spill] sm:$0xff] %v10544_v43 }
 0x217   : > { %v10560_v13 = vsel %vm4487_vm6, %v4549_v27, %v4551_v35  ;;  %v10567_v11 = vsel %vm4487_vm6, %v4548_v17, %v4549_v27  ;;  %v10573_v35 = vsel %vm4277_vm5, %v4329_v40, %v4331_v9  ;;  %v4328_v17 = vrot.slane %v10280_v31, 1 }
 0x218   : > { %v10584_v9 = vsel %vm4487_vm6, %v4539_v28, %v4541_v58 }
 0x219   : > { %4737 = vrot.lane.b32.xlu1 %v10300_v4, %s8701_s16  ;;  %4759 = vrot.lane.b32.xlu0 %v10539_v41, %s8701_s16  ;;  %v4403_v43 = vpop.permute.xlu0 %4402  ;;  %v10591_v27 = vsel %vm4277_vm5, %v4328_v17, %v4329_v40  ;;  %v4187_v4 = vld [vmem:[#allocation3 + $0x160] sm:$0x3]  ;;  %v4348_v17 = vrot.slane %v10333_v49, 1 }
 0x21a   : > { %4477 = vst.msk [vmem:[#allocation4 + $0xb0] sm:$0xff] %vm4454_vm8, %v4403_v43  ;;  %v4615_v42 = vpop.permute.xlu1 %4614  ;;  %v4561_v34 = vrot.slane %v4187_v4, 2 }
 0x21b   : > { %4688 = vst.msk [vmem:[#allocation4 + $0xb8] sm:$0xff] %vm4664_vm9, %v4615_v42 }
 0x21d   : > { %4408 = vrot.lane.b32.xlu1 %v10547_v50, %s8697_s29  ;;  %4406 = vrot.lane.b32.xlu0 %v10553_v3, %s8697_s29  ;;  %v4613_v54 = vpop.permute.xlu0 %4612 }
 0x21e   : > { %4687 = vst.msk [vmem:[#allocation4 + $0xb0] sm:$0xff] %vm4664_vm9, %v4613_v54  ;;  %v4397_v43 = vpop.permute.xlu1 %4396  ;;  %v4538_v54 = vrot.slane %v10280_v31, 2  ;;  %v4349_v31 = vrot.slane %v10347_v0, 1 }
 0x21f   : > { %4474 = vst.msk [vmem:[#allocation4 + $0x98] sm:$0xff] %vm4454_vm8, %v4397_v43  ;;  %v10597_v43 = vld [vmem:[#allocation3 + $0x188] sm:$0xff] }
 0x220   : > { %v10603_v40 = vsel %vm4487_vm6, %v4538_v54, %v4539_v28  ;;  %v4558_v28 = vrot.slane %v10333_v49, 2  ;;  %v4559_v54 = vrot.slane %v10347_v0, 2 }
 0x221   : > { %4618 = vrot.lane.b32.xlu1 %v10560_v13, %s8698_s30  ;;  %4616 = vrot.lane.b32.xlu0 %v10567_v11, %s8698_s30  ;;  %v10588_v15 = vpop.permute.xlu0 %4747 }
 0x222   : > { %12478 = vst [vmem:[#allocation57_spill] sm:$0xff] %v10588_v15 }
 0x224   : > { %v4607_v42 = vpop.permute.xlu1 %4606 }
 0x225   : > { %4400 = vrot.lane.b32.xlu1 %v10573_v35, %s8697_s29  ;;  %4751 = vrot.lane.b32.xlu0 %v10333_v49, %s8701_s16  ;;  %4684 = vst.msk [vmem:[#allocation4 + $0x98] sm:$0xff] %vm4664_vm9, %v4607_v42  ;;  %v4395_v58 = vpop.permute.xlu0 %4394  ;;  %v4351_v42 = vrot.slane %v4187_v4, 1 }
 0x226   : > { %4473 = vst.msk [vmem:[#allocation4 + $0x90] sm:$0xff] %vm4454_vm8, %v4395_v58  ;;  %v10615_v58 = vsel %vm4277_vm5, %v4348_v17, %v4349_v31  ;;  %v10630_v17 = vsel %vm4487_vm6, %v4558_v28, %v4559_v54 }
 0x228   : > { %v10607_v15 = vpop.permute.xlu1 %4757 }
 0x229   : > { %4610 = vrot.lane.b32.xlu1 %v10584_v9, %s8698_s30  ;;  %4398 = vrot.lane.b32.xlu0 %v10591_v27, %s8697_s29  ;;  %12479 = vst [vmem:[#allocation58_spill] sm:$0xff] %v10607_v15  ;;  %v10624_v15 = vsel %vm4277_vm5, %v4349_v31, %v4351_v42 }
 0x22c   : > { %v4605_v30 = vpop.permute.xlu0 %4604  ;;  %v10619_v6 = vpop.permute.xlu1 %4749 }
 0x22d   : > { %4761 = vrot.lane.b32.xlu1 %v10597_v43, %s8701_s16  ;;  %4608 = vrot.lane.b32.xlu0 %v10603_v40, %s8698_s30  ;;  %4683 = vst.msk [vmem:[#allocation4 + $0x90] sm:$0xff] %vm4664_vm9, %v4605_v30 }
 0x230   : > { %v4712_v30 = vpop.permute.xlu0 %4711  ;;  %v4421_v49 = vpop.permute.xlu1 %4420 }
 0x231   : > { %4753 = vrot.lane.b32.xlu1 %v10347_v0, %s8701_s16  ;;  %4414 = vrot.lane.b32.xlu0 %v10615_v58, %s8697_s29  ;;  %4802 = vst.msk [vmem:[#allocation4 + $0x30] sm:$0xff] %vm4795_vm10, %v4712_v30  ;;  %v10636_v0 = vsel %vm4487_vm6, %v4559_v54, %v4561_v34 }
 0x232   : > { %4486 = vst.msk [vmem:[#allocation4 + $0xf8] sm:$0xff] %vm4454_vm8, %v4421_v49 }
 0x234   : > { %v4419_v31 = vpop.permute.xlu0 %4418 }
 0x235   : > { %4416 = vrot.lane.b32.xlu1 %v10624_v15, %s8697_s29  ;;  %4624 = vrot.lane.b32.xlu0 %v10630_v17, %s8698_s30  ;;  %4485 = vst.msk [vmem:[#allocation4 + $0xf0] sm:$0xff] %vm4454_vm8, %v4419_v31  ;;  %v4631_v4 = vpop.permute.xlu1 %4630 }
 0x236   : > { %4696 = vst.msk [vmem:[#allocation4 + $0xf8] sm:$0xff] %vm4664_vm9, %v4631_v4 }
 0x239   : > { %4626 = vrot.lane.b32.xlu1 %v10636_v0, %s8698_s30  ;;  %4866 = vrot.lane.b32.xlu0 %v10164_v48, %s8702_s17 }
 0x23b   : > { %v4629_v42 = vpop.permute.xlu0 %4628 }
 0x23c   : > { %4695 = vst.msk [vmem:[#allocation4 + $0xf0] sm:$0xff] %vm4664_vm9, %v4629_v42 }
 0x23d   : > { %4868 = vrot.lane.b32.xlu1 %v10131_v55, %s8702_s17  ;;  %v4413_v49 = vpop.permute.xlu1 %4412  ;;  %4870 = vrot.lane.b32.xlu0 %v10591_v27, %s8702_s17 }
 0x23e   : > { %4482 = vst.msk [vmem:[#allocation4 + $0xd8] sm:$0xff] %vm4454_vm8, %v4413_v49 }
 0x23f   : > { %v4704_v34 = vpop.permute.xlu0 %4703 }
 0x240   : > { %4798 = vst.msk [vmem:[#allocation4 + $0x10] sm:$0xff] %vm4795_vm10, %v4704_v34 }
 0x241   : > { %4872 = vrot.lane.b32.xlu1 %v10573_v35, %s8702_s17  ;;  %4874 = vrot.lane.b32.xlu0 %v10095_v1, %s8702_s17 }
 0x243   : > { %v4623_v28 = vpop.permute.xlu1 %4622  ;;  %v4411_v54 = vpop.permute.xlu0 %4410 }
 0x244   : > { %4692 = vst.msk [vmem:[#allocation4 + $0xd8] sm:$0xff] %vm4664_vm9, %v4623_v28  ;;  %v10676_v28 = vld [vmem:[#allocation3 + $0x190] sm:$0x3] }
 0x245   : > { %4876 = vrot.lane.b32.xlu1 %v10077_v25, %s8702_s17  ;;  %4481 = vst.msk [vmem:[#allocation4 + $0xd0] sm:$0xff] %vm4454_vm8, %v4411_v54  ;;  %4878 = vrot.lane.b32.xlu0 %v10553_v3, %s8702_s17  ;;  %v4829_v54 = vrot.slane %v10539_v41, 1 }
 0x247   : > { %v4714_v30 = vpop.permute.xlu1 %4713  ;;  %v4621_v31 = vpop.permute.xlu0 %4620 }
 0x248   : > { %4803 = vst.msk [vmem:[#allocation4 + $0x38] sm:$0xff] %vm4795_vm10, %v4714_v30  ;;  %v4830_v30 = vrot.slane %v10597_v43, 1 }
 0x249   : > { %4880 = vrot.lane.b32.xlu1 %v10547_v50, %s8702_s17  ;;  %4691 = vst.msk [vmem:[#allocation4 + $0xd0] sm:$0xff] %vm4664_vm9, %v4621_v31  ;;  %4882 = vrot.lane.b32.xlu0 %v10363_v16, %s8702_s17 }
 0x24b   : > { %v4706_v4 = vpop.permute.xlu1 %4705  ;;  %v4728_v42 = vpop.permute.xlu0 %4727 }
 0x24c   : > { %4799 = vst.msk [vmem:[#allocation4 + $0x18] sm:$0xff] %vm4795_vm10, %v4706_v4  ;;  %4810 = vst.msk [vmem:[#allocation4 + $0x70] sm:$0xff] %vm4795_vm10, %v4728_v42  ;;  %v4832_v4 = vrot.slane %v10676_v28, 1 }
 0x24d   : > { %4884 = vrot.lane.b32.xlu1 %v10336_v47, %s8702_s17  ;;  %4886 = vrot.lane.b32.xlu0 %v10615_v58, %s8702_s17 }
 0x24f   : > { %v4377_v49 = vpop.permute.xlu1 %4376  ;;  %v4375_v34 = vpop.permute.xlu0 %4374 }
 0x250   : > { %4464 = vst.msk [vmem:[#allocation4 + $0x48] sm:$0xff] %vm4454_vm8, %v4377_v49  ;;  %4463 = vst.msk [vmem:[#allocation4 + $0x40] sm:$0xff] %vm4454_vm8, %v4375_v34  ;;  %v10693_v49 = vsel %vm4277_vm5, %v4829_v54, %v4830_v30 }
 0x251   : > { %4888 = vrot.lane.b32.xlu1 %v10624_v15, %s8702_s17  ;;  %4890 = vrot.lane.b32.xlu0 %v10287_v12, %s8702_s17 }
 0x253   : > { %v4587_v31 = vpop.permute.xlu1 %4586  ;;  %v4585_v42 = vpop.permute.xlu0 %4584 }
 0x254   : > { %4674 = vst.msk [vmem:[#allocation4 + $0x48] sm:$0xff] %vm4664_vm9, %v4587_v31  ;;  %4673 = vst.msk [vmem:[#allocation4 + $0x40] sm:$0xff] %vm4664_vm9, %v4585_v42 }
 0x255   : > { %4805 = vst.msk [vmem:[#allocation4 + $0x48] sm:$0xff] %vm4795_vm10, %v10403_v24  ;;  %4892 = vrot.lane.b32.xlu1 %v10259_v36, %s8702_s17  ;;  %4804 = vst.msk [vmem:[#allocation4 + $0x40] sm:$0xff] %vm4795_vm10, %v10345_v56  ;;  %4894 = vrot.lane.b32.xlu0 %v10693_v49, %s8702_s17  ;;  %v10703_v24 = vsel %vm4277_vm5, %v4830_v30, %v4832_v4 }
 0x256   : > { %4940 = vst.msk [vmem:[#allocation4 + $0x48] sm:$0xff] %vm4930_vm11, %v10526_v44  ;;  %4939 = vst.msk [vmem:[#allocation4 + $0x40] sm:$0xff] %vm4930_vm11, %v10530_v8 }
 0x257   : > { %v4849_v34 = vpop.permute.xlu1 %4848  ;;  %v4720_v44 = vpop.permute.xlu0 %4719 }
 0x258   : > { %4938 = vst.msk [vmem:[#allocation4 + $0x38] sm:$0xff] %vm4930_vm11, %v4849_v34 }
 0x259   : > { %4896 = vrot.lane.b32.xlu1 %v10703_v24, %s8702_s17  ;;  %4806 = vst.msk [vmem:[#allocation4 + $0x50] sm:$0xff] %vm4795_vm10, %v4720_v44  ;;  %4968 = vrot.lane.b32.xlu0 %v9560_v52, %s8703_s21 }
 0x25b   : > { %v4369_v54 = vpop.permute.xlu1 %4368  ;;  %v4847_v56 = vpop.permute.xlu0 %4846 }
 0x25c   : > { %4460 = vst.msk [vmem:[#allocation4 + $0x28] sm:$0xff] %vm4454_vm8, %v4369_v54 }
 0x25d   : > { %4970 = vrot.lane.b32.xlu1 %v9498_v29, %s8703_s21  ;;  %4937 = vst.msk [vmem:[#allocation4 + $0x30] sm:$0xff] %vm4930_vm11, %v4847_v56  ;;  %4972 = vrot.lane.b32.xlu0 %v10449_v51, %s8703_s21 }
 0x25f   : > { %v4579_v8 = vpop.permute.xlu1 %4578  ;;  %v4367_v52 = vpop.permute.xlu0 %4366 }
 0x260   : > { %4670 = vst.msk [vmem:[#allocation4 + $0x28] sm:$0xff] %vm4664_vm9, %v4579_v8 }
 0x261   : > { %4801 = vst.msk [vmem:[#allocation4 + $0x28] sm:$0xff] %vm4795_vm10, %v10197_v45  ;;  %4974 = vrot.lane.b32.xlu1 %v10433_v38, %s8703_s21  ;;  %4976 = vrot.lane.b32.xlu0 %v9484_v19, %s8703_s21 }
 0x262   : > { %4936 = vst.msk [vmem:[#allocation4 + $0x28] sm:$0xff] %vm4930_vm11, %v10339_v22 }
 0x263   : > { %4459 = vst.msk [vmem:[#allocation4 + $0x20] sm:$0xff] %vm4454_vm8, %v4367_v52  ;;  %v4730_v29 = vpop.permute.xlu1 %4729  ;;  %v4577_v30 = vpop.permute.xlu0 %4576 }
 0x264   : > { %4811 = vst.msk [vmem:[#allocation4 + $0x78] sm:$0xff] %vm4795_vm10, %v4730_v29  ;;  %v12480_v29 = vld [vmem:[#allocation28_spill] sm:$0xff] }
 0x265   : > { %4978 = vrot.lane.b32.xlu1 %v9481_v18, %s8703_s21  ;;  %4669 = vst.msk [vmem:[#allocation4 + $0x20] sm:$0xff] %vm4664_vm9, %v4577_v30  ;;  %4980 = vrot.lane.b32.xlu0 %v10410_v10, %s8703_s21  ;;  %v12481_v30 = vld [vmem:[#allocation27_spill] sm:$0xff] }
 0x266   : > { %4800 = vst.msk [vmem:[#allocation4 + $0x20] sm:$0xff] %vm4795_vm10, %v10173_v5 }
 0x267   : > { %v4841_v45 = vpop.permute.xlu1 %4840  ;;  %4935 = vst.msk [vmem:[#allocation4 + $0x20] sm:$0xff] %vm4930_vm11, %v10360_v62  ;;  %v4839_v22 = vpop.permute.xlu0 %4838 }
 0x268   : > { %4934 = vst.msk [vmem:[#allocation4 + $0x18] sm:$0xff] %vm4930_vm11, %v4841_v45  ;;  %4933 = vst.msk [vmem:[#allocation4 + $0x10] sm:$0xff] %vm4930_vm11, %v4839_v22 }
 0x269   : > { %4982 = vrot.lane.b32.xlu1 %v10401_v23, %s8703_s21  ;;  %4984 = vrot.lane.b32.xlu0 %v9960_v63, %s8703_s21 }
 0x26b   : > { %v4722_v31 = vpop.permute.xlu1 %4721  ;;  %v4744_v5 = vpop.permute.xlu0 %4743 }
 0x26c   : > { %4807 = vst.msk [vmem:[#allocation4 + $0x58] sm:$0xff] %vm4795_vm10, %v4722_v31  ;;  %4818 = vst.msk [vmem:[#allocation4 + $0xb0] sm:$0xff] %vm4795_vm10, %v4744_v5 }
 0x26d   : > { %4986 = vrot.lane.b32.xlu1 %v9849_v7, %s8703_s21  ;;  %4988 = vrot.lane.b32.xlu0 %v10522_v60, %s8703_s21 }
 0x26f   : > { %v4393_v62 = vpop.permute.xlu1 %4392  ;;  %v4391_v4 = vpop.permute.xlu0 %4390 }
 0x270   : > { %4472 = vst.msk [vmem:[#allocation4 + $0x88] sm:$0xff] %vm4454_vm8, %v4393_v62  ;;  %4471 = vst.msk [vmem:[#allocation4 + $0x80] sm:$0xff] %vm4454_vm8, %v4391_v4  ;;  %v4963_v62 = vrot.slane %v10539_v41, 2  ;;  %v4964_v4 = vrot.slane %v10597_v43, 2 }
 0x271   : > { %4990 = vrot.lane.b32.xlu1 %v10506_v2, %s8703_s21  ;;  %4992 = vrot.lane.b32.xlu0 %v9735_v20, %s8703_s21 }
 0x273   : > { %v4603_v42 = vpop.permute.xlu1 %4602  ;;  %v4601_v34 = vpop.permute.xlu0 %4600 }
 0x274   : > { %4682 = vst.msk [vmem:[#allocation4 + $0x88] sm:$0xff] %vm4664_vm9, %v4603_v42  ;;  %4681 = vst.msk [vmem:[#allocation4 + $0x80] sm:$0xff] %vm4664_vm9, %v4601_v34  ;;  %v12483_v34 = vld [vmem:[#allocation41_spill] sm:$0xff] }
 0x275   : > { %4813 = vst.msk [vmem:[#allocation4 + $0x88] sm:$0xff] %vm4795_vm10, %v10537_v53  ;;  %4994 = vrot.lane.b32.xlu1 %v9653_v21, %s8703_s21  ;;  %4812 = vst.msk [vmem:[#allocation4 + $0x80] sm:$0xff] %vm4795_vm10, %v10451_v59  ;;  %4996 = vrot.lane.b32.xlu0 %v10487_v26, %s8703_s21 }
 0x277   : > { %v4865_v44 = vpop.permute.xlu1 %4864  ;;  %v4736_v54 = vpop.permute.xlu0 %4735 }
 0x278   : > { %4946 = vst.msk [vmem:[#allocation4 + $0x78] sm:$0xff] %vm4930_vm11, %v4865_v44  ;;  %v4966_v44 = vrot.slane %v10676_v28, 2 }
 0x279   : > { %4998 = vrot.lane.b32.xlu1 %v10482_v37, %s8703_s21  ;;  %4814 = vst.msk [vmem:[#allocation4 + $0x90] sm:$0xff] %vm4795_vm10, %v4736_v54  ;;  %5000 = vrot.lane.b32.xlu0 %v10207_v61, %s8703_s21  ;;  %v12484_v54 = vld [vmem:[#allocation39_spill] sm:$0xff] }
 0x27b   : > { %v4385_v53 = vpop.permute.xlu1 %4384  ;;  %v4863_v59 = vpop.permute.xlu0 %4862 }
 0x27c   : > { %4468 = vst.msk [vmem:[#allocation4 + $0x68] sm:$0xff] %vm4454_vm8, %v4385_v53 }
 0x27d   : > { %5002 = vrot.lane.b32.xlu1 %v10159_v14, %s8703_s21  ;;  %4945 = vst.msk [vmem:[#allocation4 + $0x70] sm:$0xff] %vm4930_vm11, %v4863_v59  ;;  %5004 = vrot.lane.b32.xlu0 %v10603_v40, %s8703_s21  ;;  %v10824_v59 = vsel %vm4487_vm6, %v4963_v62, %v4964_v4 }
 0x27f   : > { %v4595_v56 = vpop.permute.xlu1 %4594  ;;  %v4383_v8 = vpop.permute.xlu0 %4382 }
 0x280   : > { %4678 = vst.msk [vmem:[#allocation4 + $0x68] sm:$0xff] %vm4664_vm9, %v4595_v56  ;;  %v12485_v56 = vld [vmem:[#allocation57_spill] sm:$0xff] }
 0x281   : > { %4809 = vst.msk [vmem:[#allocation4 + $0x68] sm:$0xff] %vm4795_vm10, %v10378_v39  ;;  %5006 = vrot.lane.b32.xlu1 %v10584_v9, %s8703_s21  ;;  %5008 = vrot.lane.b32.xlu0 %v12480_v29, %s8703_s21 }
 0x282   : > { %4944 = vst.msk [vmem:[#allocation4 + $0x68] sm:$0xff] %vm4930_vm11, %v10435_v57 }
 0x283   : > { %4467 = vst.msk [vmem:[#allocation4 + $0x60] sm:$0xff] %vm4454_vm8, %v4383_v8  ;;  %v4746_v52 = vpop.permute.xlu1 %4745  ;;  %v4593_v45 = vpop.permute.xlu0 %4592 }
 0x284   : > { %4819 = vst.msk [vmem:[#allocation4 + $0xb8] sm:$0xff] %vm4795_vm10, %v4746_v52 }
 0x285   : > { %5010 = vrot.lane.b32.xlu1 %v12481_v30, %s8703_s21  ;;  %4677 = vst.msk [vmem:[#allocation4 + $0x60] sm:$0xff] %vm4664_vm9, %v4593_v45  ;;  %5012 = vrot.lane.b32.xlu0 %v10567_v11, %s8703_s21  ;;  %v12486_v45 = vld [vmem:[#allocation29_spill] sm:$0xff] }
 0x286   : > { %4808 = vst.msk [vmem:[#allocation4 + $0x60] sm:$0xff] %vm4795_vm10, %v10240_v46  ;;  %v12482_v46 = vld [vmem:[#allocation45_spill] sm:$0xff] }
 0x287   : > { %v4857_v39 = vpop.permute.xlu1 %4856  ;;  %4943 = vst.msk [vmem:[#allocation4 + $0x60] sm:$0xff] %vm4930_vm11, %v10460_v32  ;;  %v4855_v57 = vpop.permute.xlu0 %4854 }
 0x288   : > { %4942 = vst.msk [vmem:[#allocation4 + $0x58] sm:$0xff] %vm4930_vm11, %v4857_v39  ;;  %4941 = vst.msk [vmem:[#allocation4 + $0x50] sm:$0xff] %vm4930_vm11, %v4855_v57  ;;  %v12487_v39 = vld [vmem:[#allocation54_spill] sm:$0xff] }
 0x289   : > { %5014 = vrot.lane.b32.xlu1 %v10560_v13, %s8703_s21  ;;  %5016 = vrot.lane.b32.xlu0 %v10372_v33, %s8703_s21  ;;  %v12488_v57 = vld [vmem:[#allocation30_spill] sm:$0xff] }
 0x28b   : > { %v4738_v22 = vpop.permute.xlu1 %4737  ;;  %v4760_v31 = vpop.permute.xlu0 %4759 }
 0x28c   : > { %4815 = vst.msk [vmem:[#allocation4 + $0x98] sm:$0xff] %vm4795_vm10, %v4738_v22  ;;  %4826 = vst.msk [vmem:[#allocation4 + $0xf0] sm:$0xff] %vm4795_vm10, %v4760_v31 }
 0x28d   : > { %5018 = vrot.lane.b32.xlu1 %v12482_v46, %s8703_s21  ;;  %5020 = vrot.lane.b32.xlu0 %v10630_v17, %s8703_s21 }
 0x28f   : > { %v4409_v32 = vpop.permute.xlu1 %4408  ;;  %v4407_v5 = vpop.permute.xlu0 %4406 }
 0x290   : > { %4480 = vst.msk [vmem:[#allocation4 + $0xc8] sm:$0xff] %vm4454_vm8, %v4409_v32  ;;  %4479 = vst.msk [vmem:[#allocation4 + $0xc0] sm:$0xff] %vm4454_vm8, %v4407_v5  ;;  %v12489_v32 = vld [vmem:[#allocation7_spill] sm:$0xff]  ;;  %v12490_v5 = vld [vmem:[#allocation8_spill] sm:$0xff] }
 0x291   : > { %5022 = vrot.lane.b32.xlu1 %v10636_v0, %s8703_s21  ;;  %5024 = vrot.lane.b32.xlu0 %v12483_v34, %s8703_s21 }
 0x293   : > { %v4619_v42 = vpop.permute.xlu1 %4618  ;;  %v4617_v53 = vpop.permute.xlu0 %4616 }
 0x294   : > { %4690 = vst.msk [vmem:[#allocation4 + $0xc8] sm:$0xff] %vm4664_vm9, %v4619_v42  ;;  %4689 = vst.msk [vmem:[#allocation4 + $0xc0] sm:$0xff] %vm4664_vm9, %v4617_v53  ;;  %v12493_v53 = vld [vmem:[#allocation32_spill] sm:$0xff] }
 0x295   : > { %4821 = vst.msk [vmem:[#allocation4 + $0xc8] sm:$0xff] %vm4795_vm10, %v10619_v6  ;;  %5026 = vrot.lane.b32.xlu1 %v12484_v54, %s8703_s21  ;;  %4820 = vst.msk [vmem:[#allocation4 + $0xc0] sm:$0xff] %vm4795_vm10, %v12485_v56  ;;  %5028 = vrot.lane.b32.xlu0 %v10824_v59, %s8703_s21  ;;  %v10832_v6 = vsel %vm4487_vm6, %v4964_v4, %v4966_v44  ;;  %v12491_v4 = vld [vmem:[#allocation48_spill] sm:$0xff]  ;;  %v12492_v44 = vld [vmem:[#allocation31_spill] sm:$0xff] }
 0x297   : > { %v4401_v8 = vpop.permute.xlu1 %4400  ;;  %v4752_v28 = vpop.permute.xlu0 %4751 }
 0x298   : > { %4476 = vst.msk [vmem:[#allocation4 + $0xa8] sm:$0xff] %vm4454_vm8, %v4401_v8 }
 0x299   : > { %5030 = vrot.lane.b32.xlu1 %v10832_v6, %s8703_s21  ;;  %4822 = vst.msk [vmem:[#allocation4 + $0xd0] sm:$0xff] %vm4795_vm10, %v4752_v28  ;;  %5099 = vrot.lane.b32.xlu0 %v12486_v45, %s8704_s22  ;;  %v12494_v28 = vld [vmem:[#allocation13_spill] sm:$0xff] }
 0x29b   : > { %v4611_v52 = vpop.permute.xlu1 %4610  ;;  %v4399_v22 = vpop.permute.xlu0 %4398 }
 0x29c   : > { %4686 = vst.msk [vmem:[#allocation4 + $0xa8] sm:$0xff] %vm4664_vm9, %v4611_v52  ;;  %v12495_v52 = vld [vmem:[#allocation14_spill] sm:$0xff] }
 0x29d   : > { %4817 = vst.msk [vmem:[#allocation4 + $0xa8] sm:$0xff] %vm4795_vm10, %v12487_v39  ;;  %5101 = vrot.lane.b32.xlu1 %v12488_v57, %s8704_s22  ;;  %5103 = vrot.lane.b32.xlu0 %v12489_v32, %s8704_s22  ;;  %v12496_v39 = vld [vmem:[#allocation56_spill] sm:$0xff]  ;;  %v12499_v32 = vld [vmem:[#allocation35_spill] sm:$0xff] }
 0x29e   : > { %4475 = vst.msk [vmem:[#allocation4 + $0xa0] sm:$0xff] %vm4454_vm8, %v4399_v22  ;;  %v12497_v22 = vld [vmem:[#allocation33_spill] sm:$0xff] }
 0x29f   : > { %v4762_v31 = vpop.permute.xlu1 %4761  ;;  %v4609_v62 = vpop.permute.xlu0 %4608 }
 0x2a0   : > { %4827 = vst.msk [vmem:[#allocation4 + $0xf8] sm:$0xff] %vm4795_vm10, %v4762_v31  ;;  %v12498_v31 = vld [vmem:[#allocation58_spill] sm:$0xff] }
 0x2a1   : > { %5105 = vrot.lane.b32.xlu1 %v12490_v5, %s8704_s22  ;;  %4685 = vst.msk [vmem:[#allocation4 + $0xa0] sm:$0xff] %vm4664_vm9, %v4609_v62  ;;  %5107 = vrot.lane.b32.xlu0 %v12492_v44, %s8704_s22 }
 0x2a2   : > { %4816 = vst.msk [vmem:[#allocation4 + $0xa0] sm:$0xff] %vm4795_vm10, %v12491_v4  ;;  %v12500_v4 = vld [vmem:[#allocation9_spill] sm:$0xff] }
 0x2a3   : > { %v4754_v42 = vpop.permute.xlu1 %4753  ;;  %v4415_v56 = vpop.permute.xlu0 %4414 }
 0x2a4   : > { %4823 = vst.msk [vmem:[#allocation4 + $0xd8] sm:$0xff] %vm4795_vm10, %v4754_v42  ;;  %v12501_v42 = vld [vmem:[#allocation10_spill] sm:$0xff] }
 0x2a5   : > { %5109 = vrot.lane.b32.xlu1 %v12493_v53, %s8704_s22  ;;  %4483 = vst.msk [vmem:[#allocation4 + $0xe0] sm:$0xff] %vm4454_vm8, %v4415_v56  ;;  %5111 = vrot.lane.b32.xlu0 %v12494_v28, %s8704_s22  ;;  %v12502_v56 = vld [vmem:[#allocation34_spill] sm:$0xff] }
 0x2a7   : > { %v4417_v8 = vpop.permute.xlu1 %4416  ;;  %v4625_v45 = vpop.permute.xlu0 %4624 }
 0x2a8   : > { %4484 = vst.msk [vmem:[#allocation4 + $0xe8] sm:$0xff] %vm4454_vm8, %v4417_v8  ;;  %v12503_v8 = vld [vmem:[#allocation36_spill] sm:$0xff]  ;;  %vm7236_vm8 = vcmask 228544  }
 0x2a9   : > { %5113 = vrot.lane.b32.xlu1 %v12495_v52, %s8704_s22  ;;  %4693 = vst.msk [vmem:[#allocation4 + $0xe0] sm:$0xff] %vm4664_vm9, %v4625_v45  ;;  %5115 = vrot.lane.b32.xlu0 %v12497_v22, %s8704_s22  ;;  %v12504_v45 = vld [vmem:[#allocation19_spill] sm:$0xff] }
 0x2aa   : > { %4824 = vst.msk [vmem:[#allocation4 + $0xe0] sm:$0xff] %vm4795_vm10, %v12496_v39  ;;  %v12505_v39 = vld [vmem:[#allocation20_spill] sm:$0xff] }
 0x2ab   : > { %v4627_v57 = vpop.permute.xlu1 %4626  ;;  %v4867_v5 = vpop.permute.xlu0 %4866 }
 0x2ac   : > { %4694 = vst.msk [vmem:[#allocation4 + $0xe8] sm:$0xff] %vm4664_vm9, %v4627_v57  ;;  %vm7429_vm9 = vcmask 261344  }
 0x2ad   : > { %4825 = vst.msk [vmem:[#allocation4 + $0xe8] sm:$0xff] %vm4795_vm10, %v12498_v31  ;;  %5117 = vrot.lane.b32.xlu1 %v12499_v32, %s8704_s22  ;;  %5119 = vrot.lane.b32.xlu0 %v12500_v4, %s8704_s22  ;;  %v12506_v31 = vld [vmem:[#allocation37_spill] sm:$0xff]  ;;  %v12507_v32 = vld [vmem:[#allocation38_spill] sm:$0xff]  ;;  %v12508_v4 = vld [vmem:[#allocation15_spill] sm:$0xff]  ;;  %vm7622_vm10 = vcmask 294144  }
 0x2ae   : > { %4947 = vst.msk [vmem:[#allocation4 + $0x80] sm:$0xff] %vm4930_vm11, %v4867_v5 }
 0x2af   : > { %v4869_v62 = vpop.permute.xlu1 %4868  ;;  %v4871_v44 = vpop.permute.xlu0 %4870 }
 0x2b0   : > { %4948 = vst.msk [vmem:[#allocation4 + $0x88] sm:$0xff] %vm4930_vm11, %v4869_v62  ;;  %4949 = vst.msk [vmem:[#allocation4 + $0x90] sm:$0xff] %vm4930_vm11, %v4871_v44 }
 0x2b1   : > { %5121 = vrot.lane.b32.xlu1 %v12501_v42, %s8704_s22  ;;  %5123 = vrot.lane.b32.xlu0 %v12502_v56, %s8704_s22  ;;  %v12509_v42 = vld [vmem:[#allocation16_spill] sm:$0xff] }
 0x2b2   : > { %v12510_v56 = vld [vmem:[#allocation40_spill] sm:$0xff] }
 0x2b3   : > { %v4873_v53 = vpop.permute.xlu1 %4872  ;;  %v4875_v28 = vpop.permute.xlu0 %4874 }
 0x2b4   : > { %4950 = vst.msk [vmem:[#allocation4 + $0x98] sm:$0xff] %vm4930_vm11, %v4873_v53  ;;  %4951 = vst.msk [vmem:[#allocation4 + $0xa0] sm:$0xff] %vm4930_vm11, %v4875_v28  ;;  %v5530_v28 = vld [vmem:[%s12360_s7 + $0x8] sm:$0xff] }
 0x2b5   : > { %5125 = vrot.lane.b32.xlu1 %v12503_v8, %s8704_s22  ;;  %5127 = vrot.lane.b32.xlu0 %v12504_v45, %s8704_s22  ;;  %v5529_v8 = vld [vmem:[%s12360_s7] sm:$0xff] }
 0x2b7   : > { %v4877_v52 = vpop.permute.xlu1 %4876  ;;  %v4879_v57 = vpop.permute.xlu0 %4878 }
 0x2b8   : > { %4952 = vst.msk [vmem:[#allocation4 + $0xa8] sm:$0xff] %vm4930_vm11, %v4877_v52  ;;  %4953 = vst.msk [vmem:[#allocation4 + $0xb0] sm:$0xff] %vm4930_vm11, %v4879_v57  ;;  %v12511_v52 = vld [vmem:[#allocation42_spill] sm:$0xff] }
 0x2b9   : > { %5129 = vrot.lane.b32.xlu1 %v12505_v39, %s8704_s22  ;;  %5131 = vrot.lane.b32.xlu0 %v12506_v31, %s8704_s22  ;;  %v8639_v39 = vpack.c.bf16 %v5530_v28, %v5529_v8  ;;  %v5531_v31 = vld [vmem:[%s12360_s7 + $0x10] sm:$0xff]  ;;  %v12515_v8 = vld [vmem:[#allocation44_spill] sm:$0xff] }
 0x2bb   : > { %v4881_v22 = vpop.permute.xlu1 %4880  ;;  %v4883_v5 = vpop.permute.xlu0 %4882  ;;  %8640 = vmatprep.subr.bf16.mxu0 %v8639_v39 }
 0x2bc   : > { %4954 = vst.msk [vmem:[#allocation4 + $0xb8] sm:$0xff] %vm4930_vm11, %v4881_v22  ;;  %4955 = vst.msk [vmem:[#allocation4 + $0xc0] sm:$0xff] %vm4930_vm11, %v4883_v5  ;;  %v12512_v22 = vld [vmem:[#allocation23_spill] sm:$0xff]  ;;  %8642 = vmatpush3.bf16.msra.mxu0 %v8639_v39  ;;  %v12513_v5 = vld [vmem:[#allocation24_spill] sm:$0xff] }
 0x2bd   : > { %5133 = vrot.lane.b32.xlu1 %v12507_v32, %s8704_s22  ;;  %5135 = vrot.lane.b32.xlu0 %v12508_v4, %s8704_s22  ;;  %v5532_v32 = vld [vmem:[%s12360_s7 + $0x18] sm:$0xff]  ;;  %v12516_v39 = vld [vmem:[#allocation25_spill] sm:$0xff] }
 0x2be   : > { %v8643_v4 = vpack.c.bf16 %v5532_v32, %v5531_v31  ;;  %v12517_v31 = vld [vmem:[#allocation26_spill] sm:$0xff] }
 0x2bf   : > { %v4885_v62 = vpop.permute.xlu1 %4884  ;;  %v4887_v44 = vpop.permute.xlu0 %4886 }
 0x2c0   : > { %4956 = vst.msk [vmem:[#allocation4 + $0xc8] sm:$0xff] %vm4930_vm11, %v4885_v62  ;;  %4957 = vst.msk [vmem:[#allocation4 + $0xd0] sm:$0xff] %vm4930_vm11, %v4887_v44  ;;  %v12514_v44 = vld [vmem:[#allocation43_spill] sm:$0xff]  ;;  %8644 = vmatprep.subr.bf16.mxu0 %v8643_v4 }
 0x2c1   : > { %5137 = vrot.lane.b32.xlu1 %v12509_v42, %s8704_s22  ;;  %5139 = vrot.lane.b32.xlu0 %v12510_v56, %s8704_s22  ;;  %v5534_v56 = vld [vmem:[%s12360_s7 + $0x28] sm:$0xff] }
 0x2c2   : > { %8646 = vmatpush3.bf16.msra.mxu0 %v8643_v4  ;;  %v5537_v4 = vld [vmem:[%s12360_s7 + $0x40] sm:$0xff] }
 0x2c3   : > { %v4889_v53 = vpop.permute.xlu1 %4888  ;;  %v4891_v45 = vpop.permute.xlu0 %4890 }
 0x2c4   : > { %4958 = vst.msk [vmem:[#allocation4 + $0xd8] sm:$0xff] %vm4930_vm11, %v4889_v53  ;;  %4959 = vst.msk [vmem:[#allocation4 + $0xe0] sm:$0xff] %vm4930_vm11, %v4891_v45  ;;  %v5533_v53 = vld [vmem:[%s12360_s7 + $0x20] sm:$0xff] }
 0x2c5   : > { %5141 = vrot.lane.b32.xlu1 %v12511_v52, %s8704_s22  ;;  %5143 = vrot.lane.b32.xlu0 %v12512_v22, %s8704_s22  ;;  %v8647_v52 = vpack.c.bf16 %v5534_v56, %v5533_v53  ;;  %v5536_v22 = vld [vmem:[%s12360_s7 + $0x38] sm:$0xff]  ;;  %v12519_v56 = vld [vmem:[#allocation49_spill] sm:$0xff] }
 0x2c7   : > { %v4893_v57 = vpop.permute.xlu1 %4892  ;;  %v4895_v62 = vpop.permute.xlu0 %4894  ;;  %8648 = vmatprep.subr.bf16.mxu0 %v8647_v52 }
 0x2c8   : > { %4960 = vst.msk [vmem:[#allocation4 + $0xe8] sm:$0xff] %vm4930_vm11, %v4893_v57  ;;  %4961 = vst.msk [vmem:[#allocation4 + $0xf0] sm:$0xff] %vm4930_vm11, %v4895_v62  ;;  %8650 = vmatpush3.bf16.msra.mxu0 %v8647_v52  ;;  %v5535_v57 = vld [vmem:[%s12360_s7 + $0x30] sm:$0xff] }
 0x2c9   : > { %5145 = vrot.lane.b32.xlu1 %v12513_v5, %s8704_s22  ;;  %5147 = vrot.lane.b32.xlu0 %v12514_v44, %s8704_s22  ;;  %v8651_v5 = vpack.c.bf16 %v5536_v22, %v5535_v57  ;;  %v12522_v57 = vld [vmem:[#allocation47_spill] sm:$0xff] }
 0x2cb   : > { %v4897_v42 = vpop.permute.xlu1 %4896  ;;  %v4969_v28 = vpop.permute.xlu0 %4968  ;;  %8652 = vmatprep.subr.bf16.mxu0 %v8651_v5 }
 0x2cc   : > { %4962 = vst.msk [vmem:[#allocation4 + $0xf8] sm:$0xff] %vm4930_vm11, %v4897_v42  ;;  %8654 = vmatpush3.bf16.msra.mxu0 %v8651_v5  ;;  %v12518_v42 = vld [vmem:[#allocation50_spill] sm:$0xff]  ;;  %vm7692_vm11 = vcmask 293888  }
 0x2cd   : > { %5149 = vrot.lane.b32.xlu1 %v12515_v8, %s8704_s22  ;;  %5065 = vst.msk [vmem:[#allocation4] sm:$0xff] %vm5064_vm12, %v4969_v28  ;;  %5151 = vrot.lane.b32.xlu0 %v12516_v39, %s8704_s22  ;;  %v12520_v28 = vld [vmem:[#allocation12_spill] sm:$0xff]  ;;  %v12521_v39 = vld [vmem:[#allocation11_spill] sm:$0xff]  ;;  %v12524_v5 = vld [vmem:[#allocation22_spill] sm:$0xff] }
 0x2ce   : > { %8531 = vmatprep.subr.mxu0 %v5537_v4 }
 0x2cf   : > { %v4971_v45 = vpop.permute.xlu1 %4970  ;;  %v4973_v32 = vpop.permute.xlu0 %4972 }
 0x2d0   : > { %5066 = vst.msk [vmem:[#allocation4 + $0x8] sm:$0xff] %vm5064_vm12, %v4971_v45  ;;  %5067 = vst.msk [vmem:[#allocation4 + $0x10] sm:$0xff] %vm5064_vm12, %v4973_v32  ;;  %8532 = vmatpush3.msra.mxu0 %v5537_v4  ;;  %v12523_v32 = vld [vmem:[#allocation46_spill] sm:$0xff] }
 0x2d1   : > { %5153 = vrot.lane.b32.xlu1 %v12517_v31, %s8704_s22  ;;  %5155 = vrot.lane.b32.xlu0 %v10539_v41, %s8704_s22 }
 0x2d3   : > { %v4975_v62 = vpop.permute.xlu1 %4974  ;;  %v4977_v44 = vpop.permute.xlu0 %4976 }
 0x2d4   : > { %5068 = vst.msk [vmem:[#allocation4 + $0x18] sm:$0xff] %vm5064_vm12, %v4975_v62  ;;  %5069 = vst.msk [vmem:[#allocation4 + $0x20] sm:$0xff] %vm5064_vm12, %v4977_v44  ;;  %v12526_v44 = vld [vmem:[#allocation55_spill] sm:$0xff] }
 0x2d5   : > { %5234 = vrot.lane.b32.xlu1 %v12518_v42, %s8705_s27  ;;  %5236 = vrot.lane.b32.xlu0 %v12519_v56, %s8705_s27  ;;  %v12525_v42 = vld [vmem:[#allocation21_spill] sm:$0xff] }
 0x2d7   : > { %v4979_v53 = vpop.permute.xlu1 %4978  ;;  %v4981_v41 = vpop.permute.xlu0 %4980 }
 0x2d8   : > { %5070 = vst.msk [vmem:[#allocation4 + $0x28] sm:$0xff] %vm5064_vm12, %v4979_v53  ;;  %5071 = vst.msk [vmem:[#allocation4 + $0x30] sm:$0xff] %vm5064_vm12, %v4981_v41  ;;  %v12527_v41 = vld [vmem:[#allocation53_spill] sm:$0xff] }
 0x2d9   : > { %5368 = vrot.lane.b32.xlu1 %v10449_v51, %s8706_s14  ;;  %5370 = vrot.lane.b32.xlu0 %v10433_v38, %s8706_s14 }
 0x2db   : > { %v4983_v8 = vpop.permute.xlu1 %4982  ;;  %v4985_v52 = vpop.permute.xlu0 %4984 }
 0x2dc   : > { %5072 = vst.msk [vmem:[#allocation4 + $0x38] sm:$0xff] %vm5064_vm12, %v4983_v8  ;;  %5073 = vst.msk [vmem:[#allocation4 + $0x40] sm:$0xff] %vm5064_vm12, %v4985_v52  ;;  %v12528_v8 = vld [vmem:[#allocation18_spill] sm:$0xff] }
 0x2dd   : > { %5238 = vrot.lane.b32.xlu1 %v12520_v28, %s8705_s27  ;;  %5240 = vrot.lane.b32.xlu0 %v12521_v39, %s8705_s27  ;;  %v12530_v39 = vld [vmem:[#allocation52_spill] sm:$0xff] }
 0x2df   : > { %v4987_v45 = vpop.permute.xlu1 %4986  ;;  %v4989_v51 = vpop.permute.xlu0 %4988 }
 0x2e0   : > { %5074 = vst.msk [vmem:[#allocation4 + $0x48] sm:$0xff] %vm5064_vm12, %v4987_v45  ;;  %5075 = vst.msk [vmem:[#allocation4 + $0x50] sm:$0xff] %vm5064_vm12, %v4989_v51  ;;  %v12529_v45 = vld [vmem:[#allocation17_spill] sm:$0xff] }
 0x2e1   : > { %5372 = vrot.lane.b32.xlu1 %v9484_v19, %s8706_s14  ;;  %5374 = vrot.lane.b32.xlu0 %v9481_v18, %s8706_s14 }
 0x2e3   : > { %v4991_v38 = vpop.permute.xlu1 %4990  ;;  %v4993_v22 = vpop.permute.xlu0 %4992 }
 0x2e4   : > { %5076 = vst.msk [vmem:[#allocation4 + $0x58] sm:$0xff] %vm5064_vm12, %v4991_v38  ;;  %5077 = vst.msk [vmem:[#allocation4 + $0x60] sm:$0xff] %vm5064_vm12, %v4993_v22 }
 0x2e5   : > { %5242 = vrot.lane.b32.xlu1 %v12522_v57, %s8705_s27  ;;  %5244 = vrot.lane.b32.xlu0 %v12523_v32, %s8705_s27  ;;  %v12531_v57 = vld [vmem:[#allocation51_spill] sm:$0xff]  ;;  %v11137_v32 = vld [vmem:[#allocation3 + $0x198] sm:$0xff] }
 0x2e7   : > { %v4995_v31 = vpop.permute.xlu1 %4994  ;;  %v4997_v19 = vpop.permute.xlu0 %4996 }
 0x2e8   : > { %5078 = vst.msk [vmem:[#allocation4 + $0x68] sm:$0xff] %vm5064_vm12, %v4995_v31  ;;  %5079 = vst.msk [vmem:[#allocation4 + $0x70] sm:$0xff] %vm5064_vm12, %v4997_v19  ;;  %v11142_v19 = vld [vmem:[#allocation3 + $0x1a8] sm:$0x3] }
 0x2e9   : > { %5376 = vrot.lane.b32.xlu1 %v10410_v10, %s8706_s14  ;;  %5378 = vrot.lane.b32.xlu0 %v10401_v23, %s8706_s14 }
 0x2eb   : > { %v4999_v18 = vpop.permute.xlu1 %4998  ;;  %v5001_v62 = vpop.permute.xlu0 %5000 }
 0x2ec   : > { %5080 = vst.msk [vmem:[#allocation4 + $0x78] sm:$0xff] %vm5064_vm12, %v4999_v18  ;;  %5081 = vst.msk [vmem:[#allocation4 + $0x80] sm:$0xff] %vm5064_vm12, %v5001_v62 }
 0x2ed   : > { %5246 = vrot.lane.b32.xlu1 %v12524_v5, %s8705_s27  ;;  %5248 = vrot.lane.b32.xlu0 %v12525_v42, %s8705_s27  ;;  %v5232_v5 = vrot.slane %v11142_v19, 1 }
 0x2ef   : > { %v5003_v4 = vpop.permute.xlu1 %5002  ;;  %v5005_v10 = vpop.permute.xlu0 %5004 }
 0x2f0   : > { %5082 = vst.msk [vmem:[#allocation4 + $0x88] sm:$0xff] %vm5064_vm12, %v5003_v4  ;;  %5083 = vst.msk [vmem:[#allocation4 + $0x90] sm:$0xff] %vm5064_vm12, %v5005_v10 }
 0x2f1   : > { %5380 = vrot.lane.b32.xlu1 %v9960_v63, %s8706_s14  ;;  %5382 = vrot.lane.b32.xlu0 %v9849_v7, %s8706_s14 }
 0x2f3   : > { %v5007_v23 = vpop.permute.xlu1 %5006  ;;  %v5009_v53 = vpop.permute.xlu0 %5008 }
 0x2f4   : > { %5084 = vst.msk [vmem:[#allocation4 + $0x98] sm:$0xff] %vm5064_vm12, %v5007_v23  ;;  %5085 = vst.msk [vmem:[#allocation4 + $0xa0] sm:$0xff] %vm5064_vm12, %v5009_v53 }
 0x2f5   : > { %5250 = vrot.lane.b32.xlu1 %v12526_v44, %s8705_s27  ;;  %5252 = vrot.lane.b32.xlu0 %v12527_v41, %s8705_s27 }
 0x2f7   : > { %v5011_v56 = vpop.permute.xlu1 %5010  ;;  %v5013_v63 = vpop.permute.xlu0 %5012 }
 0x2f8   : > { %5086 = vst.msk [vmem:[#allocation4 + $0xa8] sm:$0xff] %vm5064_vm12, %v5011_v56  ;;  %5087 = vst.msk [vmem:[#allocation4 + $0xb0] sm:$0xff] %vm5064_vm12, %v5013_v63 }
 0x2f9   : > { %5384 = vrot.lane.b32.xlu1 %v10522_v60, %s8706_s14  ;;  %5386 = vrot.lane.b32.xlu0 %v10506_v2, %s8706_s14 }
 0x2fb   : > { %v5015_v7 = vpop.permute.xlu1 %5014  ;;  %v5017_v28 = vpop.permute.xlu0 %5016 }
 0x2fc   : > { %5088 = vst.msk [vmem:[#allocation4 + $0xb8] sm:$0xff] %vm5064_vm12, %v5015_v7  ;;  %5089 = vst.msk [vmem:[#allocation4 + $0xc0] sm:$0xff] %vm5064_vm12, %v5017_v28 }
 0x2fd   : > { %5254 = vrot.lane.b32.xlu1 %v12528_v8, %s8705_s27  ;;  %5256 = vrot.lane.b32.xlu0 %v12529_v45, %s8705_s27 }
 0x2ff   : > { %v5019_v52 = vpop.permute.xlu1 %5018  ;;  %v5021_v60 = vpop.permute.xlu0 %5020 }
 0x300   : > { %5090 = vst.msk [vmem:[#allocation4 + $0xc8] sm:$0xff] %vm5064_vm12, %v5019_v52  ;;  %5091 = vst.msk [vmem:[#allocation4 + $0xd0] sm:$0xff] %vm5064_vm12, %v5021_v60 }
 0x301   : > { %5388 = vrot.lane.b32.xlu1 %v9735_v20, %s8706_s14  ;;  %5390 = vrot.lane.b32.xlu0 %v9653_v21, %s8706_s14 }
 0x303   : > { %v5023_v2 = vpop.permute.xlu1 %5022  ;;  %v5025_v51 = vpop.permute.xlu0 %5024 }
 0x304   : > { %5092 = vst.msk [vmem:[#allocation4 + $0xd8] sm:$0xff] %vm5064_vm12, %v5023_v2  ;;  %5093 = vst.msk [vmem:[#allocation4 + $0xe0] sm:$0xff] %vm5064_vm12, %v5025_v51 }
 0x305   : > { %5258 = vrot.lane.b32.xlu1 %v12530_v39, %s8705_s27  ;;  %5260 = vrot.lane.b32.xlu0 %v12531_v57, %s8705_s27 }
 0x307   : > { %v5027_v38 = vpop.permute.xlu1 %5026  ;;  %v5029_v20 = vpop.permute.xlu0 %5028 }
 0x308   : > { %5094 = vst.msk [vmem:[#allocation4 + $0xe8] sm:$0xff] %vm5064_vm12, %v5027_v38  ;;  %5095 = vst.msk [vmem:[#allocation4 + $0xf0] sm:$0xff] %vm5064_vm12, %v5029_v20 }
 0x309   : > { %5392 = vrot.lane.b32.xlu1 %v10487_v26, %s8706_s14  ;;  %5394 = vrot.lane.b32.xlu0 %v10482_v37, %s8706_s14 }
 0x30b   : > { %v5031_v21 = vpop.permute.xlu1 %5030  ;;  %v5100_v22 = vpop.permute.xlu0 %5099 }
 0x30c   : > { %5096 = vst.msk [vmem:[#allocation4 + $0xf8] sm:$0xff] %vm5064_vm12, %v5031_v21 }
 0x30d   : > { %5262 = vrot.lane.b32.xlu1 %v10164_v48, %s8705_s27  ;;  %5196 = vst.msk [vmem:[#allocation4] sm:$0xff] %vm5195_vm13, %v5100_v22  ;;  %5264 = vrot.lane.b32.xlu0 %v10131_v55, %s8705_s27 }
 0x30f   : > { %v5102_v31 = vpop.permute.xlu1 %5101  ;;  %v5104_v26 = vpop.permute.xlu0 %5103 }
 0x310   : > { %5197 = vst.msk [vmem:[#allocation4 + $0x8] sm:$0xff] %vm5195_vm13, %v5102_v31  ;;  %5198 = vst.msk [vmem:[#allocation4 + $0x10] sm:$0xff] %vm5195_vm13, %v5104_v26 }
 0x311   : > { %5396 = vrot.lane.b32.xlu1 %v10207_v61, %s8706_s14  ;;  %5398 = vrot.lane.b32.xlu0 %v10159_v14, %s8706_s14 }
 0x313   : > { %v5106_v37 = vpop.permute.xlu1 %5105  ;;  %v5108_v48 = vpop.permute.xlu0 %5107 }
 0x314   : > { %5199 = vst.msk [vmem:[#allocation4 + $0x18] sm:$0xff] %vm5195_vm13, %v5106_v37  ;;  %5200 = vst.msk [vmem:[#allocation4 + $0x20] sm:$0xff] %vm5195_vm13, %v5108_v48 }
 0x315   : > { %5266 = vrot.lane.b32.xlu1 %v10591_v27, %s8705_s27  ;;  %5268 = vrot.lane.b32.xlu0 %v10573_v35, %s8705_s27 }
 0x317   : > { %v5110_v55 = vpop.permute.xlu1 %5109  ;;  %v5112_v61 = vpop.permute.xlu0 %5111 }
 0x318   : > { %5201 = vst.msk [vmem:[#allocation4 + $0x28] sm:$0xff] %vm5195_vm13, %v5110_v55  ;;  %5202 = vst.msk [vmem:[#allocation4 + $0x30] sm:$0xff] %vm5195_vm13, %v5112_v61 }
 0x319   : > { %5400 = vrot.lane.b32.xlu1 %v10603_v40, %s8706_s14  ;;  %5402 = vrot.lane.b32.xlu0 %v10584_v9, %s8706_s14 }
 0x31b   : > { %v5114_v14 = vpop.permute.xlu1 %5113  ;;  %v5116_v27 = vpop.permute.xlu0 %5115 }
 0x31c   : > { %5203 = vst.msk [vmem:[#allocation4 + $0x38] sm:$0xff] %vm5195_vm13, %v5114_v14  ;;  %5204 = vst.msk [vmem:[#allocation4 + $0x40] sm:$0xff] %vm5195_vm13, %v5116_v27 }
 0x31d   : > { %5270 = vrot.lane.b32.xlu1 %v10095_v1, %s8705_s27  ;;  %5272 = vrot.lane.b32.xlu0 %v10077_v25, %s8705_s27 }
 0x31f   : > { %v5118_v35 = vpop.permute.xlu1 %5117  ;;  %v5120_v40 = vpop.permute.xlu0 %5119 }
 0x320   : > { %5205 = vst.msk [vmem:[#allocation4 + $0x48] sm:$0xff] %vm5195_vm13, %v5118_v35  ;;  %5206 = vst.msk [vmem:[#allocation4 + $0x50] sm:$0xff] %vm5195_vm13, %v5120_v40 }
 0x321   : > { %5404 = vrot.lane.b32.xlu1 %v12480_v29, %s8706_s14  ;;  %5406 = vrot.lane.b32.xlu0 %v12481_v30, %s8706_s14 }
 0x323   : > { %v5122_v9 = vpop.permute.xlu1 %5121  ;;  %v5124_v1 = vpop.permute.xlu0 %5123 }
 0x324   : > { %5207 = vst.msk [vmem:[#allocation4 + $0x58] sm:$0xff] %vm5195_vm13, %v5122_v9  ;;  %5208 = vst.msk [vmem:[#allocation4 + $0x60] sm:$0xff] %vm5195_vm13, %v5124_v1 }
 0x325   : > { %5274 = vrot.lane.b32.xlu1 %v10553_v3, %s8705_s27  ;;  %5276 = vrot.lane.b32.xlu0 %v10547_v50, %s8705_s27 }
 0x327   : > { %v5126_v25 = vpop.permute.xlu1 %5125  ;;  %v5128_v29 = vpop.permute.xlu0 %5127 }
 0x328   : > { %5209 = vst.msk [vmem:[#allocation4 + $0x68] sm:$0xff] %vm5195_vm13, %v5126_v25  ;;  %5210 = vst.msk [vmem:[#allocation4 + $0x70] sm:$0xff] %vm5195_vm13, %v5128_v29 }
 0x329   : > { %5408 = vrot.lane.b32.xlu1 %v10567_v11, %s8706_s14  ;;  %5410 = vrot.lane.b32.xlu0 %v10560_v13, %s8706_s14 }
 0x32b   : > { %v5130_v30 = vpop.permute.xlu1 %5129  ;;  %v5132_v3 = vpop.permute.xlu0 %5131 }
 0x32c   : > { %5211 = vst.msk [vmem:[#allocation4 + $0x78] sm:$0xff] %vm5195_vm13, %v5130_v30  ;;  %5212 = vst.msk [vmem:[#allocation4 + $0x80] sm:$0xff] %vm5195_vm13, %v5132_v3 }
 0x32d   : > { %5278 = vrot.lane.b32.xlu1 %v10363_v16, %s8705_s27  ;;  %5280 = vrot.lane.b32.xlu0 %v10336_v47, %s8705_s27 }
 0x32f   : > { %v5134_v50 = vpop.permute.xlu1 %5133  ;;  %v5136_v11 = vpop.permute.xlu0 %5135 }
 0x330   : > { %5213 = vst.msk [vmem:[#allocation4 + $0x88] sm:$0xff] %vm5195_vm13, %v5134_v50  ;;  %5214 = vst.msk [vmem:[#allocation4 + $0x90] sm:$0xff] %vm5195_vm13, %v5136_v11 }
 0x331   : > { %5412 = vrot.lane.b32.xlu1 %v10372_v33, %s8706_s14  ;;  %5414 = vrot.lane.b32.xlu0 %v12482_v46, %s8706_s14 }
 0x333   : > { %v5138_v13 = vpop.permute.xlu1 %5137  ;;  %v5140_v16 = vpop.permute.xlu0 %5139 }
 0x334   : > { %5215 = vst.msk [vmem:[#allocation4 + $0x98] sm:$0xff] %vm5195_vm13, %v5138_v13  ;;  %5216 = vst.msk [vmem:[#allocation4 + $0xa0] sm:$0xff] %vm5195_vm13, %v5140_v16 }
 0x335   : > { %5282 = vrot.lane.b32.xlu1 %v10615_v58, %s8705_s27  ;;  %5284 = vrot.lane.b32.xlu0 %v10624_v15, %s8705_s27 }
 0x337   : > { %v5142_v47 = vpop.permute.xlu1 %5141  ;;  %v5144_v33 = vpop.permute.xlu0 %5143 }
 0x338   : > { %5217 = vst.msk [vmem:[#allocation4 + $0xa8] sm:$0xff] %vm5195_vm13, %v5142_v47  ;;  %5218 = vst.msk [vmem:[#allocation4 + $0xb0] sm:$0xff] %vm5195_vm13, %v5144_v33 }
 0x339   : > { %5416 = vrot.lane.b32.xlu1 %v10630_v17, %s8706_s14  ;;  %5418 = vrot.lane.b32.xlu0 %v10636_v0, %s8706_s14 }
 0x33b   : > { %v5146_v46 = vpop.permute.xlu1 %5145  ;;  %v5148_v58 = vpop.permute.xlu0 %5147 }
 0x33c   : > { %5219 = vst.msk [vmem:[#allocation4 + $0xb8] sm:$0xff] %vm5195_vm13, %v5146_v46  ;;  %5220 = vst.msk [vmem:[#allocation4 + $0xc0] sm:$0xff] %vm5195_vm13, %v5148_v58 }
 0x33d   : > { %5286 = vrot.lane.b32.xlu1 %v10287_v12, %s8705_s27  ;;  %5288 = vrot.lane.b32.xlu0 %v10259_v36, %s8705_s27 }
 0x33f   : > { %v5150_v15 = vpop.permute.xlu1 %5149  ;;  %v5152_v17 = vpop.permute.xlu0 %5151 }
 0x340   : > { %5221 = vst.msk [vmem:[#allocation4 + $0xc8] sm:$0xff] %vm5195_vm13, %v5150_v15  ;;  %5222 = vst.msk [vmem:[#allocation4 + $0xd0] sm:$0xff] %vm5195_vm13, %v5152_v17 }
 0x341   : > { %5420 = vrot.lane.b32.xlu1 %v12483_v34, %s8706_s14  ;;  %5422 = vrot.lane.b32.xlu0 %v12484_v54, %s8706_s14  ;;  %v11135_v54 = vld [vmem:[#allocation3 + $0x1a0] sm:$0xff] }
 0x343   : > { %v5154_v0 = vpop.permute.xlu1 %5153  ;;  %v5156_v12 = vpop.permute.xlu0 %5155 }
 0x344   : > { %5223 = vst.msk [vmem:[#allocation4 + $0xd8] sm:$0xff] %vm5195_vm13, %v5154_v0  ;;  %5224 = vst.msk [vmem:[#allocation4 + $0xe0] sm:$0xff] %vm5195_vm13, %v5156_v12 }
 0x345   : > { %5157 = vrot.lane.b32.xlu1 %v10597_v43, %s8704_s22  ;;  %5290 = vrot.lane.b32.xlu0 %v10693_v49, %s8705_s27  ;;  %v5230_v49 = vrot.slane %v11135_v54, 1 }
 0x347   : > { %v5235_v36 = vpop.permute.xlu1 %5234  ;;  %v5237_v34 = vpop.permute.xlu0 %5236 }
 0x348   : > { %5331 = vst.msk [vmem:[#allocation4] sm:$0xff] %vm5330_vm14, %v5235_v36  ;;  %5332 = vst.msk [vmem:[#allocation4 + $0x8] sm:$0xff] %vm5330_vm14, %v5237_v34 }
 0x349   : > { %5292 = vrot.lane.b32.xlu1 %v10703_v24, %s8705_s27  ;;  %5424 = vrot.lane.b32.xlu0 %v10824_v59, %s8706_s14  ;;  %v5229_v24 = vrot.slane %v11137_v32, 1 }
 0x34b   : > { %v5369_v43 = vpop.permute.xlu1 %5368  ;;  %v5371_v18 = vpop.permute.xlu0 %5370  ;;  %v5231_v59 = vsel %vm4277_vm5, %v5229_v24, %v5230_v49 }
 0x34c   : > { %5465 = vst.msk [vmem:[#allocation4] sm:$0xff] %vm5464_vm15, %v5369_v43  ;;  %5466 = vst.msk [vmem:[#allocation4 + $0x8] sm:$0xff] %vm5464_vm15, %v5371_v18 }
 0x34d   : > { %5426 = vrot.lane.b32.xlu1 %v10832_v6, %s8706_s14  ;;  %5159 = vrot.lane.b32.xlu0 %v11137_v32, %s8704_s22  ;;  %v5233_v6 = vsel %vm4277_vm5, %v5230_v49, %v5232_v5  ;;  %vm6656_vm5 = vcmask 130144  }
 0x34f   : > { %v5239_v62 = vpop.permute.xlu1 %5238  ;;  %v5241_v4 = vpop.permute.xlu0 %5240 }
 0x350   : > { %5333 = vst.msk [vmem:[#allocation4 + $0x10] sm:$0xff] %vm5330_vm14, %v5239_v62  ;;  %5334 = vst.msk [vmem:[#allocation4 + $0x18] sm:$0xff] %vm5330_vm14, %v5241_v4 }
 0x351   : > { %5161 = vrot.lane.b32.xlu1 %v11135_v54, %s8704_s22  ;;  %5294 = vrot.lane.b32.xlu0 %v5231_v59, %s8705_s27 }
 0x353   : > { %v5373_v42 = vpop.permute.xlu1 %5372  ;;  %v5497_v10 = vld [vmem:[#allocation4] sm:$0xff]  ;;  %v5375_v23 = vpop.permute.xlu0 %5374  ;;  %v5498_v44 = vld [vmem:[#allocation4 + $0x8] sm:$0xff] }
 0x354   : > { %5467 = vst.msk [vmem:[#allocation4 + $0x10] sm:$0xff] %vm5464_vm15, %v5373_v42  ;;  %8533 = vmatprep.mubr.msk.f32.mxu0 %vm5538_vm0, %v5497_v10  ;;  %5468 = vst.msk [vmem:[#allocation4 + $0x18] sm:$0xff] %vm5464_vm15, %v5375_v23 }
 0x355   : > { %5296 = vrot.lane.b32.xlu1 %v5233_v6, %s8705_s27  ;;  %8534 = vmatmul.mubr.msk.f32.vlgmr.msra.gmra.mrb[16].mxu0 %vm5538_vm0, %v5498_v44  ;;  %s12160_s27 = scalar_lea.vmem %s12366_s13, %s8343_s19 }
 0x357   : > { %v5243_v53 = vpop.permute.xlu1 %5242  ;;  %v5245_v56 = vpop.permute.xlu0 %5244 }
 0x358   : > { %5335 = vst.msk [vmem:[#allocation4 + $0x20] sm:$0xff] %vm5330_vm14, %v5243_v53  ;;  %5336 = vst.msk [vmem:[#allocation4 + $0x28] sm:$0xff] %vm5330_vm14, %v5245_v56 }
 0x35b   : > { %v5377_v41 = vpop.permute.xlu1 %5376  ;;  %v5499_v63 = vld [vmem:[#allocation4 + $0x10] sm:$0xff]  ;;  %v5379_v7 = vpop.permute.xlu0 %5378  ;;  %v5500_v8 = vld [vmem:[#allocation4 + $0x18] sm:$0xff] }
 0x35c   : > { %5469 = vst.msk [vmem:[#allocation4 + $0x20] sm:$0xff] %vm5464_vm15, %v5377_v41  ;;  %8536 = vmatprep.mubr.msk.f32.mxu0 %vm5538_vm0, %v5499_v63  ;;  %5470 = vst.msk [vmem:[#allocation4 + $0x28] sm:$0xff] %vm5464_vm15, %v5379_v7 }
 0x35d   : > { %8537 = vmatmul.mubr.msk.f32.gmra.mrb[18].mxu0 %vm5538_vm0, %v5500_v8  ;;  %v5364_v8 = vrot.slane %v11135_v54, 2  ;;  %v12532_v54 = vmov 0.0  }
 0x35e   : > { %5973 = vst.msk [vmem:[#allocation5 + $0x10] sm:$0x3] %vm5972_vm2, %v12532_v54  ;;  %5977 = vst.msk [vmem:[#allocation5 + $0x1a8] sm:$0x3] %vm5972_vm2, %v12532_v54 }
 0x35f   : > { %v5247_v28 = vpop.permute.xlu1 %5246  ;;  %v5249_v52 = vpop.permute.xlu0 %5248  ;;  %5996 = vst.msk [vmem:[#allocation5 + $0x11] sm:$0x1] %vm1116_vm1, %v12532_v54  ;;  %6013 = vst.msk [vmem:[#allocation5 + $0x1a9] sm:$0x1] %vm1116_vm1, %v12532_v54  ;;  %vm6463_vm1 = vcmask 97344  }
 0x360   : > { %5337 = vst.msk [vmem:[#allocation4 + $0x30] sm:$0xff] %vm5330_vm14, %v5247_v28  ;;  %5338 = vst.msk [vmem:[#allocation4 + $0x38] sm:$0xff] %vm5330_vm14, %v5249_v52  ;;  %v5363_v28 = vrot.slane %v11137_v32, 2 }
 0x363   : > { %v5381_v45 = vpop.permute.xlu1 %5380  ;;  %v5501_v60 = vld [vmem:[#allocation4 + $0x20] sm:$0xff]  ;;  %v5383_v2 = vpop.permute.xlu0 %5382  ;;  %v5502_v39 = vld [vmem:[#allocation4 + $0x28] sm:$0xff] }
 0x364   : > { %5471 = vst.msk [vmem:[#allocation4 + $0x30] sm:$0xff] %vm5464_vm15, %v5381_v45  ;;  %8539 = vmatprep.mubr.msk.f32.mxu0 %vm5538_vm0, %v5501_v60  ;;  %5472 = vst.msk [vmem:[#allocation4 + $0x38] sm:$0xff] %vm5464_vm15, %v5383_v2  ;;  %v5366_v60 = vrot.slane %v11142_v19, 2  ;;  %v5365_v2 = vsel %vm4487_vm6, %v5363_v28, %v5364_v8 }
 0x365   : > { %8540 = vmatmul.mubr.msk.f32.gmra.mrb[20].mxu0 %vm5538_vm0, %v5502_v39  ;;  %5428 = vrot.lane.b32.xlu0 %v5365_v2, %s8706_s14 }
 0x367   : > { %v5251_v51 = vpop.permute.xlu1 %5250  ;;  %v5253_v38 = vpop.permute.xlu0 %5252 }
 0x368   : > { %5339 = vst.msk [vmem:[#allocation4 + $0x40] sm:$0xff] %vm5330_vm14, %v5251_v51  ;;  %5340 = vst.msk [vmem:[#allocation4 + $0x48] sm:$0xff] %vm5330_vm14, %v5253_v38  ;;  %v5367_v51 = vsel %vm4487_vm6, %v5364_v8, %v5366_v60  ;;  %v6111_v38 = vld [vmem:[#allocation5 + $0x1] sm:$0xff]  ;;  %vm6849_vm6 = vcmask 162944  }
 0x369   : > { %5430 = vrot.lane.b32.xlu1 %v5367_v51, %s8706_s14  ;;  %6175 = vrot.lane.b32.xlu0 %v6111_v38, %s8695_s28  ;;  %s8709_s14 = smov 28  }
 0x36b   : > { %v5385_v57 = vpop.permute.xlu1 %5384  ;;  %v5503_v20 = vld [vmem:[#allocation4 + $0x30] sm:$0xff]  ;;  %v5387_v21 = vpop.permute.xlu0 %5386  ;;  %v5504_v22 = vld [vmem:[#allocation4 + $0x38] sm:$0xff] }
 0x36c   : > { %5473 = vst.msk [vmem:[#allocation4 + $0x40] sm:$0xff] %vm5464_vm15, %v5385_v57  ;;  %8542 = vmatprep.mubr.msk.f32.mxu0 %vm5538_vm0, %v5503_v20  ;;  %5474 = vst.msk [vmem:[#allocation4 + $0x48] sm:$0xff] %vm5464_vm15, %v5387_v21 }
 0x36d   : > { %8543 = vmatmul.mubr.msk.f32.gmra.mrb[22].mxu0 %vm5538_vm0, %v5504_v22  ;;  %v6112_v22 = vld [vmem:[#allocation5 + $0x9] sm:$0xff] }
 0x36e   : > { %6177 = vrot.lane.b32.xlu1 %v6112_v22, %s8695_s28 }
 0x36f   : > { %v5255_v31 = vpop.permute.xlu1 %5254  ;;  %v5257_v26 = vpop.permute.xlu0 %5256 }
 0x370   : > { %5341 = vst.msk [vmem:[#allocation4 + $0x50] sm:$0xff] %vm5330_vm14, %v5255_v31  ;;  %5342 = vst.msk [vmem:[#allocation4 + $0x58] sm:$0xff] %vm5330_vm14, %v5257_v26  ;;  %v6303_v31 = vld [vmem:[#allocation5 + $0x2] sm:$0xff] }
 0x371   : > { %6367 = vrot.lane.b32.xlu0 %v6303_v31, %s8697_s29 }
 0x373   : > { %v5389_v37 = vpop.permute.xlu1 %5388  ;;  %v5505_v48 = vld [vmem:[#allocation4 + $0x40] sm:$0xff]  ;;  %v5391_v55 = vpop.permute.xlu0 %5390  ;;  %v5506_v61 = vld [vmem:[#allocation4 + $0x48] sm:$0xff] }
 0x374   : > { %5475 = vst.msk [vmem:[#allocation4 + $0x50] sm:$0xff] %vm5464_vm15, %v5389_v37  ;;  %8545 = vmatprep.mubr.msk.f32.mxu0 %vm5538_vm0, %v5505_v48  ;;  %5476 = vst.msk [vmem:[#allocation4 + $0x58] sm:$0xff] %vm5464_vm15, %v5391_v55  ;;  %v6304_v48 = vld [vmem:[#allocation5 + $0xa] sm:$0xff] }
 0x375   : > { %8546 = vmatmul.mubr.msk.f32.gmra.mrb[24].mxu0 %vm5538_vm0, %v5506_v61  ;;  %6369 = vrot.lane.b32.xlu1 %v6304_v48, %s8697_s29 }
 0x377   : > { %v5259_v14 = vpop.permute.xlu1 %5258  ;;  %v5261_v27 = vpop.permute.xlu0 %5260 }
 0x378   : > { %5343 = vst.msk [vmem:[#allocation4 + $0x60] sm:$0xff] %vm5330_vm14, %v5259_v14  ;;  %5344 = vst.msk [vmem:[#allocation4 + $0x68] sm:$0xff] %vm5330_vm14, %v5261_v27 }
 0x37b   : > { %v5393_v35 = vpop.permute.xlu1 %5392  ;;  %v5507_v40 = vld [vmem:[#allocation4 + $0x50] sm:$0xff]  ;;  %v5395_v9 = vpop.permute.xlu0 %5394  ;;  %v5508_v1 = vld [vmem:[#allocation4 + $0x58] sm:$0xff] }
 0x37c   : > { %5477 = vst.msk [vmem:[#allocation4 + $0x60] sm:$0xff] %vm5464_vm15, %v5393_v35  ;;  %8548 = vmatprep.mubr.msk.f32.mxu0 %vm5538_vm0, %v5507_v40  ;;  %5478 = vst.msk [vmem:[#allocation4 + $0x68] sm:$0xff] %vm5464_vm15, %v5395_v9 }
 0x37d   : > { %8549 = vmatmul.mubr.msk.f32.gmra.mrb[26].mxu0 %vm5538_vm0, %v5508_v1 }
 0x37f   : > { %v5263_v25 = vpop.permute.xlu1 %5262  ;;  %v5265_v29 = vpop.permute.xlu0 %5264 }
 0x380   : > { %5345 = vst.msk [vmem:[#allocation4 + $0x70] sm:$0xff] %vm5330_vm14, %v5263_v25  ;;  %5346 = vst.msk [vmem:[#allocation4 + $0x78] sm:$0xff] %vm5330_vm14, %v5265_v29  ;;  %v6048_v29 = vld [vmem:[#allocation5 + $0x8] sm:$0xff] }
 0x381   : > { %6080 = vst.msk [vmem:[#allocation6 + $0x8] sm:$0xff] %vm2232_vm4, %v6048_v29 }
 0x383   : > { %v5397_v30 = vpop.permute.xlu1 %5396  ;;  %v5509_v3 = vld [vmem:[#allocation4 + $0x60] sm:$0xff]  ;;  %v5399_v50 = vpop.permute.xlu0 %5398  ;;  %v5510_v11 = vld [vmem:[#allocation4 + $0x68] sm:$0xff] }
 0x384   : > { %5479 = vst.msk [vmem:[#allocation4 + $0x70] sm:$0xff] %vm5464_vm15, %v5397_v30  ;;  %8551 = vmatprep.mubr.msk.f32.mxu0 %vm5538_vm0, %v5509_v3  ;;  %5480 = vst.msk [vmem:[#allocation4 + $0x78] sm:$0xff] %vm5464_vm15, %v5399_v50  ;;  %v6047_v30 = vld [vmem:[#allocation5] sm:$0xff] }
 0x385   : > { %8552 = vmatmul.mubr.msk.f32.gmra.mrb[28].mxu0 %vm5538_vm0, %v5510_v11  ;;  %6079 = vst.msk [vmem:[#allocation6] sm:$0xff] %vm2232_vm4, %v6047_v30  ;;  %v11273_v11 = vld [vmem:[%s12361_s8] ss:$0 sm:$0xff] }
 0x387   : > { %v5267_v13 = vpop.permute.xlu1 %5266  ;;  %v5269_v16 = vpop.permute.xlu0 %5268 }
 0x388   : > { %5347 = vst.msk [vmem:[#allocation4 + $0x80] sm:$0xff] %vm5330_vm14, %v5267_v13  ;;  %5348 = vst.msk [vmem:[#allocation4 + $0x88] sm:$0xff] %vm5330_vm14, %v5269_v16 }
 0x38b   : > { %v5401_v47 = vpop.permute.xlu1 %5400  ;;  %v5511_v33 = vld [vmem:[#allocation4 + $0x70] sm:$0xff]  ;;  %v5403_v46 = vpop.permute.xlu0 %5402  ;;  %v5512_v58 = vld [vmem:[#allocation4 + $0x78] sm:$0xff] }
 0x38c   : > { %5481 = vst.msk [vmem:[#allocation4 + $0x80] sm:$0xff] %vm5464_vm15, %v5401_v47  ;;  %8554 = vmatprep.mubr.msk.f32.mxu0 %vm5538_vm0, %v5511_v33  ;;  %5482 = vst.msk [vmem:[#allocation4 + $0x88] sm:$0xff] %vm5464_vm15, %v5403_v46  ;;  %v11279_v47 = vld [vmem:[%s12362_s9] ss:$0 sm:$0xff] }
 0x38d   : > { %8555 = vmatmul.mubr.msk.f32.gmra.mrb[30].mxu0 %vm5538_vm0, %v5512_v58 }
 0x38f   : > { %v5271_v15 = vpop.permute.xlu1 %5270  ;;  %v5273_v17 = vpop.permute.xlu0 %5272 }
 0x390   : > { %5349 = vst.msk [vmem:[#allocation4 + $0x90] sm:$0xff] %vm5330_vm14, %v5271_v15  ;;  %5350 = vst.msk [vmem:[#allocation4 + $0x98] sm:$0xff] %vm5330_vm14, %v5273_v17 }
 0x393   : > { %v5405_v0 = vpop.permute.xlu1 %5404  ;;  %v5513_v12 = vld [vmem:[#allocation4 + $0x80] sm:$0xff]  ;;  %v5407_v36 = vpop.permute.xlu0 %5406  ;;  %v5514_v34 = vld [vmem:[#allocation4 + $0x88] sm:$0xff] }
 0x394   : > { %5483 = vst.msk [vmem:[#allocation4 + $0x90] sm:$0xff] %vm5464_vm15, %v5405_v0  ;;  %8557 = vmatprep.mubr.msk.f32.mxu0 %vm5538_vm0, %v5513_v12  ;;  %5484 = vst.msk [vmem:[#allocation4 + $0x98] sm:$0xff] %vm5464_vm15, %v5407_v36 }
 0x395   : > { %8558 = vmatmul.mubr.msk.f32.gmra.mrb[32].mxu0 %vm5538_vm0, %v5514_v34 }
 0x397   : > { %v5275_v43 = vpop.permute.xlu1 %5274  ;;  %v5277_v49 = vpop.permute.xlu0 %5276 }
 0x398   : > { %5351 = vst.msk [vmem:[#allocation4 + $0xa0] sm:$0xff] %vm5330_vm14, %v5275_v43  ;;  %5352 = vst.msk [vmem:[#allocation4 + $0xa8] sm:$0xff] %vm5330_vm14, %v5277_v49 }
 0x39b   : > { %v5409_v24 = vpop.permute.xlu1 %5408  ;;  %v5515_v18 = vld [vmem:[#allocation4 + $0x90] sm:$0xff]  ;;  %v5411_v5 = vpop.permute.xlu0 %5410  ;;  %v5516_v62 = vld [vmem:[#allocation4 + $0x98] sm:$0xff] }
 0x39c   : > { %5485 = vst.msk [vmem:[#allocation4 + $0xa0] sm:$0xff] %vm5464_vm15, %v5409_v24  ;;  %8560 = vmatprep.mubr.msk.f32.mxu0 %vm5538_vm0, %v5515_v18  ;;  %5486 = vst.msk [vmem:[#allocation4 + $0xa8] sm:$0xff] %vm5464_vm15, %v5411_v5 }
 0x39d   : > { %8561 = vmatmul.mubr.msk.f32.gmra.mrb[34].mxu0 %vm5538_vm0, %v5516_v62 }
 0x39f   : > { %v5279_v59 = vpop.permute.xlu1 %5278  ;;  %v5281_v4 = vpop.permute.xlu0 %5280 }
 0x3a0   : > { %5353 = vst.msk [vmem:[#allocation4 + $0xb0] sm:$0xff] %vm5330_vm14, %v5279_v59  ;;  %5354 = vst.msk [vmem:[#allocation4 + $0xb8] sm:$0xff] %vm5330_vm14, %v5281_v4 }
 0x3a3   : > { %v5413_v6 = vpop.permute.xlu1 %5412  ;;  %v5517_v42 = vld [vmem:[#allocation4 + $0xa0] sm:$0xff]  ;;  %v5415_v10 = vpop.permute.xlu0 %5414  ;;  %v5518_v23 = vld [vmem:[#allocation4 + $0xa8] sm:$0xff] }
 0x3a4   : > { %5487 = vst.msk [vmem:[#allocation4 + $0xb0] sm:$0xff] %vm5464_vm15, %v5413_v6  ;;  %8563 = vmatprep.mubr.msk.f32.mxu0 %vm5538_vm0, %v5517_v42  ;;  %5488 = vst.msk [vmem:[#allocation4 + $0xb8] sm:$0xff] %vm5464_vm15, %v5415_v10 }
 0x3a5   : > { %8564 = vmatmul.mubr.msk.f32.gmra.mrb[36].mxu0 %vm5538_vm0, %v5518_v23 }
 0x3a7   : > { %v5283_v44 = vpop.permute.xlu1 %5282  ;;  %v5285_v53 = vpop.permute.xlu0 %5284 }
 0x3a8   : > { %5355 = vst.msk [vmem:[#allocation4 + $0xc0] sm:$0xff] %vm5330_vm14, %v5283_v44  ;;  %5356 = vst.msk [vmem:[#allocation4 + $0xc8] sm:$0xff] %vm5330_vm14, %v5285_v53 }
 0x3ab   : > { %v5417_v56 = vpop.permute.xlu1 %5416  ;;  %v5519_v41 = vld [vmem:[#allocation4 + $0xb0] sm:$0xff]  ;;  %v5419_v63 = vpop.permute.xlu0 %5418  ;;  %v5520_v7 = vld [vmem:[#allocation4 + $0xb8] sm:$0xff] }
 0x3ac   : > { %5489 = vst.msk [vmem:[#allocation4 + $0xc0] sm:$0xff] %vm5464_vm15, %v5417_v56  ;;  %8566 = vmatprep.mubr.msk.f32.mxu0 %vm5538_vm0, %v5519_v41  ;;  %5490 = vst.msk [vmem:[#allocation4 + $0xc8] sm:$0xff] %vm5464_vm15, %v5419_v63 }
 0x3ad   : > { %8567 = vmatmul.mubr.msk.f32.gmra.mrb[38].mxu0 %vm5538_vm0, %v5520_v7 }
 0x3af   : > { %v5287_v52 = vpop.permute.xlu1 %5286  ;;  %v5289_v45 = vpop.permute.xlu0 %5288 }
 0x3b0   : > { %5357 = vst.msk [vmem:[#allocation4 + $0xd0] sm:$0xff] %vm5330_vm14, %v5287_v52  ;;  %5358 = vst.msk [vmem:[#allocation4 + $0xd8] sm:$0xff] %vm5330_vm14, %v5289_v45 }
 0x3b3   : > { %v5421_v32 = vpop.permute.xlu1 %5420  ;;  %v5521_v39 = vld [vmem:[#allocation4 + $0xc0] sm:$0xff]  ;;  %v5423_v19 = vpop.permute.xlu0 %5422  ;;  %v5522_v57 = vld [vmem:[#allocation4 + $0xc8] sm:$0xff] }
 0x3b4   : > { %5491 = vst.msk [vmem:[#allocation4 + $0xd0] sm:$0xff] %vm5464_vm15, %v5421_v32  ;;  %8569 = vmatprep.mubr.msk.f32.mxu0 %vm5538_vm0, %v5521_v39  ;;  %5492 = vst.msk [vmem:[#allocation4 + $0xd8] sm:$0xff] %vm5464_vm15, %v5423_v19 }
 0x3b5   : > { %8570 = vmatmul.mubr.msk.f32.gmra.mrb[40].mxu0 %vm5538_vm0, %v5522_v57 }
 0x3b7   : > { %v5158_v20 = vpop.permute.xlu1 %5157  ;;  %v5291_v21 = vpop.permute.xlu0 %5290 }
 0x3b8   : > { %5225 = vst.msk [vmem:[#allocation4 + $0xe8] sm:$0xff] %vm5195_vm13, %v5158_v20 }
 0x3b9   : > { %5359 = vst.msk [vmem:[#allocation4 + $0xe0] sm:$0xff] %vm5330_vm14, %v5291_v21 }
 0x3bb   : > { %v5293_v26 = vpop.permute.xlu1 %5292  ;;  %v5523_v37 = vld [vmem:[#allocation4 + $0xd0] sm:$0xff]  ;;  %v5425_v55 = vpop.permute.xlu0 %5424  ;;  %v5524_v61 = vld [vmem:[#allocation4 + $0xd8] sm:$0xff] }
 0x3bc   : > { %5360 = vst.msk [vmem:[#allocation4 + $0xe8] sm:$0xff] %vm5330_vm14, %v5293_v26  ;;  %8572 = vmatprep.mubr.msk.f32.mxu0 %vm5538_vm0, %v5523_v37 }
 0x3bd   : > { %5493 = vst.msk [vmem:[#allocation4 + $0xe0] sm:$0xff] %vm5464_vm15, %v5425_v55  ;;  %8573 = vmatmul.mubr.msk.f32.gmra.mrb[42].mxu0 %vm5538_vm0, %v5524_v61 }
 0x3bf   : > { %v5427_v14 = vpop.permute.xlu1 %5426  ;;  %v5160_v9 = vpop.permute.xlu0 %5159 }
 0x3c0   : > { %5494 = vst.msk [vmem:[#allocation4 + $0xe8] sm:$0xff] %vm5464_vm15, %v5427_v14 }
 0x3c1   : > { %5226 = vst.msk [vmem:[#allocation4 + $0xf0] sm:$0xff] %vm5195_vm13, %v5160_v9 }
 0x3c3   : > { %v5162_v40 = vpop.permute.xlu1 %5161  ;;  %v5295_v25 = vpop.permute.xlu0 %5294 }
 0x3c4   : > { %v5525_v27 = vld [vmem:[#allocation4 + $0xe0] sm:$0xff]  ;;  %5227 = vst.msk [vmem:[#allocation4 + $0xf8] sm:$0xff] %vm5195_vm13, %v5162_v40 }
 0x3c5   : > { %8575 = vmatprep.mubr.msk.f32.mxu0 %vm5538_vm0, %v5525_v27  ;;  %5361 = vst.msk [vmem:[#allocation4 + $0xf0] sm:$0xff] %vm5330_vm14, %v5295_v25 }
 0x3c7   : > { %v5526_v35 = vld [vmem:[#allocation4 + $0xe8] sm:$0xff]  ;;  %v5297_v1 = vpop.permute.xlu1 %5296 }
 0x3c8   : > { %8576 = vmatmul.mubr.msk.f32.gmra.mrb[44].mxu0 %vm5538_vm0, %v5526_v35  ;;  %5362 = vst.msk [vmem:[#allocation4 + $0xf8] sm:$0xff] %vm5330_vm14, %v5297_v1 }
 0x3d7   : > { %v5429_v3 = vpop.permute.xlu0 %5428 }
 0x3d8   : > { %5495 = vst.msk [vmem:[#allocation4 + $0xf0] sm:$0xff] %vm5464_vm15, %v5429_v3 }
 0x3db   : > { %v5431_v50 = vpop.permute.xlu1 %5430  ;;  %v6176_v13 = vpop.permute.xlu0 %6175 }
 0x3dc   : > { %5496 = vst.msk [vmem:[#allocation4 + $0xf8] sm:$0xff] %vm5464_vm15, %v5431_v50 }
 0x3dd   : > { %6271 = vst.msk [vmem:[#allocation6] sm:$0xff] %vm4046_vm7, %v6176_v13 }
 0x3df   : > { %v5527_v56 = vld [vmem:[#allocation4 + $0xf0] sm:$0xff] }
 0x3e0   : > { %v6178_v17 = vpop.permute.xlu1 %6177  ;;  %8578 = vmatprep.mubr.msk.f32.mxu0 %vm5538_vm0, %v5527_v56 }
 0x3e1   : > { %6272 = vst.msk [vmem:[#allocation6 + $0x8] sm:$0xff] %vm4046_vm7, %v6178_v17 }
 0x3e3   : > { %v6368_v0 = vpop.permute.xlu0 %6367  ;;  %v5528_v41 = vld [vmem:[#allocation4 + $0xf8] sm:$0xff] }
 0x3e4   : > { %6464 = vst.msk [vmem:[#allocation6] sm:$0xff] %vm6463_vm1, %v6368_v0  ;;  %8579 = vmatmul.mubr.msk.f32.gmra.mrb[46].mxu0 %vm5538_vm0, %v5528_v41 }
 0x3e7   : > { %v6370_v43 = vpop.permute.xlu1 %6369 }
 0x3e8   : > { %6465 = vst.msk [vmem:[#allocation6 + $0x8] sm:$0xff] %vm6463_vm1, %v6370_v43 }
 0x428   : > { %v8535_v16 = vpop.f32.mrb[16].mxu0 }
 0x429   : > { %v5868_v33 = vmul.f32 %v8535_v16, %v11273_v11  ;;  %v5701_v46 = vpop.f32.mrb[17].mxu0 }
 0x42a   : > { %v5867_v58 = vmul.f32 %v11273_v11, %v5701_v46 }
 0x42b   : > { %v5907_v15 = vadd.f32 %v11279_v47, %v5868_v33 }
 0x42c   : > { %v5906_v12 = vadd.f32 %v11279_v47, %v5867_v58 }
 0x42d   : > { %v5939_v36 = vmax.f32 %v5907_v15, 0.0 }
 0x42e   : > { %v5938_v34 = vmax.f32 %v5906_v12, 0.0 }
 0x42f   : > { %6016 = vst.msk [vmem:[#allocation5 + $0x21] sm:$0xff] %vm2232_vm4, %v5939_v36 }
 0x430   : > { %6015 = vst.msk [vmem:[#allocation5 + $0x19] sm:$0xff] %vm2232_vm4, %v5938_v34  ;;  %v8538_v49 = vpop.f32.mrb[18].mxu0 }
 0x431   : > { %v5870_v24 = vmul.f32 %v8538_v49, %v11273_v11  ;;  %v5711_v18 = vpop.f32.mrb[19].mxu0 }
 0x432   : > { %v5869_v5 = vmul.f32 %v11273_v11, %v5711_v18 }
 0x433   : > { %v5909_v62 = vadd.f32 %v11279_v47, %v5870_v24 }
 0x434   : > { %v5908_v59 = vadd.f32 %v11279_v47, %v5869_v5 }
 0x435   : > { %v5941_v4 = vmax.f32 %v5909_v62, 0.0 }
 0x436   : > { %v5940_v6 = vmax.f32 %v5908_v59, 0.0  ;;  %v11295_v42 = vld [vmem:[#allocation5 + $0x21] sm:$0xff] }
 0x437   : > { %6018 = vst.msk [vmem:[#allocation5 + $0x39] sm:$0xff] %vm2232_vm4, %v5941_v4  ;;  %6181 = vrot.lane.b32.xlu1 %v11295_v42, %s8695_s28  ;;  %v11300_v10 = vld [vmem:[#allocation5 + $0x19] sm:$0xff]  ;;  %v11316_v28 = vld [vmem:[#allocation5 + $0x22] sm:$0xff] }
 0x438   : > { %v11302_v23 = vld [vmem:[#allocation5 + $0x20] sm:$0xff]  ;;  %6017 = vst.msk [vmem:[#allocation5 + $0x31] sm:$0xff] %vm2232_vm4, %v5940_v6  ;;  %6179 = vrot.lane.b32.xlu0 %v11300_v10, %s8695_s28  ;;  %v8541_v44 = vpop.f32.mrb[20].mxu0  ;;  %v11309_v53 = vld [vmem:[#allocation5 + $0x18] sm:$0xff] }
 0x439   : > { %6082 = vst.msk [vmem:[#allocation6 + $0x18] sm:$0xff] %vm2232_vm4, %v11302_v23  ;;  %v5872_v63 = vmul.f32 %v8541_v44, %v11273_v11  ;;  %v5721_v7 = vpop.f32.mrb[21].mxu0  ;;  %6081 = vst.msk [vmem:[#allocation6 + $0x10] sm:$0xff] %vm2232_vm4, %v11309_v53  ;;  %v11322_v45 = vld [vmem:[#allocation5 + $0x1a] sm:$0xff] }
 0x43a   : > { %v5871_v8 = vmul.f32 %v11273_v11, %v5721_v7 }
 0x43b   : > { %v5911_v52 = vadd.f32 %v11279_v47, %v5872_v63  ;;  %6373 = vrot.lane.b32.xlu1 %v11316_v28, %s8697_s29 }
 0x43c   : > { %v5910_v60 = vadd.f32 %v11279_v47, %v5871_v8  ;;  %6371 = vrot.lane.b32.xlu0 %v11322_v45, %s8697_s29 }
 0x43d   : > { %v5943_v2 = vmax.f32 %v5911_v52, 0.0 }
 0x43e   : > { %v5942_v54 = vmax.f32 %v5910_v60, 0.0  ;;  %v11327_v32 = vld [vmem:[#allocation5 + $0x39] sm:$0xff] }
 0x43f   : > { %6020 = vst.msk [vmem:[#allocation5 + $0x51] sm:$0xff] %vm2232_vm4, %v5943_v2  ;;  %6185 = vrot.lane.b32.xlu1 %v11327_v32, %s8695_s28  ;;  %v11332_v39 = vld [vmem:[#allocation5 + $0x31] sm:$0xff]  ;;  %v11347_v22 = vld [vmem:[#allocation5 + $0x3a] sm:$0xff] }
 0x440   : > { %v11334_v51 = vld [vmem:[#allocation5 + $0x38] sm:$0xff]  ;;  %6019 = vst.msk [vmem:[#allocation5 + $0x49] sm:$0xff] %vm2232_vm4, %v5942_v54  ;;  %6183 = vrot.lane.b32.xlu0 %v11332_v39, %s8695_s28  ;;  %v8544_v38 = vpop.f32.mrb[22].mxu0  ;;  %v11341_v19 = vld [vmem:[#allocation5 + $0x30] sm:$0xff] }
 0x441   : > { %6084 = vst.msk [vmem:[#allocation6 + $0x28] sm:$0xff] %vm2232_vm4, %v11334_v51  ;;  %v5874_v57 = vmul.f32 %v8544_v38, %v11273_v11  ;;  %v5731_v20 = vpop.f32.mrb[23].mxu0  ;;  %6083 = vst.msk [vmem:[#allocation6 + $0x20] sm:$0xff] %vm2232_vm4, %v11341_v19  ;;  %v11352_v26 = vld [vmem:[#allocation5 + $0x32] sm:$0xff] }
 0x442   : > { %v5873_v21 = vmul.f32 %v11273_v11, %v5731_v20 }
 0x443   : > { %v5913_v31 = vadd.f32 %v11279_v47, %v5874_v57  ;;  %6377 = vrot.lane.b32.xlu1 %v11347_v22, %s8697_s29 }
 0x444   : > { %v5912_v37 = vadd.f32 %v11279_v47, %v5873_v21  ;;  %6375 = vrot.lane.b32.xlu0 %v11352_v26, %s8697_s29 }
 0x445   : > { %v5945_v48 = vmax.f32 %v5913_v31, 0.0 }
 0x446   : > { %v5944_v55 = vmax.f32 %v5912_v37, 0.0  ;;  %v11357_v61 = vld [vmem:[#allocation5 + $0x51] sm:$0xff] }
 0x447   : > { %6022 = vst.msk [vmem:[#allocation5 + $0x69] sm:$0xff] %vm2232_vm4, %v5945_v48  ;;  %6189 = vrot.lane.b32.xlu1 %v11357_v61, %s8695_s28  ;;  %v11362_v14 = vld [vmem:[#allocation5 + $0x49] sm:$0xff]  ;;  %v11377_v29 = vld [vmem:[#allocation5 + $0x52] sm:$0xff] }
 0x448   : > { %v11364_v27 = vld [vmem:[#allocation5 + $0x50] sm:$0xff]  ;;  %6021 = vst.msk [vmem:[#allocation5 + $0x61] sm:$0xff] %vm2232_vm4, %v5944_v55  ;;  %6187 = vrot.lane.b32.xlu0 %v11362_v14, %s8695_s28  ;;  %v8547_v35 = vpop.f32.mrb[24].mxu0  ;;  %v11371_v40 = vld [vmem:[#allocation5 + $0x48] sm:$0xff] }
 0x449   : > { %6086 = vst.msk [vmem:[#allocation6 + $0x38] sm:$0xff] %vm2232_vm4, %v11364_v27  ;;  %v5876_v9 = vmul.f32 %v8547_v35, %v11273_v11  ;;  %v5741_v1 = vpop.f32.mrb[25].mxu0  ;;  %6085 = vst.msk [vmem:[#allocation6 + $0x30] sm:$0xff] %vm2232_vm4, %v11371_v40  ;;  %v11382_v3 = vld [vmem:[#allocation5 + $0x4a] sm:$0xff] }
 0x44a   : > { %v5875_v25 = vmul.f32 %v11273_v11, %v5741_v1 }
 0x44b   : > { %v5915_v30 = vadd.f32 %v11279_v47, %v5876_v9  ;;  %6381 = vrot.lane.b32.xlu1 %v11377_v29, %s8697_s29 }
 0x44c   : > { %v5914_v50 = vadd.f32 %v11279_v47, %v5875_v25  ;;  %6379 = vrot.lane.b32.xlu0 %v11382_v3, %s8697_s29 }
 0x44d   : > { %v5947_v13 = vmax.f32 %v5915_v30, 0.0 }
 0x44e   : > { %v5946_v16 = vmax.f32 %v5914_v50, 0.0  ;;  %v11387_v33 = vld [vmem:[#allocation5 + $0x69] sm:$0xff] }
 0x44f   : > { %6024 = vst.msk [vmem:[#allocation5 + $0x81] sm:$0xff] %vm2232_vm4, %v5947_v13  ;;  %6193 = vrot.lane.b32.xlu1 %v11387_v33, %s8695_s28  ;;  %v11392_v46 = vld [vmem:[#allocation5 + $0x61] sm:$0xff]  ;;  %v11407_v34 = vld [vmem:[#allocation5 + $0x6a] sm:$0xff] }
 0x450   : > { %v11394_v58 = vld [vmem:[#allocation5 + $0x68] sm:$0xff]  ;;  %6023 = vst.msk [vmem:[#allocation5 + $0x79] sm:$0xff] %vm2232_vm4, %v5946_v16  ;;  %6191 = vrot.lane.b32.xlu0 %v11392_v46, %s8695_s28  ;;  %v8550_v15 = vpop.f32.mrb[26].mxu0  ;;  %v11401_v17 = vld [vmem:[#allocation5 + $0x60] sm:$0xff] }
 0x451   : > { %6088 = vst.msk [vmem:[#allocation6 + $0x48] sm:$0xff] %vm2232_vm4, %v11394_v58  ;;  %v5878_v0 = vmul.f32 %v8550_v15, %v11273_v11  ;;  %v5751_v12 = vpop.f32.mrb[27].mxu0  ;;  %6087 = vst.msk [vmem:[#allocation6 + $0x40] sm:$0xff] %vm2232_vm4, %v11401_v17  ;;  %v11412_v49 = vld [vmem:[#allocation5 + $0x62] sm:$0xff] }
 0x452   : > { %v5877_v36 = vmul.f32 %v11273_v11, %v5751_v12 }
 0x453   : > { %v5917_v43 = vadd.f32 %v11279_v47, %v5878_v0  ;;  %6385 = vrot.lane.b32.xlu1 %v11407_v34, %s8697_s29 }
 0x454   : > { %v5916_v24 = vadd.f32 %v11279_v47, %v5877_v36  ;;  %6383 = vrot.lane.b32.xlu0 %v11412_v49, %s8697_s29 }
 0x455   : > { %v5949_v18 = vmax.f32 %v5917_v43, 0.0 }
 0x456   : > { %v5948_v5 = vmax.f32 %v5916_v24, 0.0  ;;  %v11417_v62 = vld [vmem:[#allocation5 + $0x81] sm:$0xff] }
 0x457   : > { %6026 = vst.msk [vmem:[#allocation5 + $0x99] sm:$0xff] %vm2232_vm4, %v5949_v18  ;;  %6197 = vrot.lane.b32.xlu1 %v11417_v62, %s8695_s28  ;;  %v11422_v59 = vld [vmem:[#allocation5 + $0x79] sm:$0xff]  ;;  %v11437_v7 = vld [vmem:[#allocation5 + $0x82] sm:$0xff] }
 0x458   : > { %v11424_v4 = vld [vmem:[#allocation5 + $0x80] sm:$0xff]  ;;  %6025 = vst.msk [vmem:[#allocation5 + $0x91] sm:$0xff] %vm2232_vm4, %v5948_v5  ;;  %6195 = vrot.lane.b32.xlu0 %v11422_v59, %s8695_s28  ;;  %v8553_v6 = vpop.f32.mrb[28].mxu0  ;;  %v11431_v44 = vld [vmem:[#allocation5 + $0x78] sm:$0xff] }
 0x459   : > { %6090 = vst.msk [vmem:[#allocation6 + $0x58] sm:$0xff] %vm2232_vm4, %v11424_v4  ;;  %v5880_v56 = vmul.f32 %v8553_v6, %v11273_v11  ;;  %v5761_v41 = vpop.f32.mrb[29].mxu0  ;;  %6089 = vst.msk [vmem:[#allocation6 + $0x50] sm:$0xff] %vm2232_vm4, %v11431_v44  ;;  %v11442_v52 = vld [vmem:[#allocation5 + $0x7a] sm:$0xff] }
 0x45a   : > { %v5879_v63 = vmul.f32 %v11273_v11, %v5761_v41 }
 0x45b   : > { %v5919_v8 = vadd.f32 %v11279_v47, %v5880_v56  ;;  %6389 = vrot.lane.b32.xlu1 %v11437_v7, %s8697_s29 }
 0x45c   : > { %v5918_v60 = vadd.f32 %v11279_v47, %v5879_v63  ;;  %6387 = vrot.lane.b32.xlu0 %v11442_v52, %s8697_s29 }
 0x45d   : > { %v5951_v2 = vmax.f32 %v5919_v8, 0.0 }
 0x45e   : > { %v5950_v54 = vmax.f32 %v5918_v60, 0.0  ;;  %v6124_v38 = vld [vmem:[#allocation5 + $0x99] sm:$0xff] }
 0x45f   : > { %6028 = vst.msk [vmem:[#allocation5 + $0xb1] sm:$0xff] %vm2232_vm4, %v5951_v2  ;;  %6201 = vrot.lane.b32.xlu1 %v6124_v38, %s8695_s28  ;;  %v11449_v57 = vld [vmem:[#allocation5 + $0x91] sm:$0xff]  ;;  %v6316_v35 = vld [vmem:[#allocation5 + $0x9a] sm:$0xff] }
 0x460   : > { %v11451_v20 = vld [vmem:[#allocation5 + $0x98] sm:$0xff]  ;;  %6027 = vst.msk [vmem:[#allocation5 + $0xa9] sm:$0xff] %vm2232_vm4, %v5950_v54  ;;  %6199 = vrot.lane.b32.xlu0 %v11449_v57, %s8695_s28  ;;  %v8556_v21 = vpop.f32.mrb[30].mxu0  ;;  %v11458_v31 = vld [vmem:[#allocation5 + $0x90] sm:$0xff] }
 0x461   : > { %6092 = vst.msk [vmem:[#allocation6 + $0x68] sm:$0xff] %vm2232_vm4, %v11451_v20  ;;  %v5882_v37 = vmul.f32 %v8556_v21, %v11273_v11  ;;  %v5771_v48 = vpop.f32.mrb[31].mxu0  ;;  %6091 = vst.msk [vmem:[#allocation6 + $0x60] sm:$0xff] %vm2232_vm4, %v11458_v31  ;;  %v11466_v1 = vld [vmem:[#allocation5 + $0x92] sm:$0xff] }
 0x462   : > { %v5881_v55 = vmul.f32 %v11273_v11, %v5771_v48 }
 0x463   : > { %v5921_v9 = vadd.f32 %v11279_v47, %v5882_v37  ;;  %6393 = vrot.lane.b32.xlu1 %v6316_v35, %s8697_s29 }
 0x464   : > { %v5920_v25 = vadd.f32 %v11279_v47, %v5881_v55  ;;  %6391 = vrot.lane.b32.xlu0 %v11466_v1, %s8697_s29 }
 0x465   : > { %v5953_v30 = vmax.f32 %v5921_v9, 0.0 }
 0x466   : > { %v5952_v50 = vmax.f32 %v5920_v25, 0.0  ;;  %v6126_v13 = vld [vmem:[#allocation5 + $0xb1] sm:$0xff] }
 0x467   : > { %6030 = vst.msk [vmem:[#allocation5 + $0xc9] sm:$0xff] %vm2232_vm4, %v5953_v30  ;;  %6205 = vrot.lane.b32.xlu1 %v6126_v13, %s8695_s28  ;;  %v6125_v16 = vld [vmem:[#allocation5 + $0xa9] sm:$0xff]  ;;  %v6318_v18 = vld [vmem:[#allocation5 + $0xb2] sm:$0xff] }
 0x468   : > { %v11473_v15 = vld [vmem:[#allocation5 + $0xb0] sm:$0xff]  ;;  %6029 = vst.msk [vmem:[#allocation5 + $0xc1] sm:$0xff] %vm2232_vm4, %v5952_v50  ;;  %6203 = vrot.lane.b32.xlu0 %v6125_v16, %s8695_s28  ;;  %v8559_v0 = vpop.f32.mrb[32].mxu0  ;;  %v11479_v12 = vld [vmem:[#allocation5 + $0xa8] sm:$0xff] }
 0x469   : > { %6094 = vst.msk [vmem:[#allocation6 + $0x78] sm:$0xff] %vm2232_vm4, %v11473_v15  ;;  %v5884_v36 = vmul.f32 %v8559_v0, %v11273_v11  ;;  %v5781_v43 = vpop.f32.mrb[33].mxu0  ;;  %6093 = vst.msk [vmem:[#allocation6 + $0x70] sm:$0xff] %vm2232_vm4, %v11479_v12  ;;  %v6317_v6 = vld [vmem:[#allocation5 + $0xaa] sm:$0xff] }
 0x46a   : > { %v5883_v24 = vmul.f32 %v11273_v11, %v5781_v43 }
 0x46b   : > { %v5923_v5 = vadd.f32 %v11279_v47, %v5884_v36  ;;  %6397 = vrot.lane.b32.xlu1 %v6318_v18, %s8697_s29 }
 0x46c   : > { %v5922_v56 = vadd.f32 %v11279_v47, %v5883_v24  ;;  %6395 = vrot.lane.b32.xlu0 %v6317_v6, %s8697_s29 }
 0x46d   : > { %v5955_v41 = vmax.f32 %v5923_v5, 0.0 }
 0x46e   : > { %v5954_v63 = vmax.f32 %v5922_v56, 0.0  ;;  %v6128_v8 = vld [vmem:[#allocation5 + $0xc9] sm:$0xff] }
 0x46f   : > { %6032 = vst.msk [vmem:[#allocation5 + $0xe1] sm:$0xff] %vm2232_vm4, %v5955_v41  ;;  %6209 = vrot.lane.b32.xlu1 %v6128_v8, %s8695_s28  ;;  %v6127_v60 = vld [vmem:[#allocation5 + $0xc1] sm:$0xff]  ;;  %v6320_v55 = vld [vmem:[#allocation5 + $0xca] sm:$0xff] }
 0x470   : > { %v11491_v2 = vld [vmem:[#allocation5 + $0xc8] sm:$0xff]  ;;  %6031 = vst.msk [vmem:[#allocation5 + $0xd9] sm:$0xff] %vm2232_vm4, %v5954_v63  ;;  %6207 = vrot.lane.b32.xlu0 %v6127_v60, %s8695_s28  ;;  %v8562_v54 = vpop.f32.mrb[34].mxu0  ;;  %v11495_v38 = vld [vmem:[#allocation5 + $0xc0] sm:$0xff] }
 0x471   : > { %6096 = vst.msk [vmem:[#allocation6 + $0x88] sm:$0xff] %vm2232_vm4, %v11491_v2  ;;  %v5886_v21 = vmul.f32 %v8562_v54, %v11273_v11  ;;  %v5791_v37 = vpop.f32.mrb[35].mxu0  ;;  %6095 = vst.msk [vmem:[#allocation6 + $0x80] sm:$0xff] %vm2232_vm4, %v11495_v38  ;;  %v6319_v9 = vld [vmem:[#allocation5 + $0xc2] sm:$0xff] }
 0x472   : > { %v5885_v48 = vmul.f32 %v11273_v11, %v5791_v37 }
 0x473   : > { %v5925_v35 = vadd.f32 %v11279_v47, %v5886_v21  ;;  %6401 = vrot.lane.b32.xlu1 %v6320_v55, %s8697_s29 }
 0x474   : > { %v5924_v25 = vadd.f32 %v11279_v47, %v5885_v48  ;;  %6399 = vrot.lane.b32.xlu0 %v6319_v9, %s8697_s29 }
 0x475   : > { %v5957_v30 = vmax.f32 %v5925_v35, 0.0 }
 0x476   : > { %v5956_v50 = vmax.f32 %v5924_v25, 0.0  ;;  %v6130_v13 = vld [vmem:[#allocation5 + $0xe1] sm:$0xff] }
 0x477   : > { %6034 = vst.msk [vmem:[#allocation5 + $0xf9] sm:$0xff] %vm2232_vm4, %v5957_v30  ;;  %6213 = vrot.lane.b32.xlu1 %v6130_v13, %s8695_s28  ;;  %v6129_v16 = vld [vmem:[#allocation5 + $0xd9] sm:$0xff]  ;;  %v6322_v6 = vld [vmem:[#allocation5 + $0xe2] sm:$0xff] }
 0x478   : > { %v11509_v0 = vld [vmem:[#allocation5 + $0xd8] sm:$0xff]  ;;  %6033 = vst.msk [vmem:[#allocation5 + $0xf1] sm:$0xff] %vm2232_vm4, %v5956_v50  ;;  %6211 = vrot.lane.b32.xlu0 %v6129_v16, %s8695_s28  ;;  %v8565_v36 = vpop.f32.mrb[36].mxu0  ;;  %v11513_v43 = vld [vmem:[#allocation5 + $0xe0] sm:$0xff] }
 0x479   : > { %6097 = vst.msk [vmem:[#allocation6 + $0x90] sm:$0xff] %vm2232_vm4, %v11509_v0  ;;  %v5888_v24 = vmul.f32 %v8565_v36, %v11273_v11  ;;  %v5801_v18 = vpop.f32.mrb[37].mxu0  ;;  %6098 = vst.msk [vmem:[#allocation6 + $0x98] sm:$0xff] %vm2232_vm4, %v11513_v43  ;;  %v6321_v41 = vld [vmem:[#allocation5 + $0xda] sm:$0xff] }
 0x47a   : > { %v5887_v5 = vmul.f32 %v11273_v11, %v5801_v18 }
 0x47b   : > { %v5927_v56 = vadd.f32 %v11279_v47, %v5888_v24  ;;  %6405 = vrot.lane.b32.xlu1 %v6322_v6, %s8697_s29 }
 0x47c   : > { %v5926_v63 = vadd.f32 %v11279_v47, %v5887_v5  ;;  %6403 = vrot.lane.b32.xlu0 %v6321_v41, %s8697_s29 }
 0x47d   : > { %v5959_v8 = vmax.f32 %v5927_v56, 0.0 }
 0x47e   : > { %v5958_v60 = vmax.f32 %v5926_v63, 0.0  ;;  %v6132_v54 = vld [vmem:[#allocation5 + $0xf9] sm:$0xff] }
 0x47f   : > { %6036 = vst.msk [vmem:[#allocation5 + $0x111] sm:$0xff] %vm2232_vm4, %v5959_v8  ;;  %6217 = vrot.lane.b32.xlu1 %v6132_v54, %s8695_s28  ;;  %v6131_v21 = vld [vmem:[#allocation5 + $0xf1] sm:$0xff]  ;;  %v6324_v30 = vld [vmem:[#allocation5 + $0xfa] sm:$0xff] }
 0x480   : > { %v11527_v37 = vld [vmem:[#allocation5 + $0xf8] sm:$0xff]  ;;  %6035 = vst.msk [vmem:[#allocation5 + $0x109] sm:$0xff] %vm2232_vm4, %v5958_v60  ;;  %6215 = vrot.lane.b32.xlu0 %v6131_v21, %s8695_s28  ;;  %v8568_v48 = vpop.f32.mrb[38].mxu0  ;;  %v11533_v55 = vld [vmem:[#allocation5 + $0xf0] sm:$0xff] }
 0x481   : > { %6100 = vst.msk [vmem:[#allocation6 + $0xa8] sm:$0xff] %vm2232_vm4, %v11527_v37  ;;  %v5890_v35 = vmul.f32 %v8568_v48, %v11273_v11  ;;  %v5811_v9 = vpop.f32.mrb[39].mxu0  ;;  %6099 = vst.msk [vmem:[#allocation6 + $0xa0] sm:$0xff] %vm2232_vm4, %v11533_v55  ;;  %v6323_v13 = vld [vmem:[#allocation5 + $0xf2] sm:$0xff] }
 0x482   : > { %v5889_v25 = vmul.f32 %v11273_v11, %v5811_v9 }
 0x483   : > { %v5929_v50 = vadd.f32 %v11279_v47, %v5890_v35  ;;  %6409 = vrot.lane.b32.xlu1 %v6324_v30, %s8697_s29 }
 0x484   : > { %v5928_v16 = vadd.f32 %v11279_v47, %v5889_v25  ;;  %6407 = vrot.lane.b32.xlu0 %v6323_v13, %s8697_s29 }
 0x485   : > { %v5961_v36 = vmax.f32 %v5929_v50, 0.0 }
 0x486   : > { %v5960_v24 = vmax.f32 %v5928_v16, 0.0  ;;  %v6134_v18 = vld [vmem:[#allocation5 + $0x111] sm:$0xff] }
 0x487   : > { %6038 = vst.msk [vmem:[#allocation5 + $0x129] sm:$0xff] %vm2232_vm4, %v5961_v36  ;;  %6221 = vrot.lane.b32.xlu1 %v6134_v18, %s8695_s28  ;;  %v6133_v5 = vld [vmem:[#allocation5 + $0x109] sm:$0xff] }
 0x488   : > { %v11545_v6 = vld [vmem:[#allocation5 + $0x110] sm:$0xff]  ;;  %6037 = vst.msk [vmem:[#allocation5 + $0x121] sm:$0xff] %vm2232_vm4, %v5960_v24  ;;  %6219 = vrot.lane.b32.xlu0 %v6133_v5, %s8695_s28  ;;  %v8571_v56 = vpop.f32.mrb[40].mxu0  ;;  %v11551_v41 = vld [vmem:[#allocation5 + $0x108] sm:$0xff] }
 0x489   : > { %6102 = vst.msk [vmem:[#allocation6 + $0xb8] sm:$0xff] %vm2232_vm4, %v11545_v6  ;;  %v5892_v63 = vmul.f32 %v8571_v56, %v11273_v11  ;;  %v5821_v8 = vpop.f32.mrb[41].mxu0  ;;  %6101 = vst.msk [vmem:[#allocation6 + $0xb0] sm:$0xff] %vm2232_vm4, %v11551_v41 }
 0x48a   : > { %v5891_v60 = vmul.f32 %v11273_v11, %v5821_v8 }
 0x48b   : > { %v5931_v54 = vadd.f32 %v11279_v47, %v5892_v63 }
 0x48c   : > { %v5930_v21 = vadd.f32 %v11279_v47, %v5891_v60 }
 0x48d   : > { %v5963_v48 = vmax.f32 %v5931_v54, 0.0 }
 0x48e   : > { %v5962_v35 = vmax.f32 %v5930_v21, 0.0  ;;  %v6136_v9 = vld [vmem:[#allocation5 + $0x129] sm:$0xff] }
 0x48f   : > { %6040 = vst.msk [vmem:[#allocation5 + $0x141] sm:$0xff] %vm2232_vm4, %v5963_v48  ;;  %6225 = vrot.lane.b32.xlu1 %v6136_v9, %s8695_s28  ;;  %v6135_v25 = vld [vmem:[#allocation5 + $0x121] sm:$0xff] }
 0x490   : > { %v11561_v30 = vld [vmem:[#allocation5 + $0x128] sm:$0xff]  ;;  %6039 = vst.msk [vmem:[#allocation5 + $0x139] sm:$0xff] %vm2232_vm4, %v5962_v35  ;;  %6223 = vrot.lane.b32.xlu0 %v6135_v25, %s8695_s28  ;;  %v8574_v50 = vpop.f32.mrb[42].mxu0  ;;  %v11567_v13 = vld [vmem:[#allocation5 + $0x120] sm:$0xff] }
 0x491   : > { %6104 = vst.msk [vmem:[#allocation6 + $0xc8] sm:$0xff] %vm2232_vm4, %v11561_v30  ;;  %v5894_v16 = vmul.f32 %v8574_v50, %v11273_v11  ;;  %v5831_v36 = vpop.f32.mrb[43].mxu0  ;;  %6103 = vst.msk [vmem:[#allocation6 + $0xc0] sm:$0xff] %vm2232_vm4, %v11567_v13 }
 0x492   : > { %v5893_v24 = vmul.f32 %v11273_v11, %v5831_v36 }
 0x493   : > { %v5933_v18 = vadd.f32 %v11279_v47, %v5894_v16 }
 0x494   : > { %v5932_v5 = vadd.f32 %v11279_v47, %v5893_v24 }
 0x495   : > { %v5965_v56 = vmax.f32 %v5933_v18, 0.0 }
 0x496   : > { %v5964_v63 = vmax.f32 %v5932_v5, 0.0  ;;  %v6138_v8 = vld [vmem:[#allocation5 + $0x141] sm:$0xff] }
 0x497   : > { %6042 = vst.msk [vmem:[#allocation5 + $0x159] sm:$0xff] %vm2232_vm4, %v5965_v56  ;;  %6229 = vrot.lane.b32.xlu1 %v6138_v8, %s8695_s28  ;;  %v6137_v60 = vld [vmem:[#allocation5 + $0x139] sm:$0xff] }
 0x498   : > { %v11577_v54 = vld [vmem:[#allocation5 + $0x140] sm:$0xff]  ;;  %6041 = vst.msk [vmem:[#allocation5 + $0x151] sm:$0xff] %vm2232_vm4, %v5964_v63  ;;  %6227 = vrot.lane.b32.xlu0 %v6137_v60, %s8695_s28  ;;  %v11583_v21 = vld [vmem:[#allocation5 + $0x138] sm:$0xff] }
 0x499   : > { %6106 = vst.msk [vmem:[#allocation6 + $0xd8] sm:$0xff] %vm2232_vm4, %v11577_v54  ;;  %6105 = vst.msk [vmem:[#allocation6 + $0xd0] sm:$0xff] %vm2232_vm4, %v11583_v21 }
 0x49b   : > { %v8577_v48 = vpop.f32.mrb[44].mxu0 }
 0x49c   : > { %v5896_v35 = vmul.f32 %v8577_v48, %v11273_v11  ;;  %v5841_v9 = vpop.f32.mrb[45].mxu0 }
 0x49d   : > { %v5895_v25 = vmul.f32 %v11273_v11, %v5841_v9 }
 0x49e   : > { %v5935_v50 = vadd.f32 %v11279_v47, %v5896_v35  ;;  %v6140_v36 = vld [vmem:[#allocation5 + $0x159] sm:$0xff] }
 0x49f   : > { %v5934_v16 = vadd.f32 %v11279_v47, %v5895_v25  ;;  %6233 = vrot.lane.b32.xlu1 %v6140_v36, %s8695_s28  ;;  %v6139_v18 = vld [vmem:[#allocation5 + $0x151] sm:$0xff] }
 0x4a0   : > { %v5967_v24 = vmax.f32 %v5935_v50, 0.0  ;;  %v11592_v5 = vld [vmem:[#allocation5 + $0x158] sm:$0xff]  ;;  %6231 = vrot.lane.b32.xlu0 %v6139_v18, %s8695_s28  ;;  %v11597_v63 = vld [vmem:[#allocation5 + $0x150] sm:$0xff] }
 0x4a1   : > { %v5966_v56 = vmax.f32 %v5934_v16, 0.0  ;;  %6108 = vst.msk [vmem:[#allocation6 + $0xe8] sm:$0xff] %vm2232_vm4, %v11592_v5  ;;  %6107 = vst.msk [vmem:[#allocation6 + $0xe0] sm:$0xff] %vm2232_vm4, %v11597_v63  ;;  %v6326_v50 = vld [vmem:[#allocation5 + $0x112] sm:$0xff]  ;;  %v6325_v36 = vld [vmem:[#allocation5 + $0x10a] sm:$0xff] }
 0x4a2   : > { %6044 = vst.msk [vmem:[#allocation5 + $0x171] sm:$0xff] %vm2232_vm4, %v5967_v24  ;;  %v6328_v18 = vld [vmem:[#allocation5 + $0x12a] sm:$0xff] }
 0x4a3   : > { %6043 = vst.msk [vmem:[#allocation5 + $0x169] sm:$0xff] %vm2232_vm4, %v5966_v56 }
 0x4a9   : > { %v6142_v8 = vld [vmem:[#allocation5 + $0x171] sm:$0xff]  ;;  %v6182_v60 = vpop.permute.xlu1 %6181 }
 0x4aa   : > { %6237 = vrot.lane.b32.xlu1 %v6142_v8, %s8695_s28  ;;  %v6141_v48 = vld [vmem:[#allocation5 + $0x169] sm:$0xff]  ;;  %6274 = vst.msk [vmem:[#allocation6 + $0x18] sm:$0xff] %vm4046_vm7, %v6182_v60  ;;  %v6180_v9 = vpop.permute.xlu0 %6179 }
 0x4ab   : > { %v6078_v35 = vld [vmem:[#allocation5 + $0x170] sm:$0xff]  ;;  %6235 = vrot.lane.b32.xlu0 %v6141_v48, %s8695_s28  ;;  %v6077_v25 = vld [vmem:[#allocation5 + $0x168] sm:$0xff]  ;;  %6273 = vst.msk [vmem:[#allocation6 + $0x10] sm:$0xff] %vm4046_vm7, %v6180_v9  ;;  %v6329_v9 = vld [vmem:[#allocation5 + $0x13a] sm:$0xff]  ;;  %s8707_s28 = smov 12  }
 0x4ac   : > { %6110 = vst.msk [vmem:[#allocation6 + $0xf8] sm:$0xff] %vm2232_vm4, %v6078_v35  ;;  %6109 = vst.msk [vmem:[#allocation6 + $0xf0] sm:$0xff] %vm2232_vm4, %v6077_v25  ;;  %v6327_v8 = vld [vmem:[#allocation5 + $0x122] sm:$0xff] }
 0x4ad   : > { %v6374_v16 = vpop.permute.xlu1 %6373  ;;  %v6330_v48 = vld [vmem:[#allocation5 + $0x142] sm:$0xff] }
 0x4ae   : > { %6413 = vrot.lane.b32.xlu1 %v6326_v50, %s8697_s29  ;;  %6467 = vst.msk [vmem:[#allocation6 + $0x18] sm:$0xff] %vm6463_vm1, %v6374_v16  ;;  %v6372_v24 = vpop.permute.xlu0 %6371  ;;  %v6332_v50 = vld [vmem:[#allocation5 + $0x15a] sm:$0xff] }
 0x4af   : > { %6411 = vrot.lane.b32.xlu0 %v6325_v36, %s8697_s29  ;;  %6466 = vst.msk [vmem:[#allocation6 + $0x10] sm:$0xff] %vm6463_vm1, %v6372_v24  ;;  %v6331_v36 = vld [vmem:[#allocation5 + $0x152] sm:$0xff] }
 0x4b1   : > { %v6186_v56 = vpop.permute.xlu1 %6185 }
 0x4b2   : > { %6417 = vrot.lane.b32.xlu1 %v6328_v18, %s8697_s29  ;;  %6276 = vst.msk [vmem:[#allocation6 + $0x28] sm:$0xff] %vm4046_vm7, %v6186_v56  ;;  %v6184_v60 = vpop.permute.xlu0 %6183  ;;  %v6334_v18 = vld [vmem:[#allocation5 + $0x172] sm:$0xff] }
 0x4b3   : > { %6415 = vrot.lane.b32.xlu0 %v6327_v8, %s8697_s29  ;;  %6275 = vst.msk [vmem:[#allocation6 + $0x20] sm:$0xff] %vm4046_vm7, %v6184_v60  ;;  %v6333_v8 = vld [vmem:[#allocation5 + $0x16a] sm:$0xff] }
 0x4b5   : > { %v6378_v35 = vpop.permute.xlu1 %6377 }
 0x4b6   : > { %6421 = vrot.lane.b32.xlu1 %v6330_v48, %s8697_s29  ;;  %6469 = vst.msk [vmem:[#allocation6 + $0x28] sm:$0xff] %vm6463_vm1, %v6378_v35  ;;  %v6376_v25 = vpop.permute.xlu0 %6375 }
 0x4b7   : > { %6419 = vrot.lane.b32.xlu0 %v6329_v9, %s8697_s29  ;;  %6468 = vst.msk [vmem:[#allocation6 + $0x20] sm:$0xff] %vm6463_vm1, %v6376_v25 }
 0x4b9   : > { %v6190_v16 = vpop.permute.xlu1 %6189 }
 0x4ba   : > { %6425 = vrot.lane.b32.xlu1 %v6332_v50, %s8697_s29  ;;  %6278 = vst.msk [vmem:[#allocation6 + $0x38] sm:$0xff] %vm4046_vm7, %v6190_v16  ;;  %v6188_v24 = vpop.permute.xlu0 %6187 }
 0x4bb   : > { %6423 = vrot.lane.b32.xlu0 %v6331_v36, %s8697_s29  ;;  %6277 = vst.msk [vmem:[#allocation6 + $0x30] sm:$0xff] %vm4046_vm7, %v6188_v24 }
 0x4bd   : > { %v6382_v56 = vpop.permute.xlu1 %6381 }
 0x4be   : > { %6429 = vrot.lane.b32.xlu1 %v6334_v18, %s8697_s29  ;;  %6471 = vst.msk [vmem:[#allocation6 + $0x38] sm:$0xff] %vm6463_vm1, %v6382_v56  ;;  %v6380_v60 = vpop.permute.xlu0 %6379 }
 0x4bf   : > { %6427 = vrot.lane.b32.xlu0 %v6333_v8, %s8697_s29  ;;  %6470 = vst.msk [vmem:[#allocation6 + $0x30] sm:$0xff] %vm6463_vm1, %v6380_v60  ;;  %s8708_s29 = smov 20  }
 0x4c1   : > { %v6194_v48 = vpop.permute.xlu1 %6193 }
 0x4c2   : > { %6562 = vrot.lane.b32.xlu1 %v11302_v23, %s8707_s28  ;;  %6280 = vst.msk [vmem:[#allocation6 + $0x48] sm:$0xff] %vm4046_vm7, %v6194_v48  ;;  %v6192_v35 = vpop.permute.xlu0 %6191 }
 0x4c3   : > { %6560 = vrot.lane.b32.xlu0 %v11309_v53, %s8707_s28  ;;  %6279 = vst.msk [vmem:[#allocation6 + $0x40] sm:$0xff] %vm4046_vm7, %v6192_v35 }
 0x4c5   : > { %v6386_v9 = vpop.permute.xlu1 %6385 }
 0x4c6   : > { %6566 = vrot.lane.b32.xlu1 %v11334_v51, %s8707_s28  ;;  %6473 = vst.msk [vmem:[#allocation6 + $0x48] sm:$0xff] %vm6463_vm1, %v6386_v9  ;;  %v6384_v25 = vpop.permute.xlu0 %6383 }
 0x4c7   : > { %6564 = vrot.lane.b32.xlu0 %v11341_v19, %s8707_s28  ;;  %6472 = vst.msk [vmem:[#allocation6 + $0x40] sm:$0xff] %vm6463_vm1, %v6384_v25 }
 0x4c9   : > { %v6198_v23 = vpop.permute.xlu1 %6197 }
 0x4ca   : > { %6570 = vrot.lane.b32.xlu1 %v11364_v27, %s8707_s28  ;;  %6282 = vst.msk [vmem:[#allocation6 + $0x58] sm:$0xff] %vm4046_vm7, %v6198_v23  ;;  %v6196_v53 = vpop.permute.xlu0 %6195 }
 0x4cb   : > { %6568 = vrot.lane.b32.xlu0 %v11371_v40, %s8707_s28  ;;  %6281 = vst.msk [vmem:[#allocation6 + $0x50] sm:$0xff] %vm4046_vm7, %v6196_v53 }
 0x4cd   : > { %v6390_v50 = vpop.permute.xlu1 %6389 }
 0x4ce   : > { %6574 = vrot.lane.b32.xlu1 %v11394_v58, %s8707_s28  ;;  %6475 = vst.msk [vmem:[#allocation6 + $0x58] sm:$0xff] %vm6463_vm1, %v6390_v50  ;;  %v6388_v16 = vpop.permute.xlu0 %6387  ;;  %v7687_v50 = vld [vmem:[%s12363_s10] sm:$0xff] }
 0x4cf   : > { %6572 = vrot.lane.b32.xlu0 %v11401_v17, %s8707_s28  ;;  %6474 = vst.msk [vmem:[#allocation6 + $0x50] sm:$0xff] %vm6463_vm1, %v6388_v16 }
 0x4d1   : > { %v6202_v36 = vpop.permute.xlu1 %6201 }
 0x4d2   : > { %6578 = vrot.lane.b32.xlu1 %v11424_v4, %s8707_s28  ;;  %6284 = vst.msk [vmem:[#allocation6 + $0x68] sm:$0xff] %vm4046_vm7, %v6202_v36  ;;  %v6200_v24 = vpop.permute.xlu0 %6199 }
 0x4d3   : > { %6576 = vrot.lane.b32.xlu0 %v11431_v44, %s8707_s28  ;;  %6283 = vst.msk [vmem:[#allocation6 + $0x60] sm:$0xff] %vm4046_vm7, %v6200_v24  ;;  %v7690_v24 = vld [vmem:[%s12363_s10 + $0x18] sm:$0xff] }
 0x4d5   : > { %v6394_v18 = vpop.permute.xlu1 %6393 }
 0x4d6   : > { %6582 = vrot.lane.b32.xlu1 %v11451_v20, %s8707_s28  ;;  %6477 = vst.msk [vmem:[#allocation6 + $0x68] sm:$0xff] %vm6463_vm1, %v6394_v18  ;;  %v6392_v56 = vpop.permute.xlu0 %6391 }
 0x4d7   : > { %6580 = vrot.lane.b32.xlu0 %v11458_v31, %s8707_s28  ;;  %6476 = vst.msk [vmem:[#allocation6 + $0x60] sm:$0xff] %vm6463_vm1, %v6392_v56 }
 0x4d9   : > { %v6206_v8 = vpop.permute.xlu1 %6205 }
 0x4da   : > { %6586 = vrot.lane.b32.xlu1 %v11473_v15, %s8707_s28  ;;  %6286 = vst.msk [vmem:[#allocation6 + $0x78] sm:$0xff] %vm4046_vm7, %v6206_v8  ;;  %v6204_v60 = vpop.permute.xlu0 %6203  ;;  %v7691_v8 = vld [vmem:[%s12363_s10 + $0x20] sm:$0xf] }
 0x4db   : > { %6584 = vrot.lane.b32.xlu0 %v11479_v12, %s8707_s28  ;;  %6285 = vst.msk [vmem:[#allocation6 + $0x70] sm:$0xff] %vm4046_vm7, %v6204_v60 }
 0x4dd   : > { %v6398_v48 = vpop.permute.xlu1 %6397 }
 0x4de   : > { %6590 = vrot.lane.b32.xlu1 %v11491_v2, %s8707_s28  ;;  %6479 = vst.msk [vmem:[#allocation6 + $0x78] sm:$0xff] %vm6463_vm1, %v6398_v48  ;;  %v6396_v35 = vpop.permute.xlu0 %6395 }
 0x4df   : > { %6588 = vrot.lane.b32.xlu0 %v11495_v38, %s8707_s28  ;;  %6478 = vst.msk [vmem:[#allocation6 + $0x70] sm:$0xff] %vm6463_vm1, %v6396_v35 }
 0x4e1   : > { %v6210_v9 = vpop.permute.xlu1 %6209 }
 0x4e2   : > { %6753 = vrot.lane.b32.xlu1 %v11300_v10, %s8698_s30  ;;  %6288 = vst.msk [vmem:[#allocation6 + $0x88] sm:$0xff] %vm4046_vm7, %v6210_v9  ;;  %v6208_v25 = vpop.permute.xlu0 %6207 }
 0x4e3   : > { %6592 = vrot.lane.b32.xlu0 %v11509_v0, %s8707_s28  ;;  %6287 = vst.msk [vmem:[#allocation6 + $0x80] sm:$0xff] %vm4046_vm7, %v6208_v25 }
 0x4e5   : > { %v6402_v23 = vpop.permute.xlu1 %6401 }
 0x4e6   : > { %6946 = vrot.lane.b32.xlu1 %v11322_v45, %s8708_s29  ;;  %6481 = vst.msk [vmem:[#allocation6 + $0x88] sm:$0xff] %vm6463_vm1, %v6402_v23  ;;  %v6400_v53 = vpop.permute.xlu0 %6399  ;;  %v7688_v45 = vld [vmem:[%s12363_s10 + $0x8] sm:$0xff] }
 0x4e7   : > { %6755 = vrot.lane.b32.xlu0 %v11295_v42, %s8698_s30  ;;  %6480 = vst.msk [vmem:[#allocation6 + $0x80] sm:$0xff] %vm6463_vm1, %v6400_v53  ;;  %v8655_v42 = vpack.c.bf16 %v7688_v45, %v7687_v50 }
 0x4e9   : > { %v6214_v10 = vpop.permute.xlu1 %6213  ;;  %8656 = vmatprep.subr.bf16.mxu1 %v8655_v42 }
 0x4ea   : > { %7140 = vrot.lane.b32.xlu1 %v11341_v19, %s8701_s16  ;;  %6290 = vst.msk [vmem:[#allocation6 + $0x98] sm:$0xff] %vm4046_vm7, %v6214_v10  ;;  %v6212_v16 = vpop.permute.xlu0 %6211  ;;  %8658 = vmatpush3.bf16.msra.mxu1 %v8655_v42  ;;  %v7689_v19 = vld [vmem:[%s12363_s10 + $0x10] sm:$0xff] }
 0x4eb   : > { %6948 = vrot.lane.b32.xlu0 %v11316_v28, %s8708_s29  ;;  %6289 = vst.msk [vmem:[#allocation6 + $0x90] sm:$0xff] %vm4046_vm7, %v6212_v16  ;;  %v8659_v18 = vpack.c.bf16 %v7690_v24, %v7689_v19 }
 0x4ed   : > { %v6406_v36 = vpop.permute.xlu1 %6405  ;;  %8660 = vmatprep.subr.bf16.mxu1 %v8659_v18 }
 0x4ee   : > { %7333 = vrot.lane.b32.xlu1 %v11332_v39, %s8709_s14  ;;  %6483 = vst.msk [vmem:[#allocation6 + $0x98] sm:$0xff] %vm6463_vm1, %v6406_v36  ;;  %v6404_v28 = vpop.permute.xlu0 %6403  ;;  %8662 = vmatpush3.bf16.msra.mxu1 %v8659_v18 }
 0x4ef   : > { %7142 = vrot.lane.b32.xlu0 %v11334_v51, %s8701_s16  ;;  %6482 = vst.msk [vmem:[#allocation6 + $0x90] sm:$0xff] %vm6463_vm1, %v6404_v28  ;;  %8589 = vmatprep.subr.msk.mxu1 %vm7789_vm3, %v7691_v8 }
 0x4f1   : > { %v6218_v56 = vpop.permute.xlu1 %6217 }
 0x4f2   : > { %7335 = vrot.lane.b32.xlu1 %v11327_v32, %s8709_s14  ;;  %6292 = vst.msk [vmem:[#allocation6 + $0xa8] sm:$0xff] %vm4046_vm7, %v6218_v56  ;;  %v6216_v60 = vpop.permute.xlu0 %6215  ;;  %8590 = vmatpush3.msk.msra.mxu1 %vm7789_vm3, %v7691_v8  ;;  %v7471_v56 = vld [vmem:[#allocation5 + $0x9a] sm:$0xff]  ;;  %v6892_v8 = vld [vmem:[#allocation5 + $0x92] sm:$0xff] }
 0x4f3   : > { %6757 = vrot.lane.b32.xlu0 %v11332_v39, %s8698_s30  ;;  %6291 = vst.msk [vmem:[#allocation6 + $0xa0] sm:$0xff] %vm4046_vm7, %v6216_v60 }
 0x4f5   : > { %v6410_v51 = vpop.permute.xlu1 %6409 }
 0x4f6   : > { %6759 = vrot.lane.b32.xlu1 %v11327_v32, %s8698_s30  ;;  %6485 = vst.msk [vmem:[#allocation6 + $0xa8] sm:$0xff] %vm6463_vm1, %v6410_v51  ;;  %v6408_v48 = vpop.permute.xlu0 %6407 }
 0x4f7   : > { %7526 = vrot.lane.b32.xlu0 %v11352_v26, %s8702_s17  ;;  %6484 = vst.msk [vmem:[#allocation6 + $0xa0] sm:$0xff] %vm6463_vm1, %v6408_v48 }
 0x4f9   : > { %v6222_v35 = vpop.permute.xlu1 %6221 }
 0x4fa   : > { %7528 = vrot.lane.b32.xlu1 %v11347_v22, %s8702_s17  ;;  %6294 = vst.msk [vmem:[#allocation6 + $0xb8] sm:$0xff] %vm4046_vm7, %v6222_v35  ;;  %v6220_v39 = vpop.permute.xlu0 %6219  ;;  %v7279_v35 = vld [vmem:[#allocation5 + $0xa9] sm:$0xff] }
 0x4fb   : > { %6950 = vrot.lane.b32.xlu0 %v11352_v26, %s8708_s29  ;;  %6293 = vst.msk [vmem:[#allocation6 + $0xb0] sm:$0xff] %vm4046_vm7, %v6220_v39 }
 0x4fe   : > { %7144 = vrot.lane.b32.xlu1 %v11371_v40, %s8701_s16 }
 0x4ff   : > { %6952 = vrot.lane.b32.xlu0 %v11347_v22, %s8708_s29 }
 0x501   : > { %v6226_v32 = vpop.permute.xlu1 %6225 }
 0x502   : > { %7337 = vrot.lane.b32.xlu1 %v11362_v14, %s8709_s14  ;;  %6296 = vst.msk [vmem:[#allocation6 + $0xc8] sm:$0xff] %vm4046_vm7, %v6226_v32  ;;  %v6224_v9 = vpop.permute.xlu0 %6223 }
 0x503   : > { %7146 = vrot.lane.b32.xlu0 %v11364_v27, %s8701_s16  ;;  %6295 = vst.msk [vmem:[#allocation6 + $0xc0] sm:$0xff] %vm4046_vm7, %v6224_v9  ;;  %v8580_v27 = vpop.f32.mrb[46].mxu0 }
 0x504   : > { %v5851_v40 = vpop.f32.mrb[47].mxu0 }
 0x506   : > { %7339 = vrot.lane.b32.xlu1 %v11357_v61, %s8709_s14 }
 0x507   : > { %6761 = vrot.lane.b32.xlu0 %v11362_v14, %s8698_s30  ;;  %v5898_v14 = vmul.f32 %v8580_v27, %v11273_v11 }
 0x509   : > { %v6230_v26 = vpop.permute.xlu1 %6229  ;;  %v5937_v25 = vadd.f32 %v11279_v47, %v5898_v14  ;;  %v7473_v14 = vld [vmem:[#allocation5 + $0xb2] sm:$0xff] }
 0x50a   : > { %6763 = vrot.lane.b32.xlu1 %v11357_v61, %s8698_s30  ;;  %6298 = vst.msk [vmem:[#allocation6 + $0xd8] sm:$0xff] %vm4046_vm7, %v6230_v26  ;;  %v6228_v22 = vpop.permute.xlu0 %6227  ;;  %v5897_v61 = vmul.f32 %v11273_v11, %v5851_v40 }
 0x50b   : > { %7530 = vrot.lane.b32.xlu0 %v11382_v3, %s8702_s17  ;;  %6297 = vst.msk [vmem:[#allocation6 + $0xd0] sm:$0xff] %vm4046_vm7, %v6228_v22 }
 0x50c   : > { %v5936_v53 = vadd.f32 %v11279_v47, %v5897_v61 }
 0x50e   : > { %7532 = vrot.lane.b32.xlu1 %v11377_v29, %s8702_s17  ;;  %v5968_v50 = vmax.f32 %v5936_v53, 0.0  ;;  %v7281_v53 = vld [vmem:[#allocation5 + $0xc1] sm:$0xff] }
 0x50f   : > { %6954 = vrot.lane.b32.xlu0 %v11382_v3, %s8708_s29  ;;  %v5969_v3 = vmax.f32 %v5937_v25, 0.0 }
 0x510   : > { %6045 = vst.msk [vmem:[#allocation5 + $0x181] sm:$0xff] %vm2232_vm4, %v5968_v50 }
 0x511   : > { %v6234_v23 = vpop.permute.xlu1 %6233  ;;  %6046 = vst.msk [vmem:[#allocation5 + $0x189] sm:$0xff] %vm2232_vm4, %v5969_v3 }
 0x512   : > { %7148 = vrot.lane.b32.xlu1 %v11401_v17, %s8701_s16  ;;  %6300 = vst.msk [vmem:[#allocation6 + $0xe8] sm:$0xff] %vm4046_vm7, %v6234_v23  ;;  %v6232_v10 = vpop.permute.xlu0 %6231 }
 0x513   : > { %6956 = vrot.lane.b32.xlu0 %v11377_v29, %s8708_s29  ;;  %6299 = vst.msk [vmem:[#allocation6 + $0xe0] sm:$0xff] %vm4046_vm7, %v6232_v10 }
 0x516   : > { %7341 = vrot.lane.b32.xlu1 %v11392_v46, %s8709_s14 }
 0x517   : > { %7150 = vrot.lane.b32.xlu0 %v11394_v58, %s8701_s16 }
 0x51a   : > { %7343 = vrot.lane.b32.xlu1 %v11387_v33, %s8709_s14 }
 0x51b   : > { %6765 = vrot.lane.b32.xlu0 %v11392_v46, %s8698_s30 }
 0x51c   : > { %v6238_v11 = vpop.permute.xlu1 %6237 }
 0x51d   : > { %6302 = vst.msk [vmem:[#allocation6 + $0xf8] sm:$0xff] %vm4046_vm7, %v6238_v11  ;;  %v6236_v47 = vpop.permute.xlu0 %6235 }
 0x51e   : > { %6301 = vst.msk [vmem:[#allocation6 + $0xf0] sm:$0xff] %vm4046_vm7, %v6236_v47  ;;  %6767 = vrot.lane.b32.xlu1 %v11387_v33, %s8698_s30  ;;  %vm7042_vm7 = vcmask 195744  }
 0x51f   : > { %7534 = vrot.lane.b32.xlu0 %v11412_v49, %s8702_s17 }
 0x520   : > { %v6414_v29 = vpop.permute.xlu1 %6413 }
 0x521   : > { %6487 = vst.msk [vmem:[#allocation6 + $0xb8] sm:$0xff] %vm6463_vm1, %v6414_v29  ;;  %v6412_v58 = vpop.permute.xlu0 %6411 }
 0x522   : > { %6486 = vst.msk [vmem:[#allocation6 + $0xb0] sm:$0xff] %vm6463_vm1, %v6412_v58  ;;  %7536 = vrot.lane.b32.xlu1 %v11407_v34, %s8702_s17  ;;  %v7475_v58 = vld [vmem:[#allocation5 + $0xca] sm:$0xff] }
 0x523   : > { %6958 = vrot.lane.b32.xlu0 %v11412_v49, %s8708_s29 }
 0x524   : > { %v6418_v46 = vpop.permute.xlu1 %6417 }
 0x525   : > { %6489 = vst.msk [vmem:[#allocation6 + $0xc8] sm:$0xff] %vm6463_vm1, %v6418_v46  ;;  %v6416_v17 = vpop.permute.xlu0 %6415 }
 0x526   : > { %6488 = vst.msk [vmem:[#allocation6 + $0xc0] sm:$0xff] %vm6463_vm1, %v6416_v17  ;;  %7152 = vrot.lane.b32.xlu1 %v11431_v44, %s8701_s16 }
 0x527   : > { %6960 = vrot.lane.b32.xlu0 %v11407_v34, %s8708_s29 }
 0x528   : > { %v6422_v33 = vpop.permute.xlu1 %6421 }
 0x529   : > { %6491 = vst.msk [vmem:[#allocation6 + $0xd8] sm:$0xff] %vm6463_vm1, %v6422_v33  ;;  %v6420_v45 = vpop.permute.xlu0 %6419 }
 0x52a   : > { %6490 = vst.msk [vmem:[#allocation6 + $0xd0] sm:$0xff] %vm6463_vm1, %v6420_v45  ;;  %7345 = vrot.lane.b32.xlu1 %v11422_v59, %s8709_s14 }
 0x52b   : > { %7154 = vrot.lane.b32.xlu0 %v11424_v4, %s8701_s16 }
 0x52c   : > { %v6426_v49 = vpop.permute.xlu1 %6425 }
 0x52d   : > { %6493 = vst.msk [vmem:[#allocation6 + $0xe8] sm:$0xff] %vm6463_vm1, %v6426_v49  ;;  %v6424_v16 = vpop.permute.xlu0 %6423 }
 0x52e   : > { %6492 = vst.msk [vmem:[#allocation6 + $0xe0] sm:$0xff] %vm6463_vm1, %v6424_v16  ;;  %7347 = vrot.lane.b32.xlu1 %v11417_v62, %s8709_s14 }
 0x52f   : > { %6769 = vrot.lane.b32.xlu0 %v11422_v59, %s8698_s30 }
 0x530   : > { %v6430_v34 = vpop.permute.xlu1 %6429 }
 0x531   : > { %6495 = vst.msk [vmem:[#allocation6 + $0xf8] sm:$0xff] %vm6463_vm1, %v6430_v34  ;;  %v6428_v44 = vpop.permute.xlu0 %6427  ;;  %v7283_v34 = vld [vmem:[#allocation5 + $0xd9] sm:$0xff] }
 0x532   : > { %6494 = vst.msk [vmem:[#allocation6 + $0xf0] sm:$0xff] %vm6463_vm1, %v6428_v44  ;;  %6771 = vrot.lane.b32.xlu1 %v11417_v62, %s8698_s30 }
 0x533   : > { %7538 = vrot.lane.b32.xlu0 %v11442_v52, %s8702_s17 }
 0x534   : > { %v6563_v4 = vpop.permute.xlu1 %6562 }
 0x535   : > { %6658 = vst.msk [vmem:[#allocation6 + $0x8] sm:$0xff] %vm6656_vm5, %v6563_v4  ;;  %v6561_v42 = vpop.permute.xlu0 %6560 }
 0x536   : > { %6657 = vst.msk [vmem:[#allocation6] sm:$0xff] %vm6656_vm5, %v6561_v42  ;;  %7540 = vrot.lane.b32.xlu1 %v11437_v7, %s8702_s17 }
 0x537   : > { %6962 = vrot.lane.b32.xlu0 %v11442_v52, %s8708_s29 }
 0x538   : > { %v6567_v59 = vpop.permute.xlu1 %6566 }
 0x539   : > { %6660 = vst.msk [vmem:[#allocation6 + $0x18] sm:$0xff] %vm6656_vm5, %v6567_v59  ;;  %v6565_v62 = vpop.permute.xlu0 %6564  ;;  %v7476_v59 = vld [vmem:[#allocation5 + $0xda] sm:$0xff] }
 0x53a   : > { %6659 = vst.msk [vmem:[#allocation6 + $0x10] sm:$0xff] %vm6656_vm5, %v6565_v62  ;;  %7156 = vrot.lane.b32.xlu1 %v11458_v31, %s8701_s16  ;;  %v7278_v31 = vld [vmem:[#allocation5 + $0x99] sm:$0xff]  ;;  %v7284_v62 = vld [vmem:[#allocation5 + $0xe1] sm:$0xff] }
 0x53b   : > { %6964 = vrot.lane.b32.xlu0 %v11437_v7, %s8708_s29  ;;  %v6699_v7 = vld [vmem:[#allocation5 + $0x91] sm:$0xff] }
 0x53c   : > { %v6571_v36 = vpop.permute.xlu1 %6570 }
 0x53d   : > { %6662 = vst.msk [vmem:[#allocation6 + $0x28] sm:$0xff] %vm6656_vm5, %v6571_v36  ;;  %v6569_v19 = vpop.permute.xlu0 %6568 }
 0x53e   : > { %6661 = vst.msk [vmem:[#allocation6 + $0x20] sm:$0xff] %vm6656_vm5, %v6569_v19  ;;  %7349 = vrot.lane.b32.xlu1 %v11449_v57, %s8709_s14 }
 0x53f   : > { %7158 = vrot.lane.b32.xlu0 %v11451_v20, %s8701_s16 }
 0x540   : > { %v6575_v52 = vpop.permute.xlu1 %6574 }
 0x541   : > { %6664 = vst.msk [vmem:[#allocation6 + $0x38] sm:$0xff] %vm6656_vm5, %v6575_v52  ;;  %v6573_v24 = vpop.permute.xlu0 %6572 }
 0x542   : > { %6663 = vst.msk [vmem:[#allocation6 + $0x30] sm:$0xff] %vm6656_vm5, %v6573_v24  ;;  %7351 = vrot.lane.b32.xlu1 %v7278_v31, %s8709_s14 }
 0x543   : > { %6773 = vrot.lane.b32.xlu0 %v6699_v7, %s8698_s30  ;;  %v6899_v7 = vld [vmem:[#allocation5 + $0xe2] sm:$0xff] }
 0x544   : > { %v6579_v28 = vpop.permute.xlu1 %6578 }
 0x545   : > { %6666 = vst.msk [vmem:[#allocation6 + $0x48] sm:$0xff] %vm6656_vm5, %v6579_v28  ;;  %v6577_v18 = vpop.permute.xlu0 %6576 }
 0x546   : > { %6665 = vst.msk [vmem:[#allocation6 + $0x40] sm:$0xff] %vm6656_vm5, %v6577_v18  ;;  %6775 = vrot.lane.b32.xlu1 %v7278_v31, %s8698_s30 }
 0x547   : > { %7542 = vrot.lane.b32.xlu0 %v11466_v1, %s8702_s17 }
 0x548   : > { %v6583_v57 = vpop.permute.xlu1 %6582 }
 0x549   : > { %6668 = vst.msk [vmem:[#allocation6 + $0x58] sm:$0xff] %vm6656_vm5, %v6583_v57  ;;  %v6581_v20 = vpop.permute.xlu0 %6580 }
 0x54a   : > { %6667 = vst.msk [vmem:[#allocation6 + $0x50] sm:$0xff] %vm6656_vm5, %v6581_v20  ;;  %7544 = vrot.lane.b32.xlu1 %v7471_v56, %s8702_s17 }
 0x54b   : > { %6966 = vrot.lane.b32.xlu0 %v6892_v8, %s8708_s29 }
 0x54c   : > { %v6587_v60 = vpop.permute.xlu1 %6586 }
 0x54d   : > { %6670 = vst.msk [vmem:[#allocation6 + $0x68] sm:$0xff] %vm6656_vm5, %v6587_v60  ;;  %v6585_v51 = vpop.permute.xlu0 %6584 }
 0x54e   : > { %6669 = vst.msk [vmem:[#allocation6 + $0x60] sm:$0xff] %vm6656_vm5, %v6585_v51  ;;  %7160 = vrot.lane.b32.xlu1 %v11479_v12, %s8701_s16  ;;  %v7280_v12 = vld [vmem:[#allocation5 + $0xb1] sm:$0xff] }
 0x54f   : > { %6968 = vrot.lane.b32.xlu0 %v7471_v56, %s8708_s29  ;;  %v7285_v56 = vld [vmem:[#allocation5 + $0xf1] sm:$0xff] }
 0x550   : > { %v6591_v1 = vpop.permute.xlu1 %6590 }
 0x551   : > { %6672 = vst.msk [vmem:[#allocation6 + $0x78] sm:$0xff] %vm6656_vm5, %v6591_v1  ;;  %v6589_v48 = vpop.permute.xlu0 %6588  ;;  %v7478_v1 = vld [vmem:[#allocation5 + $0xf2] sm:$0xff] }
 0x552   : > { %6671 = vst.msk [vmem:[#allocation6 + $0x70] sm:$0xff] %vm6656_vm5, %v6589_v48  ;;  %7353 = vrot.lane.b32.xlu1 %v7279_v35, %s8709_s14 }
 0x553   : > { %7162 = vrot.lane.b32.xlu0 %v11473_v15, %s8701_s16  ;;  %v7472_v15 = vld [vmem:[#allocation5 + $0xaa] sm:$0xff] }
 0x554   : > { %v6754_v39 = vpop.permute.xlu1 %6753 }
 0x555   : > { %6850 = vst.msk [vmem:[#allocation6] sm:$0xff] %vm6849_vm6, %v6754_v39  ;;  %v6593_v32 = vpop.permute.xlu0 %6592 }
 0x556   : > { %6673 = vst.msk [vmem:[#allocation6 + $0x80] sm:$0xff] %vm6656_vm5, %v6593_v32  ;;  %7355 = vrot.lane.b32.xlu1 %v7280_v12, %s8709_s14 }
 0x557   : > { %6777 = vrot.lane.b32.xlu0 %v7279_v35, %s8698_s30  ;;  %v7286_v35 = vld [vmem:[#allocation5 + $0xf9] sm:$0xff] }
 0x558   : > { %v6947_v9 = vpop.permute.xlu1 %6946 }
 0x559   : > { %7043 = vst.msk [vmem:[#allocation6] sm:$0xff] %vm7042_vm7, %v6947_v9  ;;  %v6756_v26 = vpop.permute.xlu0 %6755 }
 0x55a   : > { %6851 = vst.msk [vmem:[#allocation6 + $0x8] sm:$0xff] %vm6849_vm6, %v6756_v26  ;;  %6779 = vrot.lane.b32.xlu1 %v7280_v12, %s8698_s30  ;;  %v6901_v26 = vld [vmem:[#allocation5 + $0xfa] sm:$0xff] }
 0x55b   : > { %7546 = vrot.lane.b32.xlu0 %v7472_v15, %s8702_s17 }
 0x55c   : > { %v7141_v22 = vpop.permute.xlu1 %7140 }
 0x55d   : > { %7237 = vst.msk [vmem:[#allocation6] sm:$0xff] %vm7236_vm8, %v7141_v22  ;;  %v6949_v27 = vpop.permute.xlu0 %6948 }
 0x55e   : > { %7044 = vst.msk [vmem:[#allocation6 + $0x8] sm:$0xff] %vm7042_vm7, %v6949_v27  ;;  %7548 = vrot.lane.b32.xlu1 %v7473_v14, %s8702_s17 }
 0x55f   : > { %6970 = vrot.lane.b32.xlu0 %v7472_v15, %s8708_s29 }
 0x560   : > { %v7334_v40 = vpop.permute.xlu1 %7333 }
 0x561   : > { %7430 = vst.msk [vmem:[#allocation6] sm:$0xff] %vm7429_vm9, %v7334_v40  ;;  %v7143_v61 = vpop.permute.xlu0 %7142  ;;  %v7287_v40 = vld [vmem:[#allocation5 + $0x109] sm:$0xff] }
 0x562   : > { %7238 = vst.msk [vmem:[#allocation6 + $0x8] sm:$0xff] %vm7236_vm8, %v7143_v61  ;;  %7164 = vrot.lane.b32.xlu1 %v11495_v38, %s8701_s16  ;;  %v7282_v38 = vld [vmem:[#allocation5 + $0xc9] sm:$0xff] }
 0x563   : > { %6972 = vrot.lane.b32.xlu0 %v7473_v14, %s8708_s29 }
 0x564   : > { %v7336_v25 = vpop.permute.xlu1 %7335 }
 0x565   : > { %7431 = vst.msk [vmem:[#allocation6 + $0x8] sm:$0xff] %vm7429_vm9, %v7336_v25  ;;  %v6758_v23 = vpop.permute.xlu0 %6757 }
 0x566   : > { %6852 = vst.msk [vmem:[#allocation6 + $0x10] sm:$0xff] %vm6849_vm6, %v6758_v23  ;;  %7357 = vrot.lane.b32.xlu1 %v7281_v53, %s8709_s14 }
 0x567   : > { %7166 = vrot.lane.b32.xlu0 %v11491_v2, %s8701_s16  ;;  %v7474_v2 = vld [vmem:[#allocation5 + $0xc2] sm:$0xff] }
 0x568   : > { %v6760_v10 = vpop.permute.xlu1 %6759 }
 0x569   : > { %6853 = vst.msk [vmem:[#allocation6 + $0x18] sm:$0xff] %vm6849_vm6, %v6760_v10  ;;  %v7527_v3 = vpop.permute.xlu0 %7526 }
 0x56a   : > { %7623 = vst.msk [vmem:[#allocation6] sm:$0xff] %vm7622_vm10, %v7527_v3  ;;  %7359 = vrot.lane.b32.xlu1 %v7282_v38, %s8709_s14  ;;  %v7480_v3 = vld [vmem:[#allocation5 + $0x10a] sm:$0xff] }
 0x56b   : > { %6781 = vrot.lane.b32.xlu0 %v7281_v53, %s8698_s30 }
 0x56c   : > { %v7529_v50 = vpop.permute.xlu1 %7528 }
 0x56d   : > { %7624 = vst.msk [vmem:[#allocation6 + $0x8] sm:$0xff] %vm7622_vm10, %v7529_v50  ;;  %v6951_v11 = vpop.permute.xlu0 %6950 }
 0x56e   : > { %7045 = vst.msk [vmem:[#allocation6 + $0x10] sm:$0xff] %vm7042_vm7, %v6951_v11  ;;  %6783 = vrot.lane.b32.xlu1 %v7282_v38, %s8698_s30  ;;  %v7288_v38 = vld [vmem:[#allocation5 + $0x111] sm:$0xff] }
 0x56f   : > { %7550 = vrot.lane.b32.xlu0 %v7474_v2, %s8702_s17 }
 0x570   : > { %v7145_v47 = vpop.permute.xlu1 %7144 }
 0x571   : > { %7239 = vst.msk [vmem:[#allocation6 + $0x10] sm:$0xff] %vm7236_vm8, %v7145_v47  ;;  %v6953_v29 = vpop.permute.xlu0 %6952  ;;  %v7655_v46 = vld [vmem:[#allocation6] sm:$0xff] }
 0x572   : > { %7046 = vst.msk [vmem:[#allocation6 + $0x18] sm:$0xff] %vm7042_vm7, %v6953_v29  ;;  %7552 = vrot.lane.b32.xlu1 %v7475_v58, %s8702_s17  ;;  %8591 = vmatprep.mubr.msk.f32.mxu1 %vm7692_vm11, %v7655_v46  ;;  %v6903_v47 = vld [vmem:[#allocation5 + $0x112] sm:$0xff] }
 0x573   : > { %6974 = vrot.lane.b32.xlu0 %v7474_v2, %s8708_s29 }
 0x574   : > { %v7338_v17 = vpop.permute.xlu1 %7337  ;;  %v7656_v33 = vld [vmem:[#allocation6 + $0x8] sm:$0xff] }
 0x575   : > { %7432 = vst.msk [vmem:[#allocation6 + $0x10] sm:$0xff] %vm7429_vm9, %v7338_v17  ;;  %8592 = vmatmul.mubr.msk.f32.vlgmr.msra.gmra.mrb[16].mxu1 %vm7692_vm11, %v7656_v33  ;;  %v7147_v45 = vpop.permute.xlu0 %7146  ;;  %v7289_v33 = vld [vmem:[#allocation5 + $0x121] sm:$0xff] }
 0x576   : > { %7240 = vst.msk [vmem:[#allocation6 + $0x18] sm:$0xff] %vm7236_vm8, %v7147_v45  ;;  %7168 = vrot.lane.b32.xlu1 %v11509_v0, %s8701_s16 }
 0x577   : > { %6976 = vrot.lane.b32.xlu0 %v7475_v58, %s8708_s29 }
 0x578   : > { %v7340_v49 = vpop.permute.xlu1 %7339 }
 0x579   : > { %7433 = vst.msk [vmem:[#allocation6 + $0x18] sm:$0xff] %vm7429_vm9, %v7340_v49  ;;  %v6762_v16 = vpop.permute.xlu0 %6761 }
 0x57a   : > { %6854 = vst.msk [vmem:[#allocation6 + $0x20] sm:$0xff] %vm6849_vm6, %v6762_v16  ;;  %7361 = vrot.lane.b32.xlu1 %v7283_v34, %s8709_s14 }
 0x57b   : > { %7170 = vrot.lane.b32.xlu0 %v11513_v43, %s8701_s16 }
 0x57c   : > { %v6764_v44 = vpop.permute.xlu1 %6763 }
 0x57d   : > { %6855 = vst.msk [vmem:[#allocation6 + $0x28] sm:$0xff] %vm6849_vm6, %v6764_v44  ;;  %v7531_v4 = vpop.permute.xlu0 %7530 }
 0x57e   : > { %7625 = vst.msk [vmem:[#allocation6 + $0x10] sm:$0xff] %vm7622_vm10, %v7531_v4  ;;  %6785 = vrot.lane.b32.xlu1 %v7283_v34, %s8698_s30  ;;  %v7482_v4 = vld [vmem:[#allocation5 + $0x122] sm:$0xff] }
 0x57f   : > { %6594 = vrot.lane.b32.xlu0 %v11513_v43, %s8707_s28 }
 0x580   : > { %v7533_v0 = vpop.permute.xlu1 %7532 }
 0x581   : > { %7626 = vst.msk [vmem:[#allocation6 + $0x18] sm:$0xff] %vm7622_vm10, %v7533_v0  ;;  %v6955_v42 = vpop.permute.xlu0 %6954  ;;  %v7290_v0 = vld [vmem:[#allocation5 + $0x129] sm:$0xff] }
 0x582   : > { %7047 = vst.msk [vmem:[#allocation6 + $0x20] sm:$0xff] %vm7042_vm7, %v6955_v42  ;;  %7554 = vrot.lane.b32.xlu1 %v7476_v59, %s8702_s17 }
 0x583   : > { %7363 = vrot.lane.b32.xlu0 %v7284_v62, %s8709_s14 }
 0x584   : > { %v7149_v36 = vpop.permute.xlu1 %7148 }
 0x585   : > { %7241 = vst.msk [vmem:[#allocation6 + $0x20] sm:$0xff] %vm7236_vm8, %v7149_v36  ;;  %v6957_v19 = vpop.permute.xlu0 %6956  ;;  %v7657_v52 = vld [vmem:[#allocation6 + $0x10] sm:$0xff]  ;;  %v6905_v36 = vld [vmem:[#allocation5 + $0x12a] sm:$0xff] }
 0x586   : > { %7048 = vst.msk [vmem:[#allocation6 + $0x28] sm:$0xff] %vm7042_vm7, %v6957_v19  ;;  %6978 = vrot.lane.b32.xlu1 %v7476_v59, %s8708_s29  ;;  %8594 = vmatprep.mubr.msk.f32.mxu1 %vm7692_vm11, %v7657_v52 }
 0x587   : > { %6787 = vrot.lane.b32.xlu0 %v7284_v62, %s8698_s30 }
 0x588   : > { %v7342_v43 = vpop.permute.xlu1 %7341  ;;  %v7658_v24 = vld [vmem:[#allocation6 + $0x18] sm:$0xff] }
 0x589   : > { %7434 = vst.msk [vmem:[#allocation6 + $0x20] sm:$0xff] %vm7429_vm9, %v7342_v43  ;;  %8595 = vmatmul.mubr.msk.f32.gmra.mrb[18].mxu1 %vm7692_vm11, %v7658_v24  ;;  %v7151_v31 = vpop.permute.xlu0 %7150 }
 0x58a   : > { %7242 = vst.msk [vmem:[#allocation6 + $0x28] sm:$0xff] %vm7236_vm8, %v7151_v31  ;;  %6980 = vrot.lane.b32.xlu1 %v6899_v7, %s8708_s29 }
 0x58b   : > { %7556 = vrot.lane.b32.xlu0 %v6899_v7, %s8702_s17 }
 0x58c   : > { %v7344_v28 = vpop.permute.xlu1 %7343 }
 0x58d   : > { %7435 = vst.msk [vmem:[#allocation6 + $0x28] sm:$0xff] %vm7429_vm9, %v7344_v28  ;;  %v6766_v18 = vpop.permute.xlu0 %6765  ;;  %v7291_v28 = vld [vmem:[#allocation5 + $0x139] sm:$0xff] }
 0x58e   : > { %6856 = vst.msk [vmem:[#allocation6 + $0x30] sm:$0xff] %vm6849_vm6, %v6766_v18  ;;  %6596 = vrot.lane.b32.xlu1 %v11533_v55, %s8707_s28 }
 0x58f   : > { %7172 = vrot.lane.b32.xlu0 %v11533_v55, %s8701_s16 }
 0x590   : > { %v6768_v57 = vpop.permute.xlu1 %6767 }
 0x591   : > { %6857 = vst.msk [vmem:[#allocation6 + $0x38] sm:$0xff] %vm6849_vm6, %v6768_v57  ;;  %v7535_v20 = vpop.permute.xlu0 %7534 }
 0x592   : > { %7627 = vst.msk [vmem:[#allocation6 + $0x20] sm:$0xff] %vm7622_vm10, %v7535_v20  ;;  %7365 = vrot.lane.b32.xlu1 %v7285_v56, %s8709_s14 }
 0x593   : > { %7174 = vrot.lane.b32.xlu0 %v11527_v37, %s8701_s16 }
 0x594   : > { %v7537_v8 = vpop.permute.xlu1 %7536 }
 0x595   : > { %7628 = vst.msk [vmem:[#allocation6 + $0x28] sm:$0xff] %vm7622_vm10, %v7537_v8  ;;  %v6959_v60 = vpop.permute.xlu0 %6958  ;;  %v7292_v8 = vld [vmem:[#allocation5 + $0x141] sm:$0xff] }
 0x596   : > { %7049 = vst.msk [vmem:[#allocation6 + $0x30] sm:$0xff] %vm7042_vm7, %v6959_v60  ;;  %6789 = vrot.lane.b32.xlu1 %v7285_v56, %s8698_s30  ;;  %v7484_v56 = vld [vmem:[#allocation5 + $0x13a] sm:$0xff] }
 0x597   : > { %6598 = vrot.lane.b32.xlu0 %v11527_v37, %s8707_s28 }
 0x598   : > { %v7153_v55 = vpop.permute.xlu1 %7152 }
 0x599   : > { %7243 = vst.msk [vmem:[#allocation6 + $0x30] sm:$0xff] %vm7236_vm8, %v7153_v55  ;;  %v6961_v51 = vpop.permute.xlu0 %6960  ;;  %v7659_v48 = vld [vmem:[#allocation6 + $0x20] sm:$0xff] }
 0x59a   : > { %7050 = vst.msk [vmem:[#allocation6 + $0x38] sm:$0xff] %vm7042_vm7, %v6961_v51  ;;  %7558 = vrot.lane.b32.xlu1 %v7478_v1, %s8702_s17  ;;  %8597 = vmatprep.mubr.msk.f32.mxu1 %vm7692_vm11, %v7659_v48 }
 0x59b   : > { %7367 = vrot.lane.b32.xlu0 %v7286_v35, %s8709_s14 }
 0x59c   : > { %v7346_v39 = vpop.permute.xlu1 %7345  ;;  %v7660_v32 = vld [vmem:[#allocation6 + $0x28] sm:$0xff] }
 0x59d   : > { %7436 = vst.msk [vmem:[#allocation6 + $0x30] sm:$0xff] %vm7429_vm9, %v7346_v39  ;;  %8598 = vmatmul.mubr.msk.f32.gmra.mrb[20].mxu1 %vm7692_vm11, %v7660_v32  ;;  %v7155_v37 = vpop.permute.xlu0 %7154 }
 0x59e   : > { %7244 = vst.msk [vmem:[#allocation6 + $0x38] sm:$0xff] %vm7236_vm8, %v7155_v37  ;;  %6982 = vrot.lane.b32.xlu1 %v7478_v1, %s8708_s29  ;;  %v6907_v1 = vld [vmem:[#allocation5 + $0x142] sm:$0xff] }
 0x59f   : > { %6791 = vrot.lane.b32.xlu0 %v7286_v35, %s8698_s30 }
 0x5a0   : > { %v7348_v12 = vpop.permute.xlu1 %7347 }
 0x5a1   : > { %7437 = vst.msk [vmem:[#allocation6 + $0x38] sm:$0xff] %vm7429_vm9, %v7348_v12  ;;  %v6770_v9 = vpop.permute.xlu0 %6769 }
 0x5a2   : > { %6858 = vst.msk [vmem:[#allocation6 + $0x40] sm:$0xff] %vm6849_vm6, %v6770_v9  ;;  %6984 = vrot.lane.b32.xlu1 %v6901_v26, %s8708_s29  ;;  %v7293_v9 = vld [vmem:[#allocation5 + $0x151] sm:$0xff] }
 0x5a3   : > { %7560 = vrot.lane.b32.xlu0 %v6901_v26, %s8702_s17 }
 0x5a4   : > { %v6772_v15 = vpop.permute.xlu1 %6771 }
 0x5a5   : > { %6859 = vst.msk [vmem:[#allocation6 + $0x48] sm:$0xff] %vm6849_vm6, %v6772_v15  ;;  %v7539_v22 = vpop.permute.xlu0 %7538 }
 0x5a6   : > { %7629 = vst.msk [vmem:[#allocation6 + $0x30] sm:$0xff] %vm7622_vm10, %v7539_v22  ;;  %6600 = vrot.lane.b32.xlu1 %v11551_v41, %s8707_s28 }
 0x5a7   : > { %7176 = vrot.lane.b32.xlu0 %v11551_v41, %s8701_s16 }
 0x5a8   : > { %v7541_v27 = vpop.permute.xlu1 %7540 }
 0x5a9   : > { %7630 = vst.msk [vmem:[#allocation6 + $0x38] sm:$0xff] %vm7622_vm10, %v7541_v27  ;;  %v6963_v14 = vpop.permute.xlu0 %6962 }
 0x5aa   : > { %7051 = vst.msk [vmem:[#allocation6 + $0x40] sm:$0xff] %vm7042_vm7, %v6963_v14  ;;  %7369 = vrot.lane.b32.xlu1 %v7287_v40, %s8709_s14  ;;  %v7486_v14 = vld [vmem:[#allocation5 + $0x152] sm:$0xff] }
 0x5ab   : > { %7178 = vrot.lane.b32.xlu0 %v11545_v6, %s8701_s16 }
 0x5ac   : > { %v7157_v61 = vpop.permute.xlu1 %7156 }
 0x5ad   : > { %7245 = vst.msk [vmem:[#allocation6 + $0x40] sm:$0xff] %vm7236_vm8, %v7157_v61  ;;  %v6965_v25 = vpop.permute.xlu0 %6964  ;;  %v7661_v23 = vld [vmem:[#allocation6 + $0x30] sm:$0xff] }
 0x5ae   : > { %7052 = vst.msk [vmem:[#allocation6 + $0x48] sm:$0xff] %vm7042_vm7, %v6965_v25  ;;  %6793 = vrot.lane.b32.xlu1 %v7287_v40, %s8698_s30  ;;  %8600 = vmatprep.mubr.msk.f32.mxu1 %vm7692_vm11, %v7661_v23 }
 0x5af   : > { %6602 = vrot.lane.b32.xlu0 %v11545_v6, %s8707_s28 }
 0x5b0   : > { %v7350_v41 = vpop.permute.xlu1 %7349  ;;  %v7662_v53 = vld [vmem:[#allocation6 + $0x38] sm:$0xff] }
 0x5b1   : > { %7438 = vst.msk [vmem:[#allocation6 + $0x40] sm:$0xff] %vm7429_vm9, %v7350_v41  ;;  %8601 = vmatmul.mubr.msk.f32.gmra.mrb[22].mxu1 %vm7692_vm11, %v7662_v53  ;;  %v7159_v10 = vpop.permute.xlu0 %7158  ;;  %v6909_v53 = vld [vmem:[#allocation5 + $0x15a] sm:$0xff] }
 0x5b2   : > { %7246 = vst.msk [vmem:[#allocation6 + $0x48] sm:$0xff] %vm7236_vm8, %v7159_v10  ;;  %7562 = vrot.lane.b32.xlu1 %v7480_v3, %s8702_s17 }
 0x5b3   : > { %7371 = vrot.lane.b32.xlu0 %v7288_v38, %s8709_s14 }
 0x5b4   : > { %v7352_v50 = vpop.permute.xlu1 %7351 }
 0x5b5   : > { %7439 = vst.msk [vmem:[#allocation6 + $0x48] sm:$0xff] %vm7429_vm9, %v7352_v50  ;;  %v6774_v11 = vpop.permute.xlu0 %6773 }
 0x5b6   : > { %6860 = vst.msk [vmem:[#allocation6 + $0x50] sm:$0xff] %vm6849_vm6, %v6774_v11  ;;  %6986 = vrot.lane.b32.xlu1 %v7480_v3, %s8708_s29 }
 0x5b7   : > { %6795 = vrot.lane.b32.xlu0 %v7288_v38, %s8698_s30  ;;  %v6524_v38 = vld [vmem:[#allocation5 + $0x168] sm:$0xff] }
 0x5b8   : > { %v6776_v6 = vpop.permute.xlu1 %6775 }
 0x5b9   : > { %6861 = vst.msk [vmem:[#allocation6 + $0x58] sm:$0xff] %vm6849_vm6, %v6776_v6  ;;  %v7543_v2 = vpop.permute.xlu0 %7542 }
 0x5ba   : > { %7631 = vst.msk [vmem:[#allocation6 + $0x40] sm:$0xff] %vm7622_vm10, %v7543_v2  ;;  %6988 = vrot.lane.b32.xlu1 %v6903_v47, %s8708_s29  ;;  %v7295_v2 = vld [vmem:[#allocation5 + $0x169] sm:$0xff] }
 0x5bb   : > { %7564 = vrot.lane.b32.xlu0 %v6903_v47, %s8702_s17  ;;  %v7103_v47 = vld [vmem:[#allocation5 + $0x170] sm:$0xff] }
 0x5bc   : > { %v7545_v29 = vpop.permute.xlu1 %7544 }
 0x5bd   : > { %7632 = vst.msk [vmem:[#allocation6 + $0x48] sm:$0xff] %vm7622_vm10, %v7545_v29  ;;  %v6967_v58 = vpop.permute.xlu0 %6966 }
 0x5be   : > { %7053 = vst.msk [vmem:[#allocation6 + $0x50] sm:$0xff] %vm7042_vm7, %v6967_v58  ;;  %6604 = vrot.lane.b32.xlu1 %v11567_v13, %s8707_s28 }
 0x5bf   : > { %7180 = vrot.lane.b32.xlu0 %v11567_v13, %s8701_s16 }
 0x5c0   : > { %v7161_v46 = vpop.permute.xlu1 %7160 }
 0x5c1   : > { %7247 = vst.msk [vmem:[#allocation6 + $0x50] sm:$0xff] %vm7236_vm8, %v7161_v46  ;;  %v6969_v17 = vpop.permute.xlu0 %6968  ;;  %v7663_v45 = vld [vmem:[#allocation6 + $0x40] sm:$0xff] }
 0x5c2   : > { %7054 = vst.msk [vmem:[#allocation6 + $0x58] sm:$0xff] %vm7042_vm7, %v6969_v17  ;;  %7373 = vrot.lane.b32.xlu1 %v7289_v33, %s8709_s14  ;;  %8603 = vmatprep.mubr.msk.f32.mxu1 %vm7692_vm11, %v7663_v45  ;;  %v7296_v45 = vld [vmem:[#allocation5 + $0x171] sm:$0xff] }
 0x5c3   : > { %7182 = vrot.lane.b32.xlu0 %v11561_v30, %s8701_s16 }
 0x5c4   : > { %v7354_v49 = vpop.permute.xlu1 %7353  ;;  %v7664_v16 = vld [vmem:[#allocation6 + $0x48] sm:$0xff] }
 0x5c5   : > { %7440 = vst.msk [vmem:[#allocation6 + $0x50] sm:$0xff] %vm7429_vm9, %v7354_v49  ;;  %8604 = vmatmul.mubr.msk.f32.gmra.mrb[24].mxu1 %vm7692_vm11, %v7664_v16  ;;  %v7163_v13 = vpop.permute.xlu0 %7162 }
 0x5c6   : > { %7248 = vst.msk [vmem:[#allocation6 + $0x58] sm:$0xff] %vm7236_vm8, %v7163_v13  ;;  %6797 = vrot.lane.b32.xlu1 %v7289_v33, %s8698_s30  ;;  %v7488_v33 = vld [vmem:[#allocation5 + $0x16a] sm:$0xff] }
 0x5c7   : > { %6606 = vrot.lane.b32.xlu0 %v11561_v30, %s8707_s28 }
 0x5c8   : > { %v7356_v34 = vpop.permute.xlu1 %7355 }
 0x5c9   : > { %7441 = vst.msk [vmem:[#allocation6 + $0x58] sm:$0xff] %vm7429_vm9, %v7356_v34  ;;  %v6778_v44 = vpop.permute.xlu0 %6777 }
 0x5ca   : > { %6862 = vst.msk [vmem:[#allocation6 + $0x60] sm:$0xff] %vm6849_vm6, %v6778_v44  ;;  %7566 = vrot.lane.b32.xlu1 %v7482_v4, %s8702_s17 }
 0x5cb   : > { %7375 = vrot.lane.b32.xlu0 %v7290_v0, %s8709_s14 }
 0x5cc   : > { %v6780_v42 = vpop.permute.xlu1 %6779 }
 0x5cd   : > { %6863 = vst.msk [vmem:[#allocation6 + $0x68] sm:$0xff] %vm6849_vm6, %v6780_v42  ;;  %v7547_v59 = vpop.permute.xlu0 %7546 }
 0x5ce   : > { %7633 = vst.msk [vmem:[#allocation6 + $0x50] sm:$0xff] %vm7622_vm10, %v7547_v59  ;;  %6990 = vrot.lane.b32.xlu1 %v7482_v4, %s8708_s29  ;;  %v6911_v4 = vld [vmem:[#allocation5 + $0x172] sm:$0xff] }
 0x5cf   : > { %6799 = vrot.lane.b32.xlu0 %v7290_v0, %s8698_s30 }
 0x5d0   : > { %v7549_v30 = vpop.permute.xlu1 %7548 }
 0x5d1   : > { %7634 = vst.msk [vmem:[#allocation6 + $0x58] sm:$0xff] %vm7622_vm10, %v7549_v30  ;;  %v6971_v62 = vpop.permute.xlu0 %6970  ;;  %v6526_v30 = vld [vmem:[#allocation5 + $0x180] sm:$0xff] }
 0x5d2   : > { %7055 = vst.msk [vmem:[#allocation6 + $0x60] sm:$0xff] %vm7042_vm7, %v6971_v62  ;;  %6992 = vrot.lane.b32.xlu1 %v6905_v36, %s8708_s29 }
 0x5d3   : > { %7568 = vrot.lane.b32.xlu0 %v6905_v36, %s8702_s17 }
 0x5d4   : > { %v7165_v19 = vpop.permute.xlu1 %7164 }
 0x5d5   : > { %7249 = vst.msk [vmem:[#allocation6 + $0x60] sm:$0xff] %vm7236_vm8, %v7165_v19  ;;  %v6973_v52 = vpop.permute.xlu0 %6972  ;;  %v7665_v43 = vld [vmem:[#allocation6 + $0x50] sm:$0xff] }
 0x5d6   : > { %7056 = vst.msk [vmem:[#allocation6 + $0x68] sm:$0xff] %vm7042_vm7, %v6973_v52  ;;  %6608 = vrot.lane.b32.xlu1 %v11583_v21, %s8707_s28  ;;  %8606 = vmatprep.mubr.msk.f32.mxu1 %vm7692_vm11, %v7665_v43  ;;  %v7297_v19 = vld [vmem:[#allocation5 + $0x181] sm:$0xff] }
 0x5d7   : > { %7184 = vrot.lane.b32.xlu0 %v11583_v21, %s8701_s16  ;;  %v7105_v52 = vld [vmem:[#allocation5 + $0x188] sm:$0xff] }
 0x5d8   : > { %v7358_v24 = vpop.permute.xlu1 %7357  ;;  %v7666_v31 = vld [vmem:[#allocation6 + $0x58] sm:$0xff] }
 0x5d9   : > { %7442 = vst.msk [vmem:[#allocation6 + $0x60] sm:$0xff] %vm7429_vm9, %v7358_v24  ;;  %8607 = vmatmul.mubr.msk.f32.gmra.mrb[26].mxu1 %vm7692_vm11, %v7666_v31  ;;  %v7167_v7 = vpop.permute.xlu0 %7166 }
 0x5da   : > { %7250 = vst.msk [vmem:[#allocation6 + $0x68] sm:$0xff] %vm7236_vm8, %v7167_v7  ;;  %7377 = vrot.lane.b32.xlu1 %v7291_v28, %s8709_s14 }
 0x5db   : > { %7186 = vrot.lane.b32.xlu0 %v11577_v54, %s8701_s16 }
 0x5dc   : > { %v7360_v18 = vpop.permute.xlu1 %7359 }
 0x5dd   : > { %7443 = vst.msk [vmem:[#allocation6 + $0x68] sm:$0xff] %vm7429_vm9, %v7360_v18  ;;  %v6782_v57 = vpop.permute.xlu0 %6781  ;;  %v7298_v18 = vld [vmem:[#allocation5 + $0x189] sm:$0xff] }
 0x5de   : > { %6864 = vst.msk [vmem:[#allocation6 + $0x70] sm:$0xff] %vm6849_vm6, %v6782_v57  ;;  %6801 = vrot.lane.b32.xlu1 %v7291_v28, %s8698_s30  ;;  %v7490_v28 = vld [vmem:[#allocation5 + $0x182] sm:$0xff] }
 0x5df   : > { %6610 = vrot.lane.b32.xlu0 %v11577_v54, %s8707_s28 }
 0x5e0   : > { %v6784_v21 = vpop.permute.xlu1 %6783 }
 0x5e1   : > { %6865 = vst.msk [vmem:[#allocation6 + $0x78] sm:$0xff] %vm6849_vm6, %v6784_v21  ;;  %v7551_v20 = vpop.permute.xlu0 %7550 }
 0x5e2   : > { %7635 = vst.msk [vmem:[#allocation6 + $0x60] sm:$0xff] %vm7622_vm10, %v7551_v20  ;;  %7570 = vrot.lane.b32.xlu1 %v7484_v56, %s8702_s17 }
 0x5e3   : > { %7379 = vrot.lane.b32.xlu0 %v7292_v8, %s8709_s14 }
 0x5e4   : > { %v7553_v60 = vpop.permute.xlu1 %7552 }
 0x5e5   : > { %7636 = vst.msk [vmem:[#allocation6 + $0x68] sm:$0xff] %vm7622_vm10, %v7553_v60  ;;  %v6975_v55 = vpop.permute.xlu0 %6974  ;;  %v6913_v60 = vld [vmem:[#allocation5 + $0x18a] sm:$0xff] }
 0x5e6   : > { %7057 = vst.msk [vmem:[#allocation6 + $0x70] sm:$0xff] %vm7042_vm7, %v6975_v55  ;;  %6994 = vrot.lane.b32.xlu1 %v7484_v56, %s8708_s29  ;;  %v7107_v55 = vld [vmem:[#allocation5 + $0x1a0] sm:$0xff] }
 0x5e7   : > { %6803 = vrot.lane.b32.xlu0 %v7292_v8, %s8698_s30 }
 0x5e8   : > { %v7169_v54 = vpop.permute.xlu1 %7168 }
 0x5e9   : > { %7251 = vst.msk [vmem:[#allocation6 + $0x70] sm:$0xff] %vm7236_vm8, %v7169_v54  ;;  %v6977_v51 = vpop.permute.xlu0 %6976  ;;  %v7667_v48 = vld [vmem:[#allocation6 + $0x60] sm:$0xff] }
 0x5ea   : > { %7058 = vst.msk [vmem:[#allocation6 + $0x78] sm:$0xff] %vm7042_vm7, %v6977_v51  ;;  %6996 = vrot.lane.b32.xlu1 %v6907_v1, %s8708_s29  ;;  %8609 = vmatprep.mubr.msk.f32.mxu1 %vm7692_vm11, %v7667_v48  ;;  %v7106_v51 = vld [vmem:[#allocation5 + $0x198] sm:$0xff] }
 0x5eb   : > { %7572 = vrot.lane.b32.xlu0 %v6907_v1, %s8702_s17 }
 0x5ec   : > { %v7362_v35 = vpop.permute.xlu1 %7361  ;;  %v7668_v39 = vld [vmem:[#allocation6 + $0x68] sm:$0xff] }
 0x5ed   : > { %7444 = vst.msk [vmem:[#allocation6 + $0x70] sm:$0xff] %vm7429_vm9, %v7362_v35  ;;  %8610 = vmatmul.mubr.msk.f32.gmra.mrb[28].mxu1 %vm7692_vm11, %v7668_v39  ;;  %v7171_v32 = vpop.permute.xlu0 %7170  ;;  %v7300_v35 = vld [vmem:[#allocation5 + $0x1a1] sm:$0xff] }
 0x5ee   : > { %7252 = vst.msk [vmem:[#allocation6 + $0x78] sm:$0xff] %vm7236_vm8, %v7171_v32  ;;  %6612 = vrot.lane.b32.xlu1 %v11597_v63, %s8707_s28  ;;  %v7299_v32 = vld [vmem:[#allocation5 + $0x199] sm:$0xff] }
 0x5ef   : > { %7188 = vrot.lane.b32.xlu0 %v11597_v63, %s8701_s16  ;;  %v6523_v63 = vld [vmem:[#allocation5 + $0x158] sm:$0xff] }
 0x5f0   : > { %v6786_v37 = vpop.permute.xlu1 %6785 }
 0x5f1   : > { %6866 = vst.msk [vmem:[#allocation6 + $0x80] sm:$0xff] %vm6849_vm6, %v6786_v37  ;;  %v6595_v12 = vpop.permute.xlu0 %6594 }
 0x5f2   : > { %6674 = vst.msk [vmem:[#allocation6 + $0x88] sm:$0xff] %vm6656_vm5, %v6595_v12  ;;  %7381 = vrot.lane.b32.xlu1 %v7293_v9, %s8709_s14  ;;  %v7493_v12 = vld [vmem:[#allocation5 + $0x1a2] sm:$0xff] }
 0x5f3   : > { %7190 = vrot.lane.b32.xlu0 %v11592_v5, %s8701_s16  ;;  %v7294_v5 = vld [vmem:[#allocation5 + $0x159] sm:$0xff] }
 0x5f4   : > { %v7555_v26 = vpop.permute.xlu1 %7554 }
 0x5f5   : > { %7637 = vst.msk [vmem:[#allocation6 + $0x70] sm:$0xff] %vm7622_vm10, %v7555_v26  ;;  %v7364_v15 = vpop.permute.xlu0 %7363  ;;  %v7492_v26 = vld [vmem:[#allocation5 + $0x19a] sm:$0xff] }
 0x5f6   : > { %7445 = vst.msk [vmem:[#allocation6 + $0x78] sm:$0xff] %vm7429_vm9, %v7364_v15  ;;  %6805 = vrot.lane.b32.xlu1 %v7293_v9, %s8698_s30 }
 0x5f7   : > { %6614 = vrot.lane.b32.xlu0 %v6523_v63, %s8707_s28 }
 0x5f8   : > { %v6979_v22 = vpop.permute.xlu1 %6978 }
 0x5f9   : > { %7059 = vst.msk [vmem:[#allocation6 + $0x80] sm:$0xff] %vm7042_vm7, %v6979_v22  ;;  %v6788_v27 = vpop.permute.xlu0 %6787 }
 0x5fa   : > { %6867 = vst.msk [vmem:[#allocation6 + $0x88] sm:$0xff] %vm6849_vm6, %v6788_v27  ;;  %7574 = vrot.lane.b32.xlu1 %v7486_v14, %s8702_s17 }
 0x5fb   : > { %7383 = vrot.lane.b32.xlu0 %v7294_v5, %s8709_s14 }
 0x5fc   : > { %v6981_v40 = vpop.permute.xlu1 %6980  ;;  %v7669_v61 = vld [vmem:[#allocation6 + $0x70] sm:$0xff] }
 0x5fd   : > { %7060 = vst.msk [vmem:[#allocation6 + $0x88] sm:$0xff] %vm7042_vm7, %v6981_v40  ;;  %8612 = vmatprep.mubr.msk.f32.mxu1 %vm7692_vm11, %v7669_v61  ;;  %v7557_v25 = vpop.permute.xlu0 %7556  ;;  %v12143_v40 = vld [vmem:[%s12364_s11] ss:$0 sm:$0xff] }
 0x5fe   : > { %7638 = vst.msk [vmem:[#allocation6 + $0x78] sm:$0xff] %vm7622_vm10, %v7557_v25  ;;  %6998 = vrot.lane.b32.xlu1 %v7486_v14, %s8708_s29 }
 0x5ff   : > { %6807 = vrot.lane.b32.xlu0 %v7294_v5, %s8698_s30 }
 0x600   : > { %v6597_v23 = vpop.permute.xlu1 %6596 }
 0x601   : > { %6675 = vst.msk [vmem:[#allocation6 + $0x90] sm:$0xff] %vm6656_vm5, %v6597_v23  ;;  %v7173_v41 = vpop.permute.xlu0 %7172  ;;  %v12148_v23 = vld [vmem:[%s12365_s12] ss:$0 sm:$0xff] }
 0x602   : > { %7253 = vst.msk [vmem:[#allocation6 + $0x80] sm:$0xff] %vm7236_vm8, %v7173_v41  ;;  %7000 = vrot.lane.b32.xlu1 %v6909_v53, %s8708_s29 }
 0x603   : > { %7576 = vrot.lane.b32.xlu0 %v6909_v53, %s8702_s17 }
 0x604   : > { %v7366_v10 = vpop.permute.xlu1 %7365 }
 0x605   : > { %7446 = vst.msk [vmem:[#allocation6 + $0x80] sm:$0xff] %vm7429_vm9, %v7366_v10  ;;  %v7175_v3 = vpop.permute.xlu0 %7174  ;;  %v7670_v50 = vld [vmem:[#allocation6 + $0x78] sm:$0xff] }
 0x606   : > { %7254 = vst.msk [vmem:[#allocation6 + $0x88] sm:$0xff] %vm7236_vm8, %v7175_v3  ;;  %6616 = vrot.lane.b32.xlu1 %v6524_v38, %s8707_s28  ;;  %8613 = vmatmul.mubr.msk.f32.gmra.mrb[30].mxu1 %vm7692_vm11, %v7670_v50 }
 0x607   : > { %7192 = vrot.lane.b32.xlu0 %v6524_v38, %s8701_s16 }
 0x608   : > { %v6790_v11 = vpop.permute.xlu1 %6789 }
 0x609   : > { %6868 = vst.msk [vmem:[#allocation6 + $0x90] sm:$0xff] %vm6849_vm6, %v6790_v11  ;;  %v6599_v6 = vpop.permute.xlu0 %6598 }
 0x60a   : > { %6676 = vst.msk [vmem:[#allocation6 + $0x98] sm:$0xff] %vm6656_vm5, %v6599_v6  ;;  %7385 = vrot.lane.b32.xlu1 %v7295_v2, %s8709_s14 }
 0x60b   : > { %7194 = vrot.lane.b32.xlu0 %v7103_v47, %s8701_s16 }
 0x60c   : > { %v7559_v29 = vpop.permute.xlu1 %7558 }
 0x60d   : > { %7639 = vst.msk [vmem:[#allocation6 + $0x80] sm:$0xff] %vm7622_vm10, %v7559_v29  ;;  %v7368_v58 = vpop.permute.xlu0 %7367 }
 0x60e   : > { %7447 = vst.msk [vmem:[#allocation6 + $0x88] sm:$0xff] %vm7429_vm9, %v7368_v58  ;;  %6809 = vrot.lane.b32.xlu1 %v7295_v2, %s8698_s30 }
 0x60f   : > { %6618 = vrot.lane.b32.xlu0 %v7103_v47, %s8707_s28 }
 0x610   : > { %v6983_v46 = vpop.permute.xlu1 %6982 }
 0x611   : > { %7061 = vst.msk [vmem:[#allocation6 + $0x90] sm:$0xff] %vm7042_vm7, %v6983_v46  ;;  %v6792_v17 = vpop.permute.xlu0 %6791 }
 0x612   : > { %6869 = vst.msk [vmem:[#allocation6 + $0x98] sm:$0xff] %vm6849_vm6, %v6792_v17  ;;  %7578 = vrot.lane.b32.xlu1 %v7488_v33, %s8702_s17 }
 0x613   : > { %7387 = vrot.lane.b32.xlu0 %v7296_v45, %s8709_s14 }
 0x614   : > { %v6985_v49 = vpop.permute.xlu1 %6984  ;;  %v7671_v16 = vld [vmem:[#allocation6 + $0x80] sm:$0xff] }
 0x615   : > { %7062 = vst.msk [vmem:[#allocation6 + $0x98] sm:$0xff] %vm7042_vm7, %v6985_v49  ;;  %8615 = vmatprep.mubr.msk.f32.mxu1 %vm7692_vm11, %v7671_v16  ;;  %v7561_v13 = vpop.permute.xlu0 %7560 }
 0x616   : > { %7640 = vst.msk [vmem:[#allocation6 + $0x88] sm:$0xff] %vm7622_vm10, %v7561_v13  ;;  %7002 = vrot.lane.b32.xlu1 %v7488_v33, %s8708_s29 }
 0x617   : > { %6811 = vrot.lane.b32.xlu0 %v7296_v45, %s8698_s30 }
 0x618   : > { %v6601_v34 = vpop.permute.xlu1 %6600 }
 0x619   : > { %6677 = vst.msk [vmem:[#allocation6 + $0xa0] sm:$0xff] %vm6656_vm5, %v6601_v34  ;;  %v7177_v44 = vpop.permute.xlu0 %7176 }
 0x61a   : > { %7255 = vst.msk [vmem:[#allocation6 + $0x90] sm:$0xff] %vm7236_vm8, %v7177_v44  ;;  %7004 = vrot.lane.b32.xlu1 %v6911_v4, %s8708_s29 }
 0x61b   : > { %7580 = vrot.lane.b32.xlu0 %v6911_v4, %s8702_s17 }
 0x61c   : > { %v7370_v0 = vpop.permute.xlu1 %7369 }
 0x61d   : > { %7448 = vst.msk [vmem:[#allocation6 + $0x90] sm:$0xff] %vm7429_vm9, %v7370_v0  ;;  %v7179_v42 = vpop.permute.xlu0 %7178  ;;  %v7672_v59 = vld [vmem:[#allocation6 + $0x88] sm:$0xff] }
 0x61e   : > { %7256 = vst.msk [vmem:[#allocation6 + $0x98] sm:$0xff] %vm7236_vm8, %v7179_v42  ;;  %8616 = vmatmul.mubr.msk.f32.gmra.mrb[32].mxu1 %vm7692_vm11, %v7672_v59  ;;  %6620 = vrot.lane.b32.xlu1 %v6526_v30, %s8707_s28 }
 0x61f   : > { %7196 = vrot.lane.b32.xlu0 %v6526_v30, %s8701_s16 }
 0x620   : > { %v6794_v62 = vpop.permute.xlu1 %6793 }
 0x621   : > { %6870 = vst.msk [vmem:[#allocation6 + $0xa0] sm:$0xff] %vm6849_vm6, %v6794_v62  ;;  %v6603_v36 = vpop.permute.xlu0 %6602 }
 0x622   : > { %6678 = vst.msk [vmem:[#allocation6 + $0xa8] sm:$0xff] %vm6656_vm5, %v6603_v36  ;;  %7389 = vrot.lane.b32.xlu1 %v7297_v19, %s8709_s14 }
 0x623   : > { %7198 = vrot.lane.b32.xlu0 %v7105_v52, %s8701_s16 }
 0x624   : > { %v7563_v43 = vpop.permute.xlu1 %7562 }
 0x625   : > { %7641 = vst.msk [vmem:[#allocation6 + $0x90] sm:$0xff] %vm7622_vm10, %v7563_v43  ;;  %v7372_v24 = vpop.permute.xlu0 %7371 }
 0x626   : > { %7449 = vst.msk [vmem:[#allocation6 + $0x98] sm:$0xff] %vm7429_vm9, %v7372_v24  ;;  %6813 = vrot.lane.b32.xlu1 %v7297_v19, %s8698_s30 }
 0x627   : > { %6622 = vrot.lane.b32.xlu0 %v7105_v52, %s8707_s28 }
 0x628   : > { %v6987_v31 = vpop.permute.xlu1 %6986 }
 0x629   : > { %7063 = vst.msk [vmem:[#allocation6 + $0xa0] sm:$0xff] %vm7042_vm7, %v6987_v31  ;;  %v6796_v7 = vpop.permute.xlu0 %6795 }
 0x62a   : > { %6871 = vst.msk [vmem:[#allocation6 + $0xa8] sm:$0xff] %vm6849_vm6, %v6796_v7  ;;  %7582 = vrot.lane.b32.xlu1 %v7490_v28, %s8702_s17 }
 0x62b   : > { %7391 = vrot.lane.b32.xlu0 %v7298_v18, %s8709_s14 }
 0x62c   : > { %v6989_v57 = vpop.permute.xlu1 %6988  ;;  %v7673_v21 = vld [vmem:[#allocation6 + $0x90] sm:$0xff] }
 0x62d   : > { %7064 = vst.msk [vmem:[#allocation6 + $0xa8] sm:$0xff] %vm7042_vm7, %v6989_v57  ;;  %8618 = vmatprep.mubr.msk.f32.mxu1 %vm7692_vm11, %v7673_v21  ;;  %v7565_v20 = vpop.permute.xlu0 %7564 }
 0x62e   : > { %7642 = vst.msk [vmem:[#allocation6 + $0x98] sm:$0xff] %vm7622_vm10, %v7565_v20  ;;  %7006 = vrot.lane.b32.xlu1 %v7490_v28, %s8708_s29 }
 0x62f   : > { %6815 = vrot.lane.b32.xlu0 %v7298_v18, %s8698_s30 }
 0x630   : > { %v6605_v56 = vpop.permute.xlu1 %6604 }
 0x631   : > { %6679 = vst.msk [vmem:[#allocation6 + $0xb0] sm:$0xff] %vm6656_vm5, %v6605_v56  ;;  %v7181_v8 = vpop.permute.xlu0 %7180 }
 0x632   : > { %7257 = vst.msk [vmem:[#allocation6 + $0xa0] sm:$0xff] %vm7236_vm8, %v7181_v8  ;;  %7008 = vrot.lane.b32.xlu1 %v6913_v60, %s8708_s29 }
 0x633   : > { %7584 = vrot.lane.b32.xlu0 %v6913_v60, %s8702_s17 }
 0x634   : > { %v7374_v54 = vpop.permute.xlu1 %7373 }
 0x635   : > { %7450 = vst.msk [vmem:[#allocation6 + $0xa0] sm:$0xff] %vm7429_vm9, %v7374_v54  ;;  %v7183_v1 = vpop.permute.xlu0 %7182  ;;  %v7674_v48 = vld [vmem:[#allocation6 + $0x98] sm:$0xff] }
 0x636   : > { %7258 = vst.msk [vmem:[#allocation6 + $0xa8] sm:$0xff] %vm7236_vm8, %v7183_v1  ;;  %8619 = vmatmul.mubr.msk.f32.gmra.mrb[34].mxu1 %vm7692_vm11, %v7674_v48  ;;  %7202 = vrot.lane.b32.xlu1 %v7107_v55, %s8701_s16 }
 0x637   : > { %7200 = vrot.lane.b32.xlu0 %v7106_v51, %s8701_s16 }
 0x638   : > { %v6798_v39 = vpop.permute.xlu1 %6797 }
 0x639   : > { %6872 = vst.msk [vmem:[#allocation6 + $0xb0] sm:$0xff] %vm6849_vm6, %v6798_v39  ;;  %v6607_v37 = vpop.permute.xlu0 %6606 }
 0x63a   : > { %6680 = vst.msk [vmem:[#allocation6 + $0xb8] sm:$0xff] %vm6656_vm5, %v6607_v37  ;;  %7395 = vrot.lane.b32.xlu1 %v7300_v35, %s8709_s14 }
 0x63b   : > { %7393 = vrot.lane.b32.xlu0 %v7299_v32, %s8709_s14 }
 0x63c   : > { %v7567_v9 = vpop.permute.xlu1 %7566 }
 0x63d   : > { %7643 = vst.msk [vmem:[#allocation6 + $0xa0] sm:$0xff] %vm7622_vm10, %v7567_v9  ;;  %v7376_v15 = vpop.permute.xlu0 %7375 }
 0x63e   : > { %7451 = vst.msk [vmem:[#allocation6 + $0xa8] sm:$0xff] %vm7429_vm9, %v7376_v15  ;;  %7588 = vrot.lane.b32.xlu1 %v7493_v12, %s8702_s17 }
 0x63f   : > { %7586 = vrot.lane.b32.xlu0 %v7492_v26, %s8702_s17 }
 0x640   : > { %v6991_v63 = vpop.permute.xlu1 %6990 }
 0x641   : > { %7065 = vst.msk [vmem:[#allocation6 + $0xb0] sm:$0xff] %vm7042_vm7, %v6991_v63  ;;  %v6800_v22 = vpop.permute.xlu0 %6799 }
 0x642   : > { %6873 = vst.msk [vmem:[#allocation6 + $0xb8] sm:$0xff] %vm6849_vm6, %v6800_v22 }
 0x644   : > { %v6993_v27 = vpop.permute.xlu1 %6992  ;;  %v7675_v14 = vld [vmem:[#allocation6 + $0xa0] sm:$0xff] }
 0x645   : > { %7066 = vst.msk [vmem:[#allocation6 + $0xb8] sm:$0xff] %vm7042_vm7, %v6993_v27  ;;  %8621 = vmatprep.mubr.msk.f32.mxu1 %vm7692_vm11, %v7675_v14  ;;  %v7569_v5 = vpop.permute.xlu0 %7568 }
 0x646   : > { %7644 = vst.msk [vmem:[#allocation6 + $0xa8] sm:$0xff] %vm7622_vm10, %v7569_v5 }
 0x648   : > { %v6609_v61 = vpop.permute.xlu1 %6608  ;;  %v8593_v25 = vpop.f32.mrb[16].mxu1 }
 0x649   : > { %6681 = vst.msk [vmem:[#allocation6 + $0xc0] sm:$0xff] %vm6656_vm5, %v6609_v61  ;;  %v8026_v41 = vmul.f32 %v8593_v25, %v12143_v40  ;;  %v7859_v53 = vpop.f32.mrb[17].mxu1  ;;  %v7185_v10 = vpop.permute.xlu0 %7184 }
 0x64a   : > { %v8025_v3 = vmul.f32 %v12143_v40, %v7859_v53  ;;  %7259 = vst.msk [vmem:[#allocation6 + $0xb0] sm:$0xff] %vm7236_vm8, %v7185_v10 }
 0x64b   : > { %v8065_v38 = vadd.f32 %v12148_v23, %v8026_v41 }
 0x64c   : > { %v8064_v50 = vadd.f32 %v12148_v23, %v8025_v3  ;;  %v7378_v11 = vpop.permute.xlu1 %7377 }
 0x64d   : > { %v8097_v6 = vmax.f32 %v8065_v38, 0.0  ;;  %7452 = vst.msk [vmem:[#allocation6 + $0xb0] sm:$0xff] %vm7429_vm9, %v7378_v11  ;;  %v7187_v2 = vpop.permute.xlu0 %7186  ;;  %v7676_v47 = vld [vmem:[#allocation6 + $0xa8] sm:$0xff] }
 0x64e   : > { %v8096_v29 = vmax.f32 %v8064_v50, 0.0  ;;  %7260 = vst.msk [vmem:[#allocation6 + $0xb8] sm:$0xff] %vm7236_vm8, %v7187_v2  ;;  %8622 = vmatmul.mubr.msk.f32.gmra.mrb[36].mxu1 %vm7692_vm11, %v7676_v47 }
 0x64f   : > { %8129 = vst.msk [vmem:[%s12160_s27 + $0x8] sm:$0xff] %vm2232_vm4, %v8097_v6 }
 0x650   : > { %8128 = vst.msk [vmem:[%s12160_s27] sm:$0xff] %vm2232_vm4, %v8096_v29  ;;  %v6802_v58 = vpop.permute.xlu1 %6801 }
 0x651   : > { %6874 = vst.msk [vmem:[#allocation6 + $0xc0] sm:$0xff] %vm6849_vm6, %v6802_v58  ;;  %v6611_v46 = vpop.permute.xlu0 %6610 }
 0x652   : > { %6682 = vst.msk [vmem:[#allocation6 + $0xc8] sm:$0xff] %vm6656_vm5, %v6611_v46 }
 0x654   : > { %v7571_v17 = vpop.permute.xlu1 %7570 }
 0x655   : > { %7645 = vst.msk [vmem:[#allocation6 + $0xb0] sm:$0xff] %vm7622_vm10, %v7571_v17  ;;  %v7380_v33 = vpop.permute.xlu0 %7379 }
 0x656   : > { %7453 = vst.msk [vmem:[#allocation6 + $0xb8] sm:$0xff] %vm7429_vm9, %v7380_v33 }
 0x658   : > { %v6995_v45 = vpop.permute.xlu1 %6994 }
 0x659   : > { %7067 = vst.msk [vmem:[#allocation6 + $0xc0] sm:$0xff] %vm7042_vm7, %v6995_v45  ;;  %v6804_v49 = vpop.permute.xlu0 %6803 }
 0x65a   : > { %6875 = vst.msk [vmem:[#allocation6 + $0xc8] sm:$0xff] %vm6849_vm6, %v6804_v49 }
 0x65c   : > { %v6997_v16 = vpop.permute.xlu1 %6996  ;;  %v8596_v13 = vpop.f32.mrb[18].mxu1  ;;  %v7677_v34 = vld [vmem:[#allocation6 + $0xb0] sm:$0xff] }
 0x65d   : > { %7068 = vst.msk [vmem:[#allocation6 + $0xc8] sm:$0xff] %vm7042_vm7, %v6997_v16  ;;  %v8028_v44 = vmul.f32 %v8596_v13, %v12143_v40  ;;  %v7869_v4 = vpop.f32.mrb[19].mxu1  ;;  %8624 = vmatprep.mubr.msk.f32.mxu1 %vm7692_vm11, %v7677_v34  ;;  %v7573_v0 = vpop.permute.xlu0 %7572 }
 0x65e   : > { %v8027_v42 = vmul.f32 %v12143_v40, %v7869_v4  ;;  %7646 = vst.msk [vmem:[#allocation6 + $0xb8] sm:$0xff] %vm7622_vm10, %v7573_v0 }
 0x65f   : > { %v8067_v59 = vadd.f32 %v12148_v23, %v8028_v44 }
 0x660   : > { %v8066_v30 = vadd.f32 %v12148_v23, %v8027_v42  ;;  %v6613_v62 = vpop.permute.xlu1 %6612 }
 0x661   : > { %v8099_v36 = vmax.f32 %v8067_v59, 0.0  ;;  %6683 = vst.msk [vmem:[#allocation6 + $0xd0] sm:$0xff] %vm6656_vm5, %v6613_v62  ;;  %v7189_v19 = vpop.permute.xlu0 %7188 }
 0x662   : > { %v8098_v52 = vmax.f32 %v8066_v30, 0.0  ;;  %7261 = vst.msk [vmem:[#allocation6 + $0xc0] sm:$0xff] %vm7236_vm8, %v7189_v19 }
 0x663   : > { %8131 = vst.msk [vmem:[%s12160_s27 + $0x18] sm:$0xff] %vm2232_vm4, %v8099_v36 }
 0x664   : > { %8130 = vst.msk [vmem:[%s12160_s27 + $0x10] sm:$0xff] %vm2232_vm4, %v8098_v52  ;;  %v7382_v43 = vpop.permute.xlu1 %7381 }
 0x665   : > { %7454 = vst.msk [vmem:[#allocation6 + $0xc0] sm:$0xff] %vm7429_vm9, %v7382_v43  ;;  %v7191_v24 = vpop.permute.xlu0 %7190  ;;  %v7678_v31 = vld [vmem:[#allocation6 + $0xb8] sm:$0xff] }
 0x666   : > { %7262 = vst.msk [vmem:[#allocation6 + $0xc8] sm:$0xff] %vm7236_vm8, %v7191_v24  ;;  %8625 = vmatmul.mubr.msk.f32.gmra.mrb[38].mxu1 %vm7692_vm11, %v7678_v31 }
 0x668   : > { %v6806_v7 = vpop.permute.xlu1 %6805 }
 0x669   : > { %6876 = vst.msk [vmem:[#allocation6 + $0xd0] sm:$0xff] %vm6849_vm6, %v6806_v7  ;;  %v6615_v28 = vpop.permute.xlu0 %6614 }
 0x66a   : > { %6684 = vst.msk [vmem:[#allocation6 + $0xd8] sm:$0xff] %vm6656_vm5, %v6615_v28 }
 0x66c   : > { %v7575_v18 = vpop.permute.xlu1 %7574 }
 0x66d   : > { %7647 = vst.msk [vmem:[#allocation6 + $0xc0] sm:$0xff] %vm7622_vm10, %v7575_v18  ;;  %v7384_v57 = vpop.permute.xlu0 %7383 }
 0x66e   : > { %7455 = vst.msk [vmem:[#allocation6 + $0xc8] sm:$0xff] %vm7429_vm9, %v7384_v57 }
 0x670   : > { %v6999_v21 = vpop.permute.xlu1 %6998  ;;  %v8599_v20 = vpop.f32.mrb[20].mxu1 }
 0x671   : > { %7069 = vst.msk [vmem:[#allocation6 + $0xd0] sm:$0xff] %vm7042_vm7, %v6999_v21  ;;  %v8030_v56 = vmul.f32 %v8599_v20, %v12143_v40  ;;  %v7879_v8 = vpop.f32.mrb[21].mxu1  ;;  %v6808_v60 = vpop.permute.xlu0 %6807 }
 0x672   : > { %v8029_v55 = vmul.f32 %v12143_v40, %v7879_v8  ;;  %6877 = vst.msk [vmem:[#allocation6 + $0xd8] sm:$0xff] %vm6849_vm6, %v6808_v60 }
 0x673   : > { %v8069_v54 = vadd.f32 %v12148_v23, %v8030_v56 }
 0x674   : > { %v8068_v51 = vadd.f32 %v12148_v23, %v8029_v55  ;;  %v7001_v1 = vpop.permute.xlu1 %7000  ;;  %v7679_v48 = vld [vmem:[#allocation6 + $0xc0] sm:$0xff] }
 0x675   : > { %v8101_v35 = vmax.f32 %v8069_v54, 0.0  ;;  %7070 = vst.msk [vmem:[#allocation6 + $0xd8] sm:$0xff] %vm7042_vm7, %v7001_v1  ;;  %8627 = vmatprep.mubr.msk.f32.mxu1 %vm7692_vm11, %v7679_v48  ;;  %v7577_v39 = vpop.permute.xlu0 %7576 }
 0x676   : > { %v8100_v32 = vmax.f32 %v8068_v51, 0.0  ;;  %7648 = vst.msk [vmem:[#allocation6 + $0xc8] sm:$0xff] %vm7622_vm10, %v7577_v39 }
 0x677   : > { %8133 = vst.msk [vmem:[%s12160_s27 + $0x28] sm:$0xff] %vm2232_vm4, %v8101_v35 }
 0x678   : > { %8132 = vst.msk [vmem:[%s12160_s27 + $0x20] sm:$0xff] %vm2232_vm4, %v8100_v32  ;;  %v6617_v37 = vpop.permute.xlu1 %6616 }
 0x679   : > { %6685 = vst.msk [vmem:[#allocation6 + $0xe0] sm:$0xff] %vm6656_vm5, %v6617_v37  ;;  %v7193_v12 = vpop.permute.xlu0 %7192 }
 0x67a   : > { %7263 = vst.msk [vmem:[#allocation6 + $0xd0] sm:$0xff] %vm7236_vm8, %v7193_v12 }
 0x67c   : > { %v7386_v9 = vpop.permute.xlu1 %7385 }
 0x67d   : > { %7456 = vst.msk [vmem:[#allocation6 + $0xd0] sm:$0xff] %vm7429_vm9, %v7386_v9  ;;  %v7195_v26 = vpop.permute.xlu0 %7194  ;;  %v7680_v15 = vld [vmem:[#allocation6 + $0xc8] sm:$0xff] }
 0x67e   : > { %7264 = vst.msk [vmem:[#allocation6 + $0xd8] sm:$0xff] %vm7236_vm8, %v7195_v26  ;;  %8628 = vmatmul.mubr.msk.f32.gmra.mrb[40].mxu1 %vm7692_vm11, %v7680_v15 }
 0x680   : > { %v6810_v63 = vpop.permute.xlu1 %6809 }
 0x681   : > { %6878 = vst.msk [vmem:[#allocation6 + $0xe0] sm:$0xff] %vm6849_vm6, %v6810_v63  ;;  %v6619_v22 = vpop.permute.xlu0 %6618 }
 0x682   : > { %6686 = vst.msk [vmem:[#allocation6 + $0xe8] sm:$0xff] %vm6656_vm5, %v6619_v22 }
 0x684   : > { %v7579_v27 = vpop.permute.xlu1 %7578  ;;  %v8602_v14 = vpop.f32.mrb[22].mxu1 }
 0x685   : > { %7649 = vst.msk [vmem:[#allocation6 + $0xd0] sm:$0xff] %vm7622_vm10, %v7579_v27  ;;  %v8032_v5 = vmul.f32 %v8602_v14, %v12143_v40  ;;  %v7889_v61 = vpop.f32.mrb[23].mxu1  ;;  %v7388_v25 = vpop.permute.xlu0 %7387 }
 0x686   : > { %v8031_v41 = vmul.f32 %v12143_v40, %v7889_v61  ;;  %7457 = vst.msk [vmem:[#allocation6 + $0xd8] sm:$0xff] %vm7429_vm9, %v7388_v25 }
 0x687   : > { %v8071_v53 = vadd.f32 %v12148_v23, %v8032_v5 }
 0x688   : > { %v8070_v10 = vadd.f32 %v12148_v23, %v8031_v41  ;;  %v7003_v3 = vpop.permute.xlu1 %7002 }
 0x689   : > { %v8103_v38 = vmax.f32 %v8071_v53, 0.0  ;;  %7071 = vst.msk [vmem:[#allocation6 + $0xe0] sm:$0xff] %vm7042_vm7, %v7003_v3  ;;  %v6812_v50 = vpop.permute.xlu0 %6811 }
 0x68a   : > { %v8102_v11 = vmax.f32 %v8070_v10, 0.0  ;;  %6879 = vst.msk [vmem:[#allocation6 + $0xe8] sm:$0xff] %vm6849_vm6, %v6812_v50 }
 0x68b   : > { %8135 = vst.msk [vmem:[%s12160_s27 + $0x38] sm:$0xff] %vm2232_vm4, %v8103_v38 }
 0x68c   : > { %8134 = vst.msk [vmem:[%s12160_s27 + $0x30] sm:$0xff] %vm2232_vm4, %v8102_v11  ;;  %v7005_v6 = vpop.permute.xlu1 %7004  ;;  %v7681_v2 = vld [vmem:[#allocation6 + $0xd0] sm:$0xff] }
 0x68d   : > { %7072 = vst.msk [vmem:[#allocation6 + $0xe8] sm:$0xff] %vm7042_vm7, %v7005_v6  ;;  %8630 = vmatprep.mubr.msk.f32.mxu1 %vm7692_vm11, %v7681_v2  ;;  %v7581_v47 = vpop.permute.xlu0 %7580 }
 0x68e   : > { %7650 = vst.msk [vmem:[#allocation6 + $0xd8] sm:$0xff] %vm7622_vm10, %v7581_v47 }
 0x690   : > { %v6621_v29 = vpop.permute.xlu1 %6620 }
 0x691   : > { %6687 = vst.msk [vmem:[#allocation6 + $0xf0] sm:$0xff] %vm6656_vm5, %v6621_v29  ;;  %v7197_v58 = vpop.permute.xlu0 %7196 }
 0x692   : > { %7265 = vst.msk [vmem:[#allocation6 + $0xe0] sm:$0xff] %vm7236_vm8, %v7197_v58 }
 0x694   : > { %v7390_v46 = vpop.permute.xlu1 %7389 }
 0x695   : > { %7458 = vst.msk [vmem:[#allocation6 + $0xe0] sm:$0xff] %vm7429_vm9, %v7390_v46  ;;  %v7199_v17 = vpop.permute.xlu0 %7198  ;;  %v7682_v33 = vld [vmem:[#allocation6 + $0xd8] sm:$0xff] }
 0x696   : > { %7266 = vst.msk [vmem:[#allocation6 + $0xe8] sm:$0xff] %vm7236_vm8, %v7199_v17  ;;  %8631 = vmatmul.mubr.msk.f32.gmra.mrb[42].mxu1 %vm7692_vm11, %v7682_v33 }
 0x698   : > { %v8605_v45 = vpop.f32.mrb[24].mxu1  ;;  %v6814_v49 = vpop.permute.xlu1 %6813 }
 0x699   : > { %v8034_v16 = vmul.f32 %v8605_v45, %v12143_v40  ;;  %6880 = vst.msk [vmem:[#allocation6 + $0xf0] sm:$0xff] %vm6849_vm6, %v6814_v49  ;;  %v7899_v13 = vpop.f32.mrb[25].mxu1  ;;  %v6623_v34 = vpop.permute.xlu0 %6622 }
 0x69a   : > { %v8033_v44 = vmul.f32 %v12143_v40, %v7899_v13  ;;  %6688 = vst.msk [vmem:[#allocation6 + $0xf8] sm:$0xff] %vm6656_vm5, %v6623_v34 }
 0x69b   : > { %v8073_v4 = vadd.f32 %v12148_v23, %v8034_v16 }
 0x69c   : > { %v8072_v0 = vadd.f32 %v12148_v23, %v8033_v44  ;;  %v7583_v42 = vpop.permute.xlu1 %7582 }
 0x69d   : > { %v8105_v59 = vmax.f32 %v8073_v4, 0.0  ;;  %7651 = vst.msk [vmem:[#allocation6 + $0xe0] sm:$0xff] %vm7622_vm10, %v7583_v42  ;;  %v7392_v30 = vpop.permute.xlu0 %7391 }
 0x69e   : > { %v8104_v62 = vmax.f32 %v8072_v0, 0.0  ;;  %7459 = vst.msk [vmem:[#allocation6 + $0xe8] sm:$0xff] %vm7429_vm9, %v7392_v30 }
 0x69f   : > { %8137 = vst.msk [vmem:[%s12160_s27 + $0x48] sm:$0xff] %vm2232_vm4, %v8105_v59 }
 0x6a0   : > { %8136 = vst.msk [vmem:[%s12160_s27 + $0x40] sm:$0xff] %vm2232_vm4, %v8104_v62  ;;  %v7007_v36 = vpop.permute.xlu1 %7006 }
 0x6a1   : > { %7073 = vst.msk [vmem:[#allocation6 + $0xf0] sm:$0xff] %vm7042_vm7, %v7007_v36  ;;  %v6816_v19 = vpop.permute.xlu0 %6815 }
 0x6a2   : > { %6881 = vst.msk [vmem:[#allocation6 + $0xf8] sm:$0xff] %vm6849_vm6, %v6816_v19 }
 0x6a4   : > { %v7009_v52 = vpop.permute.xlu1 %7008  ;;  %v7683_v43 = vld [vmem:[#allocation6 + $0xe0] sm:$0xff] }
 0x6a5   : > { %7074 = vst.msk [vmem:[#allocation6 + $0xf8] sm:$0xff] %vm7042_vm7, %v7009_v52  ;;  %v7585_v24 = vpop.permute.xlu0 %7584  ;;  %8633 = vmatprep.mubr.msk.f32.mxu1 %vm7692_vm11, %v7683_v43 }
 0x6a6   : > { %7652 = vst.msk [vmem:[#allocation6 + $0xe8] sm:$0xff] %vm7622_vm10, %v7585_v24 }
 0x6a8   : > { %v7203_v31 = vpop.permute.xlu1 %7202 }
 0x6a9   : > { %v7201_v7 = vpop.permute.xlu0 %7200  ;;  %7268 = vst.msk [vmem:[#allocation6 + $0xf8] sm:$0xff] %vm7236_vm8, %v7203_v31 }
 0x6aa   : > { %7267 = vst.msk [vmem:[#allocation6 + $0xf0] sm:$0xff] %vm7236_vm8, %v7201_v7 }
 0x6ac   : > { %v8608_v28 = vpop.f32.mrb[26].mxu1  ;;  %v7396_v18 = vpop.permute.xlu1 %7395 }
 0x6ad   : > { %v8036_v57 = vmul.f32 %v8608_v28, %v12143_v40  ;;  %v7909_v21 = vpop.f32.mrb[27].mxu1  ;;  %v7394_v20 = vpop.permute.xlu0 %7393  ;;  %v7684_v56 = vld [vmem:[#allocation6 + $0xe8] sm:$0xff]  ;;  %7461 = vst.msk [vmem:[#allocation6 + $0xf8] sm:$0xff] %vm7429_vm9, %v7396_v18 }
 0x6ae   : > { %v8035_v8 = vmul.f32 %v12143_v40, %v7909_v21  ;;  %7460 = vst.msk [vmem:[#allocation6 + $0xf0] sm:$0xff] %vm7429_vm9, %v7394_v20  ;;  %8634 = vmatmul.mubr.msk.f32.gmra.mrb[44].mxu1 %vm7692_vm11, %v7684_v56 }
 0x6af   : > { %v8075_v60 = vadd.f32 %v12148_v23, %v8036_v57 }
 0x6b0   : > { %v8074_v55 = vadd.f32 %v12148_v23, %v8035_v8  ;;  %v7589_v54 = vpop.permute.xlu1 %7588 }
 0x6b1   : > { %v8107_v51 = vmax.f32 %v8075_v60, 0.0  ;;  %v7587_v1 = vpop.permute.xlu0 %7586  ;;  %7654 = vst.msk [vmem:[#allocation6 + $0xf8] sm:$0xff] %vm7622_vm10, %v7589_v54 }
 0x6b2   : > { %v8106_v48 = vmax.f32 %v8074_v55, 0.0  ;;  %7653 = vst.msk [vmem:[#allocation6 + $0xf0] sm:$0xff] %vm7622_vm10, %v7587_v1 }
 0x6b3   : > { %8139 = vst.msk [vmem:[%s12160_s27 + $0x58] sm:$0xff] %vm2232_vm4, %v8107_v51 }
 0x6b4   : > { %8138 = vst.msk [vmem:[%s12160_s27 + $0x50] sm:$0xff] %vm2232_vm4, %v8106_v48 }
 0x6b8   : > { %v7686_v35 = vld [vmem:[#allocation6 + $0xf8] sm:$0xff] }
 0x6b9   : > { %v7685_v39 = vld [vmem:[#allocation6 + $0xf0] sm:$0xff] }
 0x6ba   : > { %8636 = vmatprep.mubr.msk.f32.mxu1 %vm7692_vm11, %v7685_v39 }
 0x6bb   : > { %8637 = vmatmul.mubr.msk.f32.gmra.mrb[46].mxu1 %vm7692_vm11, %v7686_v35 }
 0x6c0   : > { %v8611_v32 = vpop.f32.mrb[28].mxu1 }
 0x6c1   : > { %v8038_v37 = vmul.f32 %v8611_v32, %v12143_v40  ;;  %v7919_v12 = vpop.f32.mrb[29].mxu1 }
 0x6c2   : > { %v8037_v9 = vmul.f32 %v12143_v40, %v7919_v12 }
 0x6c3   : > { %v8077_v26 = vadd.f32 %v12148_v23, %v8038_v37 }
 0x6c4   : > { %v8076_v15 = vadd.f32 %v12148_v23, %v8037_v9 }
 0x6c5   : > { %v8109_v63 = vmax.f32 %v8077_v26, 0.0 }
 0x6c6   : > { %v8108_v22 = vmax.f32 %v8076_v15, 0.0 }
 0x6c7   : > { %8141 = vst.msk [vmem:[%s12160_s27 + $0x68] sm:$0xff] %vm2232_vm4, %v8109_v63 }
 0x6c8   : > { %8140 = vst.msk [vmem:[%s12160_s27 + $0x60] sm:$0xff] %vm2232_vm4, %v8108_v22 }
 0x6d9   : > { %v8614_v27 = vpop.f32.mrb[30].mxu1 }
 0x6da   : > { %v8040_v14 = vmul.f32 %v8614_v27, %v12143_v40  ;;  %v7929_v5 = vpop.f32.mrb[31].mxu1 }
 0x6db   : > { %v8039_v61 = vmul.f32 %v12143_v40, %v7929_v5 }
 0x6dc   : > { %v8079_v25 = vadd.f32 %v12148_v23, %v8040_v14 }
 0x6dd   : > { %v8078_v41 = vadd.f32 %v12148_v23, %v8039_v61 }
 0x6de   : > { %v8111_v53 = vmax.f32 %v8079_v25, 0.0 }
 0x6df   : > { %v8110_v10 = vmax.f32 %v8078_v41, 0.0 }
 0x6e0   : > { %8143 = vst.msk [vmem:[%s12160_s27 + $0x78] sm:$0xff] %vm2232_vm4, %v8111_v53 }
 0x6e1   : > { %8142 = vst.msk [vmem:[%s12160_s27 + $0x70] sm:$0xff] %vm2232_vm4, %v8110_v10 }
 0x6f1   : > { %v8617_v3 = vpop.f32.mrb[32].mxu1 }
 0x6f2   : > { %v8042_v38 = vmul.f32 %v8617_v3, %v12143_v40  ;;  %v7939_v50 = vpop.f32.mrb[33].mxu1 }
 0x6f3   : > { %v8041_v11 = vmul.f32 %v12143_v40, %v7939_v50 }
 0x6f4   : > { %v8081_v6 = vadd.f32 %v12148_v23, %v8042_v38 }
 0x6f5   : > { %v8080_v2 = vadd.f32 %v12148_v23, %v8041_v11 }
 0x6f6   : > { %v8113_v47 = vmax.f32 %v8081_v6, 0.0 }
 0x6f7   : > { %v8112_v29 = vmax.f32 %v8080_v2, 0.0 }
 0x6f8   : > { %8145 = vst.msk [vmem:[%s12160_s27 + $0x88] sm:$0xff] %vm2232_vm4, %v8113_v47 }
 0x6f9   : > { %8144 = vst.msk [vmem:[%s12160_s27 + $0x80] sm:$0xff] %vm2232_vm4, %v8112_v29 }
 0x709   : > { %v8620_v58 = vpop.f32.mrb[34].mxu1 }
 0x70a   : > { %v8044_v46 = vmul.f32 %v8620_v58, %v12143_v40  ;;  %v7949_v17 = vpop.f32.mrb[35].mxu1 }
 0x70b   : > { %v8043_v33 = vmul.f32 %v12143_v40, %v7949_v17 }
 0x70c   : > { %v8083_v45 = vadd.f32 %v12148_v23, %v8044_v46 }
 0x70d   : > { %v8082_v49 = vadd.f32 %v12148_v23, %v8043_v33 }
 0x70e   : > { %v8115_v16 = vmax.f32 %v8083_v45, 0.0 }
 0x70f   : > { %v8114_v13 = vmax.f32 %v8082_v49, 0.0 }
 0x710   : > { %8147 = vst.msk [vmem:[%s12160_s27 + $0x98] sm:$0xff] %vm2232_vm4, %v8115_v16 }
 0x711   : > { %8146 = vst.msk [vmem:[%s12160_s27 + $0x90] sm:$0xff] %vm2232_vm4, %v8114_v13 }
 0x721   : > { %v8623_v34 = vpop.f32.mrb[36].mxu1 }
 0x722   : > { %v8046_v44 = vmul.f32 %v8623_v34, %v12143_v40  ;;  %v7959_v4 = vpop.f32.mrb[37].mxu1 }
 0x723   : > { %v8045_v0 = vmul.f32 %v12143_v40, %v7959_v4 }
 0x724   : > { %v8085_v42 = vadd.f32 %v12148_v23, %v8046_v44 }
 0x725   : > { %v8084_v59 = vadd.f32 %v12148_v23, %v8045_v0 }
 0x726   : > { %v8117_v30 = vmax.f32 %v8085_v42, 0.0 }
 0x727   : > { %v8116_v62 = vmax.f32 %v8084_v59, 0.0 }
 0x728   : > { %8149 = vst.msk [vmem:[%s12160_s27 + $0xa8] sm:$0xff] %vm2232_vm4, %v8117_v30 }
 0x729   : > { %8148 = vst.msk [vmem:[%s12160_s27 + $0xa0] sm:$0xff] %vm2232_vm4, %v8116_v62 }
 0x739   : > { %v8626_v36 = vpop.f32.mrb[38].mxu1 }
 0x73a   : > { %v8048_v19 = vmul.f32 %v8626_v36, %v12143_v40  ;;  %v7969_v52 = vpop.f32.mrb[39].mxu1 }
 0x73b   : > { %v8047_v43 = vmul.f32 %v12143_v40, %v7969_v52 }
 0x73c   : > { %v8087_v24 = vadd.f32 %v12148_v23, %v8048_v19 }
 0x73d   : > { %v8086_v31 = vadd.f32 %v12148_v23, %v8047_v43 }
 0x73e   : > { %v8119_v7 = vmax.f32 %v8087_v24, 0.0 }
 0x73f   : > { %v8118_v28 = vmax.f32 %v8086_v31, 0.0 }
 0x740   : > { %8151 = vst.msk [vmem:[%s12160_s27 + $0xb8] sm:$0xff] %vm2232_vm4, %v8119_v7 }
 0x741   : > { %8150 = vst.msk [vmem:[%s12160_s27 + $0xb0] sm:$0xff] %vm2232_vm4, %v8118_v28 }
 0x751   : > { %v8629_v18 = vpop.f32.mrb[40].mxu1 }
 0x752   : > { %v8050_v57 = vmul.f32 %v8629_v18, %v12143_v40  ;;  %v7979_v21 = vpop.f32.mrb[41].mxu1 }
 0x753   : > { %v8049_v20 = vmul.f32 %v12143_v40, %v7979_v21 }
 0x754   : > { %v8089_v56 = vadd.f32 %v12148_v23, %v8050_v57 }
 0x755   : > { %v8088_v8 = vadd.f32 %v12148_v23, %v8049_v20 }
 0x756   : > { %v8121_v60 = vmax.f32 %v8089_v56, 0.0 }
 0x757   : > { %v8120_v55 = vmax.f32 %v8088_v8, 0.0 }
 0x758   : > { %8153 = vst.msk [vmem:[%s12160_s27 + $0xc8] sm:$0xff] %vm2232_vm4, %v8121_v60 }
 0x759   : > { %8152 = vst.msk [vmem:[%s12160_s27 + $0xc0] sm:$0xff] %vm2232_vm4, %v8120_v55 }
 0x769   : > { %v8632_v54 = vpop.f32.mrb[42].mxu1 }
 0x76a   : > { %v8052_v51 = vmul.f32 %v8632_v54, %v12143_v40  ;;  %v7989_v1 = vpop.f32.mrb[43].mxu1 }
 0x76b   : > { %v8051_v48 = vmul.f32 %v12143_v40, %v7989_v1 }
 0x76c   : > { %v8091_v35 = vadd.f32 %v12148_v23, %v8052_v51 }
 0x76d   : > { %v8090_v39 = vadd.f32 %v12148_v23, %v8051_v48 }
 0x76e   : > { %v8123_v32 = vmax.f32 %v8091_v35, 0.0 }
 0x76f   : > { %v8122_v37 = vmax.f32 %v8090_v39, 0.0 }
 0x770   : > { %8155 = vst.msk [vmem:[%s12160_s27 + $0xd8] sm:$0xff] %vm2232_vm4, %v8123_v32 }
 0x771   : > { %8154 = vst.msk [vmem:[%s12160_s27 + $0xd0] sm:$0xff] %vm2232_vm4, %v8122_v37 }
 0x781   : > { %v8635_v12 = vpop.f32.mrb[44].mxu1 }
 0x782   : > { %v8054_v9 = vmul.f32 %v8635_v12, %v12143_v40  ;;  %v7999_v26 = vpop.f32.mrb[45].mxu1 }
 0x783   : > { %v8053_v15 = vmul.f32 %v12143_v40, %v7999_v26 }
 0x784   : > { %v8093_v63 = vadd.f32 %v12148_v23, %v8054_v9 }
 0x785   : > { %v8092_v22 = vadd.f32 %v12148_v23, %v8053_v15 }
 0x786   : > { %v8125_v27 = vmax.f32 %v8093_v63, 0.0 }
 0x787   : > { %v8124_v14 = vmax.f32 %v8092_v22, 0.0 }
 0x788   : > { %8157 = vst.msk [vmem:[%s12160_s27 + $0xe8] sm:$0xff] %vm2232_vm4, %v8125_v27 }
 0x789   : > { %8156 = vst.msk [vmem:[%s12160_s27 + $0xe0] sm:$0xff] %vm2232_vm4, %v8124_v14 }
 0x78e   : > { %v8638_v5 = vpop.f32.mrb[46].mxu1 }
 0x78f   : > { %v8056_v61 = vmul.f32 %v8638_v5, %v12143_v40  ;;  %v8009_v25 = vpop.f32.mrb[47].mxu1 }
 0x790   : > { %v8055_v41 = vmul.f32 %v12143_v40, %v8009_v25 }
 0x791   : > { %v8095_v53 = vadd.f32 %v12148_v23, %v8056_v61 }
 0x792   : > { %v8094_v10 = vadd.f32 %v12148_v23, %v8055_v41 }
 0x793   : > { %v8127_v3 = vmax.f32 %v8095_v53, 0.0 }
 0x794   : > { %v8126_v38 = vmax.f32 %v8094_v10, 0.0 }
 0x795   : > { %8159 = vst.msk [vmem:[%s12160_s27 + $0xf8] sm:$0xff] %vm2232_vm4, %v8127_v3 }
 0x796   : > { %8158 = vst.msk [vmem:[%s12160_s27 + $0xf0] sm:$0xff] %vm2232_vm4, %v8126_v38 }
 0x797 PF: > { %s23_s25 = sadd.s32 1, %s8693_s25  }
 0x798   : > { %p20_p4 = scmp.ge.s32.totalorder %s23_s25, 4  }
 0x79a   :  { %22 = sbr.rel (!%p20_p4) target bundleno = 1 (0x1), region = 111 }

</bundles_post_ra>
